<compile_context>
chip_gen: v7x
topology: tpu7x:2x2x1
jax: 0.10.0
libtpu: 0.0.40
codegen_flags: <defaults>
</compile_context>

<pallas_src>
import jax
import jax.numpy as jnp
from jax.experimental import pallas as pl
from jax.experimental.pallas import tpu as pltpu

# ---- problem sizes (module defaults, small) ---------------------------------
B = 2              # batch
E = 32             # embedding_dim
H = 128            # hidden_dim
L = 10             # max_arch_len (real)
LP = 16            # padded in-kernel sequence length (sublane aligned)
SEQ = B * LP       # flattened padded sequence rows
NL = 3             # transformer layers
NH = 4             # attention heads
HD = H // NH       # head dim
FF = 2 * H         # feed-forward hidden
NLT = 6            # num_layer_types
NPT = 6            # num_precision_types
EPS = 1e-5         # LayerNorm eps (PyTorch default)

# ---- wenc slab row offsets (all multiples of 8, width 128, f32) --------------
R_W1E = 0          # embedding-encoder L1 (ee_w1 in rows 0:32)
R_W1D = 128        # dim-encoder L1 (de_w1 in rows 32:34, cols 0:32)
R_W2E = 256        # embedding-encoder L2
R_W2D = 384        # dim-encoder L2 (rows 0:32, cols 0:64)
R_WFE = 512        # fusion weight, embedding half (rows 0:128 of fu_w)
R_WFD = 640        # fusion weight, dim half (rows 128:192 of fu_w -> rows 0:64)
R_POS = 768        # positional embedding, padded to 16 rows
R_WLD1 = 784       # layer_dim_predictor L1 (cols 0:64)
R_WHX = 912        # seq-head weight from x   (ltp_w in cols 0:6)
R_WHH = 1040       # seq-head weight from h1  (ldp_w2 in rows 0:64, col 6)
R_WPP = 1168       # precision predictor (cols 0:12)
WENC_ROWS = 1296

# ---- vec slab rows (width 256, f32) ------------------------------------------
V_B1E, V_B1D, V_B2E, V_B2D = 0, 1, 2, 3
V_BFU, V_GFU, V_BEFU = 4, 5, 6
V_BLD1, V_BHEAD, V_BPREC = 7, 8, 9
V_TBASE = 10                 # + 10 rows per layer: bq,bk,bv,bo,g1,b1,bf1,bf2,g2,b2
VEC_ROWS = V_TBASE + 10 * NL
VEC_W = 256

# ---- transformer weight slab (bf16, width 256) -------------------------------
TW_LAYER_ROWS = 640          # [Wq|Wk]:0..128  [Wv|Wo]:128..256  Wf1:256..384  Wf2:384..640
TWGT_ROWS = NL * TW_LAYER_ROWS
TWGT_W = 256


def _layer_norm(x, g, b):
    # var = E[x^2] - E[x]^2 : both cross-lane reductions issue from x in parallel
    mu = jnp.mean(x, axis=-1, keepdims=True)
    var = jnp.mean(x * x, axis=-1, keepdims=True) - mu * mu
    return (x - mu) * jax.lax.rsqrt(var + EPS) * g + b


def model_architect_kernel(xin_ref, vec_ref, wenc_ref, twgt_ref, seq_ref, prec_ref):
    f32 = jnp.float32
    bf16 = jnp.bfloat16

    def vrow(r, w=H):
        return vec_ref[r:r + 1, 0:w]                       # (1, w) bias / affine row

    def mm(a, w):
        return jnp.dot(a, w, preferred_element_type=f32)

    xin = xin_ref[...]                                     # (B, 128): [emb | in_dim | out_dim | 0]

    # --- embedding / dim encoders (both first layers fused into lane-dense K=128 matmuls)
    e = jnp.maximum(mm(xin, wenc_ref[R_W1E:R_W1E + H, :]) + vrow(V_B1E), 0.0)
    d = jnp.maximum(mm(xin, wenc_ref[R_W1D:R_W1D + H, :]) + vrow(V_B1D), 0.0)
    e = jnp.maximum(mm(e, wenc_ref[R_W2E:R_W2E + H, :]) + vrow(V_B2E), 0.0)
    d = jnp.maximum(mm(d, wenc_ref[R_W2D:R_W2D + H, :]) + vrow(V_B2D), 0.0)

    # --- fusion: concat-free (split weight), LayerNorm, ReLU
    feats = (mm(e, wenc_ref[R_WFE:R_WFE + H, :]) +
             mm(d, wenc_ref[R_WFD:R_WFD + H, :]) + vrow(V_BFU))
    feats = _layer_norm(feats, vrow(V_GFU), vrow(V_BEFU))
    feats = jnp.maximum(feats, 0.0)                        # (B, H)

    # --- broadcast to (padded) sequence + positional embedding
    pos = wenc_ref[R_POS:R_POS + LP, :]                    # (LP, H), rows L..LP-1 are zero
    x = (feats[:, None, :] + pos[None, :, :]).reshape(SEQ, H)   # aligned reshape (16 % 8 == 0)

    # key-padding mask (positions >= L never attended to)
    kmask = jnp.where(jax.lax.broadcasted_iota(jnp.int32, (1, 1, LP), 2) < L,
                      0.0, -1e30).astype(f32)

    # --- TransformerEncoder: NL post-LN layers, ReLU feed-forward, bf16 matmuls
    scale = 1.0 / (HD ** 0.5)
    for l in range(NL):
        r0 = l * TW_LAYER_ROWS
        vb = V_TBASE + 10 * l

        xb = x.astype(bf16)
        q = mm(xb, twgt_ref[r0:r0 + H, 0:H]) + vrow(vb + 0)
        k = mm(xb, twgt_ref[r0:r0 + H, H:2 * H]) + vrow(vb + 1)
        v = mm(xb, twgt_ref[r0 + H:r0 + 2 * H, 0:H]) + vrow(vb + 2)
        q3 = q.reshape(B, LP, H).astype(bf16)              # aligned reshapes
        k3 = k.reshape(B, LP, H).astype(bf16)
        v3 = v.reshape(B, LP, H).astype(bf16)

        heads = []
        for h in range(NH):
            sl = slice(h * HD, (h + 1) * HD)
            s = jnp.einsum('bqd,bkd->bqk', q3[:, :, sl], k3[:, :, sl],
                           preferred_element_type=f32)
            s = s * scale + kmask
            s = s - jnp.max(s, axis=-1, keepdims=True)
            p = jnp.exp(s)
            p = p * pl.reciprocal(jnp.sum(p, axis=-1, keepdims=True), approx=True)
            heads.append(jnp.einsum('bqk,bkd->bqd', p.astype(bf16), v3[:, :, sl],
                                    preferred_element_type=f32))
        attn = jnp.concatenate(heads, axis=-1).reshape(SEQ, H)
        attn = mm(attn.astype(bf16), twgt_ref[r0 + H:r0 + 2 * H, H:2 * H]) + vrow(vb + 3)

        x = _layer_norm(x + attn, vrow(vb + 4), vrow(vb + 5))
        ff = jnp.maximum(mm(x.astype(bf16), twgt_ref[r0 + 2 * H:r0 + 3 * H, 0:FF])
                         + vec_ref[vb + 6:vb + 7, 0:FF], 0.0)
        ff = mm(ff.astype(bf16), twgt_ref[r0 + 3 * H:r0 + 3 * H + FF, 0:H]) + vrow(vb + 7)
        x = _layer_norm(x + ff, vrow(vb + 8), vrow(vb + 9))

    # --- prediction heads, written as lane-dense 128-wide slabs
    h1 = jnp.maximum(mm(x, wenc_ref[R_WLD1:R_WLD1 + H, :]) + vrow(V_BLD1), 0.0)
    seq_ref[...] = (mm(x, wenc_ref[R_WHX:R_WHX + H, :]) +
                    mm(h1, wenc_ref[R_WHH:R_WHH + H, :]) + vrow(V_BHEAD))
    prec_ref[...] = mm(feats, wenc_ref[R_WPP:R_WPP + H, :]) + vrow(V_BPREC)


def init_params(key):
    """Deterministic synthetic parameters, shapes match ModelArchitect.__init__."""
    def w(shape, scale=0.05):
        nonlocal key
        key, sub = jax.random.split(key)
        return (scale * jax.random.normal(sub, shape)).astype(jnp.float32)

    params = []
    # dim_encoder: Linear(2, H/4) -> ReLU -> Linear(H/4, H/2) -> ReLU
    params += [w((2, H // 4)), w((1, H // 4)), w((H // 4, H // 2)), w((1, H // 2))]
    # embedding_encoder: Linear(E, H) -> ReLU -> Linear(H, H) -> ReLU
    params += [w((E, H)), w((1, H)), w((H, H)), w((1, H))]
    # fusion_layer: Linear(H + H/2, H) + LayerNorm(H)
    params += [w((H + H // 2, H)), w((1, H)),
               jnp.ones((1, H), jnp.float32), jnp.zeros((1, H), jnp.float32)]
    # pos_encoder: Embedding(L, H)
    params += [w((L, H))]
    # transformer encoder layers (stacked on leading NL axis)
    params += [w((NL, H, 3 * H)), w((NL, 1, 3 * H)),     # attn in_proj
               w((NL, H, H)), w((NL, 1, H)),             # attn out_proj
               jnp.ones((NL, 1, H), jnp.float32), jnp.zeros((NL, 1, H), jnp.float32),  # norm1
               w((NL, H, 2 * H)), w((NL, 1, 2 * H)),     # ff linear1
               w((NL, 2 * H, H)), w((NL, 1, H)),         # ff linear2
               jnp.ones((NL, 1, H), jnp.float32), jnp.zeros((NL, 1, H), jnp.float32)]  # norm2
    # layer_type_predictor
    params += [w((H, NLT)), w((1, NLT))]
    # layer_dim_predictor
    params += [w((H, H // 2)), w((1, H // 2)), w((H // 2, 1)), w((1, 1))]
    # precision_predictor
    params += [w((H, 2 * NPT)), w((1, 2 * NPT))]
    return tuple(params)


def pack_params(params):
    """One-time packing of the 33 logical params into 3 lane-dense slabs."""
    (de_w1, de_b1, de_w2, de_b2,
     ee_w1, ee_b1, ee_w2, ee_b2,
     fu_w, fu_b, fu_g, fu_beta,
     pos,
     t_inw, t_inb, t_ow, t_ob, t_n1g, t_n1b,
     t_f1w, t_f1b, t_f2w, t_f2b, t_n2g, t_n2b,
     ltp_w, ltp_b,
     ldp_w1, ldp_b1, ldp_w2, ldp_b2,
     pp_w, pp_b) = params

    # ---- f32 encoder / head weight slab -------------------------------------
    wenc = jnp.zeros((WENC_ROWS, H), jnp.float32)
    wenc = wenc.at[R_W1E:R_W1E + E, :].set(ee_w1)
    wenc = wenc.at[R_W1D + E:R_W1D + E + 2, 0:H // 4].set(de_w1)
    wenc = wenc.at[R_W2E:R_W2E + H, :].set(ee_w2)
    wenc = wenc.at[R_W2D:R_W2D + H // 4, 0:H // 2].set(de_w2)
    wenc = wenc.at[R_WFE:R_WFE + H, :].set(fu_w[0:H, :])
    wenc = wenc.at[R_WFD:R_WFD + H // 2, :].set(fu_w[H:H + H // 2, :])
    wenc = wenc.at[R_POS:R_POS + L, :].set(pos)
    wenc = wenc.at[R_WLD1:R_WLD1 + H, 0:H // 2].set(ldp_w1)
    wenc = wenc.at[R_WHX:R_WHX + H, 0:NLT].set(ltp_w)
    wenc = wenc.at[R_WHH:R_WHH + H // 2, NLT:NLT + 1].set(ldp_w2)
    wenc = wenc.at[R_WPP:R_WPP + H, 0:2 * NPT].set(pp_w)

    # ---- f32 bias / affine slab ----------------------------------------------
    vec = jnp.zeros((VEC_ROWS, VEC_W), jnp.float32)
    vec = vec.at[V_B1E, 0:H].set(ee_b1[0])
    vec = vec.at[V_B1D, 0:H // 4].set(de_b1[0])
    vec = vec.at[V_B2E, 0:H].set(ee_b2[0])
    vec = vec.at[V_B2D, 0:H // 2].set(de_b2[0])
    vec = vec.at[V_BFU, 0:H].set(fu_b[0])
    vec = vec.at[V_GFU, 0:H].set(fu_g[0])
    vec = vec.at[V_BEFU, 0:H].set(fu_beta[0])
    vec = vec.at[V_BLD1, 0:H // 2].set(ldp_b1[0])
    vec = vec.at[V_BHEAD, 0:NLT].set(ltp_b[0])
    vec = vec.at[V_BHEAD, NLT].set(ldp_b2[0, 0])
    vec = vec.at[V_BPREC, 0:2 * NPT].set(pp_b[0])
    for l in range(NL):
        r = V_TBASE + 10 * l
        vec = vec.at[r + 0, 0:H].set(t_inb[l, 0, 0:H])
        vec = vec.at[r + 1, 0:H].set(t_inb[l, 0, H:2 * H])
        vec = vec.at[r + 2, 0:H].set(t_inb[l, 0, 2 * H:3 * H])
        vec = vec.at[r + 3, 0:H].set(t_ob[l, 0])
        vec = vec.at[r + 4, 0:H].set(t_n1g[l, 0])
        vec = vec.at[r + 5, 0:H].set(t_n1b[l, 0])
        vec = vec.at[r + 6, 0:FF].set(t_f1b[l, 0])
        vec = vec.at[r + 7, 0:H].set(t_f2b[l, 0])
        vec = vec.at[r + 8, 0:H].set(t_n2g[l, 0])
        vec = vec.at[r + 9, 0:H].set(t_n2b[l, 0])

    # ---- bf16 transformer weight slab ----------------------------------------
    tw = jnp.zeros((TWGT_ROWS, TWGT_W), jnp.float32)
    for l in range(NL):
        r = l * TW_LAYER_ROWS
        tw = tw.at[r:r + H, 0:H].set(t_inw[l, :, 0:H])              # Wq
        tw = tw.at[r:r + H, H:2 * H].set(t_inw[l, :, H:2 * H])      # Wk
        tw = tw.at[r + H:r + 2 * H, 0:H].set(t_inw[l, :, 2 * H:3 * H])   # Wv
        tw = tw.at[r + H:r + 2 * H, H:2 * H].set(t_ow[l])           # Wo
        tw = tw.at[r + 2 * H:r + 3 * H, 0:FF].set(t_f1w[l])         # Wf1
        tw = tw.at[r + 3 * H:r + 3 * H + FF, 0:H].set(t_f2w[l])     # Wf2
    twgt = tw.astype(jnp.bfloat16)

    return vec, wenc, twgt


def model_architect_forward(packed, embedding, input_dim, output_dim):
    vec, wenc, twgt = packed
    assert embedding.shape[0] == B

    # combined lane-dense input row: [embedding | input_dim | output_dim | zeros]
    xin = jnp.zeros((B, H), jnp.float32)
    xin = xin.at[:, 0:E].set(embedding.astype(jnp.float32))
    xin = xin.at[:, E].set(input_dim.astype(jnp.float32))
    xin = xin.at[:, E + 1].set(output_dim.astype(jnp.float32))

    vmem = pl.BlockSpec(memory_space=pltpu.MemorySpace.VMEM)
    seq_out, prec_out = pl.pallas_call(
        model_architect_kernel,
        out_shape=(jax.ShapeDtypeStruct((SEQ, H), jnp.float32),
                   jax.ShapeDtypeStruct((B, H), jnp.float32)),
        in_specs=(vmem, vmem, vmem, vmem),
        out_specs=(vmem, vmem),
    )(xin, vec, wenc, twgt)

    seq = seq_out.reshape(B, LP, H)[:, :L, :]     # drop padded positions (wrapper, free)
    return {
        'layer_types_logits': seq[:, :, 0:NLT],
        'layer_dims': seq[:, :, NLT],
        'input_precision_logits': prec_out[:, 0:NPT],
        'output_precision_logits': prec_out[:, NPT:2 * NPT],
    }


if __name__ == "__main__":
    key = jax.random.PRNGKey(0)
    kp, ke, ki, ko = jax.random.split(key, 4)
    params = init_params(kp)
    packed = pack_params(params)

    embedding = jax.random.normal(ke, (B, E), jnp.float32)
    input_dim = jax.random.uniform(ki, (B,), jnp.float32, 1.0, 512.0)
    output_dim = jax.random.uniform(ko, (B,), jnp.float32, 1.0, 64.0)

    out = model_architect_forward(packed, embedding, input_dim, output_dim)
    out = jax.tree_util.tree_map(jax.block_until_ready, out)

    assert out['layer_types_logits'].shape == (B, L, NLT)
    assert out['layer_dims'].shape == (B, L)
    assert out['input_precision_logits'].shape == (B, NPT)
    assert out['output_precision_logits'].shape == (B, NPT)
    assert all(bool(jnp.all(jnp.isfinite(v))) for v in out.values())
    print("KERNEL_OK")
</pallas_src>

<mosaic_0001>
module attributes {stable_mosaic.version = 11 : i64} {
  func.func @model_architect_kernel(%arg0: memref<2x128xf32, #tpu.memory_space<vmem>>, %arg1: memref<40x256xf32, #tpu.memory_space<vmem>>, %arg2: memref<1296x128xf32, #tpu.memory_space<vmem>>, %arg3: memref<1920x256xbf16, #tpu.memory_space<vmem>>, %arg4: memref<32x128xf32, #tpu.memory_space<vmem>>, %arg5: memref<2x128xf32, #tpu.memory_space<vmem>>) attributes {dimension_semantics = [], scalar_prefetch = 0 : i64, scratch_operands = 0 : i64, tpu.core_type = #tpu.core_type<tc>} {
    %c0 = arith.constant 0 : index
    %c0_0 = arith.constant 0 : index
    %0 = vector.load %arg0[%c0, %c0_0] : memref<2x128xf32, #tpu.memory_space<vmem>>, vector<2x128xf32>
    %c0_1 = arith.constant 0 : index
    %c0_2 = arith.constant 0 : index
    %1 = vector.load %arg2[%c0_1, %c0_2] : memref<1296x128xf32, #tpu.memory_space<vmem>>, vector<128x128xf32>
    %cst = arith.constant dense<0.000000e+00> : vector<2x128xf32>
    %2 = tpu.matmul %0, %1, %cst {dimension_numbers = #tpu.dot_dimension_numbers<[1], [0], [0], [1], [0, 0, 1, 1], [], []>} : vector<2x128xf32>, vector<128x128xf32>, vector<2x128xf32> -> vector<2x128xf32>
    %c0_3 = arith.constant 0 : index
    %c0_4 = arith.constant 0 : index
    %3 = vector.load %arg1[%c0_3, %c0_4] : memref<40x256xf32, #tpu.memory_space<vmem>>, vector<1x128xf32>
    %4 = vector.broadcast %3 : vector<1x128xf32> to vector<2x128xf32>
    %5 = arith.addf %2, %4 : vector<2x128xf32>
    %cst_5 = arith.constant 0.000000e+00 : f32
    %6 = vector.broadcast %cst_5 : f32 to vector<2x128xf32>
    %7 = arith.maximumf %5, %6 : vector<2x128xf32>
    %c128 = arith.constant 128 : index
    %c0_6 = arith.constant 0 : index
    %8 = vector.load %arg2[%c128, %c0_6] : memref<1296x128xf32, #tpu.memory_space<vmem>>, vector<128x128xf32>
    %cst_7 = arith.constant dense<0.000000e+00> : vector<2x128xf32>
    %9 = tpu.matmul %0, %8, %cst_7 {dimension_numbers = #tpu.dot_dimension_numbers<[1], [0], [0], [1], [0, 0, 1, 1], [], []>} : vector<2x128xf32>, vector<128x128xf32>, vector<2x128xf32> -> vector<2x128xf32>
    %c1 = arith.constant 1 : index
    %c0_8 = arith.constant 0 : index
    %10 = vector.load %arg1[%c1, %c0_8] : memref<40x256xf32, #tpu.memory_space<vmem>>, vector<1x128xf32>
    %11 = vector.broadcast %10 : vector<1x128xf32> to vector<2x128xf32>
    %12 = arith.addf %9, %11 : vector<2x128xf32>
    %cst_9 = arith.constant 0.000000e+00 : f32
    %13 = vector.broadcast %cst_9 : f32 to vector<2x128xf32>
    %14 = arith.maximumf %12, %13 : vector<2x128xf32>
    %c256 = arith.constant 256 : index
    %c0_10 = arith.constant 0 : index
    %15 = vector.load %arg2[%c256, %c0_10] : memref<1296x128xf32, #tpu.memory_space<vmem>>, vector<128x128xf32>
    %cst_11 = arith.constant dense<0.000000e+00> : vector<2x128xf32>
    %16 = tpu.matmul %7, %15, %cst_11 {dimension_numbers = #tpu.dot_dimension_numbers<[1], [0], [0], [1], [0, 0, 1, 1], [], []>} : vector<2x128xf32>, vector<128x128xf32>, vector<2x128xf32> -> vector<2x128xf32>
    %c2 = arith.constant 2 : index
    %c0_12 = arith.constant 0 : index
    %17 = vector.load %arg1[%c2, %c0_12] : memref<40x256xf32, #tpu.memory_space<vmem>>, vector<1x128xf32>
    %18 = vector.broadcast %17 : vector<1x128xf32> to vector<2x128xf32>
    %19 = arith.addf %16, %18 : vector<2x128xf32>
    %cst_13 = arith.constant 0.000000e+00 : f32
    %20 = vector.broadcast %cst_13 : f32 to vector<2x128xf32>
    %21 = arith.maximumf %19, %20 : vector<2x128xf32>
    %c384 = arith.constant 384 : index
    %c0_14 = arith.constant 0 : index
    %22 = vector.load %arg2[%c384, %c0_14] : memref<1296x128xf32, #tpu.memory_space<vmem>>, vector<128x128xf32>
    %cst_15 = arith.constant dense<0.000000e+00> : vector<2x128xf32>
    %23 = tpu.matmul %14, %22, %cst_15 {dimension_numbers = #tpu.dot_dimension_numbers<[1], [0], [0], [1], [0, 0, 1, 1], [], []>} : vector<2x128xf32>, vector<128x128xf32>, vector<2x128xf32> -> vector<2x128xf32>
    %c3 = arith.constant 3 : index
    %c0_16 = arith.constant 0 : index
    %24 = vector.load %arg1[%c3, %c0_16] : memref<40x256xf32, #tpu.memory_space<vmem>>, vector<1x128xf32>
    %25 = vector.broadcast %24 : vector<1x128xf32> to vector<2x128xf32>
    %26 = arith.addf %23, %25 : vector<2x128xf32>
    %cst_17 = arith.constant 0.000000e+00 : f32
    %27 = vector.broadcast %cst_17 : f32 to vector<2x128xf32>
    %28 = arith.maximumf %26, %27 : vector<2x128xf32>
    %c512 = arith.constant 512 : index
    %c0_18 = arith.constant 0 : index
    %29 = vector.load %arg2[%c512, %c0_18] : memref<1296x128xf32, #tpu.memory_space<vmem>>, vector<128x128xf32>
    %cst_19 = arith.constant dense<0.000000e+00> : vector<2x128xf32>
    %30 = tpu.matmul %21, %29, %cst_19 {dimension_numbers = #tpu.dot_dimension_numbers<[1], [0], [0], [1], [0, 0, 1, 1], [], []>} : vector<2x128xf32>, vector<128x128xf32>, vector<2x128xf32> -> vector<2x128xf32>
    %c640 = arith.constant 640 : index
    %c0_20 = arith.constant 0 : index
    %31 = vector.load %arg2[%c640, %c0_20] : memref<1296x128xf32, #tpu.memory_space<vmem>>, vector<128x128xf32>
    %cst_21 = arith.constant dense<0.000000e+00> : vector<2x128xf32>
    %32 = tpu.matmul %28, %31, %cst_21 {dimension_numbers = #tpu.dot_dimension_numbers<[1], [0], [0], [1], [0, 0, 1, 1], [], []>} : vector<2x128xf32>, vector<128x128xf32>, vector<2x128xf32> -> vector<2x128xf32>
    %33 = arith.addf %30, %32 : vector<2x128xf32>
    %c4 = arith.constant 4 : index
    %c0_22 = arith.constant 0 : index
    %34 = vector.load %arg1[%c4, %c0_22] : memref<40x256xf32, #tpu.memory_space<vmem>>, vector<1x128xf32>
    %35 = vector.broadcast %34 : vector<1x128xf32> to vector<2x128xf32>
    %36 = arith.addf %33, %35 : vector<2x128xf32>
    %c5 = arith.constant 5 : index
    %c0_23 = arith.constant 0 : index
    %37 = vector.load %arg1[%c5, %c0_23] : memref<40x256xf32, #tpu.memory_space<vmem>>, vector<1x128xf32>
    %c6 = arith.constant 6 : index
    %c0_24 = arith.constant 0 : index
    %38 = vector.load %arg1[%c6, %c0_24] : memref<40x256xf32, #tpu.memory_space<vmem>>, vector<1x128xf32>
    %cst_25 = arith.constant dense<0.000000e+00> : vector<2xf32>
    %39 = vector.multi_reduction <add>, %36, %cst_25 [1] : vector<2x128xf32> to vector<2xf32>
    %40 = vector.shape_cast %39 : vector<2xf32> to vector<2x1xf32>
    %cst_26 = arith.constant 1.280000e+02 : f32
    %41 = vector.broadcast %cst_26 : f32 to vector<2x1xf32>
    %42 = arith.divf %40, %41 : vector<2x1xf32>
    %43 = arith.mulf %36, %36 : vector<2x128xf32>
    %cst_27 = arith.constant dense<0.000000e+00> : vector<2xf32>
    %44 = vector.multi_reduction <add>, %43, %cst_27 [1] : vector<2x128xf32> to vector<2xf32>
    %45 = vector.shape_cast %44 : vector<2xf32> to vector<2x1xf32>
    %cst_28 = arith.constant 1.280000e+02 : f32
    %46 = vector.broadcast %cst_28 : f32 to vector<2x1xf32>
    %47 = arith.divf %45, %46 : vector<2x1xf32>
    %48 = arith.mulf %42, %42 : vector<2x1xf32>
    %49 = arith.subf %47, %48 : vector<2x1xf32>
    %50 = vector.broadcast %42 : vector<2x1xf32> to vector<2x128xf32>
    %51 = arith.subf %36, %50 : vector<2x128xf32>
    %cst_29 = arith.constant 9.99999974E-6 : f32
    %52 = vector.broadcast %cst_29 : f32 to vector<2x1xf32>
    %53 = arith.addf %49, %52 : vector<2x1xf32>
    %54 = math.rsqrt %53 : vector<2x1xf32>
    %55 = vector.broadcast %54 : vector<2x1xf32> to vector<2x128xf32>
    %56 = arith.mulf %51, %55 : vector<2x128xf32>
    %57 = vector.broadcast %37 : vector<1x128xf32> to vector<2x128xf32>
    %58 = arith.mulf %56, %57 : vector<2x128xf32>
    %59 = vector.broadcast %38 : vector<1x128xf32> to vector<2x128xf32>
    %60 = arith.addf %58, %59 : vector<2x128xf32>
    %cst_30 = arith.constant 0.000000e+00 : f32
    %61 = vector.broadcast %cst_30 : f32 to vector<2x128xf32>
    %62 = arith.maximumf %60, %61 : vector<2x128xf32>
    %c768 = arith.constant 768 : index
    %c0_31 = arith.constant 0 : index
    %63 = vector.load %arg2[%c768, %c0_31] : memref<1296x128xf32, #tpu.memory_space<vmem>>, vector<16x128xf32>
    %64 = vector.shape_cast %62 : vector<2x128xf32> to vector<2x1x128xf32>
    %65 = vector.shape_cast %63 : vector<16x128xf32> to vector<1x16x128xf32>
    %66 = vector.broadcast %64 : vector<2x1x128xf32> to vector<2x16x128xf32>
    %67 = vector.broadcast %65 : vector<1x16x128xf32> to vector<2x16x128xf32>
    %68 = arith.addf %66, %67 : vector<2x16x128xf32>
    %69 = vector.shape_cast %68 : vector<2x16x128xf32> to vector<32x128xf32>
    %70 = tpu.iota {dimensions = array<i32: 2>} : vector<1x1x16xi32>
    %c10_i32 = arith.constant 10 : i32
    %71 = vector.broadcast %c10_i32 : i32 to vector<1x1x16xi32>
    %72 = arith.cmpi slt, %70, %71 : vector<1x1x16xi32>
    %cst_32 = arith.constant 0.000000e+00 : f32
    %cst_33 = arith.constant -1.000000e+30 : f32
    %73 = vector.broadcast %cst_32 : f32 to vector<1x1x16xf32>
    %74 = vector.broadcast %cst_33 : f32 to vector<1x1x16xf32>
    %75 = arith.select %72, %73, %74 : vector<1x1x16xi1>, vector<1x1x16xf32>
    %76 = arith.truncf %69 : vector<32x128xf32> to vector<32x128xbf16>
    %c0_34 = arith.constant 0 : index
    %c0_35 = arith.constant 0 : index
    %77 = vector.load %arg3[%c0_34, %c0_35] : memref<1920x256xbf16, #tpu.memory_space<vmem>>, vector<128x128xbf16>
    %cst_36 = arith.constant dense<0.000000e+00> : vector<32x128xf32>
    %78 = tpu.matmul %76, %77, %cst_36 {dimension_numbers = #tpu.dot_dimension_numbers<[1], [0], [0], [1], [0, 0, 1, 1], [], []>} : vector<32x128xbf16>, vector<128x128xbf16>, vector<32x128xf32> -> vector<32x128xf32>
    %c10 = arith.constant 10 : index
    %c0_37 = arith.constant 0 : index
    %79 = vector.load %arg1[%c10, %c0_37] : memref<40x256xf32, #tpu.memory_space<vmem>>, vector<1x128xf32>
    %80 = vector.broadcast %79 : vector<1x128xf32> to vector<32x128xf32>
    %81 = arith.addf %78, %80 : vector<32x128xf32>
    %c0_38 = arith.constant 0 : index
    %c128_39 = arith.constant 128 : index
    %82 = vector.load %arg3[%c0_38, %c128_39] : memref<1920x256xbf16, #tpu.memory_space<vmem>>, vector<128x128xbf16>
    %cst_40 = arith.constant dense<0.000000e+00> : vector<32x128xf32>
    %83 = tpu.matmul %76, %82, %cst_40 {dimension_numbers = #tpu.dot_dimension_numbers<[1], [0], [0], [1], [0, 0, 1, 1], [], []>} : vector<32x128xbf16>, vector<128x128xbf16>, vector<32x128xf32> -> vector<32x128xf32>
    %c11 = arith.constant 11 : index
    %c0_41 = arith.constant 0 : index
    %84 = vector.load %arg1[%c11, %c0_41] : memref<40x256xf32, #tpu.memory_space<vmem>>, vector<1x128xf32>
    %85 = vector.broadcast %84 : vector<1x128xf32> to vector<32x128xf32>
    %86 = arith.addf %83, %85 : vector<32x128xf32>
    %c128_42 = arith.constant 128 : index
    %c0_43 = arith.constant 0 : index
    %87 = vector.load %arg3[%c128_42, %c0_43] : memref<1920x256xbf16, #tpu.memory_space<vmem>>, vector<128x128xbf16>
    %cst_44 = arith.constant dense<0.000000e+00> : vector<32x128xf32>
    %88 = tpu.matmul %76, %87, %cst_44 {dimension_numbers = #tpu.dot_dimension_numbers<[1], [0], [0], [1], [0, 0, 1, 1], [], []>} : vector<32x128xbf16>, vector<128x128xbf16>, vector<32x128xf32> -> vector<32x128xf32>
    %c12 = arith.constant 12 : index
    %c0_45 = arith.constant 0 : index
    %89 = vector.load %arg1[%c12, %c0_45] : memref<40x256xf32, #tpu.memory_space<vmem>>, vector<1x128xf32>
    %90 = vector.broadcast %89 : vector<1x128xf32> to vector<32x128xf32>
    %91 = arith.addf %88, %90 : vector<32x128xf32>
    %92 = vector.shape_cast %81 : vector<32x128xf32> to vector<2x16x128xf32>
    %93 = arith.truncf %92 : vector<2x16x128xf32> to vector<2x16x128xbf16>
    %94 = vector.shape_cast %86 : vector<32x128xf32> to vector<2x16x128xf32>
    %95 = arith.truncf %94 : vector<2x16x128xf32> to vector<2x16x128xbf16>
    %96 = vector.shape_cast %91 : vector<32x128xf32> to vector<2x16x128xf32>
    %97 = arith.truncf %96 : vector<2x16x128xf32> to vector<2x16x128xbf16>
    %98 = vector.extract_strided_slice %93 {offsets = [0, 0, 0], sizes = [2, 16, 32], strides = [1, 1, 1]} : vector<2x16x128xbf16> to vector<2x16x32xbf16>
    %99 = vector.extract_strided_slice %95 {offsets = [0, 0, 0], sizes = [2, 16, 32], strides = [1, 1, 1]} : vector<2x16x128xbf16> to vector<2x16x32xbf16>
    "tpu.trace_start"() <{level = 10 : i32, message = "bqd,bkd->bqk"}> : () -> ()
    %cst_46 = arith.constant dense<0.000000e+00> : vector<2x16x16xf32>
    %100 = tpu.matmul %98, %99, %cst_46 {dimension_numbers = #tpu.dot_dimension_numbers<[2], [2], [1], [1], [0, 0, 0, 1, 1, 1], [0], [0]>} : vector<2x16x32xbf16>, vector<2x16x32xbf16>, vector<2x16x16xf32> -> vector<2x16x16xf32>
    "tpu.trace_stop"() : () -> ()
    %cst_47 = arith.constant 0.176776692 : f32
    %101 = vector.broadcast %cst_47 : f32 to vector<2x16x16xf32>
    %102 = arith.mulf %100, %101 : vector<2x16x16xf32>
    %103 = vector.broadcast %75 : vector<1x1x16xf32> to vector<2x16x16xf32>
    %104 = arith.addf %102, %103 : vector<2x16x16xf32>
    %cst_48 = arith.constant dense<0xFF800000> : vector<2x16xf32>
    %105 = vector.multi_reduction <maximumf>, %104, %cst_48 [2] : vector<2x16x16xf32> to vector<2x16xf32>
    %106 = vector.shape_cast %105 : vector<2x16xf32> to vector<2x16x1xf32>
    %107 = vector.broadcast %106 : vector<2x16x1xf32> to vector<2x16x16xf32>
    %108 = arith.subf %104, %107 : vector<2x16x16xf32>
    %109 = math.exp %108 : vector<2x16x16xf32>
    %cst_49 = arith.constant dense<0.000000e+00> : vector<2x16xf32>
    %110 = vector.multi_reduction <add>, %109, %cst_49 [2] : vector<2x16x16xf32> to vector<2x16xf32>
    %111 = vector.shape_cast %110 : vector<2x16xf32> to vector<2x16x1xf32>
    %112 = tpu.reciprocal %111 {approx = true} : vector<2x16x1xf32> -> vector<2x16x1xf32>
    %113 = vector.broadcast %112 : vector<2x16x1xf32> to vector<2x16x16xf32>
    %114 = arith.mulf %109, %113 : vector<2x16x16xf32>
    %115 = arith.truncf %114 : vector<2x16x16xf32> to vector<2x16x16xbf16>
    %116 = vector.extract_strided_slice %97 {offsets = [0, 0, 0], sizes = [2, 16, 32], strides = [1, 1, 1]} : vector<2x16x128xbf16> to vector<2x16x32xbf16>
    "tpu.trace_start"() <{level = 10 : i32, message = "bqk,bkd->bqd"}> : () -> ()
    %cst_50 = arith.constant dense<0.000000e+00> : vector<2x16x32xf32>
    %117 = tpu.matmul %115, %116, %cst_50 {dimension_numbers = #tpu.dot_dimension_numbers<[2], [1], [1], [2], [0, 0, 0, 1, 1, 2], [0], [0]>} : vector<2x16x16xbf16>, vector<2x16x32xbf16>, vector<2x16x32xf32> -> vector<2x16x32xf32>
    "tpu.trace_stop"() : () -> ()
    %118 = vector.extract_strided_slice %93 {offsets = [0, 0, 32], sizes = [2, 16, 32], strides = [1, 1, 1]} : vector<2x16x128xbf16> to vector<2x16x32xbf16>
    %119 = vector.extract_strided_slice %95 {offsets = [0, 0, 32], sizes = [2, 16, 32], strides = [1, 1, 1]} : vector<2x16x128xbf16> to vector<2x16x32xbf16>
    "tpu.trace_start"() <{level = 10 : i32, message = "bqd,bkd->bqk"}> : () -> ()
    %cst_51 = arith.constant dense<0.000000e+00> : vector<2x16x16xf32>
    %120 = tpu.matmul %118, %119, %cst_51 {dimension_numbers = #tpu.dot_dimension_numbers<[2], [2], [1], [1], [0, 0, 0, 1, 1, 1], [0], [0]>} : vector<2x16x32xbf16>, vector<2x16x32xbf16>, vector<2x16x16xf32> -> vector<2x16x16xf32>
    "tpu.trace_stop"() : () -> ()
    %cst_52 = arith.constant 0.176776692 : f32
    %121 = vector.broadcast %cst_52 : f32 to vector<2x16x16xf32>
    %122 = arith.mulf %120, %121 : vector<2x16x16xf32>
    %123 = vector.broadcast %75 : vector<1x1x16xf32> to vector<2x16x16xf32>
    %124 = arith.addf %122, %123 : vector<2x16x16xf32>
    %cst_53 = arith.constant dense<0xFF800000> : vector<2x16xf32>
    %125 = vector.multi_reduction <maximumf>, %124, %cst_53 [2] : vector<2x16x16xf32> to vector<2x16xf32>
    %126 = vector.shape_cast %125 : vector<2x16xf32> to vector<2x16x1xf32>
    %127 = vector.broadcast %126 : vector<2x16x1xf32> to vector<2x16x16xf32>
    %128 = arith.subf %124, %127 : vector<2x16x16xf32>
    %129 = math.exp %128 : vector<2x16x16xf32>
    %cst_54 = arith.constant dense<0.000000e+00> : vector<2x16xf32>
    %130 = vector.multi_reduction <add>, %129, %cst_54 [2] : vector<2x16x16xf32> to vector<2x16xf32>
    %131 = vector.shape_cast %130 : vector<2x16xf32> to vector<2x16x1xf32>
    %132 = tpu.reciprocal %131 {approx = true} : vector<2x16x1xf32> -> vector<2x16x1xf32>
    %133 = vector.broadcast %132 : vector<2x16x1xf32> to vector<2x16x16xf32>
    %134 = arith.mulf %129, %133 : vector<2x16x16xf32>
    %135 = arith.truncf %134 : vector<2x16x16xf32> to vector<2x16x16xbf16>
    %136 = vector.extract_strided_slice %97 {offsets = [0, 0, 32], sizes = [2, 16, 32], strides = [1, 1, 1]} : vector<2x16x128xbf16> to vector<2x16x32xbf16>
    "tpu.trace_start"() <{level = 10 : i32, message = "bqk,bkd->bqd"}> : () -> ()
    %cst_55 = arith.constant dense<0.000000e+00> : vector<2x16x32xf32>
    %137 = tpu.matmul %135, %136, %cst_55 {dimension_numbers = #tpu.dot_dimension_numbers<[2], [1], [1], [2], [0, 0, 0, 1, 1, 2], [0], [0]>} : vector<2x16x16xbf16>, vector<2x16x32xbf16>, vector<2x16x32xf32> -> vector<2x16x32xf32>
    "tpu.trace_stop"() : () -> ()
    %138 = vector.extract_strided_slice %93 {offsets = [0, 0, 64], sizes = [2, 16, 32], strides = [1, 1, 1]} : vector<2x16x128xbf16> to vector<2x16x32xbf16>
    %139 = vector.extract_strided_slice %95 {offsets = [0, 0, 64], sizes = [2, 16, 32], strides = [1, 1, 1]} : vector<2x16x128xbf16> to vector<2x16x32xbf16>
    "tpu.trace_start"() <{level = 10 : i32, message = "bqd,bkd->bqk"}> : () -> ()
    %cst_56 = arith.constant dense<0.000000e+00> : vector<2x16x16xf32>
    %140 = tpu.matmul %138, %139, %cst_56 {dimension_numbers = #tpu.dot_dimension_numbers<[2], [2], [1], [1], [0, 0, 0, 1, 1, 1], [0], [0]>} : vector<2x16x32xbf16>, vector<2x16x32xbf16>, vector<2x16x16xf32> -> vector<2x16x16xf32>
    "tpu.trace_stop"() : () -> ()
    %cst_57 = arith.constant 0.176776692 : f32
    %141 = vector.broadcast %cst_57 : f32 to vector<2x16x16xf32>
    %142 = arith.mulf %140, %141 : vector<2x16x16xf32>
    %143 = vector.broadcast %75 : vector<1x1x16xf32> to vector<2x16x16xf32>
    %144 = arith.addf %142, %143 : vector<2x16x16xf32>
    %cst_58 = arith.constant dense<0xFF800000> : vector<2x16xf32>
    %145 = vector.multi_reduction <maximumf>, %144, %cst_58 [2] : vector<2x16x16xf32> to vector<2x16xf32>
    %146 = vector.shape_cast %145 : vector<2x16xf32> to vector<2x16x1xf32>
    %147 = vector.broadcast %146 : vector<2x16x1xf32> to vector<2x16x16xf32>
    %148 = arith.subf %144, %147 : vector<2x16x16xf32>
    %149 = math.exp %148 : vector<2x16x16xf32>
    %cst_59 = arith.constant dense<0.000000e+00> : vector<2x16xf32>
    %150 = vector.multi_reduction <add>, %149, %cst_59 [2] : vector<2x16x16xf32> to vector<2x16xf32>
    %151 = vector.shape_cast %150 : vector<2x16xf32> to vector<2x16x1xf32>
    %152 = tpu.reciprocal %151 {approx = true} : vector<2x16x1xf32> -> vector<2x16x1xf32>
    %153 = vector.broadcast %152 : vector<2x16x1xf32> to vector<2x16x16xf32>
    %154 = arith.mulf %149, %153 : vector<2x16x16xf32>
    %155 = arith.truncf %154 : vector<2x16x16xf32> to vector<2x16x16xbf16>
    %156 = vector.extract_strided_slice %97 {offsets = [0, 0, 64], sizes = [2, 16, 32], strides = [1, 1, 1]} : vector<2x16x128xbf16> to vector<2x16x32xbf16>
    "tpu.trace_start"() <{level = 10 : i32, message = "bqk,bkd->bqd"}> : () -> ()
    %cst_60 = arith.constant dense<0.000000e+00> : vector<2x16x32xf32>
    %157 = tpu.matmul %155, %156, %cst_60 {dimension_numbers = #tpu.dot_dimension_numbers<[2], [1], [1], [2], [0, 0, 0, 1, 1, 2], [0], [0]>} : vector<2x16x16xbf16>, vector<2x16x32xbf16>, vector<2x16x32xf32> -> vector<2x16x32xf32>
    "tpu.trace_stop"() : () -> ()
    %158 = vector.extract_strided_slice %93 {offsets = [0, 0, 96], sizes = [2, 16, 32], strides = [1, 1, 1]} : vector<2x16x128xbf16> to vector<2x16x32xbf16>
    %159 = vector.extract_strided_slice %95 {offsets = [0, 0, 96], sizes = [2, 16, 32], strides = [1, 1, 1]} : vector<2x16x128xbf16> to vector<2x16x32xbf16>
    "tpu.trace_start"() <{level = 10 : i32, message = "bqd,bkd->bqk"}> : () -> ()
    %cst_61 = arith.constant dense<0.000000e+00> : vector<2x16x16xf32>
    %160 = tpu.matmul %158, %159, %cst_61 {dimension_numbers = #tpu.dot_dimension_numbers<[2], [2], [1], [1], [0, 0, 0, 1, 1, 1], [0], [0]>} : vector<2x16x32xbf16>, vector<2x16x32xbf16>, vector<2x16x16xf32> -> vector<2x16x16xf32>
    "tpu.trace_stop"() : () -> ()
    %cst_62 = arith.constant 0.176776692 : f32
    %161 = vector.broadcast %cst_62 : f32 to vector<2x16x16xf32>
    %162 = arith.mulf %160, %161 : vector<2x16x16xf32>
    %163 = vector.broadcast %75 : vector<1x1x16xf32> to vector<2x16x16xf32>
    %164 = arith.addf %162, %163 : vector<2x16x16xf32>
    %cst_63 = arith.constant dense<0xFF800000> : vector<2x16xf32>
    %165 = vector.multi_reduction <maximumf>, %164, %cst_63 [2] : vector<2x16x16xf32> to vector<2x16xf32>
    %166 = vector.shape_cast %165 : vector<2x16xf32> to vector<2x16x1xf32>
    %167 = vector.broadcast %166 : vector<2x16x1xf32> to vector<2x16x16xf32>
    %168 = arith.subf %164, %167 : vector<2x16x16xf32>
    %169 = math.exp %168 : vector<2x16x16xf32>
    %cst_64 = arith.constant dense<0.000000e+00> : vector<2x16xf32>
    %170 = vector.multi_reduction <add>, %169, %cst_64 [2] : vector<2x16x16xf32> to vector<2x16xf32>
    %171 = vector.shape_cast %170 : vector<2x16xf32> to vector<2x16x1xf32>
    %172 = tpu.reciprocal %171 {approx = true} : vector<2x16x1xf32> -> vector<2x16x1xf32>
    %173 = vector.broadcast %172 : vector<2x16x1xf32> to vector<2x16x16xf32>
    %174 = arith.mulf %169, %173 : vector<2x16x16xf32>
    %175 = arith.truncf %174 : vector<2x16x16xf32> to vector<2x16x16xbf16>
    %176 = vector.extract_strided_slice %97 {offsets = [0, 0, 96], sizes = [2, 16, 32], strides = [1, 1, 1]} : vector<2x16x128xbf16> to vector<2x16x32xbf16>
    "tpu.trace_start"() <{level = 10 : i32, message = "bqk,bkd->bqd"}> : () -> ()
    %cst_65 = arith.constant dense<0.000000e+00> : vector<2x16x32xf32>
    %177 = tpu.matmul %175, %176, %cst_65 {dimension_numbers = #tpu.dot_dimension_numbers<[2], [1], [1], [2], [0, 0, 0, 1, 1, 2], [0], [0]>} : vector<2x16x16xbf16>, vector<2x16x32xbf16>, vector<2x16x32xf32> -> vector<2x16x32xf32>
    "tpu.trace_stop"() : () -> ()
    %178 = tpu.concatenate %117, %137, %157, %177 in 2 : vector<2x16x32xf32>, vector<2x16x32xf32>, vector<2x16x32xf32>, vector<2x16x32xf32> -> vector<2x16x128xf32>
    %179 = vector.shape_cast %178 : vector<2x16x128xf32> to vector<32x128xf32>
    %180 = arith.truncf %179 : vector<32x128xf32> to vector<32x128xbf16>
    %c128_66 = arith.constant 128 : index
    %c128_67 = arith.constant 128 : index
    %181 = vector.load %arg3[%c128_66, %c128_67] : memref<1920x256xbf16, #tpu.memory_space<vmem>>, vector<128x128xbf16>
    %cst_68 = arith.constant dense<0.000000e+00> : vector<32x128xf32>
    %182 = tpu.matmul %180, %181, %cst_68 {dimension_numbers = #tpu.dot_dimension_numbers<[1], [0], [0], [1], [0, 0, 1, 1], [], []>} : vector<32x128xbf16>, vector<128x128xbf16>, vector<32x128xf32> -> vector<32x128xf32>
    %c13 = arith.constant 13 : index
    %c0_69 = arith.constant 0 : index
    %183 = vector.load %arg1[%c13, %c0_69] : memref<40x256xf32, #tpu.memory_space<vmem>>, vector<1x128xf32>
    %184 = vector.broadcast %183 : vector<1x128xf32> to vector<32x128xf32>
    %185 = arith.addf %182, %184 : vector<32x128xf32>
    %186 = arith.addf %69, %185 : vector<32x128xf32>
    %c14 = arith.constant 14 : index
    %c0_70 = arith.constant 0 : index
    %187 = vector.load %arg1[%c14, %c0_70] : memref<40x256xf32, #tpu.memory_space<vmem>>, vector<1x128xf32>
    %c15 = arith.constant 15 : index
    %c0_71 = arith.constant 0 : index
    %188 = vector.load %arg1[%c15, %c0_71] : memref<40x256xf32, #tpu.memory_space<vmem>>, vector<1x128xf32>
    %cst_72 = arith.constant dense<0.000000e+00> : vector<32xf32>
    %189 = vector.multi_reduction <add>, %186, %cst_72 [1] : vector<32x128xf32> to vector<32xf32>
    %190 = vector.shape_cast %189 : vector<32xf32> to vector<32x1xf32>
    %cst_73 = arith.constant 1.280000e+02 : f32
    %191 = vector.broadcast %cst_73 : f32 to vector<32x1xf32>
    %192 = arith.divf %190, %191 : vector<32x1xf32>
    %193 = arith.mulf %186, %186 : vector<32x128xf32>
    %cst_74 = arith.constant dense<0.000000e+00> : vector<32xf32>
    %194 = vector.multi_reduction <add>, %193, %cst_74 [1] : vector<32x128xf32> to vector<32xf32>
    %195 = vector.shape_cast %194 : vector<32xf32> to vector<32x1xf32>
    %cst_75 = arith.constant 1.280000e+02 : f32
    %196 = vector.broadcast %cst_75 : f32 to vector<32x1xf32>
    %197 = arith.divf %195, %196 : vector<32x1xf32>
    %198 = arith.mulf %192, %192 : vector<32x1xf32>
    %199 = arith.subf %197, %198 : vector<32x1xf32>
    %200 = vector.broadcast %192 : vector<32x1xf32> to vector<32x128xf32>
    %201 = arith.subf %186, %200 : vector<32x128xf32>
    %cst_76 = arith.constant 9.99999974E-6 : f32
    %202 = vector.broadcast %cst_76 : f32 to vector<32x1xf32>
    %203 = arith.addf %199, %202 : vector<32x1xf32>
    %204 = math.rsqrt %203 : vector<32x1xf32>
    %205 = vector.broadcast %204 : vector<32x1xf32> to vector<32x128xf32>
    %206 = arith.mulf %201, %205 : vector<32x128xf32>
    %207 = vector.broadcast %187 : vector<1x128xf32> to vector<32x128xf32>
    %208 = arith.mulf %206, %207 : vector<32x128xf32>
    %209 = vector.broadcast %188 : vector<1x128xf32> to vector<32x128xf32>
    %210 = arith.addf %208, %209 : vector<32x128xf32>
    %211 = arith.truncf %210 : vector<32x128xf32> to vector<32x128xbf16>
    %c256_77 = arith.constant 256 : index
    %c0_78 = arith.constant 0 : index
    %212 = vector.load %arg3[%c256_77, %c0_78] : memref<1920x256xbf16, #tpu.memory_space<vmem>>, vector<128x256xbf16>
    %cst_79 = arith.constant dense<0.000000e+00> : vector<32x256xf32>
    %213 = tpu.matmul %211, %212, %cst_79 {dimension_numbers = #tpu.dot_dimension_numbers<[1], [0], [0], [1], [0, 0, 1, 1], [], []>} : vector<32x128xbf16>, vector<128x256xbf16>, vector<32x256xf32> -> vector<32x256xf32>
    %c16 = arith.constant 16 : index
    %c0_80 = arith.constant 0 : index
    %214 = vector.load %arg1[%c16, %c0_80] : memref<40x256xf32, #tpu.memory_space<vmem>>, vector<1x256xf32>
    %215 = vector.broadcast %214 : vector<1x256xf32> to vector<32x256xf32>
    %216 = arith.addf %213, %215 : vector<32x256xf32>
    %cst_81 = arith.constant 0.000000e+00 : f32
    %217 = vector.broadcast %cst_81 : f32 to vector<32x256xf32>
    %218 = arith.maximumf %216, %217 : vector<32x256xf32>
    %219 = arith.truncf %218 : vector<32x256xf32> to vector<32x256xbf16>
    %c384_82 = arith.constant 384 : index
    %c0_83 = arith.constant 0 : index
    %220 = vector.load %arg3[%c384_82, %c0_83] : memref<1920x256xbf16, #tpu.memory_space<vmem>>, vector<256x128xbf16>
    %cst_84 = arith.constant dense<0.000000e+00> : vector<32x128xf32>
    %221 = tpu.matmul %219, %220, %cst_84 {dimension_numbers = #tpu.dot_dimension_numbers<[1], [0], [0], [1], [0, 0, 1, 1], [], []>} : vector<32x256xbf16>, vector<256x128xbf16>, vector<32x128xf32> -> vector<32x128xf32>
    %c17 = arith.constant 17 : index
    %c0_85 = arith.constant 0 : index
    %222 = vector.load %arg1[%c17, %c0_85] : memref<40x256xf32, #tpu.memory_space<vmem>>, vector<1x128xf32>
    %223 = vector.broadcast %222 : vector<1x128xf32> to vector<32x128xf32>
    %224 = arith.addf %221, %223 : vector<32x128xf32>
    %225 = arith.addf %210, %224 : vector<32x128xf32>
    %c18 = arith.constant 18 : index
    %c0_86 = arith.constant 0 : index
    %226 = vector.load %arg1[%c18, %c0_86] : memref<40x256xf32, #tpu.memory_space<vmem>>, vector<1x128xf32>
    %c19 = arith.constant 19 : index
    %c0_87 = arith.constant 0 : index
    %227 = vector.load %arg1[%c19, %c0_87] : memref<40x256xf32, #tpu.memory_space<vmem>>, vector<1x128xf32>
    %cst_88 = arith.constant dense<0.000000e+00> : vector<32xf32>
    %228 = vector.multi_reduction <add>, %225, %cst_88 [1] : vector<32x128xf32> to vector<32xf32>
    %229 = vector.shape_cast %228 : vector<32xf32> to vector<32x1xf32>
    %cst_89 = arith.constant 1.280000e+02 : f32
    %230 = vector.broadcast %cst_89 : f32 to vector<32x1xf32>
    %231 = arith.divf %229, %230 : vector<32x1xf32>
    %232 = arith.mulf %225, %225 : vector<32x128xf32>
    %cst_90 = arith.constant dense<0.000000e+00> : vector<32xf32>
    %233 = vector.multi_reduction <add>, %232, %cst_90 [1] : vector<32x128xf32> to vector<32xf32>
    %234 = vector.shape_cast %233 : vector<32xf32> to vector<32x1xf32>
    %cst_91 = arith.constant 1.280000e+02 : f32
    %235 = vector.broadcast %cst_91 : f32 to vector<32x1xf32>
    %236 = arith.divf %234, %235 : vector<32x1xf32>
    %237 = arith.mulf %231, %231 : vector<32x1xf32>
    %238 = arith.subf %236, %237 : vector<32x1xf32>
    %239 = vector.broadcast %231 : vector<32x1xf32> to vector<32x128xf32>
    %240 = arith.subf %225, %239 : vector<32x128xf32>
    %cst_92 = arith.constant 9.99999974E-6 : f32
    %241 = vector.broadcast %cst_92 : f32 to vector<32x1xf32>
    %242 = arith.addf %238, %241 : vector<32x1xf32>
    %243 = math.rsqrt %242 : vector<32x1xf32>
    %244 = vector.broadcast %243 : vector<32x1xf32> to vector<32x128xf32>
    %245 = arith.mulf %240, %244 : vector<32x128xf32>
    %246 = vector.broadcast %226 : vector<1x128xf32> to vector<32x128xf32>
    %247 = arith.mulf %245, %246 : vector<32x128xf32>
    %248 = vector.broadcast %227 : vector<1x128xf32> to vector<32x128xf32>
    %249 = arith.addf %247, %248 : vector<32x128xf32>
    %250 = arith.truncf %249 : vector<32x128xf32> to vector<32x128xbf16>
    %c640_93 = arith.constant 640 : index
    %c0_94 = arith.constant 0 : index
    %251 = vector.load %arg3[%c640_93, %c0_94] : memref<1920x256xbf16, #tpu.memory_space<vmem>>, vector<128x128xbf16>
    %cst_95 = arith.constant dense<0.000000e+00> : vector<32x128xf32>
    %252 = tpu.matmul %250, %251, %cst_95 {dimension_numbers = #tpu.dot_dimension_numbers<[1], [0], [0], [1], [0, 0, 1, 1], [], []>} : vector<32x128xbf16>, vector<128x128xbf16>, vector<32x128xf32> -> vector<32x128xf32>
    %c20 = arith.constant 20 : index
    %c0_96 = arith.constant 0 : index
    %253 = vector.load %arg1[%c20, %c0_96] : memref<40x256xf32, #tpu.memory_space<vmem>>, vector<1x128xf32>
    %254 = vector.broadcast %253 : vector<1x128xf32> to vector<32x128xf32>
    %255 = arith.addf %252, %254 : vector<32x128xf32>
    %c640_97 = arith.constant 640 : index
    %c128_98 = arith.constant 128 : index
    %256 = vector.load %arg3[%c640_97, %c128_98] : memref<1920x256xbf16, #tpu.memory_space<vmem>>, vector<128x128xbf16>
    %cst_99 = arith.constant dense<0.000000e+00> : vector<32x128xf32>
    %257 = tpu.matmul %250, %256, %cst_99 {dimension_numbers = #tpu.dot_dimension_numbers<[1], [0], [0], [1], [0, 0, 1, 1], [], []>} : vector<32x128xbf16>, vector<128x128xbf16>, vector<32x128xf32> -> vector<32x128xf32>
    %c21 = arith.constant 21 : index
    %c0_100 = arith.constant 0 : index
    %258 = vector.load %arg1[%c21, %c0_100] : memref<40x256xf32, #tpu.memory_space<vmem>>, vector<1x128xf32>
    %259 = vector.broadcast %258 : vector<1x128xf32> to vector<32x128xf32>
    %260 = arith.addf %257, %259 : vector<32x128xf32>
    %c768_101 = arith.constant 768 : index
    %c0_102 = arith.constant 0 : index
    %261 = vector.load %arg3[%c768_101, %c0_102] : memref<1920x256xbf16, #tpu.memory_space<vmem>>, vector<128x128xbf16>
    %cst_103 = arith.constant dense<0.000000e+00> : vector<32x128xf32>
    %262 = tpu.matmul %250, %261, %cst_103 {dimension_numbers = #tpu.dot_dimension_numbers<[1], [0], [0], [1], [0, 0, 1, 1], [], []>} : vector<32x128xbf16>, vector<128x128xbf16>, vector<32x128xf32> -> vector<32x128xf32>
    %c22 = arith.constant 22 : index
    %c0_104 = arith.constant 0 : index
    %263 = vector.load %arg1[%c22, %c0_104] : memref<40x256xf32, #tpu.memory_space<vmem>>, vector<1x128xf32>
    %264 = vector.broadcast %263 : vector<1x128xf32> to vector<32x128xf32>
    %265 = arith.addf %262, %264 : vector<32x128xf32>
    %266 = vector.shape_cast %255 : vector<32x128xf32> to vector<2x16x128xf32>
    %267 = arith.truncf %266 : vector<2x16x128xf32> to vector<2x16x128xbf16>
    %268 = vector.shape_cast %260 : vector<32x128xf32> to vector<2x16x128xf32>
    %269 = arith.truncf %268 : vector<2x16x128xf32> to vector<2x16x128xbf16>
    %270 = vector.shape_cast %265 : vector<32x128xf32> to vector<2x16x128xf32>
    %271 = arith.truncf %270 : vector<2x16x128xf32> to vector<2x16x128xbf16>
    %272 = vector.extract_strided_slice %267 {offsets = [0, 0, 0], sizes = [2, 16, 32], strides = [1, 1, 1]} : vector<2x16x128xbf16> to vector<2x16x32xbf16>
    %273 = vector.extract_strided_slice %269 {offsets = [0, 0, 0], sizes = [2, 16, 32], strides = [1, 1, 1]} : vector<2x16x128xbf16> to vector<2x16x32xbf16>
    "tpu.trace_start"() <{level = 10 : i32, message = "bqd,bkd->bqk"}> : () -> ()
    %cst_105 = arith.constant dense<0.000000e+00> : vector<2x16x16xf32>
    %274 = tpu.matmul %272, %273, %cst_105 {dimension_numbers = #tpu.dot_dimension_numbers<[2], [2], [1], [1], [0, 0, 0, 1, 1, 1], [0], [0]>} : vector<2x16x32xbf16>, vector<2x16x32xbf16>, vector<2x16x16xf32> -> vector<2x16x16xf32>
    "tpu.trace_stop"() : () -> ()
    %cst_106 = arith.constant 0.176776692 : f32
    %275 = vector.broadcast %cst_106 : f32 to vector<2x16x16xf32>
    %276 = arith.mulf %274, %275 : vector<2x16x16xf32>
    %277 = vector.broadcast %75 : vector<1x1x16xf32> to vector<2x16x16xf32>
    %278 = arith.addf %276, %277 : vector<2x16x16xf32>
    %cst_107 = arith.constant dense<0xFF800000> : vector<2x16xf32>
    %279 = vector.multi_reduction <maximumf>, %278, %cst_107 [2] : vector<2x16x16xf32> to vector<2x16xf32>
    %280 = vector.shape_cast %279 : vector<2x16xf32> to vector<2x16x1xf32>
    %281 = vector.broadcast %280 : vector<2x16x1xf32> to vector<2x16x16xf32>
    %282 = arith.subf %278, %281 : vector<2x16x16xf32>
    %283 = math.exp %282 : vector<2x16x16xf32>
    %cst_108 = arith.constant dense<0.000000e+00> : vector<2x16xf32>
    %284 = vector.multi_reduction <add>, %283, %cst_108 [2] : vector<2x16x16xf32> to vector<2x16xf32>
    %285 = vector.shape_cast %284 : vector<2x16xf32> to vector<2x16x1xf32>
    %286 = tpu.reciprocal %285 {approx = true} : vector<2x16x1xf32> -> vector<2x16x1xf32>
    %287 = vector.broadcast %286 : vector<2x16x1xf32> to vector<2x16x16xf32>
    %288 = arith.mulf %283, %287 : vector<2x16x16xf32>
    %289 = arith.truncf %288 : vector<2x16x16xf32> to vector<2x16x16xbf16>
    %290 = vector.extract_strided_slice %271 {offsets = [0, 0, 0], sizes = [2, 16, 32], strides = [1, 1, 1]} : vector<2x16x128xbf16> to vector<2x16x32xbf16>
    "tpu.trace_start"() <{level = 10 : i32, message = "bqk,bkd->bqd"}> : () -> ()
    %cst_109 = arith.constant dense<0.000000e+00> : vector<2x16x32xf32>
    %291 = tpu.matmul %289, %290, %cst_109 {dimension_numbers = #tpu.dot_dimension_numbers<[2], [1], [1], [2], [0, 0, 0, 1, 1, 2], [0], [0]>} : vector<2x16x16xbf16>, vector<2x16x32xbf16>, vector<2x16x32xf32> -> vector<2x16x32xf32>
    "tpu.trace_stop"() : () -> ()
    %292 = vector.extract_strided_slice %267 {offsets = [0, 0, 32], sizes = [2, 16, 32], strides = [1, 1, 1]} : vector<2x16x128xbf16> to vector<2x16x32xbf16>
    %293 = vector.extract_strided_slice %269 {offsets = [0, 0, 32], sizes = [2, 16, 32], strides = [1, 1, 1]} : vector<2x16x128xbf16> to vector<2x16x32xbf16>
    "tpu.trace_start"() <{level = 10 : i32, message = "bqd,bkd->bqk"}> : () -> ()
    %cst_110 = arith.constant dense<0.000000e+00> : vector<2x16x16xf32>
    %294 = tpu.matmul %292, %293, %cst_110 {dimension_numbers = #tpu.dot_dimension_numbers<[2], [2], [1], [1], [0, 0, 0, 1, 1, 1], [0], [0]>} : vector<2x16x32xbf16>, vector<2x16x32xbf16>, vector<2x16x16xf32> -> vector<2x16x16xf32>
    "tpu.trace_stop"() : () -> ()
    %cst_111 = arith.constant 0.176776692 : f32
    %295 = vector.broadcast %cst_111 : f32 to vector<2x16x16xf32>
    %296 = arith.mulf %294, %295 : vector<2x16x16xf32>
    %297 = vector.broadcast %75 : vector<1x1x16xf32> to vector<2x16x16xf32>
    %298 = arith.addf %296, %297 : vector<2x16x16xf32>
    %cst_112 = arith.constant dense<0xFF800000> : vector<2x16xf32>
    %299 = vector.multi_reduction <maximumf>, %298, %cst_112 [2] : vector<2x16x16xf32> to vector<2x16xf32>
    %300 = vector.shape_cast %299 : vector<2x16xf32> to vector<2x16x1xf32>
    %301 = vector.broadcast %300 : vector<2x16x1xf32> to vector<2x16x16xf32>
    %302 = arith.subf %298, %301 : vector<2x16x16xf32>
    %303 = math.exp %302 : vector<2x16x16xf32>
    %cst_113 = arith.constant dense<0.000000e+00> : vector<2x16xf32>
    %304 = vector.multi_reduction <add>, %303, %cst_113 [2] : vector<2x16x16xf32> to vector<2x16xf32>
    %305 = vector.shape_cast %304 : vector<2x16xf32> to vector<2x16x1xf32>
    %306 = tpu.reciprocal %305 {approx = true} : vector<2x16x1xf32> -> vector<2x16x1xf32>
    %307 = vector.broadcast %306 : vector<2x16x1xf32> to vector<2x16x16xf32>
    %308 = arith.mulf %303, %307 : vector<2x16x16xf32>
    %309 = arith.truncf %308 : vector<2x16x16xf32> to vector<2x16x16xbf16>
    %310 = vector.extract_strided_slice %271 {offsets = [0, 0, 32], sizes = [2, 16, 32], strides = [1, 1, 1]} : vector<2x16x128xbf16> to vector<2x16x32xbf16>
    "tpu.trace_start"() <{level = 10 : i32, message = "bqk,bkd->bqd"}> : () -> ()
    %cst_114 = arith.constant dense<0.000000e+00> : vector<2x16x32xf32>
    %311 = tpu.matmul %309, %310, %cst_114 {dimension_numbers = #tpu.dot_dimension_numbers<[2], [1], [1], [2], [0, 0, 0, 1, 1, 2], [0], [0]>} : vector<2x16x16xbf16>, vector<2x16x32xbf16>, vector<2x16x32xf32> -> vector<2x16x32xf32>
    "tpu.trace_stop"() : () -> ()
    %312 = vector.extract_strided_slice %267 {offsets = [0, 0, 64], sizes = [2, 16, 32], strides = [1, 1, 1]} : vector<2x16x128xbf16> to vector<2x16x32xbf16>
    %313 = vector.extract_strided_slice %269 {offsets = [0, 0, 64], sizes = [2, 16, 32], strides = [1, 1, 1]} : vector<2x16x128xbf16> to vector<2x16x32xbf16>
    "tpu.trace_start"() <{level = 10 : i32, message = "bqd,bkd->bqk"}> : () -> ()
    %cst_115 = arith.constant dense<0.000000e+00> : vector<2x16x16xf32>
    %314 = tpu.matmul %312, %313, %cst_115 {dimension_numbers = #tpu.dot_dimension_numbers<[2], [2], [1], [1], [0, 0, 0, 1, 1, 1], [0], [0]>} : vector<2x16x32xbf16>, vector<2x16x32xbf16>, vector<2x16x16xf32> -> vector<2x16x16xf32>
    "tpu.trace_stop"() : () -> ()
    %cst_116 = arith.constant 0.176776692 : f32
    %315 = vector.broadcast %cst_116 : f32 to vector<2x16x16xf32>
    %316 = arith.mulf %314, %315 : vector<2x16x16xf32>
    %317 = vector.broadcast %75 : vector<1x1x16xf32> to vector<2x16x16xf32>
    %318 = arith.addf %316, %317 : vector<2x16x16xf32>
    %cst_117 = arith.constant dense<0xFF800000> : vector<2x16xf32>
    %319 = vector.multi_reduction <maximumf>, %318, %cst_117 [2] : vector<2x16x16xf32> to vector<2x16xf32>
    %320 = vector.shape_cast %319 : vector<2x16xf32> to vector<2x16x1xf32>
    %321 = vector.broadcast %320 : vector<2x16x1xf32> to vector<2x16x16xf32>
    %322 = arith.subf %318, %321 : vector<2x16x16xf32>
    %323 = math.exp %322 : vector<2x16x16xf32>
    %cst_118 = arith.constant dense<0.000000e+00> : vector<2x16xf32>
    %324 = vector.multi_reduction <add>, %323, %cst_118 [2] : vector<2x16x16xf32> to vector<2x16xf32>
    %325 = vector.shape_cast %324 : vector<2x16xf32> to vector<2x16x1xf32>
    %326 = tpu.reciprocal %325 {approx = true} : vector<2x16x1xf32> -> vector<2x16x1xf32>
    %327 = vector.broadcast %326 : vector<2x16x1xf32> to vector<2x16x16xf32>
    %328 = arith.mulf %323, %327 : vector<2x16x16xf32>
    %329 = arith.truncf %328 : vector<2x16x16xf32> to vector<2x16x16xbf16>
    %330 = vector.extract_strided_slice %271 {offsets = [0, 0, 64], sizes = [2, 16, 32], strides = [1, 1, 1]} : vector<2x16x128xbf16> to vector<2x16x32xbf16>
    "tpu.trace_start"() <{level = 10 : i32, message = "bqk,bkd->bqd"}> : () -> ()
    %cst_119 = arith.constant dense<0.000000e+00> : vector<2x16x32xf32>
    %331 = tpu.matmul %329, %330, %cst_119 {dimension_numbers = #tpu.dot_dimension_numbers<[2], [1], [1], [2], [0, 0, 0, 1, 1, 2], [0], [0]>} : vector<2x16x16xbf16>, vector<2x16x32xbf16>, vector<2x16x32xf32> -> vector<2x16x32xf32>
    "tpu.trace_stop"() : () -> ()
    %332 = vector.extract_strided_slice %267 {offsets = [0, 0, 96], sizes = [2, 16, 32], strides = [1, 1, 1]} : vector<2x16x128xbf16> to vector<2x16x32xbf16>
    %333 = vector.extract_strided_slice %269 {offsets = [0, 0, 96], sizes = [2, 16, 32], strides = [1, 1, 1]} : vector<2x16x128xbf16> to vector<2x16x32xbf16>
    "tpu.trace_start"() <{level = 10 : i32, message = "bqd,bkd->bqk"}> : () -> ()
    %cst_120 = arith.constant dense<0.000000e+00> : vector<2x16x16xf32>
    %334 = tpu.matmul %332, %333, %cst_120 {dimension_numbers = #tpu.dot_dimension_numbers<[2], [2], [1], [1], [0, 0, 0, 1, 1, 1], [0], [0]>} : vector<2x16x32xbf16>, vector<2x16x32xbf16>, vector<2x16x16xf32> -> vector<2x16x16xf32>
    "tpu.trace_stop"() : () -> ()
    %cst_121 = arith.constant 0.176776692 : f32
    %335 = vector.broadcast %cst_121 : f32 to vector<2x16x16xf32>
    %336 = arith.mulf %334, %335 : vector<2x16x16xf32>
    %337 = vector.broadcast %75 : vector<1x1x16xf32> to vector<2x16x16xf32>
    %338 = arith.addf %336, %337 : vector<2x16x16xf32>
    %cst_122 = arith.constant dense<0xFF800000> : vector<2x16xf32>
    %339 = vector.multi_reduction <maximumf>, %338, %cst_122 [2] : vector<2x16x16xf32> to vector<2x16xf32>
    %340 = vector.shape_cast %339 : vector<2x16xf32> to vector<2x16x1xf32>
    %341 = vector.broadcast %340 : vector<2x16x1xf32> to vector<2x16x16xf32>
    %342 = arith.subf %338, %341 : vector<2x16x16xf32>
    %343 = math.exp %342 : vector<2x16x16xf32>
    %cst_123 = arith.constant dense<0.000000e+00> : vector<2x16xf32>
    %344 = vector.multi_reduction <add>, %343, %cst_123 [2] : vector<2x16x16xf32> to vector<2x16xf32>
    %345 = vector.shape_cast %344 : vector<2x16xf32> to vector<2x16x1xf32>
    %346 = tpu.reciprocal %345 {approx = true} : vector<2x16x1xf32> -> vector<2x16x1xf32>
    %347 = vector.broadcast %346 : vector<2x16x1xf32> to vector<2x16x16xf32>
    %348 = arith.mulf %343, %347 : vector<2x16x16xf32>
    %349 = arith.truncf %348 : vector<2x16x16xf32> to vector<2x16x16xbf16>
    %350 = vector.extract_strided_slice %271 {offsets = [0, 0, 96], sizes = [2, 16, 32], strides = [1, 1, 1]} : vector<2x16x128xbf16> to vector<2x16x32xbf16>
    "tpu.trace_start"() <{level = 10 : i32, message = "bqk,bkd->bqd"}> : () -> ()
    %cst_124 = arith.constant dense<0.000000e+00> : vector<2x16x32xf32>
    %351 = tpu.matmul %349, %350, %cst_124 {dimension_numbers = #tpu.dot_dimension_numbers<[2], [1], [1], [2], [0, 0, 0, 1, 1, 2], [0], [0]>} : vector<2x16x16xbf16>, vector<2x16x32xbf16>, vector<2x16x32xf32> -> vector<2x16x32xf32>
    "tpu.trace_stop"() : () -> ()
    %352 = tpu.concatenate %291, %311, %331, %351 in 2 : vector<2x16x32xf32>, vector<2x16x32xf32>, vector<2x16x32xf32>, vector<2x16x32xf32> -> vector<2x16x128xf32>
    %353 = vector.shape_cast %352 : vector<2x16x128xf32> to vector<32x128xf32>
    %354 = arith.truncf %353 : vector<32x128xf32> to vector<32x128xbf16>
    %c768_125 = arith.constant 768 : index
    %c128_126 = arith.constant 128 : index
    %355 = vector.load %arg3[%c768_125, %c128_126] : memref<1920x256xbf16, #tpu.memory_space<vmem>>, vector<128x128xbf16>
    %cst_127 = arith.constant dense<0.000000e+00> : vector<32x128xf32>
    %356 = tpu.matmul %354, %355, %cst_127 {dimension_numbers = #tpu.dot_dimension_numbers<[1], [0], [0], [1], [0, 0, 1, 1], [], []>} : vector<32x128xbf16>, vector<128x128xbf16>, vector<32x128xf32> -> vector<32x128xf32>
    %c23 = arith.constant 23 : index
    %c0_128 = arith.constant 0 : index
    %357 = vector.load %arg1[%c23, %c0_128] : memref<40x256xf32, #tpu.memory_space<vmem>>, vector<1x128xf32>
    %358 = vector.broadcast %357 : vector<1x128xf32> to vector<32x128xf32>
    %359 = arith.addf %356, %358 : vector<32x128xf32>
    %360 = arith.addf %249, %359 : vector<32x128xf32>
    %c24 = arith.constant 24 : index
    %c0_129 = arith.constant 0 : index
    %361 = vector.load %arg1[%c24, %c0_129] : memref<40x256xf32, #tpu.memory_space<vmem>>, vector<1x128xf32>
    %c25 = arith.constant 25 : index
    %c0_130 = arith.constant 0 : index
    %362 = vector.load %arg1[%c25, %c0_130] : memref<40x256xf32, #tpu.memory_space<vmem>>, vector<1x128xf32>
    %cst_131 = arith.constant dense<0.000000e+00> : vector<32xf32>
    %363 = vector.multi_reduction <add>, %360, %cst_131 [1] : vector<32x128xf32> to vector<32xf32>
    %364 = vector.shape_cast %363 : vector<32xf32> to vector<32x1xf32>
    %cst_132 = arith.constant 1.280000e+02 : f32
    %365 = vector.broadcast %cst_132 : f32 to vector<32x1xf32>
    %366 = arith.divf %364, %365 : vector<32x1xf32>
    %367 = arith.mulf %360, %360 : vector<32x128xf32>
    %cst_133 = arith.constant dense<0.000000e+00> : vector<32xf32>
    %368 = vector.multi_reduction <add>, %367, %cst_133 [1] : vector<32x128xf32> to vector<32xf32>
    %369 = vector.shape_cast %368 : vector<32xf32> to vector<32x1xf32>
    %cst_134 = arith.constant 1.280000e+02 : f32
    %370 = vector.broadcast %cst_134 : f32 to vector<32x1xf32>
    %371 = arith.divf %369, %370 : vector<32x1xf32>
    %372 = arith.mulf %366, %366 : vector<32x1xf32>
    %373 = arith.subf %371, %372 : vector<32x1xf32>
    %374 = vector.broadcast %366 : vector<32x1xf32> to vector<32x128xf32>
    %375 = arith.subf %360, %374 : vector<32x128xf32>
    %cst_135 = arith.constant 9.99999974E-6 : f32
    %376 = vector.broadcast %cst_135 : f32 to vector<32x1xf32>
    %377 = arith.addf %373, %376 : vector<32x1xf32>
    %378 = math.rsqrt %377 : vector<32x1xf32>
    %379 = vector.broadcast %378 : vector<32x1xf32> to vector<32x128xf32>
    %380 = arith.mulf %375, %379 : vector<32x128xf32>
    %381 = vector.broadcast %361 : vector<1x128xf32> to vector<32x128xf32>
    %382 = arith.mulf %380, %381 : vector<32x128xf32>
    %383 = vector.broadcast %362 : vector<1x128xf32> to vector<32x128xf32>
    %384 = arith.addf %382, %383 : vector<32x128xf32>
    %385 = arith.truncf %384 : vector<32x128xf32> to vector<32x128xbf16>
    %c896 = arith.constant 896 : index
    %c0_136 = arith.constant 0 : index
    %386 = vector.load %arg3[%c896, %c0_136] : memref<1920x256xbf16, #tpu.memory_space<vmem>>, vector<128x256xbf16>
    %cst_137 = arith.constant dense<0.000000e+00> : vector<32x256xf32>
    %387 = tpu.matmul %385, %386, %cst_137 {dimension_numbers = #tpu.dot_dimension_numbers<[1], [0], [0], [1], [0, 0, 1, 1], [], []>} : vector<32x128xbf16>, vector<128x256xbf16>, vector<32x256xf32> -> vector<32x256xf32>
    %c26 = arith.constant 26 : index
    %c0_138 = arith.constant 0 : index
    %388 = vector.load %arg1[%c26, %c0_138] : memref<40x256xf32, #tpu.memory_space<vmem>>, vector<1x256xf32>
    %389 = vector.broadcast %388 : vector<1x256xf32> to vector<32x256xf32>
    %390 = arith.addf %387, %389 : vector<32x256xf32>
    %cst_139 = arith.constant 0.000000e+00 : f32
    %391 = vector.broadcast %cst_139 : f32 to vector<32x256xf32>
    %392 = arith.maximumf %390, %391 : vector<32x256xf32>
    %393 = arith.truncf %392 : vector<32x256xf32> to vector<32x256xbf16>
    %c1024 = arith.constant 1024 : index
    %c0_140 = arith.constant 0 : index
    %394 = vector.load %arg3[%c1024, %c0_140] : memref<1920x256xbf16, #tpu.memory_space<vmem>>, vector<256x128xbf16>
    %cst_141 = arith.constant dense<0.000000e+00> : vector<32x128xf32>
    %395 = tpu.matmul %393, %394, %cst_141 {dimension_numbers = #tpu.dot_dimension_numbers<[1], [0], [0], [1], [0, 0, 1, 1], [], []>} : vector<32x256xbf16>, vector<256x128xbf16>, vector<32x128xf32> -> vector<32x128xf32>
    %c27 = arith.constant 27 : index
    %c0_142 = arith.constant 0 : index
    %396 = vector.load %arg1[%c27, %c0_142] : memref<40x256xf32, #tpu.memory_space<vmem>>, vector<1x128xf32>
    %397 = vector.broadcast %396 : vector<1x128xf32> to vector<32x128xf32>
    %398 = arith.addf %395, %397 : vector<32x128xf32>
    %399 = arith.addf %384, %398 : vector<32x128xf32>
    %c28 = arith.constant 28 : index
    %c0_143 = arith.constant 0 : index
    %400 = vector.load %arg1[%c28, %c0_143] : memref<40x256xf32, #tpu.memory_space<vmem>>, vector<1x128xf32>
    %c29 = arith.constant 29 : index
    %c0_144 = arith.constant 0 : index
    %401 = vector.load %arg1[%c29, %c0_144] : memref<40x256xf32, #tpu.memory_space<vmem>>, vector<1x128xf32>
    %cst_145 = arith.constant dense<0.000000e+00> : vector<32xf32>
    %402 = vector.multi_reduction <add>, %399, %cst_145 [1] : vector<32x128xf32> to vector<32xf32>
    %403 = vector.shape_cast %402 : vector<32xf32> to vector<32x1xf32>
    %cst_146 = arith.constant 1.280000e+02 : f32
    %404 = vector.broadcast %cst_146 : f32 to vector<32x1xf32>
    %405 = arith.divf %403, %404 : vector<32x1xf32>
    %406 = arith.mulf %399, %399 : vector<32x128xf32>
    %cst_147 = arith.constant dense<0.000000e+00> : vector<32xf32>
    %407 = vector.multi_reduction <add>, %406, %cst_147 [1] : vector<32x128xf32> to vector<32xf32>
    %408 = vector.shape_cast %407 : vector<32xf32> to vector<32x1xf32>
    %cst_148 = arith.constant 1.280000e+02 : f32
    %409 = vector.broadcast %cst_148 : f32 to vector<32x1xf32>
    %410 = arith.divf %408, %409 : vector<32x1xf32>
    %411 = arith.mulf %405, %405 : vector<32x1xf32>
    %412 = arith.subf %410, %411 : vector<32x1xf32>
    %413 = vector.broadcast %405 : vector<32x1xf32> to vector<32x128xf32>
    %414 = arith.subf %399, %413 : vector<32x128xf32>
    %cst_149 = arith.constant 9.99999974E-6 : f32
    %415 = vector.broadcast %cst_149 : f32 to vector<32x1xf32>
    %416 = arith.addf %412, %415 : vector<32x1xf32>
    %417 = math.rsqrt %416 : vector<32x1xf32>
    %418 = vector.broadcast %417 : vector<32x1xf32> to vector<32x128xf32>
    %419 = arith.mulf %414, %418 : vector<32x128xf32>
    %420 = vector.broadcast %400 : vector<1x128xf32> to vector<32x128xf32>
    %421 = arith.mulf %419, %420 : vector<32x128xf32>
    %422 = vector.broadcast %401 : vector<1x128xf32> to vector<32x128xf32>
    %423 = arith.addf %421, %422 : vector<32x128xf32>
    %424 = arith.truncf %423 : vector<32x128xf32> to vector<32x128xbf16>
    %c1280 = arith.constant 1280 : index
    %c0_150 = arith.constant 0 : index
    %425 = vector.load %arg3[%c1280, %c0_150] : memref<1920x256xbf16, #tpu.memory_space<vmem>>, vector<128x128xbf16>
    %cst_151 = arith.constant dense<0.000000e+00> : vector<32x128xf32>
    %426 = tpu.matmul %424, %425, %cst_151 {dimension_numbers = #tpu.dot_dimension_numbers<[1], [0], [0], [1], [0, 0, 1, 1], [], []>} : vector<32x128xbf16>, vector<128x128xbf16>, vector<32x128xf32> -> vector<32x128xf32>
    %c30 = arith.constant 30 : index
    %c0_152 = arith.constant 0 : index
    %427 = vector.load %arg1[%c30, %c0_152] : memref<40x256xf32, #tpu.memory_space<vmem>>, vector<1x128xf32>
    %428 = vector.broadcast %427 : vector<1x128xf32> to vector<32x128xf32>
    %429 = arith.addf %426, %428 : vector<32x128xf32>
    %c1280_153 = arith.constant 1280 : index
    %c128_154 = arith.constant 128 : index
    %430 = vector.load %arg3[%c1280_153, %c128_154] : memref<1920x256xbf16, #tpu.memory_space<vmem>>, vector<128x128xbf16>
    %cst_155 = arith.constant dense<0.000000e+00> : vector<32x128xf32>
    %431 = tpu.matmul %424, %430, %cst_155 {dimension_numbers = #tpu.dot_dimension_numbers<[1], [0], [0], [1], [0, 0, 1, 1], [], []>} : vector<32x128xbf16>, vector<128x128xbf16>, vector<32x128xf32> -> vector<32x128xf32>
    %c31 = arith.constant 31 : index
    %c0_156 = arith.constant 0 : index
    %432 = vector.load %arg1[%c31, %c0_156] : memref<40x256xf32, #tpu.memory_space<vmem>>, vector<1x128xf32>
    %433 = vector.broadcast %432 : vector<1x128xf32> to vector<32x128xf32>
    %434 = arith.addf %431, %433 : vector<32x128xf32>
    %c1408 = arith.constant 1408 : index
    %c0_157 = arith.constant 0 : index
    %435 = vector.load %arg3[%c1408, %c0_157] : memref<1920x256xbf16, #tpu.memory_space<vmem>>, vector<128x128xbf16>
    %cst_158 = arith.constant dense<0.000000e+00> : vector<32x128xf32>
    %436 = tpu.matmul %424, %435, %cst_158 {dimension_numbers = #tpu.dot_dimension_numbers<[1], [0], [0], [1], [0, 0, 1, 1], [], []>} : vector<32x128xbf16>, vector<128x128xbf16>, vector<32x128xf32> -> vector<32x128xf32>
    %c32 = arith.constant 32 : index
    %c0_159 = arith.constant 0 : index
    %437 = vector.load %arg1[%c32, %c0_159] : memref<40x256xf32, #tpu.memory_space<vmem>>, vector<1x128xf32>
    %438 = vector.broadcast %437 : vector<1x128xf32> to vector<32x128xf32>
    %439 = arith.addf %436, %438 : vector<32x128xf32>
    %440 = vector.shape_cast %429 : vector<32x128xf32> to vector<2x16x128xf32>
    %441 = arith.truncf %440 : vector<2x16x128xf32> to vector<2x16x128xbf16>
    %442 = vector.shape_cast %434 : vector<32x128xf32> to vector<2x16x128xf32>
    %443 = arith.truncf %442 : vector<2x16x128xf32> to vector<2x16x128xbf16>
    %444 = vector.shape_cast %439 : vector<32x128xf32> to vector<2x16x128xf32>
    %445 = arith.truncf %444 : vector<2x16x128xf32> to vector<2x16x128xbf16>
    %446 = vector.extract_strided_slice %441 {offsets = [0, 0, 0], sizes = [2, 16, 32], strides = [1, 1, 1]} : vector<2x16x128xbf16> to vector<2x16x32xbf16>
    %447 = vector.extract_strided_slice %443 {offsets = [0, 0, 0], sizes = [2, 16, 32], strides = [1, 1, 1]} : vector<2x16x128xbf16> to vector<2x16x32xbf16>
    "tpu.trace_start"() <{level = 10 : i32, message = "bqd,bkd->bqk"}> : () -> ()
    %cst_160 = arith.constant dense<0.000000e+00> : vector<2x16x16xf32>
    %448 = tpu.matmul %446, %447, %cst_160 {dimension_numbers = #tpu.dot_dimension_numbers<[2], [2], [1], [1], [0, 0, 0, 1, 1, 1], [0], [0]>} : vector<2x16x32xbf16>, vector<2x16x32xbf16>, vector<2x16x16xf32> -> vector<2x16x16xf32>
    "tpu.trace_stop"() : () -> ()
    %cst_161 = arith.constant 0.176776692 : f32
    %449 = vector.broadcast %cst_161 : f32 to vector<2x16x16xf32>
    %450 = arith.mulf %448, %449 : vector<2x16x16xf32>
    %451 = vector.broadcast %75 : vector<1x1x16xf32> to vector<2x16x16xf32>
    %452 = arith.addf %450, %451 : vector<2x16x16xf32>
    %cst_162 = arith.constant dense<0xFF800000> : vector<2x16xf32>
    %453 = vector.multi_reduction <maximumf>, %452, %cst_162 [2] : vector<2x16x16xf32> to vector<2x16xf32>
    %454 = vector.shape_cast %453 : vector<2x16xf32> to vector<2x16x1xf32>
    %455 = vector.broadcast %454 : vector<2x16x1xf32> to vector<2x16x16xf32>
    %456 = arith.subf %452, %455 : vector<2x16x16xf32>
    %457 = math.exp %456 : vector<2x16x16xf32>
    %cst_163 = arith.constant dense<0.000000e+00> : vector<2x16xf32>
    %458 = vector.multi_reduction <add>, %457, %cst_163 [2] : vector<2x16x16xf32> to vector<2x16xf32>
    %459 = vector.shape_cast %458 : vector<2x16xf32> to vector<2x16x1xf32>
    %460 = tpu.reciprocal %459 {approx = true} : vector<2x16x1xf32> -> vector<2x16x1xf32>
    %461 = vector.broadcast %460 : vector<2x16x1xf32> to vector<2x16x16xf32>
    %462 = arith.mulf %457, %461 : vector<2x16x16xf32>
    %463 = arith.truncf %462 : vector<2x16x16xf32> to vector<2x16x16xbf16>
    %464 = vector.extract_strided_slice %445 {offsets = [0, 0, 0], sizes = [2, 16, 32], strides = [1, 1, 1]} : vector<2x16x128xbf16> to vector<2x16x32xbf16>
    "tpu.trace_start"() <{level = 10 : i32, message = "bqk,bkd->bqd"}> : () -> ()
    %cst_164 = arith.constant dense<0.000000e+00> : vector<2x16x32xf32>
    %465 = tpu.matmul %463, %464, %cst_164 {dimension_numbers = #tpu.dot_dimension_numbers<[2], [1], [1], [2], [0, 0, 0, 1, 1, 2], [0], [0]>} : vector<2x16x16xbf16>, vector<2x16x32xbf16>, vector<2x16x32xf32> -> vector<2x16x32xf32>
    "tpu.trace_stop"() : () -> ()
    %466 = vector.extract_strided_slice %441 {offsets = [0, 0, 32], sizes = [2, 16, 32], strides = [1, 1, 1]} : vector<2x16x128xbf16> to vector<2x16x32xbf16>
    %467 = vector.extract_strided_slice %443 {offsets = [0, 0, 32], sizes = [2, 16, 32], strides = [1, 1, 1]} : vector<2x16x128xbf16> to vector<2x16x32xbf16>
    "tpu.trace_start"() <{level = 10 : i32, message = "bqd,bkd->bqk"}> : () -> ()
    %cst_165 = arith.constant dense<0.000000e+00> : vector<2x16x16xf32>
    %468 = tpu.matmul %466, %467, %cst_165 {dimension_numbers = #tpu.dot_dimension_numbers<[2], [2], [1], [1], [0, 0, 0, 1, 1, 1], [0], [0]>} : vector<2x16x32xbf16>, vector<2x16x32xbf16>, vector<2x16x16xf32> -> vector<2x16x16xf32>
    "tpu.trace_stop"() : () -> ()
    %cst_166 = arith.constant 0.176776692 : f32
    %469 = vector.broadcast %cst_166 : f32 to vector<2x16x16xf32>
    %470 = arith.mulf %468, %469 : vector<2x16x16xf32>
    %471 = vector.broadcast %75 : vector<1x1x16xf32> to vector<2x16x16xf32>
    %472 = arith.addf %470, %471 : vector<2x16x16xf32>
    %cst_167 = arith.constant dense<0xFF800000> : vector<2x16xf32>
    %473 = vector.multi_reduction <maximumf>, %472, %cst_167 [2] : vector<2x16x16xf32> to vector<2x16xf32>
    %474 = vector.shape_cast %473 : vector<2x16xf32> to vector<2x16x1xf32>
    %475 = vector.broadcast %474 : vector<2x16x1xf32> to vector<2x16x16xf32>
    %476 = arith.subf %472, %475 : vector<2x16x16xf32>
    %477 = math.exp %476 : vector<2x16x16xf32>
    %cst_168 = arith.constant dense<0.000000e+00> : vector<2x16xf32>
    %478 = vector.multi_reduction <add>, %477, %cst_168 [2] : vector<2x16x16xf32> to vector<2x16xf32>
    %479 = vector.shape_cast %478 : vector<2x16xf32> to vector<2x16x1xf32>
    %480 = tpu.reciprocal %479 {approx = true} : vector<2x16x1xf32> -> vector<2x16x1xf32>
    %481 = vector.broadcast %480 : vector<2x16x1xf32> to vector<2x16x16xf32>
    %482 = arith.mulf %477, %481 : vector<2x16x16xf32>
    %483 = arith.truncf %482 : vector<2x16x16xf32> to vector<2x16x16xbf16>
    %484 = vector.extract_strided_slice %445 {offsets = [0, 0, 32], sizes = [2, 16, 32], strides = [1, 1, 1]} : vector<2x16x128xbf16> to vector<2x16x32xbf16>
    "tpu.trace_start"() <{level = 10 : i32, message = "bqk,bkd->bqd"}> : () -> ()
    %cst_169 = arith.constant dense<0.000000e+00> : vector<2x16x32xf32>
    %485 = tpu.matmul %483, %484, %cst_169 {dimension_numbers = #tpu.dot_dimension_numbers<[2], [1], [1], [2], [0, 0, 0, 1, 1, 2], [0], [0]>} : vector<2x16x16xbf16>, vector<2x16x32xbf16>, vector<2x16x32xf32> -> vector<2x16x32xf32>
    "tpu.trace_stop"() : () -> ()
    %486 = vector.extract_strided_slice %441 {offsets = [0, 0, 64], sizes = [2, 16, 32], strides = [1, 1, 1]} : vector<2x16x128xbf16> to vector<2x16x32xbf16>
    %487 = vector.extract_strided_slice %443 {offsets = [0, 0, 64], sizes = [2, 16, 32], strides = [1, 1, 1]} : vector<2x16x128xbf16> to vector<2x16x32xbf16>
    "tpu.trace_start"() <{level = 10 : i32, message = "bqd,bkd->bqk"}> : () -> ()
    %cst_170 = arith.constant dense<0.000000e+00> : vector<2x16x16xf32>
    %488 = tpu.matmul %486, %487, %cst_170 {dimension_numbers = #tpu.dot_dimension_numbers<[2], [2], [1], [1], [0, 0, 0, 1, 1, 1], [0], [0]>} : vector<2x16x32xbf16>, vector<2x16x32xbf16>, vector<2x16x16xf32> -> vector<2x16x16xf32>
    "tpu.trace_stop"() : () -> ()
    %cst_171 = arith.constant 0.176776692 : f32
    %489 = vector.broadcast %cst_171 : f32 to vector<2x16x16xf32>
    %490 = arith.mulf %488, %489 : vector<2x16x16xf32>
    %491 = vector.broadcast %75 : vector<1x1x16xf32> to vector<2x16x16xf32>
    %492 = arith.addf %490, %491 : vector<2x16x16xf32>
    %cst_172 = arith.constant dense<0xFF800000> : vector<2x16xf32>
    %493 = vector.multi_reduction <maximumf>, %492, %cst_172 [2] : vector<2x16x16xf32> to vector<2x16xf32>
    %494 = vector.shape_cast %493 : vector<2x16xf32> to vector<2x16x1xf32>
    %495 = vector.broadcast %494 : vector<2x16x1xf32> to vector<2x16x16xf32>
    %496 = arith.subf %492, %495 : vector<2x16x16xf32>
    %497 = math.exp %496 : vector<2x16x16xf32>
    %cst_173 = arith.constant dense<0.000000e+00> : vector<2x16xf32>
    %498 = vector.multi_reduction <add>, %497, %cst_173 [2] : vector<2x16x16xf32> to vector<2x16xf32>
    %499 = vector.shape_cast %498 : vector<2x16xf32> to vector<2x16x1xf32>
    %500 = tpu.reciprocal %499 {approx = true} : vector<2x16x1xf32> -> vector<2x16x1xf32>
    %501 = vector.broadcast %500 : vector<2x16x1xf32> to vector<2x16x16xf32>
    %502 = arith.mulf %497, %501 : vector<2x16x16xf32>
    %503 = arith.truncf %502 : vector<2x16x16xf32> to vector<2x16x16xbf16>
    %504 = vector.extract_strided_slice %445 {offsets = [0, 0, 64], sizes = [2, 16, 32], strides = [1, 1, 1]} : vector<2x16x128xbf16> to vector<2x16x32xbf16>
    "tpu.trace_start"() <{level = 10 : i32, message = "bqk,bkd->bqd"}> : () -> ()
    %cst_174 = arith.constant dense<0.000000e+00> : vector<2x16x32xf32>
    %505 = tpu.matmul %503, %504, %cst_174 {dimension_numbers = #tpu.dot_dimension_numbers<[2], [1], [1], [2], [0, 0, 0, 1, 1, 2], [0], [0]>} : vector<2x16x16xbf16>, vector<2x16x32xbf16>, vector<2x16x32xf32> -> vector<2x16x32xf32>
    "tpu.trace_stop"() : () -> ()
    %506 = vector.extract_strided_slice %441 {offsets = [0, 0, 96], sizes = [2, 16, 32], strides = [1, 1, 1]} : vector<2x16x128xbf16> to vector<2x16x32xbf16>
    %507 = vector.extract_strided_slice %443 {offsets = [0, 0, 96], sizes = [2, 16, 32], strides = [1, 1, 1]} : vector<2x16x128xbf16> to vector<2x16x32xbf16>
    "tpu.trace_start"() <{level = 10 : i32, message = "bqd,bkd->bqk"}> : () -> ()
    %cst_175 = arith.constant dense<0.000000e+00> : vector<2x16x16xf32>
    %508 = tpu.matmul %506, %507, %cst_175 {dimension_numbers = #tpu.dot_dimension_numbers<[2], [2], [1], [1], [0, 0, 0, 1, 1, 1], [0], [0]>} : vector<2x16x32xbf16>, vector<2x16x32xbf16>, vector<2x16x16xf32> -> vector<2x16x16xf32>
    "tpu.trace_stop"() : () -> ()
    %cst_176 = arith.constant 0.176776692 : f32
    %509 = vector.broadcast %cst_176 : f32 to vector<2x16x16xf32>
    %510 = arith.mulf %508, %509 : vector<2x16x16xf32>
    %511 = vector.broadcast %75 : vector<1x1x16xf32> to vector<2x16x16xf32>
    %512 = arith.addf %510, %511 : vector<2x16x16xf32>
    %cst_177 = arith.constant dense<0xFF800000> : vector<2x16xf32>
    %513 = vector.multi_reduction <maximumf>, %512, %cst_177 [2] : vector<2x16x16xf32> to vector<2x16xf32>
    %514 = vector.shape_cast %513 : vector<2x16xf32> to vector<2x16x1xf32>
    %515 = vector.broadcast %514 : vector<2x16x1xf32> to vector<2x16x16xf32>
    %516 = arith.subf %512, %515 : vector<2x16x16xf32>
    %517 = math.exp %516 : vector<2x16x16xf32>
    %cst_178 = arith.constant dense<0.000000e+00> : vector<2x16xf32>
    %518 = vector.multi_reduction <add>, %517, %cst_178 [2] : vector<2x16x16xf32> to vector<2x16xf32>
    %519 = vector.shape_cast %518 : vector<2x16xf32> to vector<2x16x1xf32>
    %520 = tpu.reciprocal %519 {approx = true} : vector<2x16x1xf32> -> vector<2x16x1xf32>
    %521 = vector.broadcast %520 : vector<2x16x1xf32> to vector<2x16x16xf32>
    %522 = arith.mulf %517, %521 : vector<2x16x16xf32>
    %523 = arith.truncf %522 : vector<2x16x16xf32> to vector<2x16x16xbf16>
    %524 = vector.extract_strided_slice %445 {offsets = [0, 0, 96], sizes = [2, 16, 32], strides = [1, 1, 1]} : vector<2x16x128xbf16> to vector<2x16x32xbf16>
    "tpu.trace_start"() <{level = 10 : i32, message = "bqk,bkd->bqd"}> : () -> ()
    %cst_179 = arith.constant dense<0.000000e+00> : vector<2x16x32xf32>
    %525 = tpu.matmul %523, %524, %cst_179 {dimension_numbers = #tpu.dot_dimension_numbers<[2], [1], [1], [2], [0, 0, 0, 1, 1, 2], [0], [0]>} : vector<2x16x16xbf16>, vector<2x16x32xbf16>, vector<2x16x32xf32> -> vector<2x16x32xf32>
    "tpu.trace_stop"() : () -> ()
    %526 = tpu.concatenate %465, %485, %505, %525 in 2 : vector<2x16x32xf32>, vector<2x16x32xf32>, vector<2x16x32xf32>, vector<2x16x32xf32> -> vector<2x16x128xf32>
    %527 = vector.shape_cast %526 : vector<2x16x128xf32> to vector<32x128xf32>
    %528 = arith.truncf %527 : vector<32x128xf32> to vector<32x128xbf16>
    %c1408_180 = arith.constant 1408 : index
    %c128_181 = arith.constant 128 : index
    %529 = vector.load %arg3[%c1408_180, %c128_181] : memref<1920x256xbf16, #tpu.memory_space<vmem>>, vector<128x128xbf16>
    %cst_182 = arith.constant dense<0.000000e+00> : vector<32x128xf32>
    %530 = tpu.matmul %528, %529, %cst_182 {dimension_numbers = #tpu.dot_dimension_numbers<[1], [0], [0], [1], [0, 0, 1, 1], [], []>} : vector<32x128xbf16>, vector<128x128xbf16>, vector<32x128xf32> -> vector<32x128xf32>
    %c33 = arith.constant 33 : index
    %c0_183 = arith.constant 0 : index
    %531 = vector.load %arg1[%c33, %c0_183] : memref<40x256xf32, #tpu.memory_space<vmem>>, vector<1x128xf32>
    %532 = vector.broadcast %531 : vector<1x128xf32> to vector<32x128xf32>
    %533 = arith.addf %530, %532 : vector<32x128xf32>
    %534 = arith.addf %423, %533 : vector<32x128xf32>
    %c34 = arith.constant 34 : index
    %c0_184 = arith.constant 0 : index
    %535 = vector.load %arg1[%c34, %c0_184] : memref<40x256xf32, #tpu.memory_space<vmem>>, vector<1x128xf32>
    %c35 = arith.constant 35 : index
    %c0_185 = arith.constant 0 : index
    %536 = vector.load %arg1[%c35, %c0_185] : memref<40x256xf32, #tpu.memory_space<vmem>>, vector<1x128xf32>
    %cst_186 = arith.constant dense<0.000000e+00> : vector<32xf32>
    %537 = vector.multi_reduction <add>, %534, %cst_186 [1] : vector<32x128xf32> to vector<32xf32>
    %538 = vector.shape_cast %537 : vector<32xf32> to vector<32x1xf32>
    %cst_187 = arith.constant 1.280000e+02 : f32
    %539 = vector.broadcast %cst_187 : f32 to vector<32x1xf32>
    %540 = arith.divf %538, %539 : vector<32x1xf32>
    %541 = arith.mulf %534, %534 : vector<32x128xf32>
    %cst_188 = arith.constant dense<0.000000e+00> : vector<32xf32>
    %542 = vector.multi_reduction <add>, %541, %cst_188 [1] : vector<32x128xf32> to vector<32xf32>
    %543 = vector.shape_cast %542 : vector<32xf32> to vector<32x1xf32>
    %cst_189 = arith.constant 1.280000e+02 : f32
    %544 = vector.broadcast %cst_189 : f32 to vector<32x1xf32>
    %545 = arith.divf %543, %544 : vector<32x1xf32>
    %546 = arith.mulf %540, %540 : vector<32x1xf32>
    %547 = arith.subf %545, %546 : vector<32x1xf32>
    %548 = vector.broadcast %540 : vector<32x1xf32> to vector<32x128xf32>
    %549 = arith.subf %534, %548 : vector<32x128xf32>
    %cst_190 = arith.constant 9.99999974E-6 : f32
    %550 = vector.broadcast %cst_190 : f32 to vector<32x1xf32>
    %551 = arith.addf %547, %550 : vector<32x1xf32>
    %552 = math.rsqrt %551 : vector<32x1xf32>
    %553 = vector.broadcast %552 : vector<32x1xf32> to vector<32x128xf32>
    %554 = arith.mulf %549, %553 : vector<32x128xf32>
    %555 = vector.broadcast %535 : vector<1x128xf32> to vector<32x128xf32>
    %556 = arith.mulf %554, %555 : vector<32x128xf32>
    %557 = vector.broadcast %536 : vector<1x128xf32> to vector<32x128xf32>
    %558 = arith.addf %556, %557 : vector<32x128xf32>
    %559 = arith.truncf %558 : vector<32x128xf32> to vector<32x128xbf16>
    %c1536 = arith.constant 1536 : index
    %c0_191 = arith.constant 0 : index
    %560 = vector.load %arg3[%c1536, %c0_191] : memref<1920x256xbf16, #tpu.memory_space<vmem>>, vector<128x256xbf16>
    %cst_192 = arith.constant dense<0.000000e+00> : vector<32x256xf32>
    %561 = tpu.matmul %559, %560, %cst_192 {dimension_numbers = #tpu.dot_dimension_numbers<[1], [0], [0], [1], [0, 0, 1, 1], [], []>} : vector<32x128xbf16>, vector<128x256xbf16>, vector<32x256xf32> -> vector<32x256xf32>
    %c36 = arith.constant 36 : index
    %c0_193 = arith.constant 0 : index
    %562 = vector.load %arg1[%c36, %c0_193] : memref<40x256xf32, #tpu.memory_space<vmem>>, vector<1x256xf32>
    %563 = vector.broadcast %562 : vector<1x256xf32> to vector<32x256xf32>
    %564 = arith.addf %561, %563 : vector<32x256xf32>
    %cst_194 = arith.constant 0.000000e+00 : f32
    %565 = vector.broadcast %cst_194 : f32 to vector<32x256xf32>
    %566 = arith.maximumf %564, %565 : vector<32x256xf32>
    %567 = arith.truncf %566 : vector<32x256xf32> to vector<32x256xbf16>
    %c1664 = arith.constant 1664 : index
    %c0_195 = arith.constant 0 : index
    %568 = vector.load %arg3[%c1664, %c0_195] : memref<1920x256xbf16, #tpu.memory_space<vmem>>, vector<256x128xbf16>
    %cst_196 = arith.constant dense<0.000000e+00> : vector<32x128xf32>
    %569 = tpu.matmul %567, %568, %cst_196 {dimension_numbers = #tpu.dot_dimension_numbers<[1], [0], [0], [1], [0, 0, 1, 1], [], []>} : vector<32x256xbf16>, vector<256x128xbf16>, vector<32x128xf32> -> vector<32x128xf32>
    %c37 = arith.constant 37 : index
    %c0_197 = arith.constant 0 : index
    %570 = vector.load %arg1[%c37, %c0_197] : memref<40x256xf32, #tpu.memory_space<vmem>>, vector<1x128xf32>
    %571 = vector.broadcast %570 : vector<1x128xf32> to vector<32x128xf32>
    %572 = arith.addf %569, %571 : vector<32x128xf32>
    %573 = arith.addf %558, %572 : vector<32x128xf32>
    %c38 = arith.constant 38 : index
    %c0_198 = arith.constant 0 : index
    %574 = vector.load %arg1[%c38, %c0_198] : memref<40x256xf32, #tpu.memory_space<vmem>>, vector<1x128xf32>
    %c39 = arith.constant 39 : index
    %c0_199 = arith.constant 0 : index
    %575 = vector.load %arg1[%c39, %c0_199] : memref<40x256xf32, #tpu.memory_space<vmem>>, vector<1x128xf32>
    %cst_200 = arith.constant dense<0.000000e+00> : vector<32xf32>
    %576 = vector.multi_reduction <add>, %573, %cst_200 [1] : vector<32x128xf32> to vector<32xf32>
    %577 = vector.shape_cast %576 : vector<32xf32> to vector<32x1xf32>
    %cst_201 = arith.constant 1.280000e+02 : f32
    %578 = vector.broadcast %cst_201 : f32 to vector<32x1xf32>
    %579 = arith.divf %577, %578 : vector<32x1xf32>
    %580 = arith.mulf %573, %573 : vector<32x128xf32>
    %cst_202 = arith.constant dense<0.000000e+00> : vector<32xf32>
    %581 = vector.multi_reduction <add>, %580, %cst_202 [1] : vector<32x128xf32> to vector<32xf32>
    %582 = vector.shape_cast %581 : vector<32xf32> to vector<32x1xf32>
    %cst_203 = arith.constant 1.280000e+02 : f32
    %583 = vector.broadcast %cst_203 : f32 to vector<32x1xf32>
    %584 = arith.divf %582, %583 : vector<32x1xf32>
    %585 = arith.mulf %579, %579 : vector<32x1xf32>
    %586 = arith.subf %584, %585 : vector<32x1xf32>
    %587 = vector.broadcast %579 : vector<32x1xf32> to vector<32x128xf32>
    %588 = arith.subf %573, %587 : vector<32x128xf32>
    %cst_204 = arith.constant 9.99999974E-6 : f32
    %589 = vector.broadcast %cst_204 : f32 to vector<32x1xf32>
    %590 = arith.addf %586, %589 : vector<32x1xf32>
    %591 = math.rsqrt %590 : vector<32x1xf32>
    %592 = vector.broadcast %591 : vector<32x1xf32> to vector<32x128xf32>
    %593 = arith.mulf %588, %592 : vector<32x128xf32>
    %594 = vector.broadcast %574 : vector<1x128xf32> to vector<32x128xf32>
    %595 = arith.mulf %593, %594 : vector<32x128xf32>
    %596 = vector.broadcast %575 : vector<1x128xf32> to vector<32x128xf32>
    %597 = arith.addf %595, %596 : vector<32x128xf32>
    %c784 = arith.constant 784 : index
    %c0_205 = arith.constant 0 : index
    %598 = vector.load %arg2[%c784, %c0_205] : memref<1296x128xf32, #tpu.memory_space<vmem>>, vector<128x128xf32>
    %cst_206 = arith.constant dense<0.000000e+00> : vector<32x128xf32>
    %599 = tpu.matmul %597, %598, %cst_206 {dimension_numbers = #tpu.dot_dimension_numbers<[1], [0], [0], [1], [0, 0, 1, 1], [], []>} : vector<32x128xf32>, vector<128x128xf32>, vector<32x128xf32> -> vector<32x128xf32>
    %c7 = arith.constant 7 : index
    %c0_207 = arith.constant 0 : index
    %600 = vector.load %arg1[%c7, %c0_207] : memref<40x256xf32, #tpu.memory_space<vmem>>, vector<1x128xf32>
    %601 = vector.broadcast %600 : vector<1x128xf32> to vector<32x128xf32>
    %602 = arith.addf %599, %601 : vector<32x128xf32>
    %cst_208 = arith.constant 0.000000e+00 : f32
    %603 = vector.broadcast %cst_208 : f32 to vector<32x128xf32>
    %604 = arith.maximumf %602, %603 : vector<32x128xf32>
    %c912 = arith.constant 912 : index
    %c0_209 = arith.constant 0 : index
    %605 = vector.load %arg2[%c912, %c0_209] : memref<1296x128xf32, #tpu.memory_space<vmem>>, vector<128x128xf32>
    %cst_210 = arith.constant dense<0.000000e+00> : vector<32x128xf32>
    %606 = tpu.matmul %597, %605, %cst_210 {dimension_numbers = #tpu.dot_dimension_numbers<[1], [0], [0], [1], [0, 0, 1, 1], [], []>} : vector<32x128xf32>, vector<128x128xf32>, vector<32x128xf32> -> vector<32x128xf32>
    %c1040 = arith.constant 1040 : index
    %c0_211 = arith.constant 0 : index
    %607 = vector.load %arg2[%c1040, %c0_211] : memref<1296x128xf32, #tpu.memory_space<vmem>>, vector<128x128xf32>
    %cst_212 = arith.constant dense<0.000000e+00> : vector<32x128xf32>
    %608 = tpu.matmul %604, %607, %cst_212 {dimension_numbers = #tpu.dot_dimension_numbers<[1], [0], [0], [1], [0, 0, 1, 1], [], []>} : vector<32x128xf32>, vector<128x128xf32>, vector<32x128xf32> -> vector<32x128xf32>
    %609 = arith.addf %606, %608 : vector<32x128xf32>
    %c8 = arith.constant 8 : index
    %c0_213 = arith.constant 0 : index
    %610 = vector.load %arg1[%c8, %c0_213] : memref<40x256xf32, #tpu.memory_space<vmem>>, vector<1x128xf32>
    %611 = vector.broadcast %610 : vector<1x128xf32> to vector<32x128xf32>
    %612 = arith.addf %609, %611 : vector<32x128xf32>
    %c0_214 = arith.constant 0 : index
    %c0_215 = arith.constant 0 : index
    %613 = vector.load %arg4[%c0_214, %c0_215] : memref<32x128xf32, #tpu.memory_space<vmem>>, vector<32x128xf32>
    tpu.vector_store %arg4[%c0_214, %c0_215], %612 {strides = array<i32>} : memref<32x128xf32, #tpu.memory_space<vmem>>, vector<32x128xf32>,
    %c1168 = arith.constant 1168 : index
    %c0_216 = arith.constant 0 : index
    %614 = vector.load %arg2[%c1168, %c0_216] : memref<1296x128xf32, #tpu.memory_space<vmem>>, vector<128x128xf32>
    %cst_217 = arith.constant dense<0.000000e+00> : vector<2x128xf32>
    %615 = tpu.matmul %62, %614, %cst_217 {dimension_numbers = #tpu.dot_dimension_numbers<[1], [0], [0], [1], [0, 0, 1, 1], [], []>} : vector<2x128xf32>, vector<128x128xf32>, vector<2x128xf32> -> vector<2x128xf32>
    %c9 = arith.constant 9 : index
    %c0_218 = arith.constant 0 : index
    %616 = vector.load %arg1[%c9, %c0_218] : memref<40x256xf32, #tpu.memory_space<vmem>>, vector<1x128xf32>
    %617 = vector.broadcast %616 : vector<1x128xf32> to vector<2x128xf32>
    %618 = arith.addf %615, %617 : vector<2x128xf32>
    %c0_219 = arith.constant 0 : index
    %c0_220 = arith.constant 0 : index
    %619 = vector.load %arg5[%c0_219, %c0_220] : memref<2x128xf32, #tpu.memory_space<vmem>>, vector<2x128xf32>
    tpu.vector_store %arg5[%c0_219, %c0_220], %618 {strides = array<i32>} : memref<2x128xf32, #tpu.memory_space<vmem>>, vector<2x128xf32>,
    return
  }
}

</mosaic_0001>

<bundles_post_ra>
// kernel: tpu_custom_call.1
= control target key start
LH: loop header
LB: loop body
LE: loop exit
PB: predicated region body
PF: predicated region fallthrough
CT: control target
= control target key end

     0   :  { %11 = vsyncpa [#allocation3], 0  ;;  %s10898_s0 = inlined_call_operand.hbm [shape: f32[2,128], index: 0, kind: input, shape index: {}]   ;;  %s10899_s1 = inlined_call_operand.hbm [shape: f32[40,256], index: 1, kind: input, shape index: {}]   ;;  %s10900_s2 = inlined_call_operand.hbm [shape: f32[1296,128], index: 2, kind: input, shape index: {}]   ;;  %s10901_s3 = inlined_call_operand.hbm [shape: bf16[1920,256], index: 3, kind: input, shape index: {}]   ;;  %s10902_s4 = inlined_call_operand.hbm [shape: f32[32,128], index: 4, kind: output, shape index: {0}]   ;;  %s10903_s5 = inlined_call_operand.hbm [shape: f32[2,128], index: 5, kind: output, shape index: {1}]  }
   0x1   :  { %12 = vsyncpa [#allocation6], 0 }
   0x2   :  { %13 = vsyncpa [#allocation9], 0 }
   0x3   :  { %14 = vsyncpa [#allocation4], 0 }
   0x4   :  { %15 = vsyncpa [#allocation12], 0  ;;  %s9704_s18 = smov [#allocation5]   ;;  %s9562_s22 = scalar_lea.hbm %s10899_s1, 1280 }
   0x5   :  { %s31_s19 = sshll.u32 %s9704_s18, 4  ;;  %p9563_p0 = scmp.ne.s32.totalorder %s10899_s1, %s9562_s22  ;;  %s32_s19 = int_to_ptr.vmem [resolvable:$true] %s31_s19 }
   0x6   :  { %p9566_p1 = scmp.lt.u32.totalorder %s9562_s22, %s10899_s1 }
   0x8   :  { %p9568_p2 = pnand %p9566_p1, %p9563_p0 }
   0xa   :  { %9571 = shalt.err (!%p9568_p2)
}
   0xb   :  { %s9572_s27 = scalar_lea.vmem %s32_s19, 1280  ;;  %p9577_p4 = scmp.lt.s32.totalorder %s32_s19, %s32_s19 }
   0xc   :  { %p9573_p3 = scmp.ne.s32.totalorder %s32_s19, %s9572_s27  ;;  %p9578_p5 = scmp.lt.s32.totalorder %s9572_s27, %s9572_s27 }
   0xe   :  { %p9579_p6 = por %p9578_p5, %p9577_p4 }
  0x10   :  { %p9580_p7 = pnand %p9579_p6, %p9573_p3 }
  0x12   :  { %9583 = shalt.err (!%p9580_p7)
}
  0x13   :  { %s9705_s28 = smov 256   ;;  %s9706_s29 = smov 16  }
  0x14   :  { %37 = dma.hbm_to_vmem [thread:$0]  %s10899_s1, 1280, %s32_s19, [#allocation6], %s9705_s28, %s9705_s28, %s9706_s29  }
  0x15   :  { %s9707_s7 = smov [#allocation2]   ;;  %s9708_s9 = smov [#allocation7]  }
  0x16   :  { %s22_s8 = sshll.u32 %s9707_s7, 4  ;;  %s43_s10 = sshll.u32 %s9708_s9, 4  ;;  %s23_s8 = int_to_ptr.vmem [resolvable:$true] %s22_s8  ;;  %s44_s10 = int_to_ptr.vmem [resolvable:$true] %s43_s10 }
  0x17   :  { %s9584_s13 = scalar_lea.hbm %s10898_s0, 32 }
  0x18   :  { %p9585_p8 = scmp.ne.s32.totalorder %s10898_s0, %s9584_s13  ;;  %p9588_p9 = scmp.lt.u32.totalorder %s9584_s13, %s10898_s0 }
  0x1a   :  { %p9590_p10 = pnand %p9588_p9, %p9585_p8 }
  0x1c   :  { %9593 = shalt.err (!%p9590_p10)
}
  0x1d   :  { %s9594_s1 = scalar_lea.vmem %s23_s8, 32  ;;  %p9599_p12 = scmp.lt.s32.totalorder %s23_s8, %s23_s8 }
  0x1e   :  { %p9595_p11 = scmp.ne.s32.totalorder %s23_s8, %s9594_s1  ;;  %p9600_p13 = scmp.lt.s32.totalorder %s9594_s1, %s9594_s1 }
  0x20   :  { %p9601_p0 = por %p9600_p13, %p9599_p12 }
  0x22   :  { %p9602_p1 = pnand %p9601_p0, %p9595_p11 }
  0x24   :  { %9605 = shalt.err (!%p9602_p1)
}
  0x25   :  { %25 = dma.hbm_to_vmem [thread:$0]  %s10898_s0, 32, %s23_s8, [#allocation3]  }
  0x26   :  { %s9606_s22 = scalar_lea.hbm %s10900_s2, 20736 }
  0x27   :  { %p9607_p2 = scmp.ne.s32.totalorder %s10900_s2, %s9606_s22  ;;  %p9610_p3 = scmp.lt.u32.totalorder %s9606_s22, %s10900_s2 }
  0x29   :  { %p9612_p4 = pnand %p9610_p3, %p9607_p2 }
  0x2b   :  { %9615 = shalt.err (!%p9612_p4)
}
  0x2c   :  { %s9616_s27 = scalar_lea.vmem %s44_s10, 20736  ;;  %p9621_p6 = scmp.lt.s32.totalorder %s44_s10, %s44_s10 }
  0x2d   :  { %p9617_p5 = scmp.ne.s32.totalorder %s44_s10, %s9616_s27  ;;  %p9622_p7 = scmp.lt.s32.totalorder %s9616_s27, %s9616_s27 }
  0x2f   :  { %p9623_p8 = por %p9622_p7, %p9621_p6 }
  0x31   :  { %p9624_p9 = pnand %p9623_p8, %p9617_p5 }
  0x33   :  { %9627 = shalt.err (!%p9624_p9)
}
  0x34   :  { %s9709_s0 = smov 128   ;;  %s9710_s28 = smov 8  }
  0x35   :  { %49 = dma.hbm_to_vmem [thread:$0]  %s10900_s2, 20736, %s44_s10, [#allocation6], %s9709_s0, %s9709_s0, %s9710_s28  }
  0x36   :  { %s9711_s6 = smov [#allocation8]   ;;  %s9628_s11 = scalar_lea.hbm %s10901_s3, 30720 }
  0x37   :  { %s55_s7 = sshll.u32 %s9711_s6, 4  ;;  %p9629_p10 = scmp.ne.s32.totalorder %s10901_s3, %s9628_s11  ;;  %s56_s7 = int_to_ptr.vmem [resolvable:$true] %s55_s7 }
  0x38   :  { %p9632_p11 = scmp.lt.u32.totalorder %s9628_s11, %s10901_s3 }
  0x3a   :  { %p9634_p12 = pnand %p9632_p11, %p9629_p10 }
  0x3c   :  { %9637 = shalt.err (!%p9634_p12)
}
  0x3d   :  { %s9638_s16 = scalar_lea.vmem %s56_s7, 30720  ;;  %p9643_p0 = scmp.lt.s32.totalorder %s56_s7, %s56_s7 }
  0x3e   :  { %p9639_p13 = scmp.ne.s32.totalorder %s56_s7, %s9638_s16  ;;  %p9644_p1 = scmp.lt.s32.totalorder %s9638_s16, %s9638_s16 }
  0x40   :  { %p9645_p2 = por %p9644_p1, %p9643_p0 }
  0x42   :  { %p9646_p3 = pnand %p9645_p2, %p9639_p13 }
  0x44   :  { %9649 = shalt.err (!%p9646_p3)
}
  0x45   :  { %61 = dma.hbm_to_vmem [thread:$0]  %s10901_s3, 30720, %s56_s7, [#allocation9], %s9709_s0, %s9709_s0, %s9710_s28  }
  0x46   :  { %9694 = dma.done.wait [#allocation3], 32  }
  0x47   :  { %9695 = vsyncadd [#allocation3], 4294967264 }
  0x48   :  { %9696 = dma.done.wait [#allocation6], 22016  }
  0x49   :  { %9697 = vsyncadd [#allocation6], 4294945280 }
  0x4a   :  { %9698 = dma.done.wait [#allocation9], 30720  }
  0x4b   :  { %9699 = vsyncadd [#allocation9], 4294936576  ;;  %v9712_v0 = vmov 0.0|0.0   ;;  %vm9713_vm0 = vmmov 0   ;;  %v9714_v1 = vmov 0.0   ;;  %v76_v2 = vld [vmem:[#allocation7] sm:$0xff] }
  0x4c   :  { %8727 = vmatprep.subr.bf16.mxu0 %v9712_v0  ;;  %8751 = vmatprep.subr.bf16.mxu1 %v9712_v0  ;;  %v77_v3 = vld [vmem:[#allocation7 + $0x8] sm:$0xff]  ;;  %v164_v4 = vld [vmem:[#allocation7 + $0x80] sm:$0xff]  ;;  %v78_v7 = vld [vmem:[#allocation7 + $0x10] sm:$0xff]  ;;  %vm604_vm1 = vcmask 1041408   ;;  %vm1017_vm2 = vcmask 261120   ;;  %vm1120_vm4 = vcmask 130048  }
  0x4d   :  { %7872 = vmatprep.mubr.msk.f32.mxu0 %vm9713_vm0, %v9714_v1  ;;  %7907 = vmatprep.mubr.msk.f32.mxu1 %vm9713_vm0, %v9714_v1  ;;  %v8728_v5 = vpack.c.bf16 %v77_v3, %v76_v2  ;;  %v165_v6 = vld [vmem:[#allocation7 + $0x88] sm:$0xff]  ;;  %v79_v8 = vld [vmem:[#allocation7 + $0x18] sm:$0xff]  ;;  %v166_v10 = vld [vmem:[#allocation7 + $0x90] sm:$0xff]  ;;  %s9717_s3 = smov 96   ;;  %s9718_s17 = smov 64   ;;  %vm2063_vm5 = vcmask 523264  }
  0x4e   :  { %v8752_v9 = vpack.c.bf16 %v165_v6, %v164_v4  ;;  %v167_v11 = vld [vmem:[#allocation7 + $0x98] sm:$0xff]  ;;  %v8731_v12 = vpack.c.bf16 %v79_v8, %v78_v7  ;;  %v80_v14 = vld [vmem:[#allocation7 + $0x20] sm:$0xff]  ;;  %v81_v15 = vld [vmem:[#allocation7 + $0x28] sm:$0xff]  ;;  %s9719_s1 = smov 32   ;;  %vm2068_vm6 = vcmask 785408   ;;  %s9721_s18 = smov [#allocation11]  }
  0x4f   :  { %8729 = vmatpush3.bf16.msra.mxu0 %v8728_v5  ;;  %v8755_v13 = vpack.c.bf16 %v167_v11, %v166_v10  ;;  %v168_v16 = vld [vmem:[#allocation7 + $0xa0] sm:$0xff]  ;;  %v169_v17 = vld [vmem:[#allocation7 + $0xa8] sm:$0xff]  ;;  %v8734_v18 = vpack.c.bf16 %v81_v15, %v80_v14  ;;  %v82_v20 = vld [vmem:[#allocation7 + $0x30] sm:$0xff]  ;;  %s7106_s19 = sshll.u32 %s9721_s18, 4  ;;  %s7107_s19 = int_to_ptr.vmem [resolvable:$true] %s7106_s19 }
  0x50   :  { %8753 = vmatpush3.bf16.msra.mxu1 %v8752_v9  ;;  %8730 = vmatprep.subr.bf16.mxu0 %v9712_v0  ;;  %v8758_v19 = vpack.c.bf16 %v169_v17, %v168_v16  ;;  %v83_v21 = vld [vmem:[#allocation7 + $0x38] sm:$0xff]  ;;  %v170_v22 = vld [vmem:[#allocation7 + $0xb0] sm:$0xff]  ;;  %v84_v26 = vld [vmem:[#allocation7 + $0x40] sm:$0xff]  ;;  %s9650_s20 = scalar_lea.vmem %s7107_s19, 32  ;;  %p9655_p5 = scmp.lt.s32.totalorder %s7107_s19, %s7107_s19 }
  0x51   :  { %8754 = vmatprep.subr.bf16.mxu1 %v9712_v0  ;;  %v171_v23 = vld [vmem:[#allocation7 + $0xb8] sm:$0xff]  ;;  %v8737_v24 = vpack.c.bf16 %v83_v21, %v82_v20  ;;  %v85_v27 = vld [vmem:[#allocation7 + $0x48] sm:$0xff]  ;;  %v172_v28 = vld [vmem:[#allocation7 + $0xc0] sm:$0xff]  ;;  %p9651_p4 = scmp.ne.s32.totalorder %s7107_s19, %s9650_s20  ;;  %p9656_p6 = scmp.lt.s32.totalorder %s9650_s20, %s9650_s20 }
  0x52   :  { %v8761_v25 = vpack.c.bf16 %v171_v23, %v170_v22  ;;  %v173_v29 = vld [vmem:[#allocation7 + $0xc8] sm:$0xff]  ;;  %v8740_v30 = vpack.c.bf16 %v85_v27, %v84_v26  ;;  %v86_v32 = vld [vmem:[#allocation7 + $0x50] sm:$0xff]  ;;  %v87_v33 = vld [vmem:[#allocation7 + $0x58] sm:$0xff] }
  0x53   :  { %8732 = vmatpush3.bf16.msra.mxu0 %v8731_v12  ;;  %v8764_v31 = vpack.c.bf16 %v173_v29, %v172_v28  ;;  %v174_v34 = vld [vmem:[#allocation7 + $0xd0] sm:$0xff]  ;;  %v175_v35 = vld [vmem:[#allocation7 + $0xd8] sm:$0xff]  ;;  %v8743_v36 = vpack.c.bf16 %v87_v33, %v86_v32  ;;  %v88_v37 = vld [vmem:[#allocation7 + $0x60] sm:$0xff]  ;;  %p9657_p7 = por %p9656_p6, %p9655_p5 }
  0x54   :  { %8756 = vmatpush3.bf16.msra.mxu1 %v8755_v13  ;;  %8733 = vmatprep.subr.bf16.mxu0 %v9712_v0  ;;  %v89_v38 = vld [vmem:[#allocation7 + $0x68] sm:$0xff]  ;;  %v8767_v39 = vpack.c.bf16 %v175_v35, %v174_v34  ;;  %v176_v40 = vld [vmem:[#allocation7 + $0xe0] sm:$0xff]  ;;  %v90_v42 = vld [vmem:[#allocation7 + $0x70] sm:$0xff] }
  0x55   :  { %8757 = vmatprep.subr.bf16.mxu1 %v9712_v0  ;;  %v177_v41 = vld [vmem:[#allocation7 + $0xe8] sm:$0xff]  ;;  %v91_v43 = vld [vmem:[#allocation7 + $0x78] sm:$0xff]  ;;  %v8746_v44 = vpack.c.bf16 %v89_v38, %v88_v37  ;;  %v178_v45 = vld [vmem:[#allocation7 + $0xf0] sm:$0xff]  ;;  %p9658_p8 = pnand %p9657_p7, %p9651_p4 }
  0x56   :  { %v179_v46 = vld [vmem:[#allocation7 + $0xf8] sm:$0xff]  ;;  %v8770_v47 = vpack.c.bf16 %v177_v41, %v176_v40  ;;  %v252_v48 = vld [vmem:[#allocation7 + $0x100] sm:$0xff]  ;;  %v253_v49 = vld [vmem:[#allocation7 + $0x108] sm:$0xff]  ;;  %v8749_v50 = vpack.c.bf16 %v91_v43, %v90_v42 }
  0x57   :  { %8735 = vmatpush3.bf16.msra.mxu0 %v8734_v18  ;;  %v340_v51 = vld [vmem:[#allocation7 + $0x180] sm:$0xff]  ;;  %v341_v52 = vld [vmem:[#allocation7 + $0x188] sm:$0xff]  ;;  %v8773_v53 = vpack.c.bf16 %v179_v46, %v178_v45  ;;  %v254_v55 = vld [vmem:[#allocation7 + $0x110] sm:$0xff]  ;;  %v8776_v57 = vpack.c.bf16 %v253_v49, %v252_v48 }
  0x58   :  { %8759 = vmatpush3.bf16.msra.mxu1 %v8758_v19  ;;  %8736 = vmatprep.subr.bf16.mxu0 %v9712_v0  ;;  %v75_v54 = vld [vmem:[#allocation2] sm:$0x3]  ;;  %v255_v56 = vld [vmem:[#allocation7 + $0x118] sm:$0xff]  ;;  %v342_v58 = vld [vmem:[#allocation7 + $0x190] sm:$0xff]  ;;  %v8800_v60 = vpack.c.bf16 %v341_v52, %v340_v51 }
  0x59   :  { %8760 = vmatprep.subr.bf16.mxu1 %v9712_v0  ;;  %v343_v59 = vld [vmem:[#allocation7 + $0x198] sm:$0xff]  ;;  %v256_v61 = vld [vmem:[#allocation7 + $0x120] sm:$0xff]  ;;  %v257_v62 = vld [vmem:[#allocation7 + $0x128] sm:$0xff]  ;;  %v8779_v63 = vpack.c.bf16 %v255_v56, %v254_v55 }
  0x5a   :  { %v344_v2 = vld [vmem:[#allocation7 + $0x1a0] sm:$0xff]  ;;  %v345_v3 = vld [vmem:[#allocation7 + $0x1a8] sm:$0xff]  ;;  %v8803_v4 = vpack.c.bf16 %v343_v59, %v342_v58  ;;  %v258_v5 = vld [vmem:[#allocation7 + $0x130] sm:$0xff]  ;;  %v8782_v7 = vpack.c.bf16 %v257_v62, %v256_v61 }
  0x5b   :  { %8738 = vmatpush3.bf16.msra.mxu0 %v8737_v24  ;;  %v259_v6 = vld [vmem:[#allocation7 + $0x138] sm:$0xff]  ;;  %v346_v8 = vld [vmem:[#allocation7 + $0x1b0] sm:$0xff]  ;;  %v8806_v10 = vpack.c.bf16 %v345_v3, %v344_v2  ;;  %v260_v11 = vld [vmem:[#allocation7 + $0x140] sm:$0xff] }
  0x5c   :  { %8762 = vmatpush3.bf16.msra.mxu1 %v8761_v25  ;;  %8739 = vmatprep.subr.bf16.mxu0 %v9712_v0  ;;  %v347_v9 = vld [vmem:[#allocation7 + $0x1b8] sm:$0xff]  ;;  %v261_v12 = vld [vmem:[#allocation7 + $0x148] sm:$0xff]  ;;  %v8785_v13 = vpack.c.bf16 %v259_v6, %v258_v5  ;;  %v348_v14 = vld [vmem:[#allocation7 + $0x1c0] sm:$0xff] }
  0x5d   :  { %8763 = vmatprep.subr.bf16.mxu1 %v9712_v0  ;;  %v349_v15 = vld [vmem:[#allocation7 + $0x1c8] sm:$0xff]  ;;  %v8809_v16 = vpack.c.bf16 %v347_v9, %v346_v8  ;;  %v262_v17 = vld [vmem:[#allocation7 + $0x150] sm:$0xff]  ;;  %v263_v18 = vld [vmem:[#allocation7 + $0x158] sm:$0xff]  ;;  %v8788_v19 = vpack.c.bf16 %v261_v12, %v260_v11 }
  0x5e   :  { %v350_v20 = vld [vmem:[#allocation7 + $0x1d0] sm:$0xff]  ;;  %v351_v21 = vld [vmem:[#allocation7 + $0x1d8] sm:$0xff]  ;;  %v8812_v22 = vpack.c.bf16 %v349_v15, %v348_v14  ;;  %v264_v23 = vld [vmem:[#allocation7 + $0x160] sm:$0xff]  ;;  %v8791_v25 = vpack.c.bf16 %v263_v18, %v262_v17 }
  0x5f   :  { %8741 = vmatpush3.bf16.msra.mxu0 %v8740_v30  ;;  %v265_v24 = vld [vmem:[#allocation7 + $0x168] sm:$0xff]  ;;  %v352_v26 = vld [vmem:[#allocation7 + $0x1e0] sm:$0xff]  ;;  %v8815_v28 = vpack.c.bf16 %v351_v21, %v350_v20  ;;  %v267_v32 = vld [vmem:[#allocation7 + $0x178] sm:$0xff] }
  0x60   :  { %8765 = vmatpush3.bf16.msra.mxu1 %v8764_v31  ;;  %8742 = vmatprep.subr.bf16.mxu0 %v9712_v0  ;;  %v353_v27 = vld [vmem:[#allocation7 + $0x1e8] sm:$0xff]  ;;  %v8794_v29 = vpack.c.bf16 %v265_v24, %v264_v23  ;;  %v266_v31 = vld [vmem:[#allocation7 + $0x170] sm:$0xff]  ;;  %v355_v35 = vld [vmem:[#allocation7 + $0x1f8] sm:$0xff] }
  0x61   :  { %8766 = vmatprep.subr.bf16.mxu1 %v9712_v0  ;;  %v8818_v30 = vpack.c.bf16 %v353_v27, %v352_v26  ;;  %v354_v33 = vld [vmem:[#allocation7 + $0x1f0] sm:$0xff]  ;;  %v8797_v34 = vpack.c.bf16 %v267_v32, %v266_v31  ;;  %v445_v40 = vld [vmem:[#allocation7 + $0x288] sm:$0xff]  ;;  %v428_v42 = vld [vmem:[#allocation7 + $0x200] sm:$0xff] }
  0x62   :  { %v92_v37 = vld [vmem:[#allocation5] ss:$0 sm:$0xff]  ;;  %v180_v38 = vld [vmem:[#allocation5 + $0x1] ss:$0 sm:$0xff]  ;;  %v429_v43 = vld [vmem:[#allocation7 + $0x208] sm:$0xff] }
  0x63   :  { %8744 = vmatpush3.bf16.msra.mxu0 %v8743_v36  ;;  %v8821_v36 = vpack.c.bf16 %v355_v35, %v354_v33  ;;  %v8848_v51 = vpack.c.bf16 %v429_v43, %v428_v42  ;;  %v446_v52 = vld [vmem:[#allocation7 + $0x290] sm:$0xff]  ;;  %v431_v56 = vld [vmem:[#allocation7 + $0x218] sm:$0xff]  ;;  %v448_v59 = vld [vmem:[#allocation7 + $0x2a0] sm:$0xff] }
  0x64   :  { %8768 = vmatpush3.bf16.msra.mxu1 %v8767_v39  ;;  %8745 = vmatprep.subr.bf16.mxu0 %v9712_v0  ;;  %v444_v39 = vld [vmem:[#allocation7 + $0x280] sm:$0xff]  ;;  %v430_v55 = vld [vmem:[#allocation7 + $0x210] sm:$0xff]  ;;  %v433_v62 = vld [vmem:[#allocation7 + $0x228] sm:$0xff] }
  0x65   :  { %8769 = vmatprep.subr.bf16.mxu1 %v9712_v0  ;;  %v8824_v49 = vpack.c.bf16 %v445_v40, %v444_v39  ;;  %v8851_v58 = vpack.c.bf16 %v431_v56, %v430_v55  ;;  %v432_v61 = vld [vmem:[#allocation7 + $0x220] sm:$0xff]  ;;  %v450_v3 = vld [vmem:[#allocation7 + $0x2b0] sm:$0xff]  ;;  %v435_v6 = vld [vmem:[#allocation7 + $0x238] sm:$0xff] }
  0x66   :  { %v8854_v2 = vpack.c.bf16 %v433_v62, %v432_v61  ;;  %v434_v5 = vld [vmem:[#allocation7 + $0x230] sm:$0xff]  ;;  %v452_v9 = vld [vmem:[#allocation7 + $0x2c0] sm:$0xff]  ;;  %v437_v12 = vld [vmem:[#allocation7 + $0x248] sm:$0xff] }
  0x67   :  { %8747 = vmatpush3.bf16.msra.mxu0 %v8746_v44  ;;  %v8857_v8 = vpack.c.bf16 %v435_v6, %v434_v5  ;;  %v436_v11 = vld [vmem:[#allocation7 + $0x240] sm:$0xff]  ;;  %v454_v15 = vld [vmem:[#allocation7 + $0x2d0] sm:$0xff]  ;;  %v439_v18 = vld [vmem:[#allocation7 + $0x258] sm:$0xff] }
  0x68   :  { %8771 = vmatpush3.bf16.msra.mxu1 %v8770_v47  ;;  %8748 = vmatprep.subr.bf16.mxu0 %v9712_v0  ;;  %v8860_v14 = vpack.c.bf16 %v437_v12, %v436_v11  ;;  %v438_v17 = vld [vmem:[#allocation7 + $0x250] sm:$0xff]  ;;  %v456_v21 = vld [vmem:[#allocation7 + $0x2e0] sm:$0xff]  ;;  %v441_v24 = vld [vmem:[#allocation7 + $0x268] sm:$0xff] }
  0x69   :  { %8772 = vmatprep.subr.bf16.mxu1 %v9712_v0  ;;  %v8863_v20 = vpack.c.bf16 %v439_v18, %v438_v17  ;;  %v440_v23 = vld [vmem:[#allocation7 + $0x260] sm:$0xff]  ;;  %v458_v27 = vld [vmem:[#allocation7 + $0x2f0] sm:$0xff]  ;;  %v443_v31 = vld [vmem:[#allocation7 + $0x278] sm:$0xff]  ;;  %v630_v17 = vlaneseq }
  0x6a   :  { %v8866_v26 = vpack.c.bf16 %v441_v24, %v440_v23  ;;  %v268_v33 = vld [vmem:[#allocation5 + $0x2] ss:$0 sm:$0xff]  ;;  %v9106_v55 = vld [vmem:[#allocation8 + $0x10] ss:$8 sps:$4 sm:$0xff]   ;;  %v9107_v56 = vld [vmem:[#allocation8 + $0x14] ss:$8 sps:$4 sm:$0xff]  }
  0x6b   :  { %8750 = vmatpush3.bf16.msra.mxu0 %v8749_v50  ;;  %v9112_v61 = vld [vmem:[#allocation8 + $0x40] ss:$8 sps:$4 sm:$0xff]   ;;  %v9113_v62 = vld [vmem:[#allocation8 + $0x44] ss:$8 sps:$4 sm:$0xff]   ;;  %v9118_v5 = vld [vmem:[#allocation8 + $0x70] ss:$8 sps:$4 sm:$0xff]  }
  0x6c   :  { %8774 = vmatpush3.bf16.msra.mxu1 %v8773_v53  ;;  %8775 = vmatprep.subr.bf16.mxu0 %v9712_v0  ;;  %v447_v53 = vld [vmem:[#allocation7 + $0x298] sm:$0xff]  ;;  %v9119_v6 = vld [vmem:[#allocation8 + $0x74] ss:$8 sps:$4 sm:$0xff]   ;;  %v9875_v23 = vshrl.u32 %v630_v17, 7  ;;  %v603_v24 = vld [vmem:[#allocation5 + $0x6] ss:$0 sm:$0xff] }
  0x6d   :  { %8799 = vmatprep.subr.bf16.mxu1 %v9712_v0 }
  0x6e   :  { %7873 = vmatmul.mubr.f32.vlgmr.msra.gmra.mrb[0].mxu0 %v75_v54 }
  0x6f   :  { %7908 = vmatmul.mubr.f32.vlgmr.msra.gmra.mrb[0].mxu1 %v75_v54  ;;  %8777 = vmatpush3.bf16.msra.mxu0 %v8776_v57  ;;  %v8827_v57 = vpack.c.bf16 %v447_v53, %v446_v52  ;;  %v9104_v53 = vld [vmem:[#allocation8] ss:$8 sps:$4 sm:$0xff]  }
  0x70   :  { %8801 = vmatpush3.bf16.msra.mxu1 %v8800_v60  ;;  %8778 = vmatprep.subr.bf16.mxu0 %v9712_v0  ;;  %v449_v60 = vld [vmem:[#allocation7 + $0x2a8] sm:$0xff] }
  0x71   :  { %8802 = vmatprep.subr.bf16.mxu1 %v9712_v0  ;;  %7942 = vmatprep.mubr.msk.f32.mxu0 %vm9713_vm0, %v9714_v1 }
  0x72   :  { %7977 = vmatprep.mubr.msk.f32.mxu1 %vm9713_vm0, %v9714_v1 }
  0x73   :  { %8780 = vmatpush3.bf16.msra.mxu0 %v8779_v63  ;;  %v8830_v63 = vpack.c.bf16 %v449_v60, %v448_v59  ;;  %v9110_v59 = vld [vmem:[#allocation8 + $0x30] ss:$8 sps:$4 sm:$0xff]   ;;  %v9111_v60 = vld [vmem:[#allocation8 + $0x34] ss:$8 sps:$4 sm:$0xff]  }
  0x74   :  { %8804 = vmatpush3.bf16.msra.mxu1 %v8803_v4  ;;  %8781 = vmatprep.subr.bf16.mxu0 %v9712_v0  ;;  %v451_v4 = vld [vmem:[#allocation7 + $0x2b8] sm:$0xff] }
  0x75   :  { %8805 = vmatprep.subr.bf16.mxu1 %v9712_v0 }
  0x77   :  { %8783 = vmatpush3.bf16.msra.mxu0 %v8782_v7  ;;  %v8833_v7 = vpack.c.bf16 %v451_v4, %v450_v3  ;;  %v9116_v3 = vld [vmem:[#allocation8 + $0x60] ss:$8 sps:$4 sm:$0xff]   ;;  %v9117_v4 = vld [vmem:[#allocation8 + $0x64] ss:$8 sps:$4 sm:$0xff]  }
  0x78   :  { %8807 = vmatpush3.bf16.msra.mxu1 %v8806_v10  ;;  %8784 = vmatprep.subr.bf16.mxu0 %v9712_v0  ;;  %v453_v10 = vld [vmem:[#allocation7 + $0x2c8] sm:$0xff] }
  0x79   :  { %8808 = vmatprep.subr.bf16.mxu1 %v9712_v0 }
  0x7b   :  { %8786 = vmatpush3.bf16.msra.mxu0 %v8785_v13  ;;  %v8836_v13 = vpack.c.bf16 %v453_v10, %v452_v9 }
  0x7c   :  { %8810 = vmatpush3.bf16.msra.mxu1 %v8809_v16  ;;  %8787 = vmatprep.subr.bf16.mxu0 %v9712_v0  ;;  %v455_v16 = vld [vmem:[#allocation7 + $0x2d8] sm:$0xff] }
  0x7d   :  { %8811 = vmatprep.subr.bf16.mxu1 %v9712_v0 }
  0x7f   :  { %8789 = vmatpush3.bf16.msra.mxu0 %v8788_v19  ;;  %v8839_v19 = vpack.c.bf16 %v455_v16, %v454_v15  ;;  %v9715_v15 = vmov 1966171168  }
  0x80   :  { %8813 = vmatpush3.bf16.msra.mxu1 %v8812_v22  ;;  %8790 = vmatprep.subr.bf16.mxu0 %v9712_v0  ;;  %v457_v22 = vld [vmem:[#allocation7 + $0x2e8] sm:$0xff]  ;;  %v628_v16 = vunpack.c.l.s4 %v9715_v15 }
  0x81   :  { %8814 = vmatprep.subr.bf16.mxu1 %v9712_v0 }
  0x83   :  { %8792 = vmatpush3.bf16.msra.mxu0 %v8791_v25  ;;  %v8842_v25 = vpack.c.bf16 %v457_v22, %v456_v21  ;;  %v629_v22 = vunpack.c.0.s8 %v628_v16 }
  0x84   :  { %8816 = vmatpush3.bf16.msra.mxu1 %v8815_v28  ;;  %8793 = vmatprep.subr.bf16.mxu0 %v9712_v0  ;;  %v459_v28 = vld [vmem:[#allocation7 + $0x2f8] sm:$0xff] }
  0x85   :  { %8817 = vmatprep.subr.bf16.mxu1 %v9712_v0 }
  0x87   :  { %8795 = vmatpush3.bf16.msra.mxu0 %v8794_v29  ;;  %v442_v29 = vld [vmem:[#allocation7 + $0x270] sm:$0xff] }
  0x88   :  { %8819 = vmatpush3.bf16.msra.mxu1 %v8818_v30  ;;  %8796 = vmatprep.subr.bf16.mxu0 %v9712_v0  ;;  %v8845_v30 = vpack.c.bf16 %v459_v28, %v458_v27  ;;  %v8869_v32 = vpack.c.bf16 %v443_v31, %v442_v29  ;;  %v632_v27 = vsub.s32 %v629_v22, %v9875_v23 }
  0x89   :  { %8820 = vmatprep.subr.bf16.mxu1 %v9712_v0 }
  0x8b   :  { %8798 = vmatpush3.bf16.msra.mxu0 %v8797_v34  ;;  %v356_v34 = vld [vmem:[#allocation5 + $0x3] ss:$0 sm:$0xff] }
  0x8c   :  { %8822 = vmatpush3.bf16.msra.mxu1 %v8821_v36  ;;  %8823 = vmatprep.subr.bf16.mxu0 %v9712_v0 }
  0x8d   :  { %8847 = vmatprep.subr.bf16.mxu1 %v9712_v0 }
 0x141   :  { %v159_v41 = vpop.f32.mrb[0].mxu0 }
 0x142   :  { %v160_v44 = vadd.f32 %v159_v41, %v92_v37  ;;  %v247_v45 = vpop.f32.mrb[0].mxu1  ;;  %v7874_v46 = vpop.f32.mrb[1].mxu0 }
 0x143   :  { %v248_v47 = vadd.f32 %v247_v45, %v180_v38  ;;  %v7909_v48 = vpop.f32.mrb[1].mxu1  ;;  %v600_v45 = vld [vmem:[#allocation5 + $0x4] ss:$0 sm:$0xff] }
 0x144   :  { %v163_v50 = vmax.f32 %v160_v44, 0.0 }
 0x145   :  { %v251_v54 = vmax.f32 %v248_v47, 0.0 }
 0x146   :  { %7943 = vmatmul.mubr.f32.vlgmr.msra.gmra.mrb[2].mxu0 %v163_v50 }
 0x147   :  { %7978 = vmatmul.mubr.f32.vlgmr.msra.gmra.mrb[2].mxu1 %v251_v54  ;;  %8825 = vmatpush3.bf16.msra.mxu0 %v8824_v49  ;;  %v9105_v54 = vld [vmem:[#allocation8 + $0x4] ss:$8 sps:$4 sm:$0xff]  }
 0x148   :  { %8849 = vmatpush3.bf16.msra.mxu1 %v8848_v51  ;;  %8826 = vmatprep.subr.bf16.mxu0 %v9712_v0 }
 0x149   :  { %8850 = vmatprep.subr.bf16.mxu1 %v9712_v0  ;;  %8012 = vmatprep.mubr.msk.f32.mxu0 %vm9713_vm0, %v9714_v1 }
 0x14a   :  { %8047 = vmatprep.mubr.msk.f32.mxu1 %vm9713_vm0, %v9714_v1 }
 0x14b   :  { %8828 = vmatpush3.bf16.msra.mxu0 %v8827_v57  ;;  %v9108_v57 = vld [vmem:[#allocation8 + $0x20] ss:$8 sps:$4 sm:$0xff]  }
 0x14c   :  { %8852 = vmatpush3.bf16.msra.mxu1 %v8851_v58  ;;  %8829 = vmatprep.subr.bf16.mxu0 %v9712_v0  ;;  %v9109_v58 = vld [vmem:[#allocation8 + $0x24] ss:$8 sps:$4 sm:$0xff]  }
 0x14d   :  { %8853 = vmatprep.subr.bf16.mxu1 %v9712_v0 }
 0x14f   :  { %8831 = vmatpush3.bf16.msra.mxu0 %v8830_v63  ;;  %v9114_v63 = vld [vmem:[#allocation8 + $0x50] ss:$8 sps:$4 sm:$0xff]  }
 0x150   :  { %8855 = vmatpush3.bf16.msra.mxu1 %v8854_v2  ;;  %8832 = vmatprep.subr.bf16.mxu0 %v9712_v0  ;;  %v9115_v2 = vld [vmem:[#allocation8 + $0x54] ss:$8 sps:$4 sm:$0xff]  }
 0x151   :  { %8856 = vmatprep.subr.bf16.mxu1 %v9712_v0 }
 0x153   :  { %8834 = vmatpush3.bf16.msra.mxu0 %v8833_v7  ;;  %v9120_v7 = vld [vmem:[#allocation8 + $0x80] ss:$8 sps:$4 sm:$0xff]  }
 0x154   :  { %8858 = vmatpush3.bf16.msra.mxu1 %v8857_v8  ;;  %8835 = vmatprep.subr.bf16.mxu0 %v9712_v0 }
 0x155   :  { %8859 = vmatprep.subr.bf16.mxu1 %v9712_v0 }
 0x157   :  { %8837 = vmatpush3.bf16.msra.mxu0 %v8836_v13 }
 0x158   :  { %8861 = vmatpush3.bf16.msra.mxu1 %v8860_v14  ;;  %8838 = vmatprep.subr.bf16.mxu0 %v9712_v0 }
 0x159   :  { %8862 = vmatprep.subr.bf16.mxu1 %v9712_v0 }
 0x15b   :  { %8840 = vmatpush3.bf16.msra.mxu0 %v8839_v19 }
 0x15c   :  { %8864 = vmatpush3.bf16.msra.mxu1 %v8863_v20  ;;  %8841 = vmatprep.subr.bf16.mxu0 %v9712_v0  ;;  %v602_v20 = vld [vmem:[#allocation5 + $0x5] ss:$0 sm:$0xff] }
 0x15d   :  { %8865 = vmatprep.subr.bf16.mxu1 %v9712_v0 }
 0x15f   :  { %8843 = vmatpush3.bf16.msra.mxu0 %v8842_v25 }
 0x160   :  { %8867 = vmatpush3.bf16.msra.mxu1 %v8866_v26  ;;  %8844 = vmatprep.subr.bf16.mxu0 %v9712_v0 }
 0x161   :  { %8868 = vmatprep.subr.bf16.mxu1 %v9712_v0 }
 0x163   :  { %8846 = vmatpush3.bf16.msra.mxu0 %v8845_v30  ;;  %v9884_v30 = vsub.s32 0, %v9875_v23 }
 0x164   :  { %8870 = vmatpush3.bf16.msra.mxu1 %v8869_v32  ;;  %8050 = vmatprep.subr.bf16.mxu0 %v9104_v53 }
 0x165   :  { %8070 = vmatprep.subr.bf16.mxu1 %v9105_v54 }
 0x219   :  { %v335_v35 = vpop.f32.mrb[2].mxu0 }
 0x21a   :  { %v336_v36 = vadd.f32 %v335_v35, %v268_v33  ;;  %v423_v37 = vpop.f32.mrb[2].mxu1  ;;  %v7944_v38 = vpop.f32.mrb[3].mxu0  ;;  %v624_v33 = vld [vmem:[#allocation7 + $0x300] sm:$0xff] }
 0x21b   :  { %v424_v39 = vadd.f32 %v423_v37, %v356_v34  ;;  %v7979_v40 = vpop.f32.mrb[3].mxu1  ;;  %v625_v34 = vld [vmem:[#allocation7 + $0x308] sm:$0xff] }
 0x21c   :  { %v339_v41 = vmax.f32 %v336_v36, 0.0 }
 0x21d   :  { %v427_v42 = vmax.f32 %v424_v39, 0.0 }
 0x21e   :  { %8048 = vmatmul.mubr.f32.vlgmr.msra.gmra.mrb[4].mxu1 %v339_v41 }
 0x21f   :  { %8013 = vmatmul.mubr.f32.vlgmr.msra.gmra.mrb[4].mxu0 %v427_v42  ;;  %8071 = vmatpush3.bf16.msra.mxu1 %v9105_v54  ;;  %v799_v54 = vld [vmem:[#allocation5 + $0x13] ss:$0 sm:$0xff] }
 0x220   :  { %8051 = vmatpush3.bf16.msra.mxu0 %v9104_v53  ;;  %8072 = vmatprep.subr.bf16.mxu1 %v9107_v56 }
 0x221   :  { %8052 = vmatprep.subr.bf16.mxu0 %v9106_v55 }
 0x223   :  { %8073 = vmatpush3.bf16.msra.mxu1 %v9107_v56 }
 0x224   :  { %8053 = vmatpush3.bf16.msra.mxu0 %v9106_v55  ;;  %8074 = vmatprep.subr.bf16.mxu1 %v9109_v58 }
 0x225   :  { %8054 = vmatprep.subr.bf16.mxu0 %v9108_v57 }
 0x227   :  { %8075 = vmatpush3.bf16.msra.mxu1 %v9109_v58 }
 0x228   :  { %8055 = vmatpush3.bf16.msra.mxu0 %v9108_v57  ;;  %8076 = vmatprep.subr.bf16.mxu1 %v9111_v60 }
 0x229   :  { %8056 = vmatprep.subr.bf16.mxu0 %v9110_v59 }
 0x22b   :  { %8077 = vmatpush3.bf16.msra.mxu1 %v9111_v60 }
 0x22c   :  { %8057 = vmatpush3.bf16.msra.mxu0 %v9110_v59  ;;  %8078 = vmatprep.subr.bf16.mxu1 %v9113_v62 }
 0x22d   :  { %8058 = vmatprep.subr.bf16.mxu0 %v9112_v61 }
 0x22f   :  { %8079 = vmatpush3.bf16.msra.mxu1 %v9113_v62 }
 0x230   :  { %8059 = vmatpush3.bf16.msra.mxu0 %v9112_v61  ;;  %8080 = vmatprep.subr.bf16.mxu1 %v9115_v2 }
 0x231   :  { %8060 = vmatprep.subr.bf16.mxu0 %v9114_v63 }
 0x233   :  { %8081 = vmatpush3.bf16.msra.mxu1 %v9115_v2 }
 0x234   :  { %8061 = vmatpush3.bf16.msra.mxu0 %v9114_v63  ;;  %8082 = vmatprep.subr.bf16.mxu1 %v9117_v4 }
 0x235   :  { %8062 = vmatprep.subr.bf16.mxu0 %v9116_v3 }
 0x237   :  { %8083 = vmatpush3.bf16.msra.mxu1 %v9117_v4 }
 0x238   :  { %8063 = vmatpush3.bf16.msra.mxu0 %v9116_v3  ;;  %8084 = vmatprep.subr.bf16.mxu1 %v9119_v6 }
 0x239   :  { %8064 = vmatprep.subr.bf16.mxu0 %v9118_v5 }
 0x23b   :  { %8085 = vmatpush3.bf16.msra.mxu1 %v9119_v6 }
 0x23c   :  { %8065 = vmatpush3.bf16.msra.mxu0 %v9118_v5  ;;  %8110 = vmatprep.subr.bf16.mxu1 %v9714_v1 }
 0x23d   :  { %8090 = vmatprep.subr.bf16.mxu0 %v9120_v7 }
 0x2f1   :  { %v596_v43 = vpop.f32.mrb[4].mxu1 }
 0x2f2   :  { %v526_v44 = vpop.f32.mrb[4].mxu0  ;;  %v8049_v46 = vpop.f32.mrb[5].mxu1 }
 0x2f3   :  { %v597_v47 = vadd.f32 %v596_v43, %v526_v44  ;;  %v8014_v48 = vpop.f32.mrb[5].mxu0  ;;  %v9121_v44 = vld [vmem:[#allocation8 + $0x90] ss:$8 sps:$4 sm:$0xff]  }
 0x2f4   :  { %v9123_v46 = vld [vmem:[#allocation8 + $0xb0] ss:$8 sps:$4 sm:$0xff]  }
 0x2f5   :  { %v9867_v49 = vadd.f32 %v600_v45, %v597_v47  ;;  %v9122_v45 = vld [vmem:[#allocation8 + $0xa0] ss:$8 sps:$4 sm:$0xff]   ;;  %v9125_v48 = vld [vmem:[#allocation8 + $0xd0] ss:$8 sps:$4 sm:$0xff]  }
 0x2f6   :  { %v9124_v47 = vld [vmem:[#allocation8 + $0xc0] ss:$8 sps:$4 sm:$0xff]  }
 0x2f7   :  { %v605_v50 = vsel %vm604_vm1, %v9867_v49, 0.0  ;;  %v610_v51 = vmul.f32 %v9867_v49, %v9867_v49 }
 0x2f8   :  { %606 = vadd.xlane.f32.xlu0 %v605_v50  ;;  %v9127_v50 = vld [vmem:[#allocation8 + $0xf0] ss:$8 sps:$4 sm:$0xff]  }
 0x2f9   :  { %v611_v52 = vsel %vm604_vm1, %v610_v51, 0.0 }
 0x2fc   :  { %612 = vadd.xlane.f32.xlu0 %v611_v52  ;;  %v685_v52 = vld [vmem:[#allocation5 + $0x12] ss:$0 sm:$0xff] }
 0x385   :  { %v607_v8 = vpop.xlane.xlu0 %606 }
 0x386   :  { %v609_v9 = vmul.f32 0.0078125, %v607_v8 }
 0x388   :  { %v615_v11 = vmul.f32 %v609_v9, %v609_v9  ;;  %v617_v18 = vsub.f32 %v9867_v49, %v609_v9  ;;  %v9126_v49 = vld [vmem:[#allocation8 + $0xe0] ss:$8 sps:$4 sm:$0xff]  }
 0x389   :  { %v613_v10 = vpop.xlane.xlu0 %612 }
 0x38a   :  { %v614_v12 = vmul.f32 0.0078125, %v613_v10 }
 0x38c   :  { %v616_v13 = vsub.f32 %v614_v12, %v615_v11 }
 0x38e   :  { %v618_v14 = vadd.f32 1e-05, %v616_v13  ;;  %v913_v13 = vld [vmem:[#allocation5 + $0x14] ss:$0 sm:$0xff] }
 0x390   :  { %9320 = vrsqrt.f32 %v618_v14 }
 0x39a   :  { %v9321_v19 = vpop.eup %9320 }
 0x39b   :  { %v620_v21 = vmul.f32 %v9321_v19, %v617_v18 }
 0x39d   :  { %v621_v25 = vmul.f32 %v620_v21, %v602_v20 }
 0x39f   :  { %v9877_v26 = vadd.f32 %v621_v25, %v603_v24 }
 0x3a1   :  { %v623_v28 = vmax.f32 %v9877_v26, 0.0 }
 0x3a3   :  { %v633_v29 = vrot.slane %v623_v28, %v632_v27 }
 0x3a5   :  { %v634_v31 = vcombine.high %v633_v29, %v633_v29  ;;  %v641_v32 = vrot.slane %v633_v29, %v632_v27  ;;  %v9716_v29 = vmov -1e+30  }
 0x3a7   :  { %v648_v35 = vrot.slane %v634_v31, %v632_v27  ;;  %v652_v36 = vrot.slane %v641_v32, %v9884_v30  ;;  %v664_v27 = vand.u32 127, %v630_v17 }
 0x3a9   :  { %v656_v37 = vrot.slane %v648_v35, %v9884_v30  ;;  %v9888_v38 = vadd.f32 %v652_v36, %v624_v33  ;;  %v9890_v39 = vadd.f32 %v652_v36, %v625_v34  ;;  %vm665_vm3 = vcmp.lt.s32.totalorder %v664_v27, 10 }
 0x3aa   :  { %v9934_v31 = vsel %vm665_vm3, 0.0, %v9716_v29 }
 0x3ab   :  { %v9892_v40 = vadd.f32 %v656_v37, %v624_v33  ;;  %v9894_v41 = vadd.f32 %v656_v37, %v625_v34  ;;  %v667_v42 = vpack.c.bf16 %v9890_v39, %v9888_v38 }
 0x3ad   :  { %8066 = vmatprep.mubr.bf16.mxu0 %v667_v42  ;;  %8086 = vmatprep.mubr.bf16.mxu1 %v667_v42  ;;  %v668_v43 = vpack.c.bf16 %v9894_v41, %v9892_v40 }
 0x3af   :  { %8067 = vmatmul.mubr.bf16.vlgmr.msra.gmra.mrb[8].mxu0 %v668_v43  ;;  %8087 = vmatmul.mubr.bf16.vlgmr.msra.gmra.mrb[8].mxu1 %v668_v43 }
 0x3b0   :  { %8091 = vmatpush3.bf16.msra.mxu0 %v9120_v7  ;;  %8106 = vmatprep.mubr.bf16.mxu0 %v667_v42 }
 0x3b1   :  { %8092 = vmatprep.subr.bf16.mxu0 %v9121_v44  ;;  %8112 = vmatprep.mubr.msk.bf16.mxu1 %vm9713_vm0, %v9714_v1 }
 0x3b4   :  { %8093 = vmatpush3.bf16.msra.mxu0 %v9121_v44 }
 0x3b5   :  { %8094 = vmatprep.subr.bf16.mxu0 %v9122_v45 }
 0x3b8   :  { %8095 = vmatpush3.bf16.msra.mxu0 %v9122_v45 }
 0x3b9   :  { %8096 = vmatprep.subr.bf16.mxu0 %v9123_v46 }
 0x3bc   :  { %8097 = vmatpush3.bf16.msra.mxu0 %v9123_v46 }
 0x3bd   :  { %8098 = vmatprep.subr.bf16.mxu0 %v9124_v47 }
 0x3c0   :  { %8099 = vmatpush3.bf16.msra.mxu0 %v9124_v47 }
 0x3c1   :  { %8100 = vmatprep.subr.bf16.mxu0 %v9125_v48 }
 0x3c4   :  { %8101 = vmatpush3.bf16.msra.mxu0 %v9125_v48 }
 0x3c5   :  { %8102 = vmatprep.subr.bf16.mxu0 %v9126_v49 }
 0x3c8   :  { %8103 = vmatpush3.bf16.msra.mxu0 %v9126_v49 }
 0x3c9   :  { %8104 = vmatprep.subr.bf16.mxu0 %v9127_v50 }
 0x3cc   :  { %8105 = vmatpush3.bf16.msra.mxu0 %v9127_v50 }
 0x3cd   :  { %8158 = vmatprep.subr.bf16.mxu0 %v9714_v1 }
 0x3cf   :  { %8107 = vmatmul.mubr.bf16.vlgmr.msra.gmra.mrb[12].mxu0 %v668_v43 }
 0x3d0   :  { %8160 = vmatprep.mubr.msk.bf16.mxu0 %vm9713_vm0, %v9714_v1 }
 0x482   :  { %v8068_v51 = vpop.f32.mrb[8].mxu0  ;;  %v8088_v53 = vpop.f32.mrb[8].mxu1 }
 0x483   :  { %v768_v55 = vpop.f32.mrb[9].mxu0  ;;  %v882_v56 = vpop.f32.mrb[9].mxu1  ;;  %v777_v59 = vadd.f32 %v8068_v51, %v685_v52  ;;  %v891_v60 = vadd.f32 %v8088_v53, %v799_v54 }
 0x484   :  { %v8069_v57 = vpop.f32.mrb[10].mxu0  ;;  %v8089_v58 = vpop.f32.mrb[10].mxu1  ;;  %v769_v3 = vadd.f32 %v768_v55, %v685_v52  ;;  %v883_v4 = vadd.f32 %v882_v56, %v799_v54 }
 0x485   :  { %v780_v61 = vadd.f32 %v8069_v57, %v685_v52  ;;  %v894_v62 = vadd.f32 %v8089_v58, %v799_v54  ;;  %v771_v63 = vpop.f32.mrb[11].mxu0  ;;  %v885_v2 = vpop.f32.mrb[11].mxu1 }
 0x486   :  { %v772_v5 = vadd.f32 %v771_v63, %v685_v52  ;;  %v886_v6 = vadd.f32 %v885_v2, %v799_v54 }
 0x487   :  { %v9905_v7 = vpack.c.bf16 %v780_v61, %v777_v59  ;;  %v9907_v8 = vpack.c.bf16 %v894_v62, %v891_v60 }
 0x488   :  { %v9909_v9 = vpack.c.bf16 %v772_v5, %v769_v3  ;;  %v9911_v10 = vpack.c.bf16 %v886_v6, %v883_v4 }
 0x489   :  { %v1069_v12 = vsel %vm1017_vm2, %v9907_v8, 0 }
 0x48a   :  { %v1022_v11 = vsel %vm1017_vm2, %v9911_v10, 0 }
 0x48b   :  { %8111 = vmatpush3.bf16.xpose.msra.mxu1 %v1022_v11 }
 0x48c   :  { %8116 = vmatprep.subr.bf16.mxu1 %v9714_v1 }
 0x492   :  { %8113 = vmatmul.mubr.msk.bf16.vlgmr.msra.gmra.mrb[12].mxu1 %vm1017_vm2, %v9909_v9 }
 0x493   :  { %8117 = vmatpush3.bf16.xpose.msra.mxu1 %v1069_v12  ;;  %8118 = vmatprep.mubr.msk.bf16.mxu1 %vm9713_vm0, %v9714_v1 }
 0x494   :  { %8122 = vmatprep.subr.bf16.mxu1 %v9714_v1 }
 0x49a   :  { %8119 = vmatmul.mubr.msk.bf16.vlgmr.msra.gmra.mrb[16].mxu1 %vm1017_vm2, %v9905_v7 }
 0x49b   :  { %8124 = vmatprep.mubr.msk.bf16.mxu1 %vm9713_vm0, %v9714_v1 }
 0x4a2   :  { %v8108_v14 = vpop.f32.mrb[12].mxu0 }
 0x4a3   :  { %v1005_v15 = vadd.f32 %v8108_v14, %v913_v13  ;;  %v996_v16 = vpop.f32.mrb[13].mxu0 }
 0x4a4   :  { %v8109_v18 = vpop.f32.mrb[14].mxu0  ;;  %v997_v21 = vadd.f32 %v996_v16, %v913_v13 }
 0x4a5   :  { %v1008_v19 = vadd.f32 %v8109_v18, %v913_v13  ;;  %v999_v20 = vpop.f32.mrb[15].mxu0 }
 0x4a6   :  { %v1000_v22 = vadd.f32 %v999_v20, %v913_v13 }
 0x4a7   :  { %v9927_v24 = vpack.c.bf16 %v1008_v19, %v1005_v15 }
 0x4a8   :  { %v9929_v25 = vpack.c.bf16 %v1000_v22, %v997_v21 }
 0x4aa   :  { %8123 = vmatpush3.bf16.msra.mxu1 %v9929_v25 }
 0x4ab   :  { %8128 = vmatprep.subr.bf16.mxu1 %v9714_v1 }
 0x565   :  { %v1058_v32 = vpop.f32.mrb[12].mxu1 }
 0x566   :  { %v1112_v33 = vmul.f32 0.17677669, %v1058_v32  ;;  %v8114_v34 = vpop.f32.mrb[13].mxu1 }
 0x567   :  { %v1061_v35 = vpop.f32.mrb[14].mxu1 }
 0x568   :  { %v1113_v36 = vmul.f32 0.17677669, %v1061_v35  ;;  %v8115_v37 = vpop.f32.mrb[15].mxu1  ;;  %v1116_v42 = vadd.f32 %v1112_v33, %v9934_v31 }
 0x56a   :  { %v1121_v43 = vsel %vm1120_vm4, %v1116_v42, -inf  ;;  %v1117_v44 = vadd.f32 %v1113_v36, %v9934_v31 }
 0x56b   :  { %1122 = vmax.xlane.f32.xlu1 %v1121_v43 }
 0x56c   :  { %v1124_v47 = vsel %vm1120_vm4, %v1117_v44, -inf }
 0x56d   :  { %v1105_v45 = vpop.f32.mrb[16].mxu1 }
 0x56e   :  { %v1114_v17 = vmul.f32 0.17677669, %v1105_v45  ;;  %v8120_v46 = vpop.f32.mrb[17].mxu1 }
 0x56f   :  { %1125 = vmax.xlane.f32.xlu1 %v1124_v47  ;;  %v1108_v48 = vpop.f32.mrb[18].mxu1 }
 0x570   :  { %v1115_v49 = vmul.f32 0.17677669, %v1108_v48  ;;  %v8121_v50 = vpop.f32.mrb[19].mxu1  ;;  %v1118_v51 = vadd.f32 %v1114_v17, %v9934_v31 }
 0x572   :  { %v1127_v52 = vsel %vm1120_vm4, %v1118_v51, -inf  ;;  %v1119_v53 = vadd.f32 %v1115_v49, %v9934_v31 }
 0x573   :  { %1128 = vmax.xlane.f32.xlu0 %v1127_v52 }
 0x574   :  { %v1130_v54 = vsel %vm1120_vm4, %v1119_v53, -inf }
 0x575   :  { %1131 = vmax.xlane.f32.xlu1 %v1130_v54 }
 0x5f8   :  { %v1123_v55 = vpop.xlane.xlu1 %1122 }
 0x5f9   :  { %v1133_v56 = vsub.f32 %v1116_v42, %v1123_v55 }
 0x5fb   :  { %v1137_v57 = vmul.f32 1.442695, %v1133_v56 }
 0x5fc   :  { %v1126_v58 = vpop.xlane.xlu1 %1125 }
 0x5fd   :  { %9322 = vpow2.f32 %v1137_v57  ;;  %v1134_v59 = vsub.f32 %v1117_v44, %v1126_v58 }
 0x5ff   :  { %v1139_v60 = vmul.f32 1.442695, %v1134_v59 }
 0x600   :  { %v1129_v61 = vpop.xlane.xlu0 %1128 }
 0x601   :  { %9324 = vpow2.f32 %v1139_v60  ;;  %v1135_v62 = vsub.f32 %v1118_v51, %v1129_v61 }
 0x602   :  { %v1132_v63 = vpop.xlane.xlu1 %1131 }
 0x603   :  { %v1141_v2 = vmul.f32 1.442695, %v1135_v62  ;;  %v1136_v3 = vsub.f32 %v1119_v53, %v1132_v63 }
 0x605   :  { %9326 = vpow2.f32 %v1141_v2  ;;  %v1143_v4 = vmul.f32 1.442695, %v1136_v3 }
 0x607   :  { %v9323_v5 = vpop.eup %9322  ;;  %9328 = vpow2.f32 %v1143_v4 }
 0x608   :  { %v1145_v6 = vsel %vm1120_vm4, %v9323_v5, 0.0 }
 0x609   :  { %1146 = vadd.xlane.f32.xlu0 %v1145_v6 }
 0x60b   :  { %v9325_v11 = vpop.eup %9324 }
 0x60c   :  { %v1148_v12 = vsel %vm1120_vm4, %v9325_v11, 0.0 }
 0x60d   :  { %1149 = vadd.xlane.f32.xlu1 %v1148_v12 }
 0x60f   :  { %v9327_v13 = vpop.eup %9326 }
 0x610   :  { %v1151_v14 = vsel %vm1120_vm4, %v9327_v13, 0.0 }
 0x611   :  { %v9329_v15 = vpop.eup %9328  ;;  %1152 = vadd.xlane.f32.xlu0 %v1151_v14 }
 0x612   :  { %v1154_v16 = vsel %vm1120_vm4, %v9329_v15, 0.0 }
 0x613   :  { %1155 = vadd.xlane.f32.xlu1 %v1154_v16 }
 0x624   :  { %1256 = vrot.lane.b32.xlu1 %v9909_v9, %s9717_s3 }
 0x627   :  { %1259 = vrot.lane.b32.xlu0 %v9911_v10, %s9717_s3 }
 0x628   :  { %1312 = vrot.lane.b32.xlu1 %v9907_v8, %s9717_s3 }
 0x62c   :  { %1309 = vrot.lane.b32.xlu1 %v9905_v7, %s9717_s3 }
 0x696   :  { %v1147_v18 = vpop.xlane.xlu0 %1146 }
 0x697   :  { %9330 = vrcp.f32 %v1147_v18 }
 0x69a   :  { %v1150_v19 = vpop.xlane.xlu1 %1149 }
 0x69b   :  { %9332 = vrcp.f32 %v1150_v19 }
 0x69e   :  { %v1153_v20 = vpop.xlane.xlu0 %1152 }
 0x69f   :  { %9334 = vrcp.f32 %v1153_v20 }
 0x6a0   :  { %v1156_v21 = vpop.xlane.xlu1 %1155 }
 0x6a1   :  { %9336 = vrcp.f32 %v1156_v21  ;;  %v9331_v22 = vpop.eup %9330 }
 0x6a2   :  { %v1161_v29 = vmul.f32 %v9331_v22, %v9323_v5  ;;  %v1260_v42 = vpop.permute.xlu0 %1259 }
 0x6a3   :  { %v1265_v45 = vsel %vm1017_vm2, %v1260_v42, 0 }
 0x6a4   :  { %v1257_v44 = vpop.permute.xlu1 %1256 }
 0x6a5   :  { %v9333_v27 = vpop.eup %9332 }
 0x6a6   :  { %v1162_v32 = vmul.f32 %v9333_v27, %v9325_v11 }
 0x6a8   :  { %v1165_v33 = vpack.c.bf16 %v1162_v32, %v1161_v29  ;;  %v1313_v17 = vpop.permute.xlu1 %1312 }
 0x6a9   :  { %v9335_v34 = vpop.eup %9334  ;;  %v1318_v46 = vsel %vm1017_vm2, %v1313_v17, 0 }
 0x6aa   :  { %8125 = vmatmul.mubr.msk.bf16.vlgmr.msra.gmra.mrb[20].mxu1 %vm1120_vm4, %v1165_v33  ;;  %v1163_v37 = vmul.f32 %v9335_v34, %v9327_v13 }
 0x6ab   :  { %v9337_v35 = vpop.eup %9336  ;;  %8129 = vmatpush3.bf16.msra.mxu1 %v9927_v24  ;;  %8130 = vmatprep.mubr.msk.bf16.mxu1 %vm9713_vm0, %v9714_v1 }
 0x6ac   :  { %v1164_v36 = vmul.f32 %v9337_v35, %v9329_v15  ;;  %8134 = vmatprep.subr.bf16.mxu1 %v9714_v1  ;;  %v1310_v47 = vpop.permute.xlu1 %1309 }
 0x6ae   :  { %v1166_v43 = vpack.c.bf16 %v1164_v36, %v1163_v37 }
 0x6b2   :  { %8131 = vmatmul.mubr.msk.bf16.vlgmr.msra.gmra.mrb[24].mxu1 %vm1120_vm4, %v1166_v43 }
 0x6b3   :  { %8136 = vmatprep.mubr.msk.bf16.mxu1 %vm9713_vm0, %v9714_v1 }
 0x6b4   :  { %8135 = vmatpush3.bf16.xpose.msra.mxu1 %v1265_v45 }
 0x6b5   :  { %8140 = vmatprep.subr.bf16.mxu1 %v9714_v1 }
 0x6bb   :  { %8137 = vmatmul.mubr.msk.bf16.vlgmr.msra.gmra.mrb[28].mxu1 %vm1017_vm2, %v1257_v44 }
 0x6bc   :  { %8141 = vmatpush3.bf16.xpose.msra.mxu1 %v1318_v46  ;;  %8142 = vmatprep.mubr.msk.bf16.mxu1 %vm9713_vm0, %v9714_v1 }
 0x6bd   :  { %8146 = vmatprep.subr.bf16.mxu1 %v9714_v1 }
 0x6c3   :  { %8143 = vmatmul.mubr.msk.bf16.vlgmr.msra.gmra.mrb[32].mxu1 %vm1017_vm2, %v1310_v47 }
 0x6c4   :  { %8148 = vmatprep.mubr.msk.bf16.mxu1 %vm9713_vm0, %v9714_v1 }
 0x77d   :  { %v9974_v48 = vpop.f32.mrb[20].mxu1 }
 0x77e   :  { %v8126_v49 = vpop.f32.mrb[21].mxu1 }
 0x77f   :  { %v9976_v50 = vpop.f32.mrb[22].mxu1 }
 0x780   :  { %v8127_v51 = vpop.f32.mrb[23].mxu1 }
 0x785   :  { %v9978_v52 = vpop.f32.mrb[24].mxu1 }
 0x786   :  { %v8132_v53 = vpop.f32.mrb[25].mxu1 }
 0x787   :  { %v9980_v54 = vpop.f32.mrb[26].mxu1 }
 0x788   :  { %v8133_v55 = vpop.f32.mrb[27].mxu1 }
 0x78e   :  { %v1301_v56 = vpop.f32.mrb[28].mxu1 }
 0x78f   :  { %v1361_v57 = vmul.f32 0.17677669, %v1301_v56  ;;  %v8138_v58 = vpop.f32.mrb[29].mxu1 }
 0x790   :  { %v1304_v59 = vpop.f32.mrb[30].mxu1 }
 0x791   :  { %v1362_v60 = vmul.f32 0.17677669, %v1304_v59  ;;  %v8139_v61 = vpop.f32.mrb[31].mxu1  ;;  %v1365_v62 = vadd.f32 %v1361_v57, %v9934_v31 }
 0x793   :  { %v1369_v63 = vsel %vm1120_vm4, %v1365_v62, -inf  ;;  %v1366_v2 = vadd.f32 %v1362_v60, %v9934_v31 }
 0x794   :  { %1370 = vmax.xlane.f32.xlu0 %v1369_v63 }
 0x795   :  { %v1372_v3 = vsel %vm1120_vm4, %v1366_v2, -inf }
 0x796   :  { %1373 = vmax.xlane.f32.xlu1 %v1372_v3  ;;  %v1354_v4 = vpop.f32.mrb[32].mxu1 }
 0x797   :  { %v1363_v5 = vmul.f32 0.17677669, %v1354_v4  ;;  %v8144_v6 = vpop.f32.mrb[33].mxu1 }
 0x798   :  { %v1357_v11 = vpop.f32.mrb[34].mxu1 }
 0x799   :  { %v1364_v12 = vmul.f32 0.17677669, %v1357_v11  ;;  %v8145_v13 = vpop.f32.mrb[35].mxu1  ;;  %v1367_v14 = vadd.f32 %v1363_v5, %v9934_v31 }
 0x79b   :  { %v1375_v15 = vsel %vm1120_vm4, %v1367_v14, -inf  ;;  %v1368_v16 = vadd.f32 %v1364_v12, %v9934_v31 }
 0x79c   :  { %1376 = vmax.xlane.f32.xlu0 %v1375_v15 }
 0x79d   :  { %v1378_v18 = vsel %vm1120_vm4, %v1368_v16, -inf }
 0x7a0   :  { %1379 = vmax.xlane.f32.xlu0 %v1378_v18 }
 0x821   :  { %v1371_v19 = vpop.xlane.xlu0 %1370 }
 0x822   :  { %v1381_v20 = vsub.f32 %v1365_v62, %v1371_v19 }
 0x823   :  { %v1374_v21 = vpop.xlane.xlu1 %1373 }
 0x824   :  { %v1385_v22 = vmul.f32 1.442695, %v1381_v20  ;;  %v1382_v27 = vsub.f32 %v1366_v2, %v1374_v21 }
 0x826   :  { %9338 = vpow2.f32 %v1385_v22  ;;  %v1387_v29 = vmul.f32 1.442695, %v1382_v27 }
 0x828   :  { %9340 = vpow2.f32 %v1387_v29 }
 0x829   :  { %v1377_v32 = vpop.xlane.xlu0 %1376 }
 0x82a   :  { %v1383_v33 = vsub.f32 %v1367_v14, %v1377_v32 }
 0x82c   :  { %v1389_v34 = vmul.f32 1.442695, %v1383_v33 }
 0x82d   :  { %v1380_v45 = vpop.xlane.xlu0 %1379 }
 0x82e   :  { %9342 = vpow2.f32 %v1389_v34  ;;  %v1384_v17 = vsub.f32 %v1368_v16, %v1380_v45 }
 0x830   :  { %v9339_v35 = vpop.eup %9338  ;;  %v1391_v46 = vmul.f32 1.442695, %v1384_v17 }
 0x831   :  { %v1393_v36 = vsel %vm1120_vm4, %v9339_v35, 0.0 }
 0x832   :  { %v9341_v37 = vpop.eup %9340  ;;  %1394 = vadd.xlane.f32.xlu0 %v1393_v36  ;;  %9344 = vpow2.f32 %v1391_v46 }
 0x833   :  { %v1396_v42 = vsel %vm1120_vm4, %v9341_v37, 0.0 }
 0x834   :  { %1397 = vadd.xlane.f32.xlu1 %v1396_v42 }
 0x838   :  { %v9343_v43 = vpop.eup %9342 }
 0x839   :  { %v1399_v44 = vsel %vm1120_vm4, %v9343_v43, 0.0 }
 0x83a   :  { %1400 = vadd.xlane.f32.xlu0 %v1399_v44 }
 0x83c   :  { %v9345_v47 = vpop.eup %9344 }
 0x83d   :  { %v1402_v49 = vsel %vm1120_vm4, %v9345_v47, 0.0 }
 0x845   :  { %1464 = vrot.lane.b32.xlu1 %v9927_v24, %s9717_s3 }
 0x849   :  { %1513 = vrot.lane.b32.xlu1 %v9911_v10, %s9718_s17 }
 0x850   :  { %1416 = vrot.lane.b32.xlu0 %v9929_v25, %s9717_s3 }
 0x854   :  { %1511 = vrot.lane.b32.xlu0 %v9909_v9, %s9718_s17 }
 0x86d   :  { %1403 = vadd.xlane.f32.xlu1 %v1402_v49 }
 0x87e   :  { %1564 = vrot.lane.b32.xlu1 %v9907_v8, %s9718_s17 }
 0x882   :  { %1562 = vrot.lane.b32.xlu1 %v9905_v7, %s9718_s17 }
 0x8bf   :  { %v1395_v51 = vpop.xlane.xlu0 %1394 }
 0x8c0   :  { %9346 = vrcp.f32 %v1395_v51 }
 0x8c1   :  { %v1398_v53 = vpop.xlane.xlu1 %1397 }
 0x8c2   :  { %9348 = vrcp.f32 %v1398_v53 }
 0x8c5   :  { %v1465_v55 = vpop.permute.xlu1 %1464 }
 0x8c7   :  { %v1401_v56 = vpop.xlane.xlu0 %1400 }
 0x8c8   :  { %9350 = vrcp.f32 %v1401_v56 }
 0x8c9   :  { %v1514_v57 = vpop.permute.xlu1 %1513 }
 0x8ca   :  { %v9347_v58 = vpop.eup %9346  ;;  %v1519_v59 = vsel %vm1017_vm2, %v1514_v57, 0 }
 0x8cb   :  { %8159 = vmatpush3.bf16.xpose.msra.mxu0 %v1519_v59  ;;  %v1417_v60 = vpop.permute.xlu0 %1416  ;;  %v1409_v62 = vmul.f32 %v9347_v58, %v9339_v35 }
 0x8cc   :  { %v9349_v61 = vpop.eup %9348  ;;  %8147 = vmatpush3.bf16.msra.mxu1 %v1417_v60  ;;  %8170 = vmatprep.subr.bf16.mxu0 %v9714_v1 }
 0x8cd   :  { %v1410_v63 = vmul.f32 %v9349_v61, %v9341_v37  ;;  %8152 = vmatprep.subr.bf16.mxu1 %v9714_v1 }
 0x8cf   :  { %v1413_v2 = vpack.c.bf16 %v1410_v63, %v1409_v62  ;;  %v1512_v3 = vpop.permute.xlu0 %1511 }
 0x8d1   :  { %8149 = vmatmul.mubr.msk.bf16.vlgmr.msra.gmra.mrb[36].mxu1 %vm1120_vm4, %v1413_v2 }
 0x8d2   :  { %8153 = vmatpush3.bf16.msra.mxu1 %v1465_v55  ;;  %8161 = vmatmul.mubr.msk.bf16.vlgmr.msra.gmra.mrb[16].mxu0 %vm1017_vm2, %v1512_v3  ;;  %v9351_v5 = vpop.eup %9350 }
 0x8d3   :  { %8154 = vmatprep.mubr.msk.bf16.mxu1 %vm9713_vm0, %v9714_v1  ;;  %8164 = vmatprep.subr.bf16.mxu1 %v9714_v1  ;;  %v1411_v11 = vmul.f32 %v9351_v5, %v9343_v43 }
 0x8d4   :  { %8172 = vmatprep.mubr.msk.bf16.mxu0 %vm9713_vm0, %v9714_v1 }
 0x8fa   :  { %v1404_v4 = vpop.xlane.xlu1 %1403 }
 0x8fb   :  { %9352 = vrcp.f32 %v1404_v4 }
 0x8fe   :  { %v1565_v13 = vpop.permute.xlu1 %1564 }
 0x8ff   :  { %v1570_v15 = vsel %vm1017_vm2, %v1565_v13, 0 }
 0x902   :  { %v1563_v16 = vpop.permute.xlu1 %1562 }
 0x905   :  { %v9353_v6 = vpop.eup %9352 }
 0x906   :  { %v1412_v12 = vmul.f32 %v9353_v6, %v9345_v47 }
 0x908   :  { %v1414_v14 = vpack.c.bf16 %v1412_v12, %v1411_v11 }
 0x90a   :  { %8155 = vmatmul.mubr.msk.bf16.vlgmr.msra.gmra.mrb[40].mxu1 %vm1120_vm4, %v1414_v14 }
 0x90b   :  { %8165 = vmatpush3.bf16.xpose.msra.mxu1 %v1570_v15  ;;  %8166 = vmatprep.mubr.msk.bf16.mxu1 %vm9713_vm0, %v9714_v1 }
 0x90c   :  { %8176 = vmatprep.subr.bf16.mxu1 %v9714_v1 }
 0x912   :  { %8167 = vmatmul.mubr.msk.bf16.vlgmr.msra.gmra.mrb[44].mxu1 %vm1017_vm2, %v1563_v16 }
 0x913   :  { %8178 = vmatprep.mubr.msk.bf16.mxu1 %vm9713_vm0, %v9714_v1 }
 0x9a4   :  { %v10024_v18 = vpop.f32.mrb[36].mxu1 }
 0x9a5   :  { %v8150_v19 = vpop.f32.mrb[37].mxu1  ;;  %v1555_v20 = vpop.f32.mrb[16].mxu0 }
 0x9a6   :  { %v1613_v21 = vmul.f32 0.17677669, %v1555_v20  ;;  %v10026_v22 = vpop.f32.mrb[38].mxu1  ;;  %v8162_v27 = vpop.f32.mrb[17].mxu0 }
 0x9a7   :  { %v9014_v29 = vpack.i.bf16 %v10026_v22, %v10024_v18  ;;  %v8151_v32 = vpop.f32.mrb[39].mxu1  ;;  %v1558_v33 = vpop.f32.mrb[18].mxu0 }
 0x9a8   :  { %v1614_v34 = vmul.f32 0.17677669, %v1558_v33  ;;  %v8163_v35 = vpop.f32.mrb[19].mxu0  ;;  %v1617_v36 = vadd.f32 %v1613_v21, %v9934_v31 }
 0x9aa   :  { %v1621_v37 = vsel %vm1120_vm4, %v1617_v36, -inf  ;;  %v1618_v42 = vadd.f32 %v1614_v34, %v9934_v31 }
 0x9ab   :  { %1622 = vmax.xlane.f32.xlu0 %v1621_v37 }
 0x9ac   :  { %v1624_v43 = vsel %vm1120_vm4, %v1618_v42, -inf }
 0x9ad   :  { %1625 = vmax.xlane.f32.xlu1 %v1624_v43 }
 0x9dd   :  { %v10034_v44 = vpop.f32.mrb[40].mxu1 }
 0x9de   :  { %v8156_v45 = vpop.f32.mrb[41].mxu1 }
 0x9df   :  { %v10036_v17 = vpop.f32.mrb[42].mxu1 }
 0x9e0   :  { %v9019_v46 = vpack.i.bf16 %v10036_v17, %v10034_v44  ;;  %v8157_v47 = vpop.f32.mrb[43].mxu1 }
 0x9e5   :  { %v1606_v49 = vpop.f32.mrb[44].mxu1 }
 0x9e6   :  { %v1615_v51 = vmul.f32 0.17677669, %v1606_v49  ;;  %v8168_v53 = vpop.f32.mrb[45].mxu1 }
 0x9e7   :  { %v1609_v55 = vpop.f32.mrb[46].mxu1 }
 0x9e8   :  { %v1616_v56 = vmul.f32 0.17677669, %v1609_v55  ;;  %v8169_v57 = vpop.f32.mrb[47].mxu1  ;;  %v1619_v58 = vadd.f32 %v1615_v51, %v9934_v31 }
 0x9ea   :  { %v1627_v59 = vsel %vm1120_vm4, %v1619_v58, -inf  ;;  %v1620_v60 = vadd.f32 %v1616_v56, %v9934_v31 }
 0x9eb   :  { %1628 = vmax.xlane.f32.xlu0 %v1627_v59 }
 0x9ec   :  { %v1630_v61 = vsel %vm1120_vm4, %v1620_v60, -inf }
 0x9ef   :  { %1631 = vmax.xlane.f32.xlu0 %v1630_v61 }
 0xa38   :  { %v1623_v62 = vpop.xlane.xlu0 %1622 }
 0xa39   :  { %v1633_v63 = vsub.f32 %v1617_v36, %v1623_v62 }
 0xa3a   :  { %v1626_v2 = vpop.xlane.xlu1 %1625 }
 0xa3b   :  { %v1637_v3 = vmul.f32 1.442695, %v1633_v63  ;;  %v1634_v4 = vsub.f32 %v1618_v42, %v1626_v2 }
 0xa3d   :  { %9354 = vpow2.f32 %v1637_v3  ;;  %v1639_v5 = vmul.f32 1.442695, %v1634_v4 }
 0xa3f   :  { %9356 = vpow2.f32 %v1639_v5 }
 0xa47   :  { %v9355_v6 = vpop.eup %9354 }
 0xa48   :  { %v1645_v11 = vsel %vm1120_vm4, %v9355_v6, 0.0 }
 0xa49   :  { %v9357_v12 = vpop.eup %9356  ;;  %1646 = vadd.xlane.f32.xlu0 %v1645_v11 }
 0xa4a   :  { %v1648_v13 = vsel %vm1120_vm4, %v9357_v12, 0.0 }
 0xa4b   :  { %1649 = vadd.xlane.f32.xlu1 %v1648_v13 }
 0xa5c   :  { %1714 = vrot.lane.b32.xlu1 %v9927_v24, %s9718_s17 }
 0xa60   :  { %1763 = vrot.lane.b32.xlu1 %v9911_v10, %s9719_s1 }
 0xa78   :  { %v1629_v14 = vpop.xlane.xlu0 %1628 }
 0xa79   :  { %v1635_v15 = vsub.f32 %v1619_v58, %v1629_v14 }
 0xa7b   :  { %v1641_v16 = vmul.f32 1.442695, %v1635_v15 }
 0xa7c   :  { %v1632_v19 = vpop.xlane.xlu0 %1631 }
 0xa7d   :  { %9358 = vpow2.f32 %v1641_v16  ;;  %v1636_v20 = vsub.f32 %v1620_v60, %v1632_v19 }
 0xa7f   :  { %v1643_v21 = vmul.f32 1.442695, %v1636_v20 }
 0xa81   :  { %9360 = vpow2.f32 %v1643_v21 }
 0xa87   :  { %v9359_v27 = vpop.eup %9358 }
 0xa88   :  { %v1651_v32 = vsel %vm1120_vm4, %v9359_v27, 0.0 }
 0xa89   :  { %1652 = vadd.xlane.f32.xlu0 %v1651_v32 }
 0xa8b   :  { %v9361_v33 = vpop.eup %9360 }
 0xa8c   :  { %v1654_v34 = vsel %vm1120_vm4, %v9361_v33, 0.0 }
 0xa8d   :  { %1655 = vadd.xlane.f32.xlu1 %v1654_v34 }
 0xa9e   :  { %1814 = vrot.lane.b32.xlu1 %v9907_v8, %s9719_s1 }
 0xa9f   :  { %1667 = vrot.lane.b32.xlu0 %v9929_v25, %s9718_s17 }
 0xaa2   :  { %1812 = vrot.lane.b32.xlu1 %v9905_v7, %s9719_s1 }
 0xaa3   :  { %1761 = vrot.lane.b32.xlu0 %v9909_v9, %s9719_s1 }
 0xad6   :  { %v1647_v36 = vpop.xlane.xlu0 %1646 }
 0xad8   :  { %v1650_v10 = vpop.xlane.xlu1 %1649 }
 0xad9   :  { %9362 = vrcp.f32 %v1650_v10 }
 0xada   :  { %9364 = vrcp.f32 %v1647_v36 }
 0xadc   :  { %v1715_v35 = vpop.permute.xlu1 %1714 }
 0xadd   :  { %8177 = vmatpush3.bf16.msra.mxu1 %v1715_v35 }
 0xade   :  { %8188 = vmatprep.subr.bf16.mxu1 %v9714_v1 }
 0xae0   :  { %v1764_v42 = vpop.permute.xlu1 %1763 }
 0xae1   :  { %v1769_v53 = vsel %vm1017_vm2, %v1764_v42, 0 }
 0xae3   :  { %v9363_v37 = vpop.eup %9362 }
 0xae4   :  { %v9365_v43 = vpop.eup %9364  ;;  %v1662_v45 = vmul.f32 %v9363_v37, %v9357_v12 }
 0xae5   :  { %v1661_v47 = vmul.f32 %v9365_v43, %v9355_v6 }
 0xae7   :  { %v1665_v9 = vpack.c.bf16 %v1662_v45, %v1661_v47 }
 0xb16   :  { %v1653_v8 = vpop.xlane.xlu0 %1652 }
 0xb17   :  { %9366 = vrcp.f32 %v1653_v8 }
 0xb1a   :  { %v1656_v49 = vpop.xlane.xlu1 %1655  ;;  %v1668_v7 = vpop.permute.xlu0 %1667 }
 0xb1b   :  { %9368 = vrcp.f32 %v1656_v49  ;;  %8171 = vmatpush3.bf16.msra.mxu0 %v1668_v7 }
 0xb1c   :  { %8182 = vmatprep.subr.bf16.mxu0 %v9714_v1 }
 0xb1e   :  { %8173 = vmatmul.mubr.msk.bf16.vlgmr.msra.gmra.mrb[20].mxu0 %vm1120_vm4, %v1665_v9  ;;  %v1815_v58 = vpop.permute.xlu1 %1814  ;;  %v1762_v61 = vpop.permute.xlu0 %1761 }
 0xb1f   :  { %8184 = vmatprep.mubr.msk.bf16.mxu0 %vm9713_vm0, %v9714_v1  ;;  %v1820_v60 = vsel %vm1017_vm2, %v1815_v58, 0 }
 0xb21   :  { %v9367_v51 = vpop.eup %9366 }
 0xb22   :  { %v1663_v56 = vmul.f32 %v9367_v51, %v9359_v27  ;;  %v1813_v62 = vpop.permute.xlu1 %1812 }
 0xb24   :  { %8183 = vmatpush3.bf16.xpose.msra.mxu0 %v1769_v53 }
 0xb25   :  { %v9369_v55 = vpop.eup %9368  ;;  %8194 = vmatprep.subr.bf16.mxu0 %v9714_v1 }
 0xb26   :  { %v1664_v57 = vmul.f32 %v9369_v55, %v9361_v33 }
 0xb28   :  { %v1666_v59 = vpack.c.bf16 %v1664_v57, %v1663_v56 }
 0xb2a   :  { %8179 = vmatmul.mubr.msk.bf16.vlgmr.msra.gmra.mrb[48].mxu1 %vm1120_vm4, %v1666_v59 }
 0xb2b   :  { %8189 = vmatpush3.bf16.xpose.msra.mxu1 %v1820_v60  ;;  %8185 = vmatmul.mubr.msk.bf16.vlgmr.msra.gmra.mrb[24].mxu0 %vm1017_vm2, %v1762_v61 }
 0xb2c   :  { %8190 = vmatprep.mubr.msk.bf16.mxu1 %vm9713_vm0, %v9714_v1  ;;  %8200 = vmatprep.subr.bf16.mxu1 %v9714_v1 }
 0xb2d   :  { %8196 = vmatprep.mubr.msk.bf16.mxu0 %vm9713_vm0, %v9714_v1 }
 0xb32   :  { %8191 = vmatmul.mubr.msk.bf16.vlgmr.msra.gmra.mrb[52].mxu1 %vm1017_vm2, %v1813_v62 }
 0xb33   :  { %8202 = vmatprep.mubr.msk.bf16.mxu1 %vm9713_vm0, %v9714_v1 }
 0xbf1   :  { %v10078_v63 = vpop.f32.mrb[20].mxu0 }
 0xbf2   :  { %v8174_v2 = vpop.f32.mrb[21].mxu0 }
 0xbf3   :  { %v10080_v3 = vpop.f32.mrb[22].mxu0 }
 0xbf4   :  { %v9024_v4 = vpack.i.bf16 %v10080_v3, %v10078_v63  ;;  %v8175_v5 = vpop.f32.mrb[23].mxu0 }
 0xbfd   :  { %v1754_v6 = vpop.f32.mrb[48].mxu1 }
 0xbfe   :  { %v8180_v11 = vpop.f32.mrb[49].mxu1  ;;  %v1805_v12 = vpop.f32.mrb[24].mxu0 }
 0xbff   :  { %v1863_v13 = vmul.f32 0.17677669, %v1805_v12  ;;  %v1757_v14 = vpop.f32.mrb[50].mxu1  ;;  %v8186_v15 = vpop.f32.mrb[25].mxu0 }
 0xc00   :  { %v9029_v16 = vpack.i.bf16 %v1757_v14, %v1754_v6  ;;  %v8181_v19 = vpop.f32.mrb[51].mxu1  ;;  %v1808_v20 = vpop.f32.mrb[26].mxu0 }
 0xc01   :  { %v1864_v21 = vmul.f32 0.17677669, %v1808_v20  ;;  %v8187_v27 = vpop.f32.mrb[27].mxu0  ;;  %v1867_v32 = vadd.f32 %v1863_v13, %v9934_v31 }
 0xc03   :  { %v1871_v33 = vsel %vm1120_vm4, %v1867_v32, -inf  ;;  %v1868_v34 = vadd.f32 %v1864_v21, %v9934_v31 }
 0xc04   :  { %1872 = vmax.xlane.f32.xlu0 %v1871_v33  ;;  %v9128_v33 = vld [vmem:[#allocation8 + $0x84] ss:$8 sps:$4 sm:$0xff]  }
 0xc05   :  { %v1856_v10 = vpop.f32.mrb[52].mxu1  ;;  %v1874_v35 = vsel %vm1120_vm4, %v1868_v34, -inf }
 0xc06   :  { %v1865_v36 = vmul.f32 0.17677669, %v1856_v10  ;;  %1875 = vmax.xlane.f32.xlu1 %v1874_v35  ;;  %v8192_v37 = vpop.f32.mrb[53].mxu1  ;;  %v9130_v10 = vld [vmem:[#allocation8 + $0xa4] ss:$8 sps:$4 sm:$0xff]  }
 0xc07   :  { %v1859_v42 = vpop.f32.mrb[54].mxu1  ;;  %v9131_v35 = vld [vmem:[#allocation8 + $0xb4] ss:$8 sps:$4 sm:$0xff]  }
 0xc08   :  { %v1866_v8 = vmul.f32 0.17677669, %v1859_v42  ;;  %v8193_v43 = vpop.f32.mrb[55].mxu1  ;;  %v1869_v45 = vadd.f32 %v1865_v36, %v9934_v31  ;;  %v9132_v36 = vld [vmem:[#allocation8 + $0xc4] ss:$8 sps:$4 sm:$0xff]  }
 0xc09   :  { %v9133_v37 = vld [vmem:[#allocation8 + $0xd4] ss:$8 sps:$4 sm:$0xff]   ;;  %v9134_v42 = vld [vmem:[#allocation8 + $0xe4] ss:$8 sps:$4 sm:$0xff]  }
 0xc0a   :  { %v1877_v47 = vsel %vm1120_vm4, %v1869_v45, -inf  ;;  %v1870_v49 = vadd.f32 %v1866_v8, %v9934_v31 }
 0xc0b   :  { %1878 = vmax.xlane.f32.xlu0 %v1877_v47 }
 0xc0c   :  { %v1880_v7 = vsel %vm1120_vm4, %v1870_v49, -inf }
 0xc0f   :  { %1881 = vmax.xlane.f32.xlu0 %v1880_v7 }
 0xc91   :  { %v1873_v9 = vpop.xlane.xlu0 %1872 }
 0xc92   :  { %v1883_v51 = vsub.f32 %v1867_v32, %v1873_v9 }
 0xc93   :  { %v1876_v53 = vpop.xlane.xlu1 %1875 }
 0xc94   :  { %v1887_v55 = vmul.f32 1.442695, %v1883_v51  ;;  %v1884_v56 = vsub.f32 %v1868_v34, %v1876_v53  ;;  %v9129_v34 = vld [vmem:[#allocation8 + $0x94] ss:$8 sps:$4 sm:$0xff]  }
 0xc96   :  { %9370 = vpow2.f32 %v1887_v55  ;;  %v1889_v57 = vmul.f32 1.442695, %v1884_v56 }
 0xc98   :  { %9372 = vpow2.f32 %v1889_v57  ;;  %v1879_v58 = vpop.xlane.xlu0 %1878 }
 0xc99   :  { %v1885_v59 = vsub.f32 %v1869_v45, %v1879_v58  ;;  %v9135_v45 = vld [vmem:[#allocation8 + $0xf4] ss:$8 sps:$4 sm:$0xff]  }
 0xc9b   :  { %v1891_v60 = vmul.f32 1.442695, %v1885_v59 }
 0xc9c   :  { %v1882_v61 = vpop.xlane.xlu0 %1881 }
 0xc9d   :  { %9374 = vpow2.f32 %v1891_v60  ;;  %v1886_v62 = vsub.f32 %v1870_v49, %v1882_v61 }
 0xc9f   :  { %v1893_v63 = vmul.f32 1.442695, %v1886_v62 }
 0xca0   :  { %v9371_v2 = vpop.eup %9370 }
 0xca1   :  { %9376 = vpow2.f32 %v1893_v63  ;;  %v1895_v3 = vsel %vm1120_vm4, %v9371_v2, 0.0 }
 0xca2   :  { %v9373_v5 = vpop.eup %9372  ;;  %1896 = vadd.xlane.f32.xlu0 %v1895_v3 }
 0xca3   :  { %v1898_v6 = vsel %vm1120_vm4, %v9373_v5, 0.0 }
 0xca4   :  { %1899 = vadd.xlane.f32.xlu1 %v1898_v6 }
 0xca7   :  { %v9375_v11 = vpop.eup %9374 }
 0xca8   :  { %v1901_v12 = vsel %vm1120_vm4, %v9375_v11, 0.0 }
 0xca9   :  { %1902 = vadd.xlane.f32.xlu0 %v1901_v12 }
 0xcab   :  { %v9377_v13 = vpop.eup %9376 }
 0xcac   :  { %v1904_v14 = vsel %vm1120_vm4, %v9377_v13, 0.0 }
 0xcad   :  { %1905 = vadd.xlane.f32.xlu1 %v1904_v14 }
 0xcbe   :  { %1964 = vrot.lane.b32.xlu1 %v9927_v24, %s9719_s1 }
 0xcbf   :  { %1917 = vrot.lane.b32.xlu0 %v9929_v25, %s9719_s1 }
 0xcc2   :  { %9015 = vrot.lane.b32.xlu1 %v9014_v29, %s9719_s1 }
 0xcc3   :  { %9025 = vrot.lane.b32.xlu0 %v9024_v4, %s9718_s17 }
 0xcc6   :  { %9020 = vrot.lane.b32.xlu1 %v9019_v46, %s9719_s1 }
 0xcca   :  { %9030 = vrot.lane.b32.xlu1 %v9029_v16, %s9718_s17 }
 0xd2f   :  { %v1897_v15 = vpop.xlane.xlu0 %1896 }
 0xd30   :  { %9378 = vrcp.f32 %v1897_v15 }
 0xd31   :  { %v1900_v24 = vpop.xlane.xlu1 %1899 }
 0xd32   :  { %9380 = vrcp.f32 %v1900_v24 }
 0xd36   :  { %v1903_v19 = vpop.xlane.xlu0 %1902 }
 0xd37   :  { %9382 = vrcp.f32 %v1903_v19 }
 0xd3a   :  { %v9379_v25 = vpop.eup %9378  ;;  %v1906_v20 = vpop.xlane.xlu1 %1905 }
 0xd3b   :  { %v1918_v21 = vpop.permute.xlu0 %1917  ;;  %9384 = vrcp.f32 %v1906_v20  ;;  %v1911_v22 = vmul.f32 %v9379_v25, %v9371_v2 }
 0xd3c   :  { %8195 = vmatpush3.bf16.msra.mxu0 %v1918_v21  ;;  %v9381_v18 = vpop.eup %9380 }
 0xd3d   :  { %v1912_v29 = vmul.f32 %v9381_v18, %v9373_v5  ;;  %8206 = vmatprep.subr.bf16.mxu0 %v9128_v33 }
 0xd3e   :  { %v1965_v4 = vpop.permute.xlu1 %1964 }
 0xd3f   :  { %8201 = vmatpush3.bf16.msra.mxu1 %v1965_v4  ;;  %v1915_v44 = vpack.c.bf16 %v1912_v29, %v1911_v22  ;;  %v9026_v60 = vpop.permute.xlu0 %9025 }
 0xd40   :  { %v9028_v2 = vunpack.i.h.bf16 %v9026_v60  ;;  %v9027_v3 = vunpack.i.l.bf16 %v9026_v60  ;;  %v9151_v60 = vld [vmem:[#allocation8 + $0x150] ss:$8 sps:$4 sm:$0xff]  }
 0xd41   :  { %8197 = vmatmul.mubr.msk.bf16.vlgmr.msra.gmra.mrb[28].mxu0 %vm1120_vm4, %v1915_v44  ;;  %v9383_v17 = vpop.eup %9382 }
 0xd42   :  { %v1913_v16 = vmul.f32 %v9383_v17, %v9375_v11  ;;  %8207 = vmatpush3.bf16.msra.mxu0 %v9128_v33  ;;  %v9016_v57 = vpop.permute.xlu1 %9015 }
 0xd43   :  { %8208 = vmatprep.subr.bf16.mxu0 %v9129_v34  ;;  %v9018_v58 = vunpack.i.h.bf16 %v9016_v57  ;;  %v9017_v59 = vunpack.i.l.bf16 %v9016_v57  ;;  %v9150_v57 = vld [vmem:[#allocation8 + $0x144] ss:$8 sps:$4 sm:$0xff]  }
 0xd45   :  { %v9385_v46 = vpop.eup %9384  ;;  %v2060_v62 = vsel %vm1017_vm2, %v9976_v50, %v9018_v58  ;;  %v2059_v63 = vsel %vm1017_vm2, %v9974_v48, %v9017_v59  ;;  %v9148_v58 = vld [vmem:[#allocation8 + $0x140] ss:$8 sps:$4 sm:$0xff]   ;;  %v9153_v59 = vld [vmem:[#allocation8 + $0x154] ss:$8 sps:$4 sm:$0xff]  }
 0xd46   :  { %v1914_v27 = vmul.f32 %v9385_v46, %v9377_v13  ;;  %8209 = vmatpush3.bf16.msra.mxu0 %v9129_v34  ;;  %v9021_v61 = vpop.permute.xlu1 %9020  ;;  %v2064_v12 = vsel %vm2063_vm5, %v2059_v63, %v9027_v3  ;;  %v2065_v13 = vsel %vm2063_vm5, %v2060_v62, %v9028_v2  ;;  %v9154_v62 = vld [vmem:[#allocation8 + $0x160] ss:$8 sps:$4 sm:$0xff]   ;;  %v9159_v63 = vld [vmem:[#allocation8 + $0x174] ss:$8 sps:$4 sm:$0xff]   ;;  %v9720_v2 = vmov 0  }
 0xd47   :  { %8210 = vmatprep.subr.bf16.mxu0 %v9130_v10  ;;  %v9023_v19 = vunpack.i.h.bf16 %v9021_v61  ;;  %v9022_v25 = vunpack.i.l.bf16 %v9021_v61  ;;  %v9156_v61 = vld [vmem:[#allocation8 + $0x164] ss:$8 sps:$4 sm:$0xff]   ;;  %v9157_v3 = vld [vmem:[#allocation8 + $0x170] ss:$8 sps:$4 sm:$0xff]  }
 0xd48   :  { %v1916_v32 = vpack.c.bf16 %v1914_v27, %v1913_v16 }
 0xd49   :  { %v2062_v18 = vsel %vm1017_vm2, %v9980_v54, %v9023_v19  ;;  %v2061_v22 = vsel %vm1017_vm2, %v9978_v52, %v9022_v25  ;;  %v9169_v19 = vld [vmem:[#allocation8 + $0x1c0] ss:$8 sps:$4 sm:$0xff]   ;;  %v9170_v25 = vld [vmem:[#allocation8 + $0x250] ss:$8 sps:$4 sm:$0xff]  }
 0xd4a   :  { %8203 = vmatmul.mubr.msk.bf16.vlgmr.msra.gmra.mrb[56].mxu1 %vm1120_vm4, %v1916_v32  ;;  %8211 = vmatpush3.bf16.msra.mxu0 %v9130_v10  ;;  %v9031_v24 = vpop.permute.xlu1 %9030  ;;  %v2091_v32 = vld [vmem:[#allocation5 + $0x15] ss:$0 sm:$0xff] }
 0xd4b   :  { %8212 = vmatprep.subr.bf16.mxu0 %v9131_v35  ;;  %v9033_v48 = vunpack.i.h.bf16 %v9031_v24  ;;  %v9032_v20 = vunpack.i.l.bf16 %v9031_v24  ;;  %2398 = vmatprep.mubr.bf16.mxu1 %v9720_v2  ;;  %v9167_v24 = vld [vmem:[#allocation8 + $0x1b0] ss:$8 sps:$4 sm:$0xff]  }
 0xd4d   :  { %v2066_v44 = vsel %vm2063_vm5, %v2061_v22, %v9032_v20  ;;  %v2067_v17 = vsel %vm2063_vm5, %v2062_v18, %v9033_v48 }
 0xd4e   :  { %8213 = vmatpush3.bf16.msra.mxu0 %v9131_v35 }
 0xd4f   :  { %8214 = vmatprep.subr.bf16.mxu0 %v9132_v36 }
 0xd52   :  { %8215 = vmatpush3.bf16.msra.mxu0 %v9132_v36 }
 0xd53   :  { %8216 = vmatprep.subr.bf16.mxu0 %v9133_v37 }
 0xd56   :  { %8217 = vmatpush3.bf16.msra.mxu0 %v9133_v37 }
 0xd57   :  { %8218 = vmatprep.subr.bf16.mxu0 %v9134_v42 }
 0xd5a   :  { %8219 = vmatpush3.bf16.msra.mxu0 %v9134_v42 }
 0xd5b   :  { %8220 = vmatprep.subr.bf16.mxu0 %v9135_v45 }
 0xd5e   :  { %8221 = vmatpush3.bf16.msra.mxu0 %v9135_v45 }
 0xe14   :  { %v1957_v8 = vpop.f32.mrb[28].mxu0 }
 0xe15   :  { %v8198_v43 = vpop.f32.mrb[29].mxu0 }
 0xe16   :  { %v1960_v47 = vpop.f32.mrb[30].mxu0 }
 0xe17   :  { %v9034_v49 = vpack.i.bf16 %v1960_v47, %v1957_v8  ;;  %v8199_v7 = vpop.f32.mrb[31].mxu0 }
 0xe18   :  { %v9136_v7 = vld [vmem:[#allocation8 + $0x100] ss:$8 sps:$4 sm:$0xff]  }
 0xe19   :  { %9035 = vrot.lane.b32.xlu0 %v9034_v49, %s9717_s3  ;;  %v9138_v49 = vld [vmem:[#allocation8 + $0x104] ss:$8 sps:$4 sm:$0xff]  }
 0xe1a   :  { %2366 = vmatprep.subr.bf16.mxu1 %v9138_v49 }
 0xe1b   :  { %2367 = vmatpush1.bf16.msra.mxu1 %v9136_v7 }
 0xe1d   :  { %v2004_v9 = vpop.f32.mrb[56].mxu1 }
 0xe1e   :  { %v8204_v51 = vpop.f32.mrb[57].mxu1 }
 0xe1f   :  { %v2007_v53 = vpop.f32.mrb[58].mxu1  ;;  %v9139_v51 = vld [vmem:[#allocation8 + $0x110] ss:$8 sps:$4 sm:$0xff]  }
 0xe20   :  { %v9039_v55 = vpack.i.bf16 %v2007_v53, %v2004_v9  ;;  %v8205_v56 = vpop.f32.mrb[59].mxu1  ;;  %v9141_v9 = vld [vmem:[#allocation8 + $0x114] ss:$8 sps:$4 sm:$0xff]   ;;  %v9144_v53 = vld [vmem:[#allocation8 + $0x124] ss:$8 sps:$4 sm:$0xff]  }
 0xe21   :  { %2368 = vmatprep.subr.bf16.mxu1 %v9141_v9  ;;  %v9145_v56 = vld [vmem:[#allocation8 + $0x130] ss:$8 sps:$4 sm:$0xff]  }
 0xe22   :  { %9040 = vrot.lane.b32.xlu1 %v9039_v55, %s9717_s3  ;;  %2369 = vmatpush1.bf16.msra.mxu1 %v9139_v51  ;;  %v9142_v55 = vld [vmem:[#allocation8 + $0x120] ss:$8 sps:$4 sm:$0xff]  }
 0xe23   :  { %2370 = vmatprep.subr.bf16.mxu1 %v9144_v53 }
 0xe26   :  { %2371 = vmatpush1.bf16.msra.mxu1 %v9142_v55 }
 0xe8b   :  { %v9036_v5 = vpop.permute.xlu0 %9035 }
 0xe8c   :  { %v9038_v6 = vunpack.i.h.bf16 %v9036_v5  ;;  %v9037_v11 = vunpack.i.l.bf16 %v9036_v5  ;;  %v9160_v5 = vld [vmem:[#allocation8 + $0x200] ss:$8 sps:$4 sm:$0xff]  }
 0xe8d   :  { %7535 = vmatprep.subr.bf16.mxu0 %v9160_v5 }
 0xe8e   :  { %v2069_v14 = vsel %vm2068_vm6, %v2064_v12, %v9037_v11  ;;  %v2070_v15 = vsel %vm2068_vm6, %v2065_v13, %v9038_v6  ;;  %v9161_v6 = vld [vmem:[#allocation8 + $0x180] ss:$8 sps:$4 sm:$0xff]   ;;  %v9162_v11 = vld [vmem:[#allocation8 + $0x210] ss:$8 sps:$4 sm:$0xff]  }
 0xe8f   :  { %v2073_v50 = vpack.c.bf16 %v2070_v15, %v2069_v14  ;;  %v9163_v12 = vld [vmem:[#allocation8 + $0x190] ss:$8 sps:$4 sm:$0xff]   ;;  %v9164_v13 = vld [vmem:[#allocation8 + $0x220] ss:$8 sps:$4 sm:$0xff]  }
 0xe90   :  { %v9165_v14 = vld [vmem:[#allocation8 + $0x1a0] ss:$8 sps:$4 sm:$0xff]   ;;  %v9166_v15 = vld [vmem:[#allocation8 + $0x230] ss:$8 sps:$4 sm:$0xff]  }
 0xe91   :  { %8222 = vmatprep.mubr.bf16.mxu0 %v2073_v50  ;;  %v9168_v50 = vld [vmem:[#allocation8 + $0x240] ss:$8 sps:$4 sm:$0xff]  }
 0xe94   :  { %v9041_v21 = vpop.permute.xlu1 %9040 }
 0xe95   :  { %v9043_v29 = vunpack.i.h.bf16 %v9041_v21  ;;  %v9042_v4 = vunpack.i.l.bf16 %v9041_v21 }
 0xe97   :  { %v2072_v46 = vsel %vm2068_vm6, %v2067_v17, %v9043_v29  ;;  %v2071_v16 = vsel %vm2068_vm6, %v2066_v44, %v9042_v4 }
 0xe98   :  { %v2074_v27 = vpack.c.bf16 %v2072_v46, %v2071_v16 }
 0xe9a   :  { %8223 = vmatmul.mubr.bf16.vlgmr.msra.gmra.mrb[32].mxu0 %v2074_v27 }
 0xe9b   :  { %7536 = vmatpush3.bf16.msra.mxu0 %v9161_v6 }
 0xe9c   :  { %7537 = vmatprep.subr.bf16.mxu0 %v9162_v11 }
 0xe9f   :  { %7538 = vmatpush3.bf16.msra.mxu0 %v9163_v12 }
 0xea0   :  { %7539 = vmatprep.subr.bf16.mxu0 %v9164_v13 }
 0xea3   :  { %7540 = vmatpush3.bf16.msra.mxu0 %v9165_v14 }
 0xea4   :  { %7541 = vmatprep.subr.bf16.mxu0 %v9166_v15 }
 0xea7   :  { %7542 = vmatpush3.bf16.msra.mxu0 %v9167_v24 }
 0xea8   :  { %7543 = vmatprep.subr.bf16.mxu0 %v9168_v50  ;;  %v9171_v50 = vld [vmem:[#allocation8 + $0x1d0] ss:$8 sps:$4 sm:$0xff]  }
 0xeab   :  { %7544 = vmatpush3.bf16.msra.mxu0 %v9169_v19  ;;  %v9173_v19 = vld [vmem:[#allocation8 + $0x1e0] ss:$8 sps:$4 sm:$0xff]  }
 0xeac   :  { %7545 = vmatprep.subr.bf16.mxu0 %v9170_v25  ;;  %v9174_v25 = vld [vmem:[#allocation8 + $0x270] ss:$8 sps:$4 sm:$0xff]  }
 0xeaf   :  { %7546 = vmatpush3.bf16.msra.mxu0 %v9171_v50 }
 0xf6d   :  { %v8224_v33 = vpop.f32.mrb[32].mxu0 }
 0xf6e   :  { %v2174_v34 = vpop.f32.mrb[33].mxu0  ;;  %v2183_v45 = vadd.f32 %v8224_v33, %v2091_v32 }
 0xf6f   :  { %v2175_v10 = vadd.f32 %v2174_v34, %v2091_v32  ;;  %v8225_v54 = vpop.f32.mrb[34].mxu0 }
 0xf70   :  { %v2177_v35 = vpop.f32.mrb[35].mxu0  ;;  %v2186_v37 = vadd.f32 %v8225_v54, %v2091_v32  ;;  %v10149_v47 = vadd.f32 %v2183_v45, %v9892_v40  ;;  %v9147_v40 = vld [vmem:[#allocation8 + $0x134] ss:$8 sps:$4 sm:$0xff]  }
 0xf71   :  { %v10131_v52 = vadd.f32 %v2175_v10, %v9888_v38  ;;  %v2178_v36 = vadd.f32 %v2177_v35, %v2091_v32  ;;  %2372 = vmatprep.subr.bf16.mxu1 %v9147_v40  ;;  %v2193_v40 = vld [vmem:[#allocation5 + $0x16] ss:$0 sm:$0xff] }
 0xf72   :  { %v10141_v43 = vadd.f32 %v2186_v37, %v9894_v41  ;;  %v2209_v41 = vmul.f32 %v10149_v47, %v10149_v47  ;;  %2373 = vmatpush1.bf16.msra.mxu1 %v9145_v56 }
 0xf73   :  { %v10134_v42 = vadd.f32 %v2178_v36, %v9890_v39  ;;  %2195 = vadd.xlane.f32.xlu0 %v10131_v52  ;;  %v2207_v8 = vmul.f32 %v10131_v52, %v10131_v52  ;;  %2374 = vmatprep.subr.bf16.mxu1 %v9150_v57 }
 0xf74   :  { %v2210_v39 = vmul.f32 %v10141_v43, %v10141_v43 }
 0xf75   :  { %2197 = vadd.xlane.f32.xlu1 %v10134_v42  ;;  %v2208_v38 = vmul.f32 %v10134_v42, %v10134_v42 }
 0xf76   :  { %2375 = vmatpush1.bf16.msra.mxu1 %v9148_v58 }
 0xf77   :  { %2211 = vadd.xlane.f32.xlu0 %v2207_v8  ;;  %2376 = vmatprep.subr.bf16.mxu1 %v9153_v59 }
 0xf79   :  { %2201 = vadd.xlane.f32.xlu1 %v10141_v43 }
 0xf7a   :  { %2377 = vmatpush1.bf16.msra.mxu1 %v9151_v60 }
 0xf7b   :  { %2213 = vadd.xlane.f32.xlu0 %v2208_v38  ;;  %2378 = vmatprep.subr.bf16.mxu1 %v9156_v61  ;;  %v2194_v61 = vld [vmem:[#allocation5 + $0x17] ss:$0 sm:$0xff] }
 0xf7d   :  { %2217 = vadd.xlane.f32.xlu1 %v2210_v39 }
 0xf7e   :  { %2379 = vmatpush1.bf16.msra.mxu1 %v9154_v62 }
 0xf7f   :  { %2199 = vadd.xlane.f32.xlu0 %v10149_v47  ;;  %2380 = vmatprep.subr.bf16.mxu1 %v9159_v63 }
 0xf82   :  { %2381 = vmatpush1.bf16.msra.mxu1 %v9157_v3 }
 0xf83   :  { %2215 = vadd.xlane.f32.xlu0 %v2209_v41 }
0x1000   :  { %v2196_v48 = vpop.xlane.xlu0 %2195 }
0x1001   :  { %v2203_v20 = vmul.f32 0.0078125, %v2196_v48  ;;  %v9175_v48 = vld [vmem:[#allocation8 + $0x1f0] ss:$8 sps:$4 sm:$0xff]  }
0x1002   :  { %v2198_v21 = vpop.xlane.xlu1 %2197 }
0x1003   :  { %v2223_v22 = vmul.f32 %v2203_v20, %v2203_v20  ;;  %v2204_v29 = vmul.f32 0.0078125, %v2198_v21  ;;  %v2231_v9 = vsub.f32 %v10131_v52, %v2203_v20  ;;  %v2274_v20 = vld [vmem:[#allocation5 + $0x20] ss:$8 sm:$0x3]  ;;  %v10173_v21 = vsub.s32 1, %v9875_v23 }
0x1004   :  { %v2212_v18 = vpop.xlane.xlu0 %2211 }
0x1005   :  { %v2219_v4 = vmul.f32 0.0078125, %v2212_v18  ;;  %v2224_v27 = vmul.f32 %v2204_v29, %v2204_v29  ;;  %v2232_v56 = vsub.f32 %v10134_v42, %v2204_v29  ;;  %v2279_v18 = vrot.slane %v2274_v20, %v9884_v30 }
0x1006   :  { %v2202_v44 = vpop.xlane.xlu1 %2201 }
0x1007   :  { %v2227_v17 = vsub.f32 %v2219_v4, %v2223_v22  ;;  %v2206_v46 = vmul.f32 0.0078125, %v2202_v44  ;;  %v2283_v22 = vrot.slane %v2274_v20, %v10173_v21 }
0x1008   :  { %v2214_v16 = vpop.xlane.xlu0 %2213 }
0x1009   :  { %v2235_v32 = vadd.f32 1e-05, %v2227_v17  ;;  %v2220_v33 = vmul.f32 0.0078125, %v2214_v16  ;;  %v2226_v10 = vmul.f32 %v2206_v46, %v2206_v46  ;;  %v2234_v62 = vsub.f32 %v10141_v43, %v2206_v46 }
0x100a   :  { %v2218_v34 = vpop.xlane.xlu1 %2217 }
0x100b   :  { %9386 = vrsqrt.f32 %v2235_v32  ;;  %v2228_v54 = vsub.f32 %v2220_v33, %v2224_v27  ;;  %v2222_v35 = vmul.f32 0.0078125, %v2218_v34 }
0x100c   :  { %v2200_v36 = vpop.xlane.xlu0 %2199 }
0x100d   :  { %v2236_v37 = vadd.f32 1e-05, %v2228_v54  ;;  %v2230_v8 = vsub.f32 %v2222_v35, %v2226_v10  ;;  %v2205_v45 = vmul.f32 0.0078125, %v2200_v36 }
0x100f   :  { %9388 = vrsqrt.f32 %v2236_v37  ;;  %v2238_v38 = vadd.f32 1e-05, %v2230_v8  ;;  %v2225_v41 = vmul.f32 %v2205_v45, %v2205_v45  ;;  %v2233_v6 = vsub.f32 %v10149_v47, %v2205_v45  ;;  %v9172_v47 = vld [vmem:[#allocation8 + $0x260] ss:$8 sps:$4 sm:$0xff]  }
0x1010   :  { %v2216_v39 = vpop.xlane.xlu0 %2215  ;;  %7547 = vmatprep.subr.bf16.mxu0 %v9172_v47 }
0x1011   :  { %9390 = vrsqrt.f32 %v2238_v38  ;;  %v2221_v49 = vmul.f32 0.0078125, %v2216_v39  ;;  %7548 = vmatpush3.bf16.msra.mxu0 %v9173_v19 }
0x1012   :  { %7549 = vmatprep.subr.bf16.mxu0 %v9174_v25 }
0x1013   :  { %v2229_v7 = vsub.f32 %v2221_v49, %v2225_v41 }
0x1015   :  { %v9387_v51 = vpop.eup %9386  ;;  %v2237_v53 = vadd.f32 1e-05, %v2229_v7  ;;  %7550 = vmatpush3.bf16.msra.mxu0 %v9175_v48 }
0x1016   :  { %v2243_v55 = vmul.f32 %v9387_v51, %v2231_v9 }
0x1017   :  { %9392 = vrsqrt.f32 %v2237_v53 }
0x1018   :  { %v2247_v59 = vmul.f32 %v2243_v55, %v2193_v40 }
0x1019   :  { %v9389_v57 = vpop.eup %9388 }
0x101a   :  { %v2244_v58 = vmul.f32 %v9389_v57, %v2232_v56  ;;  %v10158_v3 = vadd.f32 %v2247_v59, %v2194_v61  ;;  %v2463_v57 = vld [vmem:[#allocation5 + $0x21] ss:$0 sm:$0xff] }
0x101b   :  { %v9391_v60 = vpop.eup %9390 }
0x101c   :  { %v2248_v63 = vmul.f32 %v2244_v58, %v2193_v40  ;;  %v2246_v52 = vmul.f32 %v9391_v60, %v2234_v62 }
0x101e   :  { %v10160_v5 = vadd.f32 %v2248_v63, %v2194_v61  ;;  %v2250_v13 = vmul.f32 %v2246_v52, %v2193_v40 }
0x1020   :  { %v2255_v11 = vpack.c.bf16 %v10160_v5, %v10158_v3  ;;  %v10168_v43 = vadd.f32 %v2250_v13, %v2194_v61 }
0x1021   :  { %v9393_v12 = vpop.eup %9392 }
0x1022   :  { %2399 = vmatmul.mubr.bf16.vlgmr.msra.gmra.mrb[60].mxu1 %v2255_v11  ;;  %v2245_v42 = vmul.f32 %v9393_v12, %v2233_v6 }
0x1023   :  { %2408 = vmatprep.mubr.bf16.mxu1 %v9720_v2 }
0x1024   :  { %v2249_v14 = vmul.f32 %v2245_v42, %v2193_v40 }
0x1026   :  { %v10166_v15 = vadd.f32 %v2249_v14, %v2194_v61 }
0x1028   :  { %v2256_v24 = vpack.c.bf16 %v10168_v43, %v10166_v15 }
0x102a   :  { %2409 = vmatmul.mubr.bf16.gmra.mrb[64].mxu1 %v2256_v24 }
0x10f5   :  { %v2400_v29 = vpop.f32.mrb[60].mxu1 }
0x10f6   :  { %v2401_v4 = vadd.f32 %v2400_v29, %v2279_v18  ;;  %v2402_v44 = vpop.f32.mrb[61].mxu1  ;;  %v9177_v29 = vld [vmem:[#allocation8 + $0x284] ss:$8 sps:$4 sm:$0xff]  }
0x10f7   :  { %v2403_v17 = vadd.f32 %v2402_v44, %v2283_v22  ;;  %v2404_v46 = vpop.f32.mrb[62].mxu1  ;;  %8246 = vmatprep.subr.bf16.mxu0 %v9177_v29  ;;  %v9181_v44 = vld [vmem:[#allocation8 + $0x2a4] ss:$8 sps:$4 sm:$0xff]  }
0x10f8   :  { %v2405_v16 = vadd.f32 %v2404_v46, %v2279_v18  ;;  %v2406_v27 = vpop.f32.mrb[63].mxu1  ;;  %v2419_v33 = vmax.f32 %v2401_v4, 0.0  ;;  %v9179_v4 = vld [vmem:[#allocation8 + $0x294] ss:$8 sps:$4 sm:$0xff]  }
0x10f9   :  { %v2407_v32 = vadd.f32 %v2406_v27, %v2283_v22  ;;  %v2420_v10 = vmax.f32 %v2403_v17, 0.0  ;;  %v9182_v17 = vld [vmem:[#allocation8 + $0x2b0] ss:$8 sps:$4 sm:$0xff]   ;;  %v9183_v46 = vld [vmem:[#allocation8 + $0x2b4] ss:$8 sps:$4 sm:$0xff]  }
0x10fa   :  { %v2421_v34 = vmax.f32 %v2405_v16, 0.0  ;;  %v9184_v16 = vld [vmem:[#allocation8 + $0x2c0] ss:$8 sps:$4 sm:$0xff]   ;;  %v9185_v27 = vld [vmem:[#allocation8 + $0x2c4] ss:$8 sps:$4 sm:$0xff]  }
0x10fb   :  { %v2422_v54 = vmax.f32 %v2407_v32, 0.0  ;;  %v9186_v32 = vld [vmem:[#allocation8 + $0x2d0] ss:$8 sps:$4 sm:$0xff]  }
0x10fc   :  { %v2427_v35 = vpack.c.bf16 %v2421_v34, %v2419_v33  ;;  %v9187_v33 = vld [vmem:[#allocation8 + $0x2d4] ss:$8 sps:$4 sm:$0xff]   ;;  %v9188_v34 = vld [vmem:[#allocation8 + $0x2e0] ss:$8 sps:$4 sm:$0xff]  }
0x10fd   :  { %v2428_v36 = vpack.c.bf16 %v2422_v54, %v2420_v10  ;;  %v2410_v23 = vpop.f32.mrb[64].mxu1  ;;  %v9189_v10 = vld [vmem:[#allocation8 + $0x2e4] ss:$8 sps:$4 sm:$0xff]   ;;  %v9190_v54 = vld [vmem:[#allocation8 + $0x2f0] ss:$8 sps:$4 sm:$0xff]  }
0x10fe   :  { %v2411_v37 = vadd.f32 %v2410_v23, %v2279_v18  ;;  %v2412_v8 = vpop.f32.mrb[65].mxu1 }
0x10ff   :  { %v2413_v45 = vadd.f32 %v2412_v8, %v2283_v22  ;;  %v2414_v38 = vpop.f32.mrb[66].mxu1  ;;  %2592 = vmatprep.mubr.bf16.mxu0 %v2428_v36  ;;  %v10201_v36 = vld [vmem:[#allocation8 + $0x300] ss:$8 sps:$4 sm:$0xff]  }
0x1100   :  { %v2415_v39 = vadd.f32 %v2414_v38, %v2279_v18  ;;  %v2416_v41 = vpop.f32.mrb[67].mxu1  ;;  %2593 = vmatmul.mubr.bf16.vlgmr.msra.gmra.mrb[36].mxu0 %v2427_v35  ;;  %v2423_v7 = vmax.f32 %v2411_v37, 0.0  ;;  %v9191_v35 = vld [vmem:[#allocation8 + $0x2f4] ss:$8 sps:$4 sm:$0xff]  }
0x1101   :  { %v2417_v49 = vadd.f32 %v2416_v41, %v2283_v22  ;;  %v2424_v51 = vmax.f32 %v2413_v45, 0.0  ;;  %v9176_v22 = vld [vmem:[#allocation8 + $0x280] ss:$8 sps:$4 sm:$0xff]   ;;  %8247 = vmatpush3.bf16.msra.mxu0 %v9177_v29 }
0x1102   :  { %v2425_v9 = vmax.f32 %v2415_v39, 0.0  ;;  %8226 = vmatprep.subr.bf16.mxu1 %v9176_v22  ;;  %8248 = vmatprep.subr.bf16.mxu0 %v9179_v4  ;;  %v2614_v29 = vld [vmem:[#allocation5 + $0x23] ss:$0 sm:$0xff] }
0x1103   :  { %v2426_v53 = vmax.f32 %v2417_v49, 0.0  ;;  %8227 = vmatpush3.bf16.msra.mxu1 %v9176_v22 }
0x1104   :  { %v2429_v55 = vpack.c.bf16 %v2425_v9, %v2423_v7 }
0x1105   :  { %v2430_v40 = vpack.c.bf16 %v2426_v53, %v2424_v51  ;;  %8249 = vmatpush3.bf16.msra.mxu0 %v9179_v4 }
0x1106   :  { %8250 = vmatprep.subr.bf16.mxu0 %v9181_v44 }
0x1107   :  { %2600 = vmatprep.mubr.bf16.mxu0 %v2430_v40 }
0x1108   :  { %2601 = vmatmul.mubr.bf16.gmra.mrb[40].mxu0 %v2429_v55 }
0x1109   :  { %8251 = vmatpush3.bf16.msra.mxu0 %v9181_v44 }
0x110a   :  { %8252 = vmatprep.subr.bf16.mxu0 %v9183_v46 }
0x110d   :  { %8253 = vmatpush3.bf16.msra.mxu0 %v9183_v46 }
0x110e   :  { %8254 = vmatprep.subr.bf16.mxu0 %v9185_v27 }
0x1111   :  { %8255 = vmatpush3.bf16.msra.mxu0 %v9185_v27 }
0x1112   :  { %8256 = vmatprep.subr.bf16.mxu0 %v9187_v33 }
0x1115   :  { %8257 = vmatpush3.bf16.msra.mxu0 %v9187_v33 }
0x1116   :  { %8258 = vmatprep.subr.bf16.mxu0 %v9189_v10 }
0x1119   :  { %8259 = vmatpush3.bf16.msra.mxu0 %v9189_v10 }
0x111a   :  { %8260 = vmatprep.subr.bf16.mxu0 %v9191_v35 }
0x111d   :  { %8261 = vmatpush3.bf16.msra.mxu0 %v9191_v35  ;;  %v9195_v35 = vld [vmem:[#allocation8 + $0x330] ss:$8 sps:$4 sm:$0xff]  }
0x111e   :  { %8286 = vmatprep.subr.bf16.mxu0 %v9714_v1 }
0x11d3   :  { %v7551_v56 = vpop.f32.mrb[36].mxu0 }
0x11d4   :  { %v7552_v58 = vpop.f32.mrb[37].mxu0 }
0x11d5   :  { %v7553_v59 = vadd.f32 %v7552_v58, %v7551_v56  ;;  %v7554_v60 = vpop.f32.mrb[38].mxu0 }
0x11d6   :  { %v7555_v61 = vpop.f32.mrb[39].mxu0 }
0x11d7   :  { %v2595_v62 = vadd.f32 %v7553_v59, %v2463_v57  ;;  %v7556_v63 = vadd.f32 %v7555_v61, %v7554_v60 }
0x11d9   :  { %v2598_v52 = vadd.f32 %v7556_v63, %v2463_v57  ;;  %v10178_v6 = vadd.f32 %v2595_v62, %v10158_v3 }
0x11db   :  { %v7557_v11 = vpop.f32.mrb[40].mxu0  ;;  %2615 = vadd.xlane.f32.xlu0 %v10178_v6  ;;  %v10182_v12 = vadd.f32 %v2598_v52, %v10160_v5  ;;  %v2627_v24 = vmul.f32 %v10178_v6, %v10178_v6 }
0x11dc   :  { %v7558_v42 = vpop.f32.mrb[41].mxu0 }
0x11dd   :  { %v7559_v13 = vadd.f32 %v7558_v42, %v7557_v11  ;;  %v7560_v14 = vpop.f32.mrb[42].mxu0  ;;  %2617 = vadd.xlane.f32.xlu1 %v10182_v12  ;;  %v2628_v3 = vmul.f32 %v10182_v12, %v10182_v12 }
0x11de   :  { %v7561_v50 = vpop.f32.mrb[43].mxu0 }
0x11df   :  { %v2603_v47 = vadd.f32 %v7559_v13, %v2463_v57  ;;  %v7562_v19 = vadd.f32 %v7561_v50, %v7560_v14  ;;  %2631 = vadd.xlane.f32.xlu0 %v2627_v24 }
0x11e1   :  { %v2606_v25 = vadd.f32 %v7562_v19, %v2463_v57  ;;  %2633 = vadd.xlane.f32.xlu1 %v2628_v3  ;;  %v10190_v5 = vadd.f32 %v2603_v47, %v10166_v15  ;;  %v9178_v15 = vld [vmem:[#allocation8 + $0x290] ss:$8 sps:$4 sm:$0xff]   ;;  %v2613_v19 = vld [vmem:[#allocation5 + $0x22] ss:$0 sm:$0xff] }
0x11e2   :  { %8228 = vmatprep.subr.bf16.mxu1 %v9178_v15 }
0x11e3   :  { %2619 = vadd.xlane.f32.xlu0 %v10190_v5  ;;  %v10194_v48 = vadd.f32 %v2606_v25, %v10168_v43  ;;  %v2629_v20 = vmul.f32 %v10190_v5, %v10190_v5  ;;  %8229 = vmatpush3.bf16.msra.mxu1 %v9178_v15  ;;  %v9180_v43 = vld [vmem:[#allocation8 + $0x2a0] ss:$8 sps:$4 sm:$0xff]  }
0x11e4   :  { %8230 = vmatprep.subr.bf16.mxu1 %v9180_v43 }
0x11e5   :  { %2621 = vadd.xlane.f32.xlu1 %v10194_v48  ;;  %v2630_v18 = vmul.f32 %v10194_v48, %v10194_v48 }
0x11e7   :  { %2635 = vadd.xlane.f32.xlu0 %v2629_v20  ;;  %8231 = vmatpush3.bf16.msra.mxu1 %v9180_v43 }
0x11e8   :  { %8232 = vmatprep.subr.bf16.mxu1 %v9182_v17 }
0x11e9   :  { %2637 = vadd.xlane.f32.xlu1 %v2630_v18 }
0x11eb   :  { %8233 = vmatpush3.bf16.msra.mxu1 %v9182_v17 }
0x11ec   :  { %8234 = vmatprep.subr.bf16.mxu1 %v9184_v16 }
0x11ef   :  { %8235 = vmatpush3.bf16.msra.mxu1 %v9184_v16 }
0x11f0   :  { %8236 = vmatprep.subr.bf16.mxu1 %v9186_v32 }
0x11f3   :  { %8237 = vmatpush3.bf16.msra.mxu1 %v9186_v32 }
0x11f4   :  { %8238 = vmatprep.subr.bf16.mxu1 %v9188_v34 }
0x11f7   :  { %8239 = vmatpush3.bf16.msra.mxu1 %v9188_v34 }
0x11f8   :  { %8240 = vmatprep.subr.bf16.mxu1 %v9190_v54 }
0x11fb   :  { %8241 = vmatpush3.bf16.msra.mxu1 %v9190_v54  ;;  %v9193_v54 = vld [vmem:[#allocation8 + $0x310] ss:$8 sps:$4 sm:$0xff]  }
0x11fc   :  { %8266 = vmatprep.subr.bf16.mxu1 %v10201_v36 }
0x1268   :  { %v2616_v23 = vpop.xlane.xlu0 %2615 }
0x1269   :  { %v2623_v37 = vmul.f32 0.0078125, %v2616_v23  ;;  %v9196_v23 = vld [vmem:[#allocation8 + $0x340] ss:$8 sps:$4 sm:$0xff]  }
0x126a   :  { %v2618_v8 = vpop.xlane.xlu1 %2617 }
0x126b   :  { %v2624_v45 = vmul.f32 0.0078125, %v2618_v8  ;;  %v2643_v39 = vmul.f32 %v2623_v37, %v2623_v37  ;;  %v2651_v50 = vsub.f32 %v10178_v6, %v2623_v37  ;;  %v9197_v37 = vld [vmem:[#allocation8 + $0x350] ss:$8 sps:$4 sm:$0xff]   ;;  %v9198_v8 = vld [vmem:[#allocation8 + $0x360] ss:$8 sps:$4 sm:$0xff]  }
0x126c   :  { %v2632_v38 = vpop.xlane.xlu0 %2631 }
0x126d   :  { %v2639_v41 = vmul.f32 0.0078125, %v2632_v38  ;;  %v2644_v7 = vmul.f32 %v2624_v45, %v2624_v45  ;;  %v2652_v3 = vsub.f32 %v10182_v12, %v2624_v45  ;;  %v2693_v38 = vld [vmem:[#allocation5 + $0x24] ss:$0 sm:$0xff] }
0x126e   :  { %v2634_v49 = vpop.xlane.xlu1 %2633 }
0x126f   :  { %v2647_v9 = vsub.f32 %v2639_v41, %v2643_v39  ;;  %v2640_v51 = vmul.f32 0.0078125, %v2634_v49  ;;  %v2807_v41 = vld [vmem:[#allocation5 + $0x25] ss:$0 sm:$0xff] }
0x1270   :  { %v2620_v53 = vpop.xlane.xlu0 %2619 }
0x1271   :  { %v2655_v55 = vadd.f32 1e-05, %v2647_v9  ;;  %v2648_v40 = vsub.f32 %v2640_v51, %v2644_v7  ;;  %v2625_v56 = vmul.f32 0.0078125, %v2620_v53 }
0x1272   :  { %v2622_v57 = vpop.xlane.xlu1 %2621 }
0x1273   :  { %9394 = vrsqrt.f32 %v2655_v55  ;;  %v2656_v58 = vadd.f32 1e-05, %v2648_v40  ;;  %v2626_v59 = vmul.f32 0.0078125, %v2622_v57  ;;  %v2645_v61 = vmul.f32 %v2625_v56, %v2625_v56 }
0x1274   :  { %v2636_v60 = vpop.xlane.xlu0 %2635  ;;  %v2653_v4 = vsub.f32 %v10190_v5, %v2625_v56 }
0x1275   :  { %9396 = vrsqrt.f32 %v2656_v58  ;;  %v2641_v62 = vmul.f32 0.0078125, %v2636_v60  ;;  %v2646_v52 = vmul.f32 %v2626_v59, %v2626_v59  ;;  %v2654_v6 = vsub.f32 %v10194_v48, %v2626_v59  ;;  %v9194_v48 = vld [vmem:[#allocation8 + $0x320] ss:$8 sps:$4 sm:$0xff]  }
0x1276   :  { %v2638_v63 = vpop.xlane.xlu1 %2637 }
0x1277   :  { %v2649_v11 = vsub.f32 %v2641_v62, %v2645_v61  ;;  %v2642_v42 = vmul.f32 0.0078125, %v2638_v63 }
0x1279   :  { %v2657_v13 = vadd.f32 1e-05, %v2649_v11  ;;  %v2650_v14 = vsub.f32 %v2642_v42, %v2646_v52 }
0x127b   :  { %9398 = vrsqrt.f32 %v2657_v13  ;;  %v2658_v24 = vadd.f32 1e-05, %v2650_v14 }
0x127d   :  { %v9395_v47 = vpop.eup %9394  ;;  %9400 = vrsqrt.f32 %v2658_v24 }
0x127e   :  { %v2663_v25 = vmul.f32 %v9395_v47, %v2651_v50  ;;  %v2921_v50 = vld [vmem:[#allocation5 + $0x26] ss:$0 sm:$0xff] }
0x127f   :  { %v9397_v20 = vpop.eup %9396 }
0x1280   :  { %v2664_v18 = vmul.f32 %v9397_v20, %v2652_v3  ;;  %v2667_v22 = vmul.f32 %v2663_v25, %v2613_v19 }
0x1282   :  { %v2668_v15 = vmul.f32 %v2664_v18, %v2613_v19  ;;  %v10208_v43 = vadd.f32 %v2667_v22, %v2614_v29 }
0x1284   :  { %v10210_v44 = vadd.f32 %v2668_v15, %v2614_v29 }
0x1285   :  { %v9399_v17 = vpop.eup %9398 }
0x1286   :  { %v2665_v46 = vmul.f32 %v9399_v17, %v2653_v4  ;;  %v2675_v16 = vpack.c.bf16 %v10210_v44, %v10208_v43 }
0x1287   :  { %v9401_v12 = vpop.eup %9400 }
0x1288   :  { %v2666_v27 = vmul.f32 %v9401_v12, %v2654_v6  ;;  %8242 = vmatprep.mubr.bf16.mxu1 %v2675_v16  ;;  %8262 = vmatprep.mubr.bf16.mxu0 %v2675_v16  ;;  %v2669_v32 = vmul.f32 %v2665_v46, %v2613_v19 }
0x128a   :  { %v2670_v33 = vmul.f32 %v2666_v27, %v2613_v19  ;;  %v10215_v34 = vadd.f32 %v2669_v32, %v2614_v29 }
0x128c   :  { %v10217_v5 = vadd.f32 %v2670_v33, %v2614_v29 }
0x128e   :  { %v2676_v10 = vpack.c.bf16 %v10217_v5, %v10215_v34 }
0x1290   :  { %8243 = vmatmul.mubr.bf16.vlgmr.msra.gmra.mrb[68].mxu1 %v2676_v10  ;;  %8263 = vmatmul.mubr.bf16.vlgmr.msra.gmra.mrb[44].mxu0 %v2676_v10 }
0x1291   :  { %8267 = vmatpush3.bf16.msra.mxu1 %v10201_v36  ;;  %8282 = vmatprep.mubr.bf16.mxu1 %v2675_v16  ;;  %v9199_v36 = vld [vmem:[#allocation8 + $0x370] ss:$8 sps:$4 sm:$0xff]  }
0x1292   :  { %8268 = vmatprep.subr.bf16.mxu1 %v9193_v54  ;;  %8288 = vmatprep.mubr.msk.bf16.mxu0 %vm9713_vm0, %v9714_v1 }
0x1295   :  { %8269 = vmatpush3.bf16.msra.mxu1 %v9193_v54 }
0x1296   :  { %8270 = vmatprep.subr.bf16.mxu1 %v9194_v48 }
0x1299   :  { %8271 = vmatpush3.bf16.msra.mxu1 %v9194_v48 }
0x129a   :  { %8272 = vmatprep.subr.bf16.mxu1 %v9195_v35 }
0x129d   :  { %8273 = vmatpush3.bf16.msra.mxu1 %v9195_v35 }
0x129e   :  { %8274 = vmatprep.subr.bf16.mxu1 %v9196_v23 }
0x12a1   :  { %8275 = vmatpush3.bf16.msra.mxu1 %v9196_v23 }
0x12a2   :  { %8276 = vmatprep.subr.bf16.mxu1 %v9197_v37 }
0x12a5   :  { %8277 = vmatpush3.bf16.msra.mxu1 %v9197_v37 }
0x12a6   :  { %8278 = vmatprep.subr.bf16.mxu1 %v9198_v8 }
0x12a9   :  { %8279 = vmatpush3.bf16.msra.mxu1 %v9198_v8 }
0x12aa   :  { %8280 = vmatprep.subr.bf16.mxu1 %v9199_v36 }
0x12ad   :  { %8281 = vmatpush3.bf16.msra.mxu1 %v9199_v36 }
0x12ae   :  { %8292 = vmatprep.subr.bf16.mxu1 %v9714_v1 }
0x12b0   :  { %8283 = vmatmul.mubr.bf16.vlgmr.msra.gmra.mrb[72].mxu1 %v2676_v10 }
0x12b1   :  { %8294 = vmatprep.mubr.msk.bf16.mxu1 %vm9713_vm0, %v9714_v1 }
0x1363   :  { %v8244_v45 = vpop.f32.mrb[68].mxu1  ;;  %v8264_v39 = vpop.f32.mrb[44].mxu0 }
0x1364   :  { %v2776_v49 = vpop.f32.mrb[69].mxu1  ;;  %v2890_v7 = vpop.f32.mrb[45].mxu0  ;;  %v2785_v53 = vadd.f32 %v8244_v45, %v2693_v38  ;;  %v2899_v55 = vadd.f32 %v8264_v39, %v2807_v41 }
0x1365   :  { %v8245_v9 = vpop.f32.mrb[70].mxu1  ;;  %v8265_v51 = vpop.f32.mrb[46].mxu0  ;;  %v2777_v59 = vadd.f32 %v2776_v49, %v2693_v38  ;;  %v2891_v60 = vadd.f32 %v2890_v7, %v2807_v41 }
0x1366   :  { %v2788_v40 = vadd.f32 %v8245_v9, %v2693_v38  ;;  %v2902_v56 = vadd.f32 %v8265_v51, %v2807_v41  ;;  %v2779_v57 = vpop.f32.mrb[71].mxu1  ;;  %v2893_v58 = vpop.f32.mrb[47].mxu0 }
0x1367   :  { %v2780_v61 = vadd.f32 %v2779_v57, %v2693_v38  ;;  %v2894_v62 = vadd.f32 %v2893_v58, %v2807_v41 }
0x1368   :  { %v10227_v63 = vpack.c.bf16 %v2788_v40, %v2785_v53  ;;  %v10229_v52 = vpack.c.bf16 %v2902_v56, %v2899_v55 }
0x1369   :  { %v10231_v11 = vpack.c.bf16 %v2780_v61, %v2777_v59  ;;  %v10233_v42 = vpack.c.bf16 %v2894_v62, %v2891_v60 }
0x136a   :  { %v3076_v13 = vsel %vm1017_vm2, %v10229_v52, 0 }
0x136b   :  { %8293 = vmatpush3.bf16.xpose.msra.mxu1 %v3076_v13  ;;  %v3029_v14 = vsel %vm1017_vm2, %v10233_v42, 0 }
0x136c   :  { %8287 = vmatpush3.bf16.xpose.msra.mxu0 %v3029_v14  ;;  %8304 = vmatprep.subr.bf16.mxu1 %v9714_v1 }
0x136d   :  { %8298 = vmatprep.subr.bf16.mxu0 %v9714_v1 }
0x1372   :  { %8295 = vmatmul.mubr.msk.bf16.vlgmr.msra.gmra.mrb[76].mxu1 %vm1017_vm2, %v10227_v63 }
0x1373   :  { %8289 = vmatmul.mubr.msk.bf16.vlgmr.msra.gmra.mrb[48].mxu0 %vm1017_vm2, %v10231_v11  ;;  %8306 = vmatprep.mubr.msk.bf16.mxu1 %vm9713_vm0, %v9714_v1 }
0x1374   :  { %8300 = vmatprep.mubr.msk.bf16.mxu0 %vm9713_vm0, %v9714_v1 }
0x1383   :  { %v8284_v24 = vpop.f32.mrb[72].mxu1 }
0x1384   :  { %v3004_v47 = vpop.f32.mrb[73].mxu1  ;;  %v3013_v3 = vadd.f32 %v8284_v24, %v2921_v50 }
0x1385   :  { %v8285_v19 = vpop.f32.mrb[74].mxu1  ;;  %v3005_v18 = vadd.f32 %v3004_v47, %v2921_v50 }
0x1386   :  { %v3016_v25 = vadd.f32 %v8285_v19, %v2921_v50  ;;  %v3007_v20 = vpop.f32.mrb[75].mxu1 }
0x1387   :  { %v3008_v22 = vadd.f32 %v3007_v20, %v2921_v50 }
0x1388   :  { %v10249_v29 = vpack.c.bf16 %v3016_v25, %v3013_v3 }
0x1389   :  { %v10251_v15 = vpack.c.bf16 %v3008_v22, %v3005_v18 }
0x138a   :  { %8305 = vmatpush3.bf16.msra.mxu1 %v10249_v29 }
0x138b   :  { %8299 = vmatpush3.bf16.msra.mxu0 %v10251_v15  ;;  %8316 = vmatprep.subr.bf16.mxu1 %v9714_v1 }
0x138c   :  { %8310 = vmatprep.subr.bf16.mxu0 %v9714_v1 }
0x1445   :  { %v3112_v4 = vpop.f32.mrb[76].mxu1 }
0x1446   :  { %v3065_v17 = vpop.f32.mrb[48].mxu0  ;;  %v8296_v6 = vpop.f32.mrb[77].mxu1  ;;  %v3121_v46 = vmul.f32 0.17677669, %v3112_v4 }
0x1447   :  { %v3119_v16 = vmul.f32 0.17677669, %v3065_v17  ;;  %v8290_v12 = vpop.f32.mrb[49].mxu0  ;;  %v3115_v27 = vpop.f32.mrb[78].mxu1 }
0x1448   :  { %v3068_v32 = vpop.f32.mrb[50].mxu0  ;;  %v8297_v33 = vpop.f32.mrb[79].mxu1  ;;  %v3122_v10 = vmul.f32 0.17677669, %v3115_v27  ;;  %v3125_v8 = vadd.f32 %v3121_v46, %v9934_v31 }
0x1449   :  { %v3120_v54 = vmul.f32 0.17677669, %v3068_v32  ;;  %v8291_v48 = vpop.f32.mrb[51].mxu0  ;;  %v3123_v35 = vadd.f32 %v3119_v16, %v9934_v31 }
0x144a   :  { %v3126_v45 = vadd.f32 %v3122_v10, %v9934_v31  ;;  %v3133_v38 = vsel %vm1120_vm4, %v3125_v8, -inf }
0x144b   :  { %v3127_v23 = vsel %vm1120_vm4, %v3123_v35, -inf  ;;  %v3124_v37 = vadd.f32 %v3120_v54, %v9934_v31 }
0x144c   :  { %3128 = vmax.xlane.f32.xlu0 %v3127_v23  ;;  %v3136_v39 = vsel %vm1120_vm4, %v3126_v45, -inf }
0x144d   :  { %v3130_v36 = vsel %vm1120_vm4, %v3124_v37, -inf }
0x144e   :  { %3131 = vmax.xlane.f32.xlu1 %v3130_v36 }
0x1450   :  { %3134 = vmax.xlane.f32.xlu0 %v3133_v38 }
0x1452   :  { %3137 = vmax.xlane.f32.xlu1 %v3136_v39 }
0x1463   :  { %3318 = vrot.lane.b32.xlu1 %v10229_v52, %s9717_s3 }
0x14d9   :  { %v3129_v41 = vpop.xlane.xlu0 %3128 }
0x14da   :  { %v3139_v49 = vsub.f32 %v3123_v35, %v3129_v41 }
0x14db   :  { %v3132_v7 = vpop.xlane.xlu1 %3131 }
0x14dc   :  { %v3140_v51 = vsub.f32 %v3124_v37, %v3132_v7  ;;  %v3143_v55 = vmul.f32 1.442695, %v3139_v49 }
0x14dd   :  { %v3135_v9 = vpop.xlane.xlu0 %3134 }
0x14de   :  { %v3141_v53 = vsub.f32 %v3125_v8, %v3135_v9  ;;  %v3145_v58 = vmul.f32 1.442695, %v3140_v51 }
0x14df   :  { %v3138_v40 = vpop.xlane.xlu1 %3137 }
0x14e0   :  { %v3147_v56 = vmul.f32 1.442695, %v3141_v53  ;;  %v3142_v57 = vsub.f32 %v3126_v45, %v3138_v40 }
0x14e2   :  { %9402 = vpow2.f32 %v3147_v56  ;;  %v3149_v59 = vmul.f32 1.442695, %v3142_v57 }
0x14e3   :  { %9404 = vpow2.f32 %v3143_v55  ;;  %v3319_v19 = vpop.permute.xlu1 %3318 }
0x14e4   :  { %9406 = vpow2.f32 %v3149_v59  ;;  %v3324_v27 = vsel %vm1017_vm2, %v3319_v19, 0 }
0x14e5   :  { %9408 = vpow2.f32 %v3145_v58 }
0x14ec   :  { %v9403_v60 = vpop.eup %9402 }
0x14ed   :  { %v9405_v61 = vpop.eup %9404  ;;  %v3157_v62 = vsel %vm1120_vm4, %v9403_v60, 0.0 }
0x14ee   :  { %v9407_v13 = vpop.eup %9406  ;;  %3158 = vadd.xlane.f32.xlu0 %v3157_v62  ;;  %v3151_v50 = vsel %vm1120_vm4, %v9405_v61, 0.0 }
0x14ef   :  { %v3160_v14 = vsel %vm1120_vm4, %v9407_v13, 0.0  ;;  %v9409_v24 = vpop.eup %9408 }
0x14f0   :  { %3161 = vadd.xlane.f32.xlu1 %v3160_v14  ;;  %v3154_v47 = vsel %vm1120_vm4, %v9409_v24, 0.0 }
0x14f2   :  { %3152 = vadd.xlane.f32.xlu0 %v3151_v50 }
0x14f4   :  { %3155 = vadd.xlane.f32.xlu1 %v3154_v47 }
0x1505   :  { %3262 = vrot.lane.b32.xlu1 %v10231_v11, %s9717_s3 }
0x1508   :  { %3265 = vrot.lane.b32.xlu0 %v10233_v42, %s9717_s3 }
0x1509   :  { %3315 = vrot.lane.b32.xlu1 %v10227_v63, %s9717_s3 }
0x157b   :  { %v3159_v3 = vpop.xlane.xlu0 %3158 }
0x157c   :  { %9410 = vrcp.f32 %v3159_v3 }
0x157d   :  { %v3162_v25 = vpop.xlane.xlu1 %3161 }
0x157e   :  { %9412 = vrcp.f32 %v3162_v25 }
0x157f   :  { %v3153_v20 = vpop.xlane.xlu0 %3152 }
0x1580   :  { %9414 = vrcp.f32 %v3153_v20 }
0x1581   :  { %v3156_v18 = vpop.xlane.xlu1 %3155 }
0x1582   :  { %9416 = vrcp.f32 %v3156_v18 }
0x1583   :  { %v3266_v10 = vpop.permute.xlu0 %3265 }
0x1584   :  { %v3271_v35 = vsel %vm1017_vm2, %v3266_v10, 0 }
0x1585   :  { %v3263_v54 = vpop.permute.xlu1 %3262 }
0x1586   :  { %v9411_v22 = vpop.eup %9410 }
0x1587   :  { %v3169_v17 = vmul.f32 %v9411_v22, %v9403_v60 }
0x1588   :  { %v9413_v4 = vpop.eup %9412 }
0x1589   :  { %v3170_v6 = vmul.f32 %v9413_v4, %v9407_v13  ;;  %v3316_v23 = vpop.permute.xlu1 %3315 }
0x158a   :  { %v9415_v46 = vpop.eup %9414 }
0x158b   :  { %v3172_v16 = vpack.c.bf16 %v3170_v6, %v3169_v17  ;;  %v3167_v32 = vmul.f32 %v9415_v46, %v9405_v61 }
0x158c   :  { %v9417_v12 = vpop.eup %9416 }
0x158d   :  { %v3168_v33 = vmul.f32 %v9417_v12, %v9409_v24  ;;  %8307 = vmatmul.mubr.msk.bf16.vlgmr.msra.gmra.mrb[80].mxu1 %vm1120_vm4, %v3172_v16 }
0x158e   :  { %8317 = vmatpush3.bf16.xpose.msra.mxu1 %v3324_v27  ;;  %8318 = vmatprep.mubr.msk.bf16.mxu1 %vm9713_vm0, %v9714_v1 }
0x158f   :  { %v3171_v48 = vpack.c.bf16 %v3168_v33, %v3167_v32  ;;  %8328 = vmatprep.subr.bf16.mxu1 %v9714_v1 }
0x1591   :  { %8301 = vmatmul.mubr.msk.bf16.vlgmr.msra.gmra.mrb[52].mxu0 %vm1120_vm4, %v3171_v48 }
0x1592   :  { %8311 = vmatpush3.bf16.xpose.msra.mxu0 %v3271_v35  ;;  %8312 = vmatprep.mubr.msk.bf16.mxu0 %vm9713_vm0, %v9714_v1 }
0x1593   :  { %8322 = vmatprep.subr.bf16.mxu0 %v9714_v1 }
0x1595   :  { %8319 = vmatmul.mubr.msk.bf16.vlgmr.msra.gmra.mrb[84].mxu1 %vm1017_vm2, %v3316_v23 }
0x1596   :  { %8330 = vmatprep.mubr.msk.bf16.mxu1 %vm9713_vm0, %v9714_v1 }
0x1599   :  { %8313 = vmatmul.mubr.msk.bf16.vlgmr.msra.gmra.mrb[56].mxu0 %vm1017_vm2, %v3263_v54 }
0x159a   :  { %8324 = vmatprep.mubr.msk.bf16.mxu0 %vm9713_vm0, %v9714_v1 }
0x1660   :  { %v10293_v37 = vpop.f32.mrb[80].mxu1 }
0x1661   :  { %v8308_v8 = vpop.f32.mrb[81].mxu1 }
0x1662   :  { %v10295_v36 = vpop.f32.mrb[82].mxu1 }
0x1663   :  { %v8309_v45 = vpop.f32.mrb[83].mxu1 }
0x1664   :  { %v10297_v38 = vpop.f32.mrb[52].mxu0 }
0x1665   :  { %v8302_v39 = vpop.f32.mrb[53].mxu0 }
0x1666   :  { %v10299_v41 = vpop.f32.mrb[54].mxu0 }
0x1667   :  { %v8303_v49 = vpop.f32.mrb[55].mxu0 }
0x1668   :  { %v3360_v7 = vpop.f32.mrb[84].mxu1 }
0x1669   :  { %v8320_v9 = vpop.f32.mrb[85].mxu1  ;;  %v3369_v40 = vmul.f32 0.17677669, %v3360_v7 }
0x166a   :  { %v3363_v51 = vpop.f32.mrb[86].mxu1 }
0x166b   :  { %v8321_v53 = vpop.f32.mrb[87].mxu1  ;;  %v3370_v62 = vmul.f32 0.17677669, %v3363_v51  ;;  %v3373_v24 = vadd.f32 %v3369_v40, %v9934_v31 }
0x166c   :  { %v3307_v55 = vpop.f32.mrb[56].mxu0 }
0x166d   :  { %v3367_v56 = vmul.f32 0.17677669, %v3307_v55  ;;  %v8314_v57 = vpop.f32.mrb[57].mxu0  ;;  %v3381_v47 = vsel %vm1120_vm4, %v3373_v24, -inf  ;;  %v3374_v19 = vadd.f32 %v3370_v62, %v9934_v31 }
0x166e   :  { %v3310_v58 = vpop.f32.mrb[58].mxu0 }
0x166f   :  { %v3368_v59 = vmul.f32 0.17677669, %v3310_v58  ;;  %v8315_v60 = vpop.f32.mrb[59].mxu0  ;;  %v3371_v61 = vadd.f32 %v3367_v56, %v9934_v31  ;;  %v3384_v3 = vsel %vm1120_vm4, %v3374_v19, -inf }
0x1671   :  { %v3375_v13 = vsel %vm1120_vm4, %v3371_v61, -inf  ;;  %v3372_v14 = vadd.f32 %v3368_v59, %v9934_v31 }
0x1672   :  { %3376 = vmax.xlane.f32.xlu0 %v3375_v13 }
0x1673   :  { %v3378_v50 = vsel %vm1120_vm4, %v3372_v14, -inf }
0x1674   :  { %3379 = vmax.xlane.f32.xlu1 %v3378_v50 }
0x1676   :  { %3382 = vmax.xlane.f32.xlu0 %v3381_v47 }
0x167a   :  { %3385 = vmax.xlane.f32.xlu0 %v3384_v3 }
0x1685   :  { %3470 = vrot.lane.b32.xlu1 %v10249_v29, %s9717_s3 }
0x1689   :  { %3519 = vrot.lane.b32.xlu1 %v10233_v42, %s9718_s17 }
0x16ff   :  { %v3377_v25 = vpop.xlane.xlu0 %3376 }
0x1700   :  { %v3387_v18 = vsub.f32 %v3371_v61, %v3377_v25 }
0x1701   :  { %v3380_v20 = vpop.xlane.xlu1 %3379 }
0x1702   :  { %v3391_v6 = vmul.f32 1.442695, %v3387_v18  ;;  %v3388_v46 = vsub.f32 %v3372_v14, %v3380_v20 }
0x1703   :  { %v3383_v22 = vpop.xlane.xlu0 %3382 }
0x1704   :  { %v3389_v4 = vsub.f32 %v3373_v24, %v3383_v22  ;;  %v3393_v32 = vmul.f32 1.442695, %v3388_v46 }
0x1705   :  { %v3471_v17 = vpop.permute.xlu1 %3470 }
0x1706   :  { %v3395_v16 = vmul.f32 1.442695, %v3389_v4  ;;  %8329 = vmatpush3.bf16.msra.mxu1 %v3471_v17 }
0x1707   :  { %v3386_v12 = vpop.xlane.xlu0 %3385  ;;  %8340 = vmatprep.subr.bf16.mxu1 %v9714_v1 }
0x1708   :  { %9418 = vpow2.f32 %v3395_v16  ;;  %v3390_v27 = vsub.f32 %v3374_v19, %v3386_v12 }
0x1709   :  { %9420 = vpow2.f32 %v3391_v6  ;;  %v3520_v49 = vpop.permute.xlu1 %3519 }
0x170a   :  { %v3397_v33 = vmul.f32 1.442695, %v3390_v27  ;;  %v3525_v47 = vsel %vm1017_vm2, %v3520_v49, 0 }
0x170c   :  { %9422 = vpow2.f32 %v3397_v33 }
0x170d   :  { %9424 = vpow2.f32 %v3393_v32 }
0x1712   :  { %v9419_v10 = vpop.eup %9418 }
0x1713   :  { %v3405_v54 = vsel %vm1120_vm4, %v9419_v10, 0.0  ;;  %v9421_v48 = vpop.eup %9420 }
0x1714   :  { %3406 = vadd.xlane.f32.xlu0 %v3405_v54  ;;  %v3399_v23 = vsel %vm1120_vm4, %v9421_v48, 0.0 }
0x1716   :  { %v9423_v35 = vpop.eup %9422 }
0x1717   :  { %v3408_v8 = vsel %vm1120_vm4, %v9423_v35, 0.0  ;;  %v9425_v45 = vpop.eup %9424 }
0x1718   :  { %3400 = vadd.xlane.f32.xlu0 %v3399_v23  ;;  %3409 = vadd.xlane.f32.xlu1 %v3408_v8  ;;  %v3402_v39 = vsel %vm1120_vm4, %v9425_v45, 0.0 }
0x171c   :  { %3403 = vadd.xlane.f32.xlu1 %v3402_v39 }
0x172d   :  { %3570 = vrot.lane.b32.xlu1 %v10229_v52, %s9718_s17 }
0x172e   :  { %3422 = vrot.lane.b32.xlu0 %v10251_v15, %s9717_s3 }
0x1731   :  { %3568 = vrot.lane.b32.xlu1 %v10227_v63, %s9718_s17 }
0x1732   :  { %3517 = vrot.lane.b32.xlu0 %v10231_v11, %s9718_s17 }
0x17a1   :  { %v3407_v7 = vpop.xlane.xlu0 %3406 }
0x17a2   :  { %9426 = vrcp.f32 %v3407_v7 }
0x17a5   :  { %v3401_v9 = vpop.xlane.xlu0 %3400  ;;  %v3410_v51 = vpop.xlane.xlu1 %3409 }
0x17a6   :  { %9428 = vrcp.f32 %v3410_v51 }
0x17a7   :  { %9430 = vrcp.f32 %v3401_v9 }
0x17a9   :  { %v3423_v53 = vpop.permute.xlu0 %3422  ;;  %v3404_v55 = vpop.xlane.xlu1 %3403 }
0x17aa   :  { %9432 = vrcp.f32 %v3404_v55  ;;  %8323 = vmatpush3.bf16.msra.mxu0 %v3423_v53 }
0x17ab   :  { %8334 = vmatprep.subr.bf16.mxu0 %v9714_v1 }
0x17ac   :  { %v9427_v40 = vpop.eup %9426 }
0x17ad   :  { %v3417_v58 = vmul.f32 %v9427_v40, %v9419_v10  ;;  %v3571_v60 = vpop.permute.xlu1 %3570  ;;  %v3518_v3 = vpop.permute.xlu0 %3517 }
0x17ae   :  { %v3576_v24 = vsel %vm1017_vm2, %v3571_v60, 0 }
0x17b0   :  { %v9429_v56 = vpop.eup %9428 }
0x17b1   :  { %v9431_v57 = vpop.eup %9430  ;;  %v3418_v59 = vmul.f32 %v9429_v56, %v9423_v35  ;;  %v3569_v19 = vpop.permute.xlu1 %3568 }
0x17b2   :  { %v3415_v13 = vmul.f32 %v9431_v57, %v9421_v48 }
0x17b3   :  { %v3420_v62 = vpack.c.bf16 %v3418_v59, %v3417_v58 }
0x17b4   :  { %v9433_v61 = vpop.eup %9432 }
0x17b5   :  { %v3416_v14 = vmul.f32 %v9433_v61, %v9425_v45  ;;  %8331 = vmatmul.mubr.msk.bf16.vlgmr.msra.gmra.mrb[88].mxu1 %vm1120_vm4, %v3420_v62 }
0x17b6   :  { %8341 = vmatpush3.bf16.xpose.msra.mxu1 %v3576_v24  ;;  %8342 = vmatprep.mubr.msk.bf16.mxu1 %vm9713_vm0, %v9714_v1 }
0x17b7   :  { %v3419_v50 = vpack.c.bf16 %v3416_v14, %v3415_v13  ;;  %8352 = vmatprep.subr.bf16.mxu1 %v9714_v1 }
0x17b9   :  { %8325 = vmatmul.mubr.msk.bf16.vlgmr.msra.gmra.mrb[60].mxu0 %vm1120_vm4, %v3419_v50 }
0x17ba   :  { %8335 = vmatpush3.bf16.xpose.msra.mxu0 %v3525_v47  ;;  %8336 = vmatprep.mubr.msk.bf16.mxu0 %vm9713_vm0, %v9714_v1 }
0x17bb   :  { %8346 = vmatprep.subr.bf16.mxu0 %v9714_v1 }
0x17bd   :  { %8343 = vmatmul.mubr.msk.bf16.vlgmr.msra.gmra.mrb[92].mxu1 %vm1017_vm2, %v3569_v19 }
0x17be   :  { %8354 = vmatprep.mubr.msk.bf16.mxu1 %vm9713_vm0, %v9714_v1 }
0x17c1   :  { %8337 = vmatmul.mubr.msk.bf16.vlgmr.msra.gmra.mrb[64].mxu0 %vm1017_vm2, %v3518_v3 }
0x17c2   :  { %8348 = vmatprep.mubr.msk.bf16.mxu0 %vm9713_vm0, %v9714_v1 }
0x1888   :  { %v10343_v25 = vpop.f32.mrb[88].mxu1 }
0x1889   :  { %v8332_v20 = vpop.f32.mrb[89].mxu1 }
0x188a   :  { %v10345_v18 = vpop.f32.mrb[90].mxu1 }
0x188b   :  { %v9049_v22 = vpack.i.bf16 %v10345_v18, %v10343_v25  ;;  %v8333_v4 = vpop.f32.mrb[91].mxu1 }
0x188c   :  { %v10349_v17 = vpop.f32.mrb[60].mxu0 }
0x188d   :  { %v8326_v6 = vpop.f32.mrb[61].mxu0 }
0x188e   :  { %v10351_v46 = vpop.f32.mrb[62].mxu0 }
0x188f   :  { %v9044_v16 = vpack.i.bf16 %v10351_v46, %v10349_v17  ;;  %v8327_v12 = vpop.f32.mrb[63].mxu0 }
0x1890   :  { %v3612_v27 = vpop.f32.mrb[92].mxu1 }
0x1891   :  { %v8344_v32 = vpop.f32.mrb[93].mxu1  ;;  %v3621_v48 = vmul.f32 0.17677669, %v3612_v27 }
0x1892   :  { %v3615_v33 = vpop.f32.mrb[94].mxu1 }
0x1893   :  { %v8345_v10 = vpop.f32.mrb[95].mxu1  ;;  %v3625_v7 = vadd.f32 %v3621_v48, %v9934_v31  ;;  %v3622_v9 = vmul.f32 0.17677669, %v3615_v33 }
0x1894   :  { %v3561_v54 = vpop.f32.mrb[64].mxu0 }
0x1895   :  { %v3619_v35 = vmul.f32 0.17677669, %v3561_v54  ;;  %v8338_v23 = vpop.f32.mrb[65].mxu0  ;;  %v3626_v40 = vadd.f32 %v3622_v9, %v9934_v31  ;;  %v3633_v56 = vsel %vm1120_vm4, %v3625_v7, -inf }
0x1896   :  { %v3564_v8 = vpop.f32.mrb[66].mxu0 }
0x1897   :  { %v3623_v45 = vadd.f32 %v3619_v35, %v9934_v31  ;;  %v3620_v39 = vmul.f32 0.17677669, %v3564_v8  ;;  %v8339_v49 = vpop.f32.mrb[67].mxu0  ;;  %v3636_v57 = vsel %vm1120_vm4, %v3626_v40, -inf }
0x1899   :  { %v3624_v51 = vadd.f32 %v3620_v39, %v9934_v31  ;;  %v3627_v53 = vsel %vm1120_vm4, %v3623_v45, -inf }
0x189a   :  { %3628 = vmax.xlane.f32.xlu0 %v3627_v53 }
0x189b   :  { %v3630_v55 = vsel %vm1120_vm4, %v3624_v51, -inf }
0x189c   :  { %3631 = vmax.xlane.f32.xlu1 %v3630_v55 }
0x189e   :  { %3634 = vmax.xlane.f32.xlu0 %v3633_v56 }
0x18a2   :  { %3637 = vmax.xlane.f32.xlu0 %v3636_v57 }
0x18ad   :  { %3720 = vrot.lane.b32.xlu1 %v10249_v29, %s9718_s17 }
0x18b1   :  { %3769 = vrot.lane.b32.xlu1 %v10233_v42, %s9719_s1 }
0x1927   :  { %v3629_v58 = vpop.xlane.xlu0 %3628 }
0x1928   :  { %v3639_v60 = vsub.f32 %v3623_v45, %v3629_v58 }
0x1929   :  { %v3632_v59 = vpop.xlane.xlu1 %3631 }
0x192a   :  { %v3643_v14 = vmul.f32 1.442695, %v3639_v60  ;;  %v3640_v24 = vsub.f32 %v3624_v51, %v3632_v59 }
0x192b   :  { %v3635_v61 = vpop.xlane.xlu0 %3634 }
0x192c   :  { %v3641_v62 = vsub.f32 %v3625_v7, %v3635_v61  ;;  %v3645_v3 = vmul.f32 1.442695, %v3640_v24 }
0x192d   :  { %v3721_v13 = vpop.permute.xlu1 %3720 }
0x192e   :  { %v3647_v50 = vmul.f32 1.442695, %v3641_v62  ;;  %8353 = vmatpush3.bf16.msra.mxu1 %v3721_v13 }
0x192f   :  { %v3638_v47 = vpop.xlane.xlu0 %3637  ;;  %8364 = vmatprep.subr.bf16.mxu1 %v9714_v1 }
0x1930   :  { %9434 = vpow2.f32 %v3647_v50  ;;  %v3642_v19 = vsub.f32 %v3626_v40, %v3638_v47 }
0x1931   :  { %9436 = vpow2.f32 %v3643_v14  ;;  %v3770_v54 = vpop.permute.xlu1 %3769 }
0x1932   :  { %v3649_v20 = vmul.f32 1.442695, %v3642_v19  ;;  %v3775_v57 = vsel %vm1017_vm2, %v3770_v54, 0 }
0x1934   :  { %9438 = vpow2.f32 %v3649_v20 }
0x1935   :  { %9440 = vpow2.f32 %v3645_v3 }
0x193a   :  { %v9435_v42 = vpop.eup %9434 }
0x193b   :  { %v3657_v4 = vsel %vm1120_vm4, %v9435_v42, 0.0  ;;  %v9437_v6 = vpop.eup %9436 }
0x193c   :  { %3658 = vadd.xlane.f32.xlu0 %v3657_v4  ;;  %v3651_v27 = vsel %vm1120_vm4, %v9437_v6, 0.0 }
0x193e   :  { %v9439_v12 = vpop.eup %9438 }
0x193f   :  { %v3660_v32 = vsel %vm1120_vm4, %v9439_v12, 0.0  ;;  %v9441_v33 = vpop.eup %9440 }
0x1940   :  { %3652 = vadd.xlane.f32.xlu0 %v3651_v27  ;;  %3661 = vadd.xlane.f32.xlu1 %v3660_v32  ;;  %v3654_v10 = vsel %vm1120_vm4, %v9441_v33, 0.0 }
0x1944   :  { %3655 = vadd.xlane.f32.xlu1 %v3654_v10 }
0x1955   :  { %3820 = vrot.lane.b32.xlu1 %v10229_v52, %s9719_s1 }
0x1956   :  { %3673 = vrot.lane.b32.xlu0 %v10251_v15, %s9718_s17 }
0x1959   :  { %3818 = vrot.lane.b32.xlu1 %v10227_v63, %s9719_s1 }
0x195a   :  { %3767 = vrot.lane.b32.xlu0 %v10231_v11, %s9719_s1 }
0x19c9   :  { %v3659_v48 = vpop.xlane.xlu0 %3658 }
0x19ca   :  { %9442 = vrcp.f32 %v3659_v48 }
0x19cd   :  { %v3653_v35 = vpop.xlane.xlu0 %3652  ;;  %v3662_v23 = vpop.xlane.xlu1 %3661 }
0x19ce   :  { %9444 = vrcp.f32 %v3662_v23 }
0x19cf   :  { %9446 = vrcp.f32 %v3653_v35 }
0x19d1   :  { %v3674_v8 = vpop.permute.xlu0 %3673  ;;  %v3656_v45 = vpop.xlane.xlu1 %3655 }
0x19d2   :  { %9448 = vrcp.f32 %v3656_v45  ;;  %8347 = vmatpush3.bf16.msra.mxu0 %v3674_v8 }
0x19d3   :  { %8358 = vmatprep.subr.bf16.mxu0 %v9714_v1 }
0x19d4   :  { %v9443_v52 = vpop.eup %9442 }
0x19d5   :  { %v3669_v63 = vmul.f32 %v9443_v52, %v9435_v42  ;;  %v3821_v9 = vpop.permute.xlu1 %3820  ;;  %v3768_v59 = vpop.permute.xlu0 %3767 }
0x19d6   :  { %v3826_v40 = vsel %vm1017_vm2, %v3821_v9, 0 }
0x19d8   :  { %v9445_v39 = vpop.eup %9444 }
0x19d9   :  { %v9447_v49 = vpop.eup %9446  ;;  %v3670_v7 = vmul.f32 %v9445_v39, %v9439_v12  ;;  %v3819_v58 = vpop.permute.xlu1 %3818 }
0x19da   :  { %v3667_v53 = vmul.f32 %v9447_v49, %v9437_v6 }
0x19db   :  { %v3672_v51 = vpack.c.bf16 %v3670_v7, %v3669_v63 }
0x19dc   :  { %v9449_v11 = vpop.eup %9448 }
0x19dd   :  { %v3668_v55 = vmul.f32 %v9449_v11, %v9441_v33  ;;  %8355 = vmatmul.mubr.msk.bf16.vlgmr.msra.gmra.mrb[96].mxu1 %vm1120_vm4, %v3672_v51 }
0x19de   :  { %8365 = vmatpush3.bf16.xpose.msra.mxu1 %v3826_v40  ;;  %8366 = vmatprep.mubr.msk.bf16.mxu1 %vm9713_vm0, %v9714_v1 }
0x19df   :  { %v3671_v56 = vpack.c.bf16 %v3668_v55, %v3667_v53  ;;  %8376 = vmatprep.subr.bf16.mxu1 %v9714_v1 }
0x19e1   :  { %8349 = vmatmul.mubr.msk.bf16.vlgmr.msra.gmra.mrb[68].mxu0 %vm1120_vm4, %v3671_v56 }
0x19e2   :  { %8359 = vmatpush3.bf16.xpose.msra.mxu0 %v3775_v57  ;;  %8360 = vmatprep.mubr.msk.bf16.mxu0 %vm9713_vm0, %v9714_v1 }
0x19e3   :  { %8370 = vmatprep.subr.bf16.mxu0 %v9714_v1 }
0x19e5   :  { %8367 = vmatmul.mubr.msk.bf16.vlgmr.msra.gmra.mrb[100].mxu1 %vm1017_vm2, %v3819_v58 }
0x19e6   :  { %8378 = vmatprep.mubr.msk.bf16.mxu1 %vm9713_vm0, %v9714_v1 }
0x19e9   :  { %8361 = vmatmul.mubr.msk.bf16.vlgmr.msra.gmra.mrb[72].mxu0 %vm1017_vm2, %v3768_v59 }
0x19ea   :  { %8372 = vmatprep.mubr.msk.bf16.mxu0 %vm9713_vm0, %v9714_v1 }
0x1ab0   :  { %v10397_v60 = vpop.f32.mrb[96].mxu1 }
0x1ab1   :  { %v8356_v61 = vpop.f32.mrb[97].mxu1 }
0x1ab2   :  { %v10399_v62 = vpop.f32.mrb[98].mxu1 }
0x1ab3   :  { %v9059_v13 = vpack.i.bf16 %v10399_v62, %v10397_v60  ;;  %v8357_v14 = vpop.f32.mrb[99].mxu1 }
0x1ab4   :  { %v3713_v24 = vpop.f32.mrb[68].mxu0 }
0x1ab5   :  { %v8350_v50 = vpop.f32.mrb[69].mxu0 }
0x1ab6   :  { %v3716_v47 = vpop.f32.mrb[70].mxu0 }
0x1ab7   :  { %v9054_v19 = vpack.i.bf16 %v3716_v47, %v3713_v24  ;;  %v8351_v3 = vpop.f32.mrb[71].mxu0 }
0x1ab8   :  { %v3862_v20 = vpop.f32.mrb[100].mxu1 }
0x1ab9   :  { %v8368_v42 = vpop.f32.mrb[101].mxu1  ;;  %v3871_v27 = vmul.f32 0.17677669, %v3862_v20 }
0x1aba   :  { %v3865_v4 = vpop.f32.mrb[102].mxu1 }
0x1abb   :  { %v8369_v6 = vpop.f32.mrb[103].mxu1  ;;  %v3875_v23 = vadd.f32 %v3871_v27, %v9934_v31  ;;  %v3872_v8 = vmul.f32 0.17677669, %v3865_v4 }
0x1abc   :  { %v3811_v12 = vpop.f32.mrb[72].mxu0 }
0x1abd   :  { %v3869_v32 = vmul.f32 0.17677669, %v3811_v12  ;;  %v8362_v33 = vpop.f32.mrb[73].mxu0  ;;  %v3876_v49 = vadd.f32 %v3872_v8, %v9934_v31  ;;  %v3883_v63 = vsel %vm1120_vm4, %v3875_v23, -inf  ;;  %v9205_v8 = vld [vmem:[#allocation8 + $0x354] ss:$8 sps:$4 sm:$0xff]  }
0x1abe   :  { %v3814_v10 = vpop.f32.mrb[74].mxu0 }
0x1abf   :  { %v3873_v54 = vadd.f32 %v3869_v32, %v9934_v31  ;;  %v3870_v48 = vmul.f32 0.17677669, %v3814_v10  ;;  %v8363_v35 = vpop.f32.mrb[75].mxu0  ;;  %v3886_v7 = vsel %vm1120_vm4, %v3876_v49, -inf  ;;  %v9200_v10 = vld [vmem:[#allocation8 + $0x304] ss:$8 sps:$4 sm:$0xff]  }
0x1ac0   :  { %v9203_v35 = vld [vmem:[#allocation8 + $0x334] ss:$8 sps:$4 sm:$0xff]  }
0x1ac1   :  { %v3874_v45 = vadd.f32 %v3870_v48, %v9934_v31  ;;  %v3877_v52 = vsel %vm1120_vm4, %v3873_v54, -inf  ;;  %v9202_v48 = vld [vmem:[#allocation8 + $0x324] ss:$8 sps:$4 sm:$0xff]  }
0x1ac2   :  { %3878 = vmax.xlane.f32.xlu0 %v3877_v52  ;;  %v9207_v52 = vld [vmem:[#allocation8 + $0x374] ss:$8 sps:$4 sm:$0xff]  }
0x1ac3   :  { %v3880_v39 = vsel %vm1120_vm4, %v3874_v45, -inf }
0x1ac4   :  { %3881 = vmax.xlane.f32.xlu1 %v3880_v39 }
0x1ac6   :  { %3884 = vmax.xlane.f32.xlu0 %v3883_v63 }
0x1aca   :  { %3887 = vmax.xlane.f32.xlu0 %v3886_v7 }
0x1b4f   :  { %v3879_v9 = vpop.xlane.xlu0 %3878 }
0x1b50   :  { %v3889_v11 = vsub.f32 %v3873_v54, %v3879_v9  ;;  %v9201_v54 = vld [vmem:[#allocation8 + $0x314] ss:$8 sps:$4 sm:$0xff]  }
0x1b51   :  { %v3882_v51 = vpop.xlane.xlu1 %3881 }
0x1b52   :  { %v3893_v40 = vmul.f32 1.442695, %v3889_v11  ;;  %v3890_v56 = vsub.f32 %v3874_v45, %v3882_v51  ;;  %v9206_v45 = vld [vmem:[#allocation8 + $0x364] ss:$8 sps:$4 sm:$0xff]  }
0x1b53   :  { %v3885_v53 = vpop.xlane.xlu0 %3884 }
0x1b54   :  { %v3891_v55 = vsub.f32 %v3875_v23, %v3885_v53  ;;  %v3895_v61 = vmul.f32 1.442695, %v3890_v56  ;;  %v9204_v23 = vld [vmem:[#allocation8 + $0x344] ss:$8 sps:$4 sm:$0xff]  }
0x1b56   :  { %v3897_v57 = vmul.f32 1.442695, %v3891_v55 }
0x1b57   :  { %v3888_v58 = vpop.xlane.xlu0 %3887 }
0x1b58   :  { %9450 = vpow2.f32 %v3897_v57  ;;  %v3892_v59 = vsub.f32 %v3876_v49, %v3888_v58 }
0x1b59   :  { %9452 = vpow2.f32 %v3893_v40 }
0x1b5a   :  { %v3899_v14 = vmul.f32 1.442695, %v3892_v59 }
0x1b5c   :  { %9454 = vpow2.f32 %v3899_v14 }
0x1b5d   :  { %9456 = vpow2.f32 %v3895_v61 }
0x1b62   :  { %v9451_v24 = vpop.eup %9450 }
0x1b63   :  { %v3907_v50 = vsel %vm1120_vm4, %v9451_v24, 0.0  ;;  %v9453_v47 = vpop.eup %9452 }
0x1b64   :  { %3908 = vadd.xlane.f32.xlu0 %v3907_v50  ;;  %v3901_v20 = vsel %vm1120_vm4, %v9453_v47, 0.0 }
0x1b66   :  { %v9455_v3 = vpop.eup %9454 }
0x1b67   :  { %v3910_v42 = vsel %vm1120_vm4, %v9455_v3, 0.0  ;;  %v9457_v4 = vpop.eup %9456 }
0x1b68   :  { %3902 = vadd.xlane.f32.xlu0 %v3901_v20  ;;  %3911 = vadd.xlane.f32.xlu1 %v3910_v42  ;;  %v3904_v6 = vsel %vm1120_vm4, %v9457_v4, 0.0 }
0x1b6c   :  { %3905 = vadd.xlane.f32.xlu1 %v3904_v6 }
0x1b7d   :  { %3970 = vrot.lane.b32.xlu1 %v10249_v29, %s9719_s1 }
0x1b7e   :  { %3923 = vrot.lane.b32.xlu0 %v10251_v15, %s9719_s1 }
0x1b81   :  { %9045 = vrot.lane.b32.xlu1 %v9044_v16, %s9719_s1 }
0x1b82   :  { %9055 = vrot.lane.b32.xlu0 %v9054_v19, %s9718_s17 }
0x1b85   :  { %9050 = vrot.lane.b32.xlu1 %v9049_v22, %s9719_s1 }
0x1b89   :  { %9060 = vrot.lane.b32.xlu1 %v9059_v13, %s9718_s17 }
0x1bf1   :  { %v3909_v29 = vpop.xlane.xlu0 %3908 }
0x1bf2   :  { %9458 = vrcp.f32 %v3909_v29 }
0x1bf5   :  { %v3903_v15 = vpop.xlane.xlu0 %3902  ;;  %v3912_v12 = vpop.xlane.xlu1 %3911 }
0x1bf6   :  { %9460 = vrcp.f32 %v3912_v12 }
0x1bf7   :  { %9462 = vrcp.f32 %v3903_v15 }
0x1bf9   :  { %v3924_v17 = vpop.permute.xlu0 %3923  ;;  %v3906_v46 = vpop.xlane.xlu1 %3905 }
0x1bfa   :  { %9464 = vrcp.f32 %v3906_v46  ;;  %8371 = vmatpush3.bf16.msra.mxu0 %v3924_v17 }
0x1bfb   :  { %8382 = vmatprep.subr.bf16.mxu0 %v9200_v10 }
0x1bfc   :  { %v9459_v19 = vpop.eup %9458 }
0x1bfd   :  { %v3971_v16 = vpop.permute.xlu1 %3970  ;;  %v3919_v22 = vmul.f32 %v9459_v19, %v9451_v24 }
0x1bfe   :  { %8377 = vmatpush3.bf16.msra.mxu1 %v3971_v16 }
0x1c00   :  { %v9461_v25 = vpop.eup %9460 }
0x1c01   :  { %v9463_v18 = vpop.eup %9462  ;;  %v3920_v27 = vmul.f32 %v9461_v25, %v9455_v3  ;;  %v9046_v56 = vpop.permute.xlu1 %9045 }
0x1c02   :  { %v3917_v62 = vmul.f32 %v9463_v18, %v9453_v47  ;;  %v9048_v14 = vunpack.i.h.bf16 %v9046_v56  ;;  %v9047_v24 = vunpack.i.l.bf16 %v9046_v56  ;;  %v9056_v3 = vpop.permute.xlu0 %9055  ;;  %v9217_v56 = vld [vmem:[#allocation8 + $0x3b0] ss:$8 sps:$4 sm:$0xff]  }
0x1c03   :  { %v3922_v60 = vpack.c.bf16 %v3920_v27, %v3919_v22  ;;  %v9058_v16 = vunpack.i.h.bf16 %v9056_v3  ;;  %v9057_v19 = vunpack.i.l.bf16 %v9056_v3  ;;  %v9232_v3 = vld [vmem:[#allocation8 + $0x480] ss:$8 sps:$4 sm:$0xff]  }
0x1c04   :  { %v9465_v32 = vpop.eup %9464  ;;  %v4066_v15 = vsel %vm1017_vm2, %v10299_v41, %v9048_v14  ;;  %v4065_v12 = vsel %vm1017_vm2, %v10297_v38, %v9047_v24  ;;  %v9228_v14 = vld [vmem:[#allocation8 + $0x3e4] ss:$8 sps:$4 sm:$0xff]   ;;  %v9226_v24 = vld [vmem:[#allocation8 + $0x3e0] ss:$8 sps:$4 sm:$0xff]  }
0x1c05   :  { %v3918_v13 = vmul.f32 %v9465_v32, %v9457_v4  ;;  %8379 = vmatmul.mubr.msk.bf16.vlgmr.msra.gmra.mrb[104].mxu1 %vm1120_vm4, %v3922_v60  ;;  %v9051_v57 = vpop.permute.xlu1 %9050  ;;  %v4069_v32 = vsel %vm2063_vm5, %v4065_v12, %v9057_v19  ;;  %v4070_v41 = vsel %vm2063_vm5, %v4066_v15, %v9058_v16  ;;  %v9238_v15 = vld [vmem:[#allocation8 + $0x4b0] ss:$8 sps:$4 sm:$0xff]  }
0x1c06   :  { %4402 = vmatprep.mubr.bf16.mxu1 %v9720_v2  ;;  %v9053_v59 = vunpack.i.h.bf16 %v9051_v57  ;;  %v9052_v61 = vunpack.i.l.bf16 %v9051_v57  ;;  %v9222_v57 = vld [vmem:[#allocation8 + $0x3c4] ss:$8 sps:$4 sm:$0xff]   ;;  %v9239_v12 = vld [vmem:[#allocation8 + $0x430] ss:$8 sps:$4 sm:$0xff]  }
0x1c07   :  { %v3921_v33 = vpack.c.bf16 %v3918_v13, %v3917_v62  ;;  %v4095_v13 = vld [vmem:[#allocation5 + $0x27] ss:$0 sm:$0xff]  ;;  %v9242_v16 = vld [vmem:[#allocation8 + $0x4d0] ss:$8 sps:$4 sm:$0xff]  }
0x1c08   :  { %v4068_v42 = vsel %vm1017_vm2, %v10295_v36, %v9053_v59  ;;  %v4067_v4 = vsel %vm1017_vm2, %v10293_v37, %v9052_v61  ;;  %v9225_v59 = vld [vmem:[#allocation8 + $0x3d4] ss:$8 sps:$4 sm:$0xff]   ;;  %v9223_v61 = vld [vmem:[#allocation8 + $0x3d0] ss:$8 sps:$4 sm:$0xff]  }
0x1c09   :  { %8373 = vmatmul.mubr.msk.bf16.vlgmr.msra.gmra.mrb[76].mxu0 %vm1120_vm4, %v3921_v33  ;;  %v9061_v58 = vpop.permute.xlu1 %9060 }
0x1c0a   :  { %8383 = vmatpush3.bf16.msra.mxu0 %v9200_v10  ;;  %v9063_v50 = vunpack.i.h.bf16 %v9061_v58  ;;  %v9062_v47 = vunpack.i.l.bf16 %v9061_v58  ;;  %v9220_v58 = vld [vmem:[#allocation8 + $0x3c0] ss:$8 sps:$4 sm:$0xff]  }
0x1c0b   :  { %8384 = vmatprep.subr.bf16.mxu0 %v9201_v54 }
0x1c0c   :  { %v4071_v17 = vsel %vm2063_vm5, %v4067_v4, %v9062_v47  ;;  %v4072_v46 = vsel %vm2063_vm5, %v4068_v42, %v9063_v50  ;;  %v9231_v50 = vld [vmem:[#allocation8 + $0x3f4] ss:$8 sps:$4 sm:$0xff]   ;;  %v9229_v47 = vld [vmem:[#allocation8 + $0x3f0] ss:$8 sps:$4 sm:$0xff]  }
0x1c0d   :  { %v9234_v42 = vld [vmem:[#allocation8 + $0x490] ss:$8 sps:$4 sm:$0xff]  }
0x1c0e   :  { %8385 = vmatpush3.bf16.msra.mxu0 %v9201_v54  ;;  %v9235_v4 = vld [vmem:[#allocation8 + $0x410] ss:$8 sps:$4 sm:$0xff]  }
0x1c0f   :  { %8386 = vmatprep.subr.bf16.mxu0 %v9202_v48 }
0x1c12   :  { %8387 = vmatpush3.bf16.msra.mxu0 %v9202_v48 }
0x1c13   :  { %8388 = vmatprep.subr.bf16.mxu0 %v9203_v35 }
0x1c16   :  { %8389 = vmatpush3.bf16.msra.mxu0 %v9203_v35 }
0x1c17   :  { %8390 = vmatprep.subr.bf16.mxu0 %v9204_v23 }
0x1c1a   :  { %8391 = vmatpush3.bf16.msra.mxu0 %v9204_v23 }
0x1c1b   :  { %8392 = vmatprep.subr.bf16.mxu0 %v9205_v8 }
0x1c1e   :  { %8393 = vmatpush3.bf16.msra.mxu0 %v9205_v8 }
0x1c1f   :  { %8394 = vmatprep.subr.bf16.mxu0 %v9206_v45 }
0x1c22   :  { %8395 = vmatpush3.bf16.msra.mxu0 %v9206_v45 }
0x1c23   :  { %8396 = vmatprep.subr.bf16.mxu0 %v9207_v52 }
0x1c26   :  { %8397 = vmatpush3.bf16.msra.mxu0 %v9207_v52 }
0x1c27   :  { %7635 = vmatprep.subr.bf16.mxu0 %v9232_v3 }
0x1cd8   :  { %v4010_v39 = vpop.f32.mrb[104].mxu1 }
0x1cd9   :  { %v8380_v49 = vpop.f32.mrb[105].mxu1 }
0x1cda   :  { %v4013_v63 = vpop.f32.mrb[106].mxu1 }
0x1cdb   :  { %v9069_v7 = vpack.i.bf16 %v4013_v63, %v4010_v39  ;;  %v8381_v9 = vpop.f32.mrb[107].mxu1 }
0x1cdc   :  { %v3963_v11 = vpop.f32.mrb[76].mxu0  ;;  %v9210_v9 = vld [vmem:[#allocation8 + $0x384] ss:$8 sps:$4 sm:$0xff]  }
0x1cdd   :  { %v8374_v51 = vpop.f32.mrb[77].mxu0  ;;  %9070 = vrot.lane.b32.xlu1 %v9069_v7, %s9717_s3  ;;  %4370 = vmatprep.subr.bf16.mxu1 %v9210_v9 }
0x1cde   :  { %v3966_v53 = vpop.f32.mrb[78].mxu0  ;;  %v9213_v51 = vld [vmem:[#allocation8 + $0x394] ss:$8 sps:$4 sm:$0xff]  }
0x1cdf   :  { %v9064_v55 = vpack.i.bf16 %v3966_v53, %v3963_v11  ;;  %v8375_v40 = vpop.f32.mrb[79].mxu0  ;;  %v9208_v11 = vld [vmem:[#allocation8 + $0x380] ss:$8 sps:$4 sm:$0xff]   ;;  %v9211_v53 = vld [vmem:[#allocation8 + $0x390] ss:$8 sps:$4 sm:$0xff]  }
0x1ce0   :  { %4371 = vmatpush1.bf16.msra.mxu1 %v9208_v11  ;;  %v9214_v40 = vld [vmem:[#allocation8 + $0x3a0] ss:$8 sps:$4 sm:$0xff]  }
0x1ce1   :  { %9065 = vrot.lane.b32.xlu0 %v9064_v55, %s9717_s3  ;;  %4372 = vmatprep.subr.bf16.mxu1 %v9213_v51  ;;  %v9216_v55 = vld [vmem:[#allocation8 + $0x3a4] ss:$8 sps:$4 sm:$0xff]  }
0x1ce4   :  { %4373 = vmatpush1.bf16.msra.mxu1 %v9211_v53 }
0x1ce5   :  { %4374 = vmatprep.subr.bf16.mxu1 %v9216_v55 }
0x1ce8   :  { %4375 = vmatpush1.bf16.msra.mxu1 %v9214_v40 }
0x1d4f   :  { %v9071_v20 = vpop.permute.xlu1 %9070 }
0x1d50   :  { %v9073_v6 = vunpack.i.h.bf16 %v9071_v20  ;;  %v9072_v29 = vunpack.i.l.bf16 %v9071_v20  ;;  %v9233_v20 = vld [vmem:[#allocation8 + $0x400] ss:$8 sps:$4 sm:$0xff]  }
0x1d52   :  { %v4075_v25 = vsel %vm2068_vm6, %v4071_v17, %v9072_v29  ;;  %v4076_v36 = vsel %vm2068_vm6, %v4072_v46, %v9073_v6  ;;  %v9236_v6 = vld [vmem:[#allocation8 + $0x4a0] ss:$8 sps:$4 sm:$0xff]  }
0x1d53   :  { %v9066_v18 = vpop.permute.xlu0 %9065  ;;  %v4078_v37 = vpack.c.bf16 %v4076_v36, %v4075_v25  ;;  %v9237_v29 = vld [vmem:[#allocation8 + $0x420] ss:$8 sps:$4 sm:$0xff]  }
0x1d54   :  { %v9068_v22 = vunpack.i.h.bf16 %v9066_v18  ;;  %v9067_v27 = vunpack.i.l.bf16 %v9066_v18  ;;  %v9240_v17 = vld [vmem:[#allocation8 + $0x4c0] ss:$8 sps:$4 sm:$0xff]  }
0x1d55   :  { %v9241_v46 = vld [vmem:[#allocation8 + $0x440] ss:$8 sps:$4 sm:$0xff]  }
0x1d56   :  { %v4073_v38 = vsel %vm2068_vm6, %v4069_v32, %v9067_v27  ;;  %v4074_v60 = vsel %vm2068_vm6, %v4070_v41, %v9068_v22 }
0x1d57   :  { %v4077_v62 = vpack.c.bf16 %v4074_v60, %v4073_v38 }
0x1d59   :  { %8398 = vmatprep.mubr.bf16.mxu0 %v4077_v62 }
0x1d5a   :  { %8399 = vmatmul.mubr.bf16.vlgmr.msra.gmra.mrb[80].mxu0 %v4078_v37 }
0x1d5b   :  { %7636 = vmatpush3.bf16.msra.mxu0 %v9233_v20 }
0x1d5c   :  { %7637 = vmatprep.subr.bf16.mxu0 %v9234_v42 }
0x1d5f   :  { %7638 = vmatpush3.bf16.msra.mxu0 %v9235_v4 }
0x1d60   :  { %7639 = vmatprep.subr.bf16.mxu0 %v9236_v6 }
0x1d63   :  { %7640 = vmatpush3.bf16.msra.mxu0 %v9237_v29 }
0x1d64   :  { %7641 = vmatprep.subr.bf16.mxu0 %v9238_v15 }
0x1d67   :  { %7642 = vmatpush3.bf16.msra.mxu0 %v9239_v12 }
0x1d68   :  { %7643 = vmatprep.subr.bf16.mxu0 %v9240_v17  ;;  %v9243_v17 = vld [vmem:[#allocation8 + $0x450] ss:$8 sps:$4 sm:$0xff]  }
0x1d6b   :  { %7644 = vmatpush3.bf16.msra.mxu0 %v9241_v46  ;;  %v9245_v46 = vld [vmem:[#allocation8 + $0x460] ss:$8 sps:$4 sm:$0xff]  }
0x1d6c   :  { %7645 = vmatprep.subr.bf16.mxu0 %v9242_v16  ;;  %v9246_v16 = vld [vmem:[#allocation8 + $0x4f0] ss:$8 sps:$4 sm:$0xff]  }
0x1d6f   :  { %7646 = vmatpush3.bf16.msra.mxu0 %v9243_v17 }
0x1e2d   :  { %v8400_v33 = vpop.f32.mrb[80].mxu0 }
0x1e2e   :  { %v4178_v10 = vpop.f32.mrb[81].mxu0  ;;  %v4187_v63 = vadd.f32 %v8400_v33, %v4095_v13 }
0x1e2f   :  { %v4179_v54 = vadd.f32 %v4178_v10, %v4095_v13  ;;  %v8401_v48 = vpop.f32.mrb[82].mxu0 }
0x1e30   :  { %v4181_v35 = vpop.f32.mrb[83].mxu0  ;;  %v4190_v45 = vadd.f32 %v8401_v48, %v4095_v13  ;;  %v10472_v7 = vadd.f32 %v4187_v63, %v10215_v34  ;;  %v9219_v34 = vld [vmem:[#allocation8 + $0x3b4] ss:$8 sps:$4 sm:$0xff]  }
0x1e31   :  { %v10454_v23 = vadd.f32 %v4179_v54, %v10208_v43  ;;  %v4182_v8 = vadd.f32 %v4181_v35, %v4095_v13  ;;  %4376 = vmatprep.subr.bf16.mxu1 %v9219_v34  ;;  %v4197_v34 = vld [vmem:[#allocation5 + $0x30] ss:$0 sm:$0xff] }
0x1e32   :  { %v10464_v49 = vadd.f32 %v4190_v45, %v10217_v5  ;;  %v4213_v5 = vmul.f32 %v10472_v7, %v10472_v7  ;;  %4377 = vmatpush1.bf16.msra.mxu1 %v9217_v56 }
0x1e33   :  { %v10457_v52 = vadd.f32 %v4182_v8, %v10210_v44  ;;  %4199 = vadd.xlane.f32.xlu0 %v10454_v23  ;;  %v4211_v39 = vmul.f32 %v10454_v23, %v10454_v23  ;;  %4378 = vmatprep.subr.bf16.mxu1 %v9222_v57 }
0x1e34   :  { %v4214_v44 = vmul.f32 %v10464_v49, %v10464_v49 }
0x1e35   :  { %4201 = vadd.xlane.f32.xlu1 %v10457_v52  ;;  %v4212_v43 = vmul.f32 %v10457_v52, %v10457_v52 }
0x1e36   :  { %4379 = vmatpush1.bf16.msra.mxu1 %v9220_v58 }
0x1e37   :  { %4215 = vadd.xlane.f32.xlu0 %v4211_v39  ;;  %4380 = vmatprep.subr.bf16.mxu1 %v9225_v59 }
0x1e39   :  { %4205 = vadd.xlane.f32.xlu1 %v10464_v49 }
0x1e3a   :  { %4381 = vmatpush1.bf16.msra.mxu1 %v9223_v61 }
0x1e3b   :  { %4217 = vadd.xlane.f32.xlu0 %v4212_v43  ;;  %4382 = vmatprep.subr.bf16.mxu1 %v9228_v14  ;;  %v4198_v14 = vld [vmem:[#allocation5 + $0x31] ss:$0 sm:$0xff] }
0x1e3d   :  { %4221 = vadd.xlane.f32.xlu1 %v4214_v44 }
0x1e3e   :  { %4383 = vmatpush1.bf16.msra.mxu1 %v9226_v24 }
0x1e3f   :  { %4203 = vadd.xlane.f32.xlu0 %v10472_v7  ;;  %4384 = vmatprep.subr.bf16.mxu1 %v9231_v50 }
0x1e42   :  { %4385 = vmatpush1.bf16.msra.mxu1 %v9229_v47 }
0x1e43   :  { %4219 = vadd.xlane.f32.xlu0 %v4213_v5 }
0x1ec0   :  { %v4200_v19 = vpop.xlane.xlu0 %4199 }
0x1ec1   :  { %v4207_v25 = vmul.f32 0.0078125, %v4200_v19  ;;  %v9247_v19 = vld [vmem:[#allocation8 + $0x470] ss:$8 sps:$4 sm:$0xff]  }
0x1ec2   :  { %v4202_v36 = vpop.xlane.xlu1 %4201 }
0x1ec3   :  { %v4227_v37 = vmul.f32 %v4207_v25, %v4207_v25  ;;  %v4208_v22 = vmul.f32 0.0078125, %v4202_v36  ;;  %v4235_v51 = vsub.f32 %v10454_v23, %v4207_v25  ;;  %v4278_v25 = vld [vmem:[#allocation5 + $0x32] ss:$8 sm:$0x3] }
0x1ec4   :  { %v4216_v18 = vpop.xlane.xlu0 %4215  ;;  %v4283_v36 = vrot.slane %v4278_v25, %v9884_v30 }
0x1ec5   :  { %v4223_v27 = vmul.f32 0.0078125, %v4216_v18  ;;  %v4228_v62 = vmul.f32 %v4208_v22, %v4208_v22  ;;  %v4236_v56 = vsub.f32 %v10457_v52, %v4208_v22  ;;  %v4287_v18 = vrot.slane %v4278_v25, %v10173_v21 }
0x1ec6   :  { %v4206_v32 = vpop.xlane.xlu1 %4205 }
0x1ec7   :  { %v4231_v41 = vsub.f32 %v4223_v27, %v4227_v37  ;;  %v4210_v38 = vmul.f32 0.0078125, %v4206_v32 }
0x1ec8   :  { %v4218_v60 = vpop.xlane.xlu0 %4217 }
0x1ec9   :  { %v4239_v13 = vadd.f32 1e-05, %v4231_v41  ;;  %v4224_v33 = vmul.f32 0.0078125, %v4218_v60  ;;  %v4230_v54 = vmul.f32 %v4210_v38, %v4210_v38  ;;  %v4238_v24 = vsub.f32 %v10464_v49, %v4210_v38 }
0x1eca   :  { %v4222_v10 = vpop.xlane.xlu1 %4221 }
0x1ecb   :  { %9466 = vrsqrt.f32 %v4239_v13  ;;  %v4232_v48 = vsub.f32 %v4224_v33, %v4228_v62  ;;  %v4226_v35 = vmul.f32 0.0078125, %v4222_v10 }
0x1ecc   :  { %v4204_v8 = vpop.xlane.xlu0 %4203 }
0x1ecd   :  { %v4240_v45 = vadd.f32 1e-05, %v4232_v48  ;;  %v4234_v39 = vsub.f32 %v4226_v35, %v4230_v54  ;;  %v4209_v63 = vmul.f32 0.0078125, %v4204_v8 }
0x1ecf   :  { %9468 = vrsqrt.f32 %v4240_v45  ;;  %v4242_v43 = vadd.f32 1e-05, %v4234_v39  ;;  %v4229_v5 = vmul.f32 %v4209_v63, %v4209_v63  ;;  %v4237_v20 = vsub.f32 %v10472_v7, %v4209_v63  ;;  %v9244_v7 = vld [vmem:[#allocation8 + $0x4e0] ss:$8 sps:$4 sm:$0xff]  }
0x1ed0   :  { %v4220_v44 = vpop.xlane.xlu0 %4219  ;;  %7647 = vmatprep.subr.bf16.mxu0 %v9244_v7 }
0x1ed1   :  { %9470 = vrsqrt.f32 %v4242_v43  ;;  %v4225_v9 = vmul.f32 0.0078125, %v4220_v44  ;;  %7648 = vmatpush3.bf16.msra.mxu0 %v9245_v46 }
0x1ed2   :  { %7649 = vmatprep.subr.bf16.mxu0 %v9246_v16 }
0x1ed3   :  { %v4233_v11 = vsub.f32 %v4225_v9, %v4229_v5 }
0x1ed5   :  { %v9467_v53 = vpop.eup %9466  ;;  %v4241_v55 = vadd.f32 1e-05, %v4233_v11  ;;  %7650 = vmatpush3.bf16.msra.mxu0 %v9247_v19 }
0x1ed6   :  { %v4247_v40 = vmul.f32 %v9467_v53, %v4235_v51 }
0x1ed7   :  { %9472 = vrsqrt.f32 %v4241_v55 }
0x1ed8   :  { %v4251_v59 = vmul.f32 %v4247_v40, %v4197_v34 }
0x1ed9   :  { %v9469_v57 = vpop.eup %9468 }
0x1eda   :  { %v4248_v58 = vmul.f32 %v9469_v57, %v4236_v56  ;;  %v10480_v47 = vadd.f32 %v4251_v59, %v4198_v14  ;;  %v4467_v57 = vld [vmem:[#allocation5 + $0x33] ss:$0 sm:$0xff] }
0x1edb   :  { %v9471_v61 = vpop.eup %9470 }
0x1edc   :  { %v4252_v50 = vmul.f32 %v4248_v58, %v4197_v34  ;;  %v4250_v23 = vmul.f32 %v9471_v61, %v4238_v24 }
0x1ede   :  { %v10482_v3 = vadd.f32 %v4252_v50, %v4198_v14  ;;  %v4254_v6 = vmul.f32 %v4250_v23, %v4197_v34 }
0x1ee0   :  { %v4259_v42 = vpack.c.bf16 %v10482_v3, %v10480_v47  ;;  %v10490_v49 = vadd.f32 %v4254_v6, %v4198_v14 }
0x1ee1   :  { %v9473_v4 = vpop.eup %9472 }
0x1ee2   :  { %4403 = vmatmul.mubr.bf16.vlgmr.msra.gmra.mrb[108].mxu1 %v4259_v42  ;;  %v4249_v52 = vmul.f32 %v9473_v4, %v4237_v20 }
0x1ee3   :  { %4412 = vmatprep.mubr.bf16.mxu1 %v9720_v2 }
0x1ee4   :  { %v4253_v29 = vmul.f32 %v4249_v52, %v4197_v34 }
0x1ee6   :  { %v10488_v15 = vadd.f32 %v4253_v29, %v4198_v14 }
0x1ee8   :  { %v4260_v12 = vpack.c.bf16 %v10490_v49, %v10488_v15 }
0x1eea   :  { %4413 = vmatmul.mubr.bf16.gmra.mrb[112].mxu1 %v4260_v12 }
0x1fb5   :  { %v4404_v37 = vpop.f32.mrb[108].mxu1 }
0x1fb6   :  { %v4405_v22 = vadd.f32 %v4404_v37, %v4283_v36  ;;  %v4406_v27 = vpop.f32.mrb[109].mxu1  ;;  %v9249_v37 = vld [vmem:[#allocation8 + $0x504] ss:$8 sps:$4 sm:$0xff]  }
0x1fb7   :  { %v4407_v32 = vadd.f32 %v4406_v27, %v4287_v18  ;;  %v4408_v41 = vpop.f32.mrb[110].mxu1  ;;  %8422 = vmatprep.subr.bf16.mxu0 %v9249_v37  ;;  %v9253_v27 = vld [vmem:[#allocation8 + $0x524] ss:$8 sps:$4 sm:$0xff]  }
0x1fb8   :  { %v4409_v38 = vadd.f32 %v4408_v41, %v4283_v36  ;;  %v4410_v60 = vpop.f32.mrb[111].mxu1  ;;  %v4423_v13 = vmax.f32 %v4405_v22, 0.0  ;;  %v9251_v22 = vld [vmem:[#allocation8 + $0x514] ss:$8 sps:$4 sm:$0xff]  }
0x1fb9   :  { %v4411_v62 = vadd.f32 %v4410_v60, %v4287_v18  ;;  %v4424_v10 = vmax.f32 %v4407_v32, 0.0  ;;  %v9254_v32 = vld [vmem:[#allocation8 + $0x530] ss:$8 sps:$4 sm:$0xff]   ;;  %v9255_v41 = vld [vmem:[#allocation8 + $0x534] ss:$8 sps:$4 sm:$0xff]  }
0x1fba   :  { %v4425_v33 = vmax.f32 %v4409_v38, 0.0  ;;  %v9256_v38 = vld [vmem:[#allocation8 + $0x540] ss:$8 sps:$4 sm:$0xff]   ;;  %v9257_v60 = vld [vmem:[#allocation8 + $0x544] ss:$8 sps:$4 sm:$0xff]  }
0x1fbb   :  { %v4426_v54 = vmax.f32 %v4411_v62, 0.0  ;;  %v9258_v62 = vld [vmem:[#allocation8 + $0x550] ss:$8 sps:$4 sm:$0xff]  }
0x1fbc   :  { %v4431_v48 = vpack.c.bf16 %v4425_v33, %v4423_v13  ;;  %v9259_v13 = vld [vmem:[#allocation8 + $0x554] ss:$8 sps:$4 sm:$0xff]   ;;  %v9260_v33 = vld [vmem:[#allocation8 + $0x560] ss:$8 sps:$4 sm:$0xff]  }
0x1fbd   :  { %v4432_v35 = vpack.c.bf16 %v4426_v54, %v4424_v10  ;;  %v4414_v8 = vpop.f32.mrb[112].mxu1  ;;  %v9261_v10 = vld [vmem:[#allocation8 + $0x564] ss:$8 sps:$4 sm:$0xff]   ;;  %v9262_v54 = vld [vmem:[#allocation8 + $0x570] ss:$8 sps:$4 sm:$0xff]  }
0x1fbe   :  { %v4415_v45 = vadd.f32 %v4414_v8, %v4283_v36  ;;  %v4416_v39 = vpop.f32.mrb[113].mxu1 }
0x1fbf   :  { %v4417_v63 = vadd.f32 %v4416_v39, %v4287_v18  ;;  %v4418_v43 = vpop.f32.mrb[114].mxu1  ;;  %4596 = vmatprep.mubr.bf16.mxu0 %v4432_v35  ;;  %v10520_v35 = vld [vmem:[#allocation8 + $0x580] ss:$8 sps:$4 sm:$0xff]  }
0x1fc0   :  { %v4419_v44 = vadd.f32 %v4418_v43, %v4283_v36  ;;  %v4420_v5 = vpop.f32.mrb[115].mxu1  ;;  %4597 = vmatmul.mubr.bf16.vlgmr.msra.gmra.mrb[84].mxu0 %v4431_v48  ;;  %v4427_v11 = vmax.f32 %v4415_v45, 0.0  ;;  %v9263_v48 = vld [vmem:[#allocation8 + $0x574] ss:$8 sps:$4 sm:$0xff]  }
0x1fc1   :  { %v4421_v9 = vadd.f32 %v4420_v5, %v4287_v18  ;;  %v4428_v53 = vmax.f32 %v4417_v63, 0.0  ;;  %v9248_v18 = vld [vmem:[#allocation8 + $0x500] ss:$8 sps:$4 sm:$0xff]   ;;  %8423 = vmatpush3.bf16.msra.mxu0 %v9249_v37  ;;  %v4618_v37 = vld [vmem:[#allocation5 + $0x35] ss:$0 sm:$0xff] }
0x1fc2   :  { %v4429_v51 = vmax.f32 %v4419_v44, 0.0  ;;  %8402 = vmatprep.subr.bf16.mxu1 %v9248_v18  ;;  %8424 = vmatprep.subr.bf16.mxu0 %v9251_v22 }
0x1fc3   :  { %v4430_v55 = vmax.f32 %v4421_v9, 0.0  ;;  %8403 = vmatpush3.bf16.msra.mxu1 %v9248_v18 }
0x1fc4   :  { %v4433_v40 = vpack.c.bf16 %v4429_v51, %v4427_v11 }
0x1fc5   :  { %v4434_v34 = vpack.c.bf16 %v4430_v55, %v4428_v53  ;;  %8425 = vmatpush3.bf16.msra.mxu0 %v9251_v22 }
0x1fc6   :  { %8426 = vmatprep.subr.bf16.mxu0 %v9253_v27 }
0x1fc7   :  { %4604 = vmatprep.mubr.bf16.mxu0 %v4434_v34 }
0x1fc8   :  { %4605 = vmatmul.mubr.bf16.gmra.mrb[88].mxu0 %v4433_v40 }
0x1fc9   :  { %8427 = vmatpush3.bf16.msra.mxu0 %v9253_v27 }
0x1fca   :  { %8428 = vmatprep.subr.bf16.mxu0 %v9255_v41 }
0x1fcd   :  { %8429 = vmatpush3.bf16.msra.mxu0 %v9255_v41 }
0x1fce   :  { %8430 = vmatprep.subr.bf16.mxu0 %v9257_v60 }
0x1fd1   :  { %8431 = vmatpush3.bf16.msra.mxu0 %v9257_v60 }
0x1fd2   :  { %8432 = vmatprep.subr.bf16.mxu0 %v9259_v13 }
0x1fd5   :  { %8433 = vmatpush3.bf16.msra.mxu0 %v9259_v13 }
0x1fd6   :  { %8434 = vmatprep.subr.bf16.mxu0 %v9261_v10 }
0x1fd9   :  { %8435 = vmatpush3.bf16.msra.mxu0 %v9261_v10 }
0x1fda   :  { %8436 = vmatprep.subr.bf16.mxu0 %v9263_v48 }
0x1fdd   :  { %8437 = vmatpush3.bf16.msra.mxu0 %v9263_v48  ;;  %v9267_v48 = vld [vmem:[#allocation8 + $0x5b0] ss:$8 sps:$4 sm:$0xff]  }
0x1fde   :  { %8462 = vmatprep.subr.bf16.mxu0 %v9714_v1 }
0x2093   :  { %v7651_v56 = vpop.f32.mrb[84].mxu0 }
0x2094   :  { %v7652_v58 = vpop.f32.mrb[85].mxu0 }
0x2095   :  { %v7653_v59 = vadd.f32 %v7652_v58, %v7651_v56  ;;  %v7654_v61 = vpop.f32.mrb[86].mxu0 }
0x2096   :  { %v7655_v14 = vpop.f32.mrb[87].mxu0 }
0x2097   :  { %v4599_v24 = vadd.f32 %v7653_v59, %v4467_v57  ;;  %v7656_v50 = vadd.f32 %v7655_v14, %v7654_v61 }
0x2099   :  { %v4602_v23 = vadd.f32 %v7656_v50, %v4467_v57  ;;  %v10497_v20 = vadd.f32 %v4599_v24, %v10480_v47 }
0x209b   :  { %4619 = vadd.xlane.f32.xlu0 %v10497_v20  ;;  %v7657_v42 = vpop.f32.mrb[88].mxu0  ;;  %v10501_v4 = vadd.f32 %v4602_v23, %v10482_v3  ;;  %v4631_v12 = vmul.f32 %v10497_v20, %v10497_v20 }
0x209c   :  { %v7658_v52 = vpop.f32.mrb[89].mxu0 }
0x209d   :  { %v7659_v6 = vadd.f32 %v7658_v52, %v7657_v42  ;;  %4621 = vadd.xlane.f32.xlu1 %v10501_v4  ;;  %v7660_v29 = vpop.f32.mrb[90].mxu0  ;;  %v4632_v47 = vmul.f32 %v10501_v4, %v10501_v4 }
0x209e   :  { %v7661_v17 = vpop.f32.mrb[91].mxu0 }
0x209f   :  { %v4607_v7 = vadd.f32 %v7659_v6, %v4467_v57  ;;  %v7662_v46 = vadd.f32 %v7661_v17, %v7660_v29  ;;  %4635 = vadd.xlane.f32.xlu0 %v4631_v12 }
0x20a1   :  { %v4610_v16 = vadd.f32 %v7662_v46, %v4467_v57  ;;  %4637 = vadd.xlane.f32.xlu1 %v4632_v47  ;;  %v10509_v3 = vadd.f32 %v4607_v7, %v10488_v15  ;;  %v9250_v15 = vld [vmem:[#allocation8 + $0x510] ss:$8 sps:$4 sm:$0xff]   ;;  %v4617_v46 = vld [vmem:[#allocation5 + $0x34] ss:$0 sm:$0xff] }
0x20a2   :  { %8404 = vmatprep.subr.bf16.mxu1 %v9250_v15 }
0x20a3   :  { %4623 = vadd.xlane.f32.xlu0 %v10509_v3  ;;  %v10513_v19 = vadd.f32 %v4610_v16, %v10490_v49  ;;  %v4633_v25 = vmul.f32 %v10509_v3, %v10509_v3  ;;  %8405 = vmatpush3.bf16.msra.mxu1 %v9250_v15  ;;  %v9252_v49 = vld [vmem:[#allocation8 + $0x520] ss:$8 sps:$4 sm:$0xff]  }
0x20a4   :  { %8406 = vmatprep.subr.bf16.mxu1 %v9252_v49 }
0x20a5   :  { %4625 = vadd.xlane.f32.xlu1 %v10513_v19  ;;  %v4634_v36 = vmul.f32 %v10513_v19, %v10513_v19 }
0x20a7   :  { %4639 = vadd.xlane.f32.xlu0 %v4633_v25  ;;  %8407 = vmatpush3.bf16.msra.mxu1 %v9252_v49 }
0x20a8   :  { %8408 = vmatprep.subr.bf16.mxu1 %v9254_v32 }
0x20a9   :  { %4641 = vadd.xlane.f32.xlu1 %v4634_v36 }
0x20ab   :  { %8409 = vmatpush3.bf16.msra.mxu1 %v9254_v32 }
0x20ac   :  { %8410 = vmatprep.subr.bf16.mxu1 %v9256_v38 }
0x20af   :  { %8411 = vmatpush3.bf16.msra.mxu1 %v9256_v38 }
0x20b0   :  { %8412 = vmatprep.subr.bf16.mxu1 %v9258_v62 }
0x20b3   :  { %8413 = vmatpush3.bf16.msra.mxu1 %v9258_v62 }
0x20b4   :  { %8414 = vmatprep.subr.bf16.mxu1 %v9260_v33 }
0x20b7   :  { %8415 = vmatpush3.bf16.msra.mxu1 %v9260_v33 }
0x20b8   :  { %8416 = vmatprep.subr.bf16.mxu1 %v9262_v54 }
0x20bb   :  { %8417 = vmatpush3.bf16.msra.mxu1 %v9262_v54  ;;  %v9265_v54 = vld [vmem:[#allocation8 + $0x590] ss:$8 sps:$4 sm:$0xff]  }
0x20bc   :  { %8442 = vmatprep.subr.bf16.mxu1 %v10520_v35 }
0x2128   :  { %v4620_v8 = vpop.xlane.xlu0 %4619 }
0x2129   :  { %v4627_v45 = vmul.f32 0.0078125, %v4620_v8  ;;  %v9268_v8 = vld [vmem:[#allocation8 + $0x5c0] ss:$8 sps:$4 sm:$0xff]  }
0x212a   :  { %v4622_v39 = vpop.xlane.xlu1 %4621 }
0x212b   :  { %v4628_v63 = vmul.f32 0.0078125, %v4622_v39  ;;  %v4647_v44 = vmul.f32 %v4627_v45, %v4627_v45  ;;  %v4655_v17 = vsub.f32 %v10497_v20, %v4627_v45  ;;  %v9269_v45 = vld [vmem:[#allocation8 + $0x5d0] ss:$8 sps:$4 sm:$0xff]   ;;  %v9270_v39 = vld [vmem:[#allocation8 + $0x5e0] ss:$8 sps:$4 sm:$0xff]  }
0x212c   :  { %v4636_v43 = vpop.xlane.xlu0 %4635 }
0x212d   :  { %v4643_v5 = vmul.f32 0.0078125, %v4636_v43  ;;  %v4648_v11 = vmul.f32 %v4628_v63, %v4628_v63  ;;  %v4656_v47 = vsub.f32 %v10501_v4, %v4628_v63  ;;  %v4697_v43 = vld [vmem:[#allocation5 + $0x36] ss:$0 sm:$0xff] }
0x212e   :  { %v4638_v9 = vpop.xlane.xlu1 %4637 }
0x212f   :  { %v4651_v51 = vsub.f32 %v4643_v5, %v4647_v44  ;;  %v4644_v53 = vmul.f32 0.0078125, %v4638_v9  ;;  %v4811_v5 = vld [vmem:[#allocation5 + $0x37] ss:$0 sm:$0xff] }
0x2130   :  { %v4624_v55 = vpop.xlane.xlu0 %4623 }
0x2131   :  { %v4659_v40 = vadd.f32 1e-05, %v4651_v51  ;;  %v4652_v34 = vsub.f32 %v4644_v53, %v4648_v11  ;;  %v4629_v56 = vmul.f32 0.0078125, %v4624_v55 }
0x2132   :  { %v4626_v57 = vpop.xlane.xlu1 %4625 }
0x2133   :  { %9474 = vrsqrt.f32 %v4659_v40  ;;  %v4660_v58 = vadd.f32 1e-05, %v4652_v34  ;;  %v4630_v59 = vmul.f32 0.0078125, %v4626_v57  ;;  %v4649_v14 = vmul.f32 %v4629_v56, %v4629_v56 }
0x2134   :  { %v4640_v61 = vpop.xlane.xlu0 %4639  ;;  %v4657_v22 = vsub.f32 %v10509_v3, %v4629_v56 }
0x2135   :  { %9476 = vrsqrt.f32 %v4660_v58  ;;  %v4645_v24 = vmul.f32 0.0078125, %v4640_v61  ;;  %v4650_v23 = vmul.f32 %v4630_v59, %v4630_v59  ;;  %v4658_v20 = vsub.f32 %v10513_v19, %v4630_v59  ;;  %v9266_v19 = vld [vmem:[#allocation8 + $0x5a0] ss:$8 sps:$4 sm:$0xff]  }
0x2136   :  { %v4642_v50 = vpop.xlane.xlu1 %4641 }
0x2137   :  { %v4653_v42 = vsub.f32 %v4645_v24, %v4649_v14  ;;  %v4646_v52 = vmul.f32 0.0078125, %v4642_v50 }
0x2139   :  { %v4661_v6 = vadd.f32 1e-05, %v4653_v42  ;;  %v4654_v29 = vsub.f32 %v4646_v52, %v4650_v23 }
0x213b   :  { %9478 = vrsqrt.f32 %v4661_v6  ;;  %v4662_v12 = vadd.f32 1e-05, %v4654_v29 }
0x213d   :  { %v9475_v7 = vpop.eup %9474  ;;  %9480 = vrsqrt.f32 %v4662_v12 }
0x213e   :  { %v4667_v16 = vmul.f32 %v9475_v7, %v4655_v17  ;;  %v4925_v17 = vld [vmem:[#allocation5 + $0x40] ss:$0 sm:$0xff] }
0x213f   :  { %v9477_v25 = vpop.eup %9476 }
0x2140   :  { %v4668_v36 = vmul.f32 %v9477_v25, %v4656_v47  ;;  %v4671_v18 = vmul.f32 %v4667_v16, %v4617_v46 }
0x2142   :  { %v4672_v15 = vmul.f32 %v4668_v36, %v4617_v46  ;;  %v10527_v49 = vadd.f32 %v4671_v18, %v4618_v37 }
0x2144   :  { %v10529_v27 = vadd.f32 %v4672_v15, %v4618_v37 }
0x2145   :  { %v9479_v32 = vpop.eup %9478 }
0x2146   :  { %v4669_v41 = vmul.f32 %v9479_v32, %v4657_v22  ;;  %v4679_v38 = vpack.c.bf16 %v10529_v27, %v10527_v49 }
0x2147   :  { %v9481_v4 = vpop.eup %9480 }
0x2148   :  { %v4670_v60 = vmul.f32 %v9481_v4, %v4658_v20  ;;  %8418 = vmatprep.mubr.bf16.mxu1 %v4679_v38  ;;  %8438 = vmatprep.mubr.bf16.mxu0 %v4679_v38  ;;  %v4673_v62 = vmul.f32 %v4669_v41, %v4617_v46 }
0x214a   :  { %v4674_v13 = vmul.f32 %v4670_v60, %v4617_v46  ;;  %v10534_v33 = vadd.f32 %v4673_v62, %v4618_v37 }
0x214c   :  { %v10536_v3 = vadd.f32 %v4674_v13, %v4618_v37 }
0x214e   :  { %v4680_v10 = vpack.c.bf16 %v10536_v3, %v10534_v33 }
0x2150   :  { %8419 = vmatmul.mubr.bf16.vlgmr.msra.gmra.mrb[116].mxu1 %v4680_v10  ;;  %8439 = vmatmul.mubr.bf16.vlgmr.msra.gmra.mrb[92].mxu0 %v4680_v10 }
0x2151   :  { %8443 = vmatpush3.bf16.msra.mxu1 %v10520_v35  ;;  %8458 = vmatprep.mubr.bf16.mxu1 %v4679_v38  ;;  %v9271_v35 = vld [vmem:[#allocation8 + $0x5f0] ss:$8 sps:$4 sm:$0xff]  }
0x2152   :  { %8444 = vmatprep.subr.bf16.mxu1 %v9265_v54  ;;  %8464 = vmatprep.mubr.msk.bf16.mxu0 %vm9713_vm0, %v9714_v1 }
0x2155   :  { %8445 = vmatpush3.bf16.msra.mxu1 %v9265_v54 }
0x2156   :  { %8446 = vmatprep.subr.bf16.mxu1 %v9266_v19 }
0x2159   :  { %8447 = vmatpush3.bf16.msra.mxu1 %v9266_v19 }
0x215a   :  { %8448 = vmatprep.subr.bf16.mxu1 %v9267_v48 }
0x215d   :  { %8449 = vmatpush3.bf16.msra.mxu1 %v9267_v48 }
0x215e   :  { %8450 = vmatprep.subr.bf16.mxu1 %v9268_v8 }
0x2161   :  { %8451 = vmatpush3.bf16.msra.mxu1 %v9268_v8 }
0x2162   :  { %8452 = vmatprep.subr.bf16.mxu1 %v9269_v45 }
0x2165   :  { %8453 = vmatpush3.bf16.msra.mxu1 %v9269_v45 }
0x2166   :  { %8454 = vmatprep.subr.bf16.mxu1 %v9270_v39 }
0x2169   :  { %8455 = vmatpush3.bf16.msra.mxu1 %v9270_v39 }
0x216a   :  { %8456 = vmatprep.subr.bf16.mxu1 %v9271_v35 }
0x216d   :  { %8457 = vmatpush3.bf16.msra.mxu1 %v9271_v35 }
0x216e   :  { %8468 = vmatprep.subr.bf16.mxu1 %v9714_v1 }
0x2170   :  { %8459 = vmatmul.mubr.bf16.vlgmr.msra.gmra.mrb[120].mxu1 %v4680_v10 }
0x2171   :  { %8470 = vmatprep.mubr.msk.bf16.mxu1 %vm9713_vm0, %v9714_v1 }
0x2223   :  { %v8420_v63 = vpop.f32.mrb[116].mxu1  ;;  %v8440_v44 = vpop.f32.mrb[92].mxu0 }
0x2224   :  { %v4780_v9 = vpop.f32.mrb[117].mxu1  ;;  %v4894_v11 = vpop.f32.mrb[93].mxu0  ;;  %v4789_v55 = vadd.f32 %v8420_v63, %v4697_v43  ;;  %v4903_v40 = vadd.f32 %v8440_v44, %v4811_v5 }
0x2225   :  { %v8421_v51 = vpop.f32.mrb[118].mxu1  ;;  %v8441_v53 = vpop.f32.mrb[94].mxu0  ;;  %v4781_v59 = vadd.f32 %v4780_v9, %v4697_v43  ;;  %v4895_v61 = vadd.f32 %v4894_v11, %v4811_v5 }
0x2226   :  { %v4792_v34 = vadd.f32 %v8421_v51, %v4697_v43  ;;  %v4906_v56 = vadd.f32 %v8441_v53, %v4811_v5  ;;  %v4783_v57 = vpop.f32.mrb[119].mxu1  ;;  %v4897_v58 = vpop.f32.mrb[95].mxu0 }
0x2227   :  { %v4784_v14 = vadd.f32 %v4783_v57, %v4697_v43  ;;  %v4898_v24 = vadd.f32 %v4897_v58, %v4811_v5 }
0x2228   :  { %v10546_v50 = vpack.c.bf16 %v4792_v34, %v4789_v55  ;;  %v10548_v23 = vpack.c.bf16 %v4906_v56, %v4903_v40 }
0x2229   :  { %v10550_v42 = vpack.c.bf16 %v4784_v14, %v4781_v59  ;;  %v10552_v52 = vpack.c.bf16 %v4898_v24, %v4895_v61 }
0x222a   :  { %v5080_v6 = vsel %vm1017_vm2, %v10548_v23, 0 }
0x222b   :  { %8469 = vmatpush3.bf16.xpose.msra.mxu1 %v5080_v6  ;;  %v5033_v29 = vsel %vm1017_vm2, %v10552_v52, 0 }
0x222c   :  { %8463 = vmatpush3.bf16.xpose.msra.mxu0 %v5033_v29  ;;  %8480 = vmatprep.subr.bf16.mxu1 %v9714_v1 }
0x222d   :  { %8474 = vmatprep.subr.bf16.mxu0 %v9714_v1 }
0x2232   :  { %8471 = vmatmul.mubr.msk.bf16.vlgmr.msra.gmra.mrb[124].mxu1 %vm1017_vm2, %v10546_v50 }
0x2233   :  { %8465 = vmatmul.mubr.msk.bf16.vlgmr.msra.gmra.mrb[96].mxu0 %vm1017_vm2, %v10550_v42  ;;  %8482 = vmatprep.mubr.msk.bf16.mxu1 %vm9713_vm0, %v9714_v1 }
0x2234   :  { %8476 = vmatprep.mubr.msk.bf16.mxu0 %vm9713_vm0, %v9714_v1 }
0x2243   :  { %v8460_v12 = vpop.f32.mrb[120].mxu1 }
0x2244   :  { %v5008_v7 = vpop.f32.mrb[121].mxu1  ;;  %v5017_v47 = vadd.f32 %v8460_v12, %v4925_v17 }
0x2245   :  { %v8461_v46 = vpop.f32.mrb[122].mxu1  ;;  %v5009_v36 = vadd.f32 %v5008_v7, %v4925_v17 }
0x2246   :  { %v5020_v16 = vadd.f32 %v8461_v46, %v4925_v17  ;;  %v5011_v25 = vpop.f32.mrb[123].mxu1 }
0x2247   :  { %v5012_v18 = vadd.f32 %v5011_v25, %v4925_v17 }
0x2248   :  { %v10568_v37 = vpack.c.bf16 %v5020_v16, %v5017_v47 }
0x2249   :  { %v10570_v15 = vpack.c.bf16 %v5012_v18, %v5009_v36 }
0x224a   :  { %8481 = vmatpush3.bf16.msra.mxu1 %v10568_v37 }
0x224b   :  { %8475 = vmatpush3.bf16.msra.mxu0 %v10570_v15  ;;  %8492 = vmatprep.subr.bf16.mxu1 %v9714_v1 }
0x224c   :  { %8486 = vmatprep.subr.bf16.mxu0 %v9714_v1 }
0x2305   :  { %v5116_v22 = vpop.f32.mrb[124].mxu1 }
0x2306   :  { %v5069_v32 = vpop.f32.mrb[96].mxu0  ;;  %v8472_v20 = vpop.f32.mrb[125].mxu1  ;;  %v5125_v41 = vmul.f32 0.17677669, %v5116_v22 }
0x2307   :  { %v5123_v38 = vmul.f32 0.17677669, %v5069_v32  ;;  %v8466_v4 = vpop.f32.mrb[97].mxu0  ;;  %v5119_v60 = vpop.f32.mrb[126].mxu1 }
0x2308   :  { %v5072_v62 = vpop.f32.mrb[98].mxu0  ;;  %v8473_v13 = vpop.f32.mrb[127].mxu1  ;;  %v5126_v54 = vmul.f32 0.17677669, %v5119_v60  ;;  %v5129_v8 = vadd.f32 %v5125_v41, %v9934_v31 }
0x2309   :  { %v5127_v10 = vadd.f32 %v5123_v38, %v9934_v31  ;;  %v5124_v19 = vmul.f32 0.17677669, %v5072_v62  ;;  %v8467_v48 = vpop.f32.mrb[99].mxu0 }
0x230a   :  { %v5130_v35 = vadd.f32 %v5126_v54, %v9934_v31  ;;  %v5137_v43 = vsel %vm1120_vm4, %v5129_v8, -inf }
0x230b   :  { %v5128_v45 = vadd.f32 %v5124_v19, %v9934_v31  ;;  %v5131_v39 = vsel %vm1120_vm4, %v5127_v10, -inf }
0x230c   :  { %5132 = vmax.xlane.f32.xlu0 %v5131_v39  ;;  %v5140_v44 = vsel %vm1120_vm4, %v5130_v35, -inf }
0x230d   :  { %v5134_v63 = vsel %vm1120_vm4, %v5128_v45, -inf }
0x230e   :  { %5135 = vmax.xlane.f32.xlu1 %v5134_v63 }
0x2310   :  { %5138 = vmax.xlane.f32.xlu0 %v5137_v43 }
0x2312   :  { %5141 = vmax.xlane.f32.xlu1 %v5140_v44 }
0x2323   :  { %5322 = vrot.lane.b32.xlu1 %v10548_v23, %s9717_s3 }
0x2399   :  { %v5133_v5 = vpop.xlane.xlu0 %5132 }
0x239a   :  { %v5143_v9 = vsub.f32 %v5127_v10, %v5133_v5 }
0x239b   :  { %v5136_v11 = vpop.xlane.xlu1 %5135 }
0x239c   :  { %v5144_v53 = vsub.f32 %v5128_v45, %v5136_v11  ;;  %v5147_v40 = vmul.f32 1.442695, %v5143_v9 }
0x239d   :  { %v5139_v51 = vpop.xlane.xlu0 %5138 }
0x239e   :  { %v5145_v55 = vsub.f32 %v5129_v8, %v5139_v51  ;;  %v5149_v58 = vmul.f32 1.442695, %v5144_v53 }
0x239f   :  { %v5142_v34 = vpop.xlane.xlu1 %5141 }
0x23a0   :  { %v5151_v56 = vmul.f32 1.442695, %v5145_v55  ;;  %v5146_v57 = vsub.f32 %v5130_v35, %v5142_v34 }
0x23a2   :  { %9482 = vpow2.f32 %v5151_v56  ;;  %v5153_v59 = vmul.f32 1.442695, %v5146_v57 }
0x23a3   :  { %9484 = vpow2.f32 %v5147_v40  ;;  %v5323_v46 = vpop.permute.xlu1 %5322 }
0x23a4   :  { %9486 = vpow2.f32 %v5153_v59  ;;  %v5328_v60 = vsel %vm1017_vm2, %v5323_v46, 0 }
0x23a5   :  { %9488 = vpow2.f32 %v5149_v58 }
0x23ac   :  { %v9483_v61 = vpop.eup %9482 }
0x23ad   :  { %v9485_v14 = vpop.eup %9484  ;;  %v5161_v24 = vsel %vm1120_vm4, %v9483_v61, 0.0 }
0x23ae   :  { %v9487_v6 = vpop.eup %9486  ;;  %5162 = vadd.xlane.f32.xlu0 %v5161_v24  ;;  %v5155_v17 = vsel %vm1120_vm4, %v9485_v14, 0.0 }
0x23af   :  { %v5164_v29 = vsel %vm1120_vm4, %v9487_v6, 0.0  ;;  %v9489_v12 = vpop.eup %9488 }
0x23b0   :  { %5165 = vadd.xlane.f32.xlu1 %v5164_v29  ;;  %v5158_v7 = vsel %vm1120_vm4, %v9489_v12, 0.0 }
0x23b2   :  { %5156 = vadd.xlane.f32.xlu0 %v5155_v17 }
0x23b4   :  { %5159 = vadd.xlane.f32.xlu1 %v5158_v7 }
0x23c5   :  { %5266 = vrot.lane.b32.xlu1 %v10550_v42, %s9717_s3 }
0x23c8   :  { %5269 = vrot.lane.b32.xlu0 %v10552_v52, %s9717_s3 }
0x23c9   :  { %5319 = vrot.lane.b32.xlu1 %v10546_v50, %s9717_s3 }
0x243b   :  { %v5163_v47 = vpop.xlane.xlu0 %5162 }
0x243c   :  { %9490 = vrcp.f32 %v5163_v47 }
0x243d   :  { %v5166_v16 = vpop.xlane.xlu1 %5165 }
0x243e   :  { %9492 = vrcp.f32 %v5166_v16 }
0x243f   :  { %v5157_v25 = vpop.xlane.xlu0 %5156 }
0x2440   :  { %9494 = vrcp.f32 %v5157_v25 }
0x2441   :  { %v5160_v36 = vpop.xlane.xlu1 %5159 }
0x2442   :  { %9496 = vrcp.f32 %v5160_v36 }
0x2443   :  { %v5270_v10 = vpop.permute.xlu0 %5269 }
0x2444   :  { %v5275_v48 = vsel %vm1017_vm2, %v5270_v10, 0 }
0x2445   :  { %v5267_v54 = vpop.permute.xlu1 %5266 }
0x2446   :  { %v9491_v18 = vpop.eup %9490 }
0x2447   :  { %v5173_v32 = vmul.f32 %v9491_v18, %v9483_v61 }
0x2448   :  { %v9493_v22 = vpop.eup %9492 }
0x2449   :  { %v5174_v20 = vmul.f32 %v9493_v22, %v9487_v6  ;;  %v5320_v8 = vpop.permute.xlu1 %5319 }
0x244a   :  { %v9495_v41 = vpop.eup %9494 }
0x244b   :  { %v5176_v38 = vpack.c.bf16 %v5174_v20, %v5173_v32  ;;  %v5171_v62 = vmul.f32 %v9495_v41, %v9485_v14 }
0x244c   :  { %v9497_v4 = vpop.eup %9496 }
0x244d   :  { %v5172_v13 = vmul.f32 %v9497_v4, %v9489_v12  ;;  %8483 = vmatmul.mubr.msk.bf16.vlgmr.msra.gmra.mrb[128].mxu1 %vm1120_vm4, %v5176_v38 }
0x244e   :  { %8493 = vmatpush3.bf16.xpose.msra.mxu1 %v5328_v60  ;;  %8494 = vmatprep.mubr.msk.bf16.mxu1 %vm9713_vm0, %v9714_v1 }
0x244f   :  { %v5175_v19 = vpack.c.bf16 %v5172_v13, %v5171_v62  ;;  %8504 = vmatprep.subr.bf16.mxu1 %v9714_v1 }
0x2451   :  { %8477 = vmatmul.mubr.msk.bf16.vlgmr.msra.gmra.mrb[100].mxu0 %vm1120_vm4, %v5175_v19 }
0x2452   :  { %8487 = vmatpush3.bf16.xpose.msra.mxu0 %v5275_v48  ;;  %8488 = vmatprep.mubr.msk.bf16.mxu0 %vm9713_vm0, %v9714_v1 }
0x2453   :  { %8498 = vmatprep.subr.bf16.mxu0 %v9714_v1 }
0x2455   :  { %8495 = vmatmul.mubr.msk.bf16.vlgmr.msra.gmra.mrb[132].mxu1 %vm1017_vm2, %v5320_v8 }
0x2456   :  { %8506 = vmatprep.mubr.msk.bf16.mxu1 %vm9713_vm0, %v9714_v1 }
0x2459   :  { %8489 = vmatmul.mubr.msk.bf16.vlgmr.msra.gmra.mrb[104].mxu0 %vm1017_vm2, %v5267_v54 }
0x245a   :  { %8500 = vmatprep.mubr.msk.bf16.mxu0 %vm9713_vm0, %v9714_v1 }
0x2520   :  { %v10612_v45 = vpop.f32.mrb[128].mxu1 }
0x2521   :  { %v8484_v39 = vpop.f32.mrb[129].mxu1 }
0x2522   :  { %v10614_v35 = vpop.f32.mrb[130].mxu1 }
0x2523   :  { %v8485_v63 = vpop.f32.mrb[131].mxu1 }
0x2524   :  { %v10616_v43 = vpop.f32.mrb[100].mxu0 }
0x2525   :  { %v8478_v44 = vpop.f32.mrb[101].mxu0 }
0x2526   :  { %v10618_v5 = vpop.f32.mrb[102].mxu0 }
0x2527   :  { %v8479_v9 = vpop.f32.mrb[103].mxu0 }
0x2528   :  { %v5364_v11 = vpop.f32.mrb[132].mxu1 }
0x2529   :  { %v8496_v51 = vpop.f32.mrb[133].mxu1  ;;  %v5373_v34 = vmul.f32 0.17677669, %v5364_v11 }
0x252a   :  { %v5367_v53 = vpop.f32.mrb[134].mxu1 }
0x252b   :  { %v8497_v55 = vpop.f32.mrb[135].mxu1  ;;  %v5377_v24 = vadd.f32 %v5373_v34, %v9934_v31  ;;  %v5374_v6 = vmul.f32 0.17677669, %v5367_v53 }
0x252c   :  { %v5311_v40 = vpop.f32.mrb[104].mxu0 }
0x252d   :  { %v5371_v56 = vmul.f32 0.17677669, %v5311_v40  ;;  %v8490_v57 = vpop.f32.mrb[105].mxu0  ;;  %v5378_v7 = vadd.f32 %v5374_v6, %v9934_v31  ;;  %v5385_v46 = vsel %vm1120_vm4, %v5377_v24, -inf }
0x252e   :  { %v5314_v58 = vpop.f32.mrb[106].mxu0 }
0x252f   :  { %v5375_v59 = vadd.f32 %v5371_v56, %v9934_v31  ;;  %v5372_v61 = vmul.f32 0.17677669, %v5314_v58  ;;  %v8491_v14 = vpop.f32.mrb[107].mxu0  ;;  %v5388_v47 = vsel %vm1120_vm4, %v5378_v7, -inf }
0x2531   :  { %v5376_v29 = vadd.f32 %v5372_v61, %v9934_v31  ;;  %v5379_v12 = vsel %vm1120_vm4, %v5375_v59, -inf }
0x2532   :  { %5380 = vmax.xlane.f32.xlu0 %v5379_v12 }
0x2533   :  { %v5382_v17 = vsel %vm1120_vm4, %v5376_v29, -inf }
0x2534   :  { %5383 = vmax.xlane.f32.xlu1 %v5382_v17 }
0x2536   :  { %5386 = vmax.xlane.f32.xlu0 %v5385_v46 }
0x253a   :  { %5389 = vmax.xlane.f32.xlu0 %v5388_v47 }
0x2545   :  { %5474 = vrot.lane.b32.xlu1 %v10568_v37, %s9717_s3 }
0x2549   :  { %5523 = vrot.lane.b32.xlu1 %v10552_v52, %s9718_s17 }
0x25bf   :  { %v5381_v16 = vpop.xlane.xlu0 %5380 }
0x25c0   :  { %v5391_v36 = vsub.f32 %v5375_v59, %v5381_v16 }
0x25c1   :  { %v5384_v25 = vpop.xlane.xlu1 %5383 }
0x25c2   :  { %v5395_v20 = vmul.f32 1.442695, %v5391_v36  ;;  %v5392_v41 = vsub.f32 %v5376_v29, %v5384_v25 }
0x25c3   :  { %v5387_v18 = vpop.xlane.xlu0 %5386 }
0x25c4   :  { %v5393_v22 = vsub.f32 %v5377_v24, %v5387_v18  ;;  %v5397_v62 = vmul.f32 1.442695, %v5392_v41 }
0x25c5   :  { %v5475_v32 = vpop.permute.xlu1 %5474 }
0x25c6   :  { %v5399_v38 = vmul.f32 1.442695, %v5393_v22  ;;  %8505 = vmatpush3.bf16.msra.mxu1 %v5475_v32 }
0x25c7   :  { %v5390_v4 = vpop.xlane.xlu0 %5389  ;;  %8516 = vmatprep.subr.bf16.mxu1 %v9714_v1 }
0x25c8   :  { %9498 = vpow2.f32 %v5399_v38  ;;  %v5394_v60 = vsub.f32 %v5378_v7, %v5390_v4 }
0x25c9   :  { %9500 = vpow2.f32 %v5395_v20  ;;  %v5524_v9 = vpop.permute.xlu1 %5523 }
0x25ca   :  { %v5401_v13 = vmul.f32 1.442695, %v5394_v60  ;;  %v5529_v7 = vsel %vm1017_vm2, %v5524_v9, 0 }
0x25cc   :  { %9502 = vpow2.f32 %v5401_v13 }
0x25cd   :  { %9504 = vpow2.f32 %v5397_v62 }
0x25d2   :  { %v9499_v10 = vpop.eup %9498 }
0x25d3   :  { %v5409_v54 = vsel %vm1120_vm4, %v9499_v10, 0.0  ;;  %v9501_v19 = vpop.eup %9500 }
0x25d4   :  { %5410 = vadd.xlane.f32.xlu0 %v5409_v54  ;;  %v5403_v8 = vsel %vm1120_vm4, %v9501_v19, 0.0 }
0x25d6   :  { %v9503_v48 = vpop.eup %9502 }
0x25d7   :  { %v5412_v39 = vsel %vm1120_vm4, %v9503_v48, 0.0  ;;  %v9505_v63 = vpop.eup %9504 }
0x25d8   :  { %5404 = vadd.xlane.f32.xlu0 %v5403_v8  ;;  %5413 = vadd.xlane.f32.xlu1 %v5412_v39  ;;  %v5406_v44 = vsel %vm1120_vm4, %v9505_v63, 0.0 }
0x25dc   :  { %5407 = vadd.xlane.f32.xlu1 %v5406_v44 }
0x25ed   :  { %5574 = vrot.lane.b32.xlu1 %v10548_v23, %s9718_s17 }
0x25ee   :  { %5426 = vrot.lane.b32.xlu0 %v10570_v15, %s9717_s3 }
0x25f1   :  { %5572 = vrot.lane.b32.xlu1 %v10546_v50, %s9718_s17 }
0x25f2   :  { %5521 = vrot.lane.b32.xlu0 %v10550_v42, %s9718_s17 }
0x2661   :  { %v5411_v11 = vpop.xlane.xlu0 %5410 }
0x2662   :  { %9506 = vrcp.f32 %v5411_v11 }
0x2665   :  { %v5405_v51 = vpop.xlane.xlu0 %5404  ;;  %v5414_v53 = vpop.xlane.xlu1 %5413 }
0x2666   :  { %9508 = vrcp.f32 %v5414_v53 }
0x2667   :  { %9510 = vrcp.f32 %v5405_v51 }
0x2669   :  { %v5427_v55 = vpop.permute.xlu0 %5426  ;;  %v5408_v40 = vpop.xlane.xlu1 %5407 }
0x266a   :  { %9512 = vrcp.f32 %v5408_v40  ;;  %8499 = vmatpush3.bf16.msra.mxu0 %v5427_v55 }
0x266b   :  { %8510 = vmatprep.subr.bf16.mxu0 %v9714_v1 }
0x266c   :  { %v9507_v34 = vpop.eup %9506 }
0x266d   :  { %v5421_v58 = vmul.f32 %v9507_v34, %v9499_v10  ;;  %v5575_v61 = vpop.permute.xlu1 %5574  ;;  %v5522_v47 = vpop.permute.xlu0 %5521 }
0x266e   :  { %v5580_v12 = vsel %vm1017_vm2, %v5575_v61, 0 }
0x2670   :  { %v9509_v56 = vpop.eup %9508 }
0x2671   :  { %v9511_v57 = vpop.eup %9510  ;;  %v5422_v59 = vmul.f32 %v9509_v56, %v9503_v48  ;;  %v5573_v46 = vpop.permute.xlu1 %5572 }
0x2672   :  { %v5419_v6 = vmul.f32 %v9511_v57, %v9501_v19 }
0x2673   :  { %v5424_v24 = vpack.c.bf16 %v5422_v59, %v5421_v58 }
0x2674   :  { %v9513_v14 = vpop.eup %9512 }
0x2675   :  { %v5420_v29 = vmul.f32 %v9513_v14, %v9505_v63  ;;  %8507 = vmatmul.mubr.msk.bf16.vlgmr.msra.gmra.mrb[136].mxu1 %vm1120_vm4, %v5424_v24 }
0x2676   :  { %8517 = vmatpush3.bf16.xpose.msra.mxu1 %v5580_v12  ;;  %8518 = vmatprep.mubr.msk.bf16.mxu1 %vm9713_vm0, %v9714_v1 }
0x2677   :  { %v5423_v17 = vpack.c.bf16 %v5420_v29, %v5419_v6  ;;  %8528 = vmatprep.subr.bf16.mxu1 %v9714_v1 }
0x2679   :  { %8501 = vmatmul.mubr.msk.bf16.vlgmr.msra.gmra.mrb[108].mxu0 %vm1120_vm4, %v5423_v17 }
0x267a   :  { %8511 = vmatpush3.bf16.xpose.msra.mxu0 %v5529_v7  ;;  %8512 = vmatprep.mubr.msk.bf16.mxu0 %vm9713_vm0, %v9714_v1 }
0x267b   :  { %8522 = vmatprep.subr.bf16.mxu0 %v9714_v1 }
0x267d   :  { %8519 = vmatmul.mubr.msk.bf16.vlgmr.msra.gmra.mrb[140].mxu1 %vm1017_vm2, %v5573_v46 }
0x267e   :  { %8530 = vmatprep.mubr.msk.bf16.mxu1 %vm9713_vm0, %v9714_v1 }
0x2681   :  { %8513 = vmatmul.mubr.msk.bf16.vlgmr.msra.gmra.mrb[112].mxu0 %vm1017_vm2, %v5522_v47 }
0x2682   :  { %8524 = vmatprep.mubr.msk.bf16.mxu0 %vm9713_vm0, %v9714_v1 }
0x2748   :  { %v10662_v16 = vpop.f32.mrb[136].mxu1 }
0x2749   :  { %v8508_v25 = vpop.f32.mrb[137].mxu1 }
0x274a   :  { %v10664_v36 = vpop.f32.mrb[138].mxu1 }
0x274b   :  { %v9079_v18 = vpack.i.bf16 %v10664_v36, %v10662_v16  ;;  %v8509_v22 = vpop.f32.mrb[139].mxu1 }
0x274c   :  { %v10668_v32 = vpop.f32.mrb[108].mxu0 }
0x274d   :  { %v8502_v20 = vpop.f32.mrb[109].mxu0 }
0x274e   :  { %v10670_v41 = vpop.f32.mrb[110].mxu0 }
0x274f   :  { %v9074_v38 = vpack.i.bf16 %v10670_v41, %v10668_v32  ;;  %v8503_v4 = vpop.f32.mrb[111].mxu0 }
0x2750   :  { %v5616_v60 = vpop.f32.mrb[140].mxu1 }
0x2751   :  { %v8520_v62 = vpop.f32.mrb[141].mxu1  ;;  %v5625_v19 = vmul.f32 0.17677669, %v5616_v60 }
0x2752   :  { %v5619_v13 = vpop.f32.mrb[142].mxu1 }
0x2753   :  { %v8521_v10 = vpop.f32.mrb[143].mxu1  ;;  %v5629_v11 = vadd.f32 %v5625_v19, %v9934_v31  ;;  %v5626_v51 = vmul.f32 0.17677669, %v5619_v13 }
0x2754   :  { %v5565_v54 = vpop.f32.mrb[112].mxu0 }
0x2755   :  { %v5623_v48 = vmul.f32 0.17677669, %v5565_v54  ;;  %v8514_v8 = vpop.f32.mrb[113].mxu0  ;;  %v5630_v34 = vadd.f32 %v5626_v51, %v9934_v31  ;;  %v5637_v56 = vsel %vm1120_vm4, %v5629_v11, -inf }
0x2756   :  { %v5568_v39 = vpop.f32.mrb[114].mxu0 }
0x2757   :  { %v5627_v63 = vadd.f32 %v5623_v48, %v9934_v31  ;;  %v5624_v44 = vmul.f32 0.17677669, %v5568_v39  ;;  %v8515_v9 = vpop.f32.mrb[115].mxu0  ;;  %v5640_v57 = vsel %vm1120_vm4, %v5630_v34, -inf }
0x2759   :  { %v5628_v53 = vadd.f32 %v5624_v44, %v9934_v31  ;;  %v5631_v55 = vsel %vm1120_vm4, %v5627_v63, -inf }
0x275a   :  { %5632 = vmax.xlane.f32.xlu0 %v5631_v55 }
0x275b   :  { %v5634_v40 = vsel %vm1120_vm4, %v5628_v53, -inf }
0x275c   :  { %5635 = vmax.xlane.f32.xlu1 %v5634_v40 }
0x275e   :  { %5638 = vmax.xlane.f32.xlu0 %v5637_v56 }
0x2762   :  { %5641 = vmax.xlane.f32.xlu0 %v5640_v57 }
0x276d   :  { %5724 = vrot.lane.b32.xlu1 %v10568_v37, %s9718_s17 }
0x2771   :  { %5773 = vrot.lane.b32.xlu1 %v10552_v52, %s9719_s1 }
0x27e7   :  { %v5633_v58 = vpop.xlane.xlu0 %5632 }
0x27e8   :  { %v5643_v61 = vsub.f32 %v5627_v63, %v5633_v58 }
0x27e9   :  { %v5636_v59 = vpop.xlane.xlu1 %5635 }
0x27ea   :  { %v5647_v29 = vmul.f32 1.442695, %v5643_v61  ;;  %v5644_v12 = vsub.f32 %v5628_v53, %v5636_v59 }
0x27eb   :  { %v5639_v14 = vpop.xlane.xlu0 %5638 }
0x27ec   :  { %v5645_v24 = vsub.f32 %v5629_v11, %v5639_v14  ;;  %v5649_v47 = vmul.f32 1.442695, %v5644_v12 }
0x27ed   :  { %v5725_v6 = vpop.permute.xlu1 %5724 }
0x27ee   :  { %v5651_v17 = vmul.f32 1.442695, %v5645_v24  ;;  %8529 = vmatpush3.bf16.msra.mxu1 %v5725_v6 }
0x27ef   :  { %v5642_v7 = vpop.xlane.xlu0 %5641  ;;  %8540 = vmatprep.subr.bf16.mxu1 %v9714_v1 }
0x27f0   :  { %9514 = vpow2.f32 %v5651_v17  ;;  %v5646_v46 = vsub.f32 %v5630_v34, %v5642_v7 }
0x27f1   :  { %9516 = vpow2.f32 %v5647_v29  ;;  %v5774_v54 = vpop.permute.xlu1 %5773 }
0x27f2   :  { %v5653_v25 = vmul.f32 1.442695, %v5646_v46  ;;  %v5779_v57 = vsel %vm1017_vm2, %v5774_v54, 0 }
0x27f4   :  { %9518 = vpow2.f32 %v5653_v25 }
0x27f5   :  { %9520 = vpow2.f32 %v5649_v47 }
0x27fa   :  { %v9515_v52 = vpop.eup %9514 }
0x27fb   :  { %v5661_v22 = vsel %vm1120_vm4, %v9515_v52, 0.0  ;;  %v9517_v20 = vpop.eup %9516 }
0x27fc   :  { %5662 = vadd.xlane.f32.xlu0 %v5661_v22  ;;  %v5655_v60 = vsel %vm1120_vm4, %v9517_v20, 0.0 }
0x27fe   :  { %v9519_v4 = vpop.eup %9518 }
0x27ff   :  { %v5664_v62 = vsel %vm1120_vm4, %v9519_v4, 0.0  ;;  %v9521_v13 = vpop.eup %9520 }
0x2800   :  { %5656 = vadd.xlane.f32.xlu0 %v5655_v60  ;;  %5665 = vadd.xlane.f32.xlu1 %v5664_v62  ;;  %v5658_v10 = vsel %vm1120_vm4, %v9521_v13, 0.0 }
0x2804   :  { %5659 = vadd.xlane.f32.xlu1 %v5658_v10 }
0x2815   :  { %5824 = vrot.lane.b32.xlu1 %v10548_v23, %s9719_s1 }
0x2816   :  { %5677 = vrot.lane.b32.xlu0 %v10570_v15, %s9718_s17 }
0x2819   :  { %5822 = vrot.lane.b32.xlu1 %v10546_v50, %s9719_s1 }
0x281a   :  { %5771 = vrot.lane.b32.xlu0 %v10550_v42, %s9719_s1 }
0x2889   :  { %v5663_v19 = vpop.xlane.xlu0 %5662 }
0x288a   :  { %9522 = vrcp.f32 %v5663_v19 }
0x288d   :  { %v5657_v48 = vpop.xlane.xlu0 %5656  ;;  %v5666_v8 = vpop.xlane.xlu1 %5665 }
0x288e   :  { %9524 = vrcp.f32 %v5666_v8 }
0x288f   :  { %9526 = vrcp.f32 %v5657_v48 }
0x2891   :  { %v5678_v39 = vpop.permute.xlu0 %5677  ;;  %v5660_v63 = vpop.xlane.xlu1 %5659 }
0x2892   :  { %9528 = vrcp.f32 %v5660_v63  ;;  %8523 = vmatpush3.bf16.msra.mxu0 %v5678_v39 }
0x2893   :  { %8534 = vmatprep.subr.bf16.mxu0 %v9714_v1 }
0x2894   :  { %v9523_v23 = vpop.eup %9522 }
0x2895   :  { %v5673_v50 = vmul.f32 %v9523_v23, %v9515_v52  ;;  %v5825_v51 = vpop.permute.xlu1 %5824  ;;  %v5772_v59 = vpop.permute.xlu0 %5771 }
0x2896   :  { %v5830_v34 = vsel %vm1017_vm2, %v5825_v51, 0 }
0x2898   :  { %v9525_v44 = vpop.eup %9524 }
0x2899   :  { %v9527_v9 = vpop.eup %9526  ;;  %v5674_v11 = vmul.f32 %v9525_v44, %v9519_v4  ;;  %v5823_v58 = vpop.permute.xlu1 %5822 }
0x289a   :  { %v5671_v55 = vmul.f32 %v9527_v9, %v9517_v20 }
0x289b   :  { %v5676_v53 = vpack.c.bf16 %v5674_v11, %v5673_v50 }
0x289c   :  { %v9529_v42 = vpop.eup %9528 }
0x289d   :  { %v5672_v40 = vmul.f32 %v9529_v42, %v9521_v13  ;;  %8531 = vmatmul.mubr.msk.bf16.vlgmr.msra.gmra.mrb[144].mxu1 %vm1120_vm4, %v5676_v53 }
0x289e   :  { %8541 = vmatpush3.bf16.xpose.msra.mxu1 %v5830_v34  ;;  %8542 = vmatprep.mubr.msk.bf16.mxu1 %vm9713_vm0, %v9714_v1 }
0x289f   :  { %v5675_v56 = vpack.c.bf16 %v5672_v40, %v5671_v55  ;;  %8552 = vmatprep.subr.bf16.mxu1 %v9714_v1 }
0x28a1   :  { %8525 = vmatmul.mubr.msk.bf16.vlgmr.msra.gmra.mrb[116].mxu0 %vm1120_vm4, %v5675_v56 }
0x28a2   :  { %8535 = vmatpush3.bf16.xpose.msra.mxu0 %v5779_v57  ;;  %8536 = vmatprep.mubr.msk.bf16.mxu0 %vm9713_vm0, %v9714_v1 }
0x28a3   :  { %8546 = vmatprep.subr.bf16.mxu0 %v9714_v1 }
0x28a5   :  { %8543 = vmatmul.mubr.msk.bf16.vlgmr.msra.gmra.mrb[148].mxu1 %vm1017_vm2, %v5823_v58 }
0x28a6   :  { %8554 = vmatprep.mubr.msk.bf16.mxu1 %vm9713_vm0, %v9714_v1 }
0x28a9   :  { %8537 = vmatmul.mubr.msk.bf16.vlgmr.msra.gmra.mrb[120].mxu0 %vm1017_vm2, %v5772_v59 }
0x28aa   :  { %8548 = vmatprep.mubr.msk.bf16.mxu0 %vm9713_vm0, %v9714_v1 }
0x2970   :  { %v10716_v61 = vpop.f32.mrb[144].mxu1 }
0x2971   :  { %v8532_v14 = vpop.f32.mrb[145].mxu1 }
0x2972   :  { %v10718_v24 = vpop.f32.mrb[146].mxu1 }
0x2973   :  { %v9089_v6 = vpack.i.bf16 %v10718_v24, %v10716_v61  ;;  %v8533_v29 = vpop.f32.mrb[147].mxu1 }
0x2974   :  { %v5717_v12 = vpop.f32.mrb[116].mxu0 }
0x2975   :  { %v8526_v17 = vpop.f32.mrb[117].mxu0 }
0x2976   :  { %v5720_v7 = vpop.f32.mrb[118].mxu0 }
0x2977   :  { %v9084_v46 = vpack.i.bf16 %v5720_v7, %v5717_v12  ;;  %v8527_v47 = vpop.f32.mrb[119].mxu0 }
0x2978   :  { %v5866_v25 = vpop.f32.mrb[148].mxu1 }
0x2979   :  { %v8544_v52 = vpop.f32.mrb[149].mxu1  ;;  %v5875_v60 = vmul.f32 0.17677669, %v5866_v25 }
0x297a   :  { %v5869_v22 = vpop.f32.mrb[150].mxu1 }
0x297b   :  { %v8545_v20 = vpop.f32.mrb[151].mxu1  ;;  %v5879_v8 = vadd.f32 %v5875_v60, %v9934_v31  ;;  %v5876_v39 = vmul.f32 0.17677669, %v5869_v22 }
0x297c   :  { %v5815_v4 = vpop.f32.mrb[120].mxu0 }
0x297d   :  { %v5873_v62 = vmul.f32 0.17677669, %v5815_v4  ;;  %v8538_v13 = vpop.f32.mrb[121].mxu0  ;;  %v5880_v9 = vadd.f32 %v5876_v39, %v9934_v31  ;;  %v5887_v50 = vsel %vm1120_vm4, %v5879_v8, -inf  ;;  %v9278_v39 = vld [vmem:[#allocation8 + $0x5e4] ss:$8 sps:$4 sm:$0xff]  }
0x297e   :  { %v5818_v10 = vpop.f32.mrb[122].mxu0  ;;  %v9272_v13 = vld [vmem:[#allocation8 + $0x584] ss:$8 sps:$4 sm:$0xff]  }
0x297f   :  { %v5877_v54 = vadd.f32 %v5873_v62, %v9934_v31  ;;  %v5874_v19 = vmul.f32 0.17677669, %v5818_v10  ;;  %v8539_v48 = vpop.f32.mrb[123].mxu0  ;;  %v5890_v11 = vsel %vm1120_vm4, %v5880_v9, -inf  ;;  %v9273_v10 = vld [vmem:[#allocation8 + $0x594] ss:$8 sps:$4 sm:$0xff]  }
0x2980   :  { %v9276_v48 = vld [vmem:[#allocation8 + $0x5c4] ss:$8 sps:$4 sm:$0xff]  }
0x2981   :  { %v5878_v63 = vadd.f32 %v5874_v19, %v9934_v31  ;;  %v5881_v23 = vsel %vm1120_vm4, %v5877_v54, -inf  ;;  %v9275_v19 = vld [vmem:[#allocation8 + $0x5b4] ss:$8 sps:$4 sm:$0xff]  }
0x2982   :  { %5882 = vmax.xlane.f32.xlu0 %v5881_v23 }
0x2983   :  { %v5884_v44 = vsel %vm1120_vm4, %v5878_v63, -inf }
0x2984   :  { %5885 = vmax.xlane.f32.xlu1 %v5884_v44 }
0x2986   :  { %5888 = vmax.xlane.f32.xlu0 %v5887_v50 }
0x298a   :  { %5891 = vmax.xlane.f32.xlu0 %v5890_v11 }
0x2a0f   :  { %v5883_v51 = vpop.xlane.xlu0 %5882 }
0x2a10   :  { %v5893_v42 = vsub.f32 %v5877_v54, %v5883_v51  ;;  %v9274_v54 = vld [vmem:[#allocation8 + $0x5a4] ss:$8 sps:$4 sm:$0xff]  }
0x2a11   :  { %v5886_v53 = vpop.xlane.xlu1 %5885 }
0x2a12   :  { %v5897_v34 = vmul.f32 1.442695, %v5893_v42  ;;  %v5894_v56 = vsub.f32 %v5878_v63, %v5886_v53  ;;  %v9279_v63 = vld [vmem:[#allocation8 + $0x5f4] ss:$8 sps:$4 sm:$0xff]  }
0x2a13   :  { %v5889_v55 = vpop.xlane.xlu0 %5888 }
0x2a14   :  { %v5895_v40 = vsub.f32 %v5879_v8, %v5889_v55  ;;  %v5899_v14 = vmul.f32 1.442695, %v5894_v56  ;;  %v9277_v8 = vld [vmem:[#allocation8 + $0x5d4] ss:$8 sps:$4 sm:$0xff]  }
0x2a16   :  { %v5901_v57 = vmul.f32 1.442695, %v5895_v40 }
0x2a17   :  { %v5892_v58 = vpop.xlane.xlu0 %5891 }
0x2a18   :  { %9530 = vpow2.f32 %v5901_v57  ;;  %v5896_v59 = vsub.f32 %v5880_v9, %v5892_v58 }
0x2a19   :  { %9532 = vpow2.f32 %v5897_v34 }
0x2a1a   :  { %v5903_v31 = vmul.f32 1.442695, %v5896_v59 }
0x2a1c   :  { %9534 = vpow2.f32 %v5903_v31 }
0x2a1d   :  { %9536 = vpow2.f32 %v5899_v14 }
0x2a22   :  { %v9531_v29 = vpop.eup %9530 }
0x2a23   :  { %v5911_v12 = vsel %vm1120_vm4, %v9531_v29, 0.0  ;;  %v9533_v17 = vpop.eup %9532 }
0x2a24   :  { %5912 = vadd.xlane.f32.xlu0 %v5911_v12  ;;  %v5905_v47 = vsel %vm1120_vm4, %v9533_v17, 0.0 }
0x2a26   :  { %v9535_v7 = vpop.eup %9534 }
0x2a27   :  { %v5914_v25 = vsel %vm1120_vm4, %v9535_v7, 0.0  ;;  %v9537_v52 = vpop.eup %9536 }
0x2a28   :  { %5906 = vadd.xlane.f32.xlu0 %v5905_v47  ;;  %5915 = vadd.xlane.f32.xlu1 %v5914_v25  ;;  %v5908_v22 = vsel %vm1120_vm4, %v9537_v52, 0.0 }
0x2a2c   :  { %5909 = vadd.xlane.f32.xlu1 %v5908_v22 }
0x2a3d   :  { %5974 = vrot.lane.b32.xlu1 %v10568_v37, %s9719_s1 }
0x2a3e   :  { %5927 = vrot.lane.b32.xlu0 %v10570_v15, %s9719_s1 }
0x2a41   :  { %9075 = vrot.lane.b32.xlu1 %v9074_v38, %s9719_s1 }
0x2a42   :  { %9085 = vrot.lane.b32.xlu0 %v9084_v46, %s9718_s17 }
0x2a45   :  { %9080 = vrot.lane.b32.xlu1 %v9079_v18, %s9719_s1 }
0x2a49   :  { %9090 = vrot.lane.b32.xlu1 %v9089_v6, %s9718_s17 }
0x2ab1   :  { %v5913_v37 = vpop.xlane.xlu0 %5912 }
0x2ab2   :  { %9538 = vrcp.f32 %v5913_v37 }
0x2ab5   :  { %v5907_v15 = vpop.xlane.xlu0 %5906  ;;  %v5916_v20 = vpop.xlane.xlu1 %5915 }
0x2ab6   :  { %9540 = vrcp.f32 %v5916_v20 }
0x2ab7   :  { %9542 = vrcp.f32 %v5907_v15 }
0x2ab9   :  { %v5928_v32 = vpop.permute.xlu0 %5927  ;;  %v5910_v41 = vpop.xlane.xlu1 %5909 }
0x2aba   :  { %9544 = vrcp.f32 %v5910_v41  ;;  %8547 = vmatpush3.bf16.msra.mxu0 %v5928_v32 }
0x2abb   :  { %8558 = vmatprep.subr.bf16.mxu0 %v9272_v13 }
0x2abc   :  { %v9539_v46 = vpop.eup %9538 }
0x2abd   :  { %v5975_v38 = vpop.permute.xlu1 %5974  ;;  %v5923_v18 = vmul.f32 %v9539_v46, %v9531_v29 }
0x2abe   :  { %8553 = vmatpush3.bf16.msra.mxu1 %v5975_v38 }
0x2ac0   :  { %v9541_v16 = vpop.eup %9540 }
0x2ac1   :  { %v9543_v36 = vpop.eup %9542  ;;  %v5924_v4 = vmul.f32 %v9541_v16, %v9535_v7  ;;  %v9076_v34 = vpop.permute.xlu1 %9075 }
0x2ac2   :  { %v5921_v24 = vmul.f32 %v9543_v36, %v9533_v17  ;;  %v9078_v14 = vunpack.i.h.bf16 %v9076_v34  ;;  %v9077_v31 = vunpack.i.l.bf16 %v9076_v34  ;;  %v9086_v17 = vpop.permute.xlu0 %9085  ;;  %v9294_v34 = vld [vmem:[#allocation8 + $0x644] ss:$8 sps:$4 sm:$0xff]  }
0x2ac3   :  { %v5926_v61 = vpack.c.bf16 %v5924_v4, %v5923_v18  ;;  %v9088_v41 = vunpack.i.h.bf16 %v9086_v17  ;;  %v9087_v38 = vunpack.i.l.bf16 %v9086_v17  ;;  %v9305_v17 = vld [vmem:[#allocation8 + $0x680] ss:$8 sps:$4 sm:$0xff]  }
0x2ac4   :  { %v9545_v60 = vpop.eup %9544  ;;  %v6070_v37 = vsel %vm1017_vm2, %v10618_v5, %v9078_v14  ;;  %v6069_v15 = vsel %vm1017_vm2, %v10616_v43, %v9077_v31  ;;  %v9298_v14 = vld [vmem:[#allocation8 + $0x660] ss:$8 sps:$4 sm:$0xff]   ;;  %v9303_v31 = vld [vmem:[#allocation8 + $0x674] ss:$8 sps:$4 sm:$0xff]  }
0x2ac5   :  { %v5922_v6 = vmul.f32 %v9545_v60, %v9537_v52  ;;  %8555 = vmatmul.mubr.msk.bf16.vlgmr.msra.gmra.mrb[152].mxu1 %vm1120_vm4, %v5926_v61  ;;  %v9081_v56 = vpop.permute.xlu1 %9080  ;;  %v6073_v4 = vsel %vm2063_vm5, %v6069_v15, %v9087_v38  ;;  %v6074_v5 = vsel %vm2063_vm5, %v6070_v37, %v9088_v41  ;;  %v9311_v37 = vld [vmem:[#allocation8 + $0x6b0] ss:$8 sps:$4 sm:$0xff]   ;;  %v9312_v15 = vld [vmem:[#allocation8 + $0x740] ss:$8 sps:$4 sm:$0xff]  }
0x2ac6   :  { %6406 = vmatprep.mubr.bf16.mxu1 %v9720_v2  ;;  %v9083_v58 = vunpack.i.h.bf16 %v9081_v56  ;;  %v9082_v59 = vunpack.i.l.bf16 %v9081_v56  ;;  %v9292_v56 = vld [vmem:[#allocation8 + $0x640] ss:$8 sps:$4 sm:$0xff]  }
0x2ac7   :  { %v5925_v62 = vpack.c.bf16 %v5922_v6, %v5921_v24  ;;  %v6099_v24 = vld [vmem:[#allocation5 + $0x41] ss:$0 sm:$0xff] }
0x2ac8   :  { %v6072_v47 = vsel %vm1017_vm2, %v10614_v35, %v9083_v58  ;;  %v6071_v25 = vsel %vm1017_vm2, %v10612_v45, %v9082_v59  ;;  %v9295_v58 = vld [vmem:[#allocation8 + $0x650] ss:$8 sps:$4 sm:$0xff]   ;;  %v9300_v59 = vld [vmem:[#allocation8 + $0x664] ss:$8 sps:$4 sm:$0xff]  }
0x2ac9   :  { %8549 = vmatmul.mubr.msk.bf16.vlgmr.msra.gmra.mrb[124].mxu0 %vm1120_vm4, %v5925_v62  ;;  %v9091_v57 = vpop.permute.xlu1 %9090 }
0x2aca   :  { %8559 = vmatpush3.bf16.msra.mxu0 %v9272_v13  ;;  %v9093_v29 = vunpack.i.h.bf16 %v9091_v57  ;;  %v9092_v12 = vunpack.i.l.bf16 %v9091_v57  ;;  %v9297_v57 = vld [vmem:[#allocation8 + $0x654] ss:$8 sps:$4 sm:$0xff]  }
0x2acb   :  { %8560 = vmatprep.subr.bf16.mxu0 %v9273_v10 }
0x2acc   :  { %v6075_v20 = vsel %vm2063_vm5, %v6071_v25, %v9092_v12  ;;  %v6076_v32 = vsel %vm2063_vm5, %v6072_v47, %v9093_v29  ;;  %v9301_v29 = vld [vmem:[#allocation8 + $0x670] ss:$8 sps:$4 sm:$0xff]   ;;  %v9304_v12 = vld [vmem:[#allocation8 + $0x700] ss:$8 sps:$4 sm:$0xff]  }
0x2acd   :  { %v9307_v47 = vld [vmem:[#allocation8 + $0x690] ss:$8 sps:$4 sm:$0xff]   ;;  %v9308_v25 = vld [vmem:[#allocation8 + $0x720] ss:$8 sps:$4 sm:$0xff]  }
0x2ace   :  { %8561 = vmatpush3.bf16.msra.mxu0 %v9273_v10 }
0x2acf   :  { %8562 = vmatprep.subr.bf16.mxu0 %v9274_v54 }
0x2ad2   :  { %8563 = vmatpush3.bf16.msra.mxu0 %v9274_v54 }
0x2ad3   :  { %8564 = vmatprep.subr.bf16.mxu0 %v9275_v19 }
0x2ad6   :  { %8565 = vmatpush3.bf16.msra.mxu0 %v9275_v19 }
0x2ad7   :  { %8566 = vmatprep.subr.bf16.mxu0 %v9276_v48 }
0x2ada   :  { %8567 = vmatpush3.bf16.msra.mxu0 %v9276_v48 }
0x2adb   :  { %8568 = vmatprep.subr.bf16.mxu0 %v9277_v8 }
0x2ade   :  { %8569 = vmatpush3.bf16.msra.mxu0 %v9277_v8 }
0x2adf   :  { %8570 = vmatprep.subr.bf16.mxu0 %v9278_v39 }
0x2ae2   :  { %8571 = vmatpush3.bf16.msra.mxu0 %v9278_v39 }
0x2ae3   :  { %8572 = vmatprep.subr.bf16.mxu0 %v9279_v63 }
0x2ae6   :  { %8573 = vmatpush3.bf16.msra.mxu0 %v9279_v63 }
0x2ae7   :  { %7735 = vmatprep.subr.bf16.mxu0 %v9304_v12 }
0x2b98   :  { %v6014_v23 = vpop.f32.mrb[152].mxu1 }
0x2b99   :  { %v8556_v44 = vpop.f32.mrb[153].mxu1 }
0x2b9a   :  { %v6017_v9 = vpop.f32.mrb[154].mxu1 }
0x2b9b   :  { %v9099_v50 = vpack.i.bf16 %v6017_v9, %v6014_v23  ;;  %v8557_v11 = vpop.f32.mrb[155].mxu1 }
0x2b9c   :  { %v5967_v51 = vpop.f32.mrb[124].mxu0  ;;  %v9280_v11 = vld [vmem:[#allocation8 + $0x600] ss:$8 sps:$4 sm:$0xff]  }
0x2b9d   :  { %v8550_v42 = vpop.f32.mrb[125].mxu0  ;;  %9100 = vrot.lane.b32.xlu1 %v9099_v50, %s9717_s3  ;;  %v9282_v50 = vld [vmem:[#allocation8 + $0x604] ss:$8 sps:$4 sm:$0xff]  }
0x2b9e   :  { %v5970_v53 = vpop.f32.mrb[126].mxu0  ;;  %6374 = vmatprep.subr.bf16.mxu1 %v9282_v50  ;;  %v9283_v42 = vld [vmem:[#allocation8 + $0x610] ss:$8 sps:$4 sm:$0xff]  }
0x2b9f   :  { %v9094_v55 = vpack.i.bf16 %v5970_v53, %v5967_v51  ;;  %v8551_v40 = vpop.f32.mrb[127].mxu0  ;;  %6375 = vmatpush1.bf16.msra.mxu1 %v9280_v11  ;;  %v9285_v51 = vld [vmem:[#allocation8 + $0x614] ss:$8 sps:$4 sm:$0xff]   ;;  %v9288_v53 = vld [vmem:[#allocation8 + $0x624] ss:$8 sps:$4 sm:$0xff]  }
0x2ba0   :  { %6376 = vmatprep.subr.bf16.mxu1 %v9285_v51  ;;  %v9289_v40 = vld [vmem:[#allocation8 + $0x630] ss:$8 sps:$4 sm:$0xff]  }
0x2ba1   :  { %9095 = vrot.lane.b32.xlu0 %v9094_v55, %s9717_s3  ;;  %v9286_v55 = vld [vmem:[#allocation8 + $0x620] ss:$8 sps:$4 sm:$0xff]  }
0x2ba3   :  { %6377 = vmatpush1.bf16.msra.mxu1 %v9283_v42 }
0x2ba4   :  { %6378 = vmatprep.subr.bf16.mxu1 %v9288_v53 }
0x2ba7   :  { %6379 = vmatpush1.bf16.msra.mxu1 %v9286_v55  ;;  %v6201_v55 = vld [vmem:[#allocation5 + $0x42] ss:$0 sm:$0xff] }
0x2c0f   :  { %v9101_v7 = vpop.permute.xlu1 %9100 }
0x2c10   :  { %v9103_v52 = vunpack.i.h.bf16 %v9101_v7  ;;  %v9102_v22 = vunpack.i.l.bf16 %v9101_v7  ;;  %v9306_v7 = vld [vmem:[#allocation8 + $0x710] ss:$8 sps:$4 sm:$0xff]  }
0x2c12   :  { %v6079_v46 = vsel %vm2068_vm6, %v6075_v20, %v9102_v22  ;;  %v6080_v35 = vsel %vm2068_vm6, %v6076_v32, %v9103_v52  ;;  %v9309_v52 = vld [vmem:[#allocation8 + $0x6a0] ss:$8 sps:$4 sm:$0xff]   ;;  %v9310_v22 = vld [vmem:[#allocation8 + $0x730] ss:$8 sps:$4 sm:$0xff]  }
0x2c13   :  { %v9096_v16 = vpop.permute.xlu0 %9095  ;;  %v6082_v45 = vpack.c.bf16 %v6080_v35, %v6079_v46  ;;  %v9313_v20 = vld [vmem:[#allocation8 + $0x6c0] ss:$8 sps:$4 sm:$0xff]   ;;  %v9314_v32 = vld [vmem:[#allocation8 + $0x750] ss:$8 sps:$4 sm:$0xff]  }
0x2c14   :  { %v9098_v36 = vunpack.i.h.bf16 %v9096_v16  ;;  %v9097_v18 = vunpack.i.l.bf16 %v9096_v16 }
0x2c16   :  { %v6077_v43 = vsel %vm2068_vm6, %v6073_v4, %v9097_v18  ;;  %v6078_v60 = vsel %vm2068_vm6, %v6074_v5, %v9098_v36 }
0x2c17   :  { %v6081_v61 = vpack.c.bf16 %v6078_v60, %v6077_v43 }
0x2c19   :  { %8574 = vmatprep.mubr.bf16.mxu0 %v6081_v61 }
0x2c1a   :  { %8575 = vmatmul.mubr.bf16.vlgmr.msra.gmra.mrb[128].mxu0 %v6082_v45 }
0x2c1b   :  { %7736 = vmatpush3.bf16.msra.mxu0 %v9305_v17 }
0x2c1c   :  { %7737 = vmatprep.subr.bf16.mxu0 %v9306_v7 }
0x2c1f   :  { %7738 = vmatpush3.bf16.msra.mxu0 %v9307_v47 }
0x2c20   :  { %7739 = vmatprep.subr.bf16.mxu0 %v9308_v25 }
0x2c23   :  { %7740 = vmatpush3.bf16.msra.mxu0 %v9309_v52 }
0x2c24   :  { %7741 = vmatprep.subr.bf16.mxu0 %v9310_v22 }
0x2c27   :  { %7742 = vmatpush3.bf16.msra.mxu0 %v9311_v37  ;;  %v9315_v37 = vld [vmem:[#allocation8 + $0x6d0] ss:$8 sps:$4 sm:$0xff]  }
0x2c28   :  { %7743 = vmatprep.subr.bf16.mxu0 %v9312_v15  ;;  %v9317_v15 = vld [vmem:[#allocation8 + $0x6e0] ss:$8 sps:$4 sm:$0xff]  }
0x2c2b   :  { %7744 = vmatpush3.bf16.msra.mxu0 %v9313_v20  ;;  %v9318_v20 = vld [vmem:[#allocation8 + $0x770] ss:$8 sps:$4 sm:$0xff]  }
0x2c2c   :  { %7745 = vmatprep.subr.bf16.mxu0 %v9314_v32  ;;  %v9319_v32 = vld [vmem:[#allocation8 + $0x6f0] ss:$8 sps:$4 sm:$0xff]  }
0x2c2f   :  { %7746 = vmatpush3.bf16.msra.mxu0 %v9315_v37 }
0x2ced   :  { %v8576_v6 = vpop.f32.mrb[128].mxu0 }
0x2cee   :  { %v6182_v62 = vpop.f32.mrb[129].mxu0  ;;  %v6191_v44 = vadd.f32 %v8576_v6, %v6099_v24 }
0x2cef   :  { %v6183_v13 = vadd.f32 %v6182_v62, %v6099_v24  ;;  %v8577_v10 = vpop.f32.mrb[130].mxu0 }
0x2cf0   :  { %v6185_v54 = vpop.f32.mrb[131].mxu0  ;;  %v6194_v8 = vadd.f32 %v8577_v10, %v6099_v24  ;;  %v10791_v9 = vadd.f32 %v6191_v44, %v10534_v33  ;;  %v9291_v33 = vld [vmem:[#allocation8 + $0x634] ss:$8 sps:$4 sm:$0xff]  }
0x2cf1   :  { %v10773_v19 = vadd.f32 %v6183_v13, %v10527_v49  ;;  %v6186_v48 = vadd.f32 %v6185_v54, %v6099_v24  ;;  %6380 = vmatprep.subr.bf16.mxu1 %v9291_v33 }
0x2cf2   :  { %v10783_v23 = vadd.f32 %v6194_v8, %v10536_v3  ;;  %v6217_v3 = vmul.f32 %v10791_v9, %v10791_v9  ;;  %6381 = vmatpush1.bf16.msra.mxu1 %v9289_v40 }
0x2cf3   :  { %v10776_v39 = vadd.f32 %v6186_v48, %v10529_v27  ;;  %6203 = vadd.xlane.f32.xlu0 %v10773_v19  ;;  %v6215_v63 = vmul.f32 %v10773_v19, %v10773_v19  ;;  %6382 = vmatprep.subr.bf16.mxu1 %v9294_v34 }
0x2cf4   :  { %v6218_v27 = vmul.f32 %v10783_v23, %v10783_v23 }
0x2cf5   :  { %6205 = vadd.xlane.f32.xlu1 %v10776_v39  ;;  %v6216_v49 = vmul.f32 %v10776_v39, %v10776_v39 }
0x2cf6   :  { %6383 = vmatpush1.bf16.msra.mxu1 %v9292_v56 }
0x2cf7   :  { %6219 = vadd.xlane.f32.xlu0 %v6215_v63  ;;  %6384 = vmatprep.subr.bf16.mxu1 %v9297_v57 }
0x2cf9   :  { %6209 = vadd.xlane.f32.xlu1 %v10783_v23 }
0x2cfa   :  { %6385 = vmatpush1.bf16.msra.mxu1 %v9295_v58  ;;  %v6202_v58 = vld [vmem:[#allocation5 + $0x43] ss:$0 sm:$0xff] }
0x2cfb   :  { %6221 = vadd.xlane.f32.xlu0 %v6216_v49  ;;  %6386 = vmatprep.subr.bf16.mxu1 %v9300_v59 }
0x2cfd   :  { %6225 = vadd.xlane.f32.xlu1 %v6218_v27 }
0x2cfe   :  { %6387 = vmatpush1.bf16.msra.mxu1 %v9298_v14 }
0x2cff   :  { %6207 = vadd.xlane.f32.xlu0 %v10791_v9  ;;  %6388 = vmatprep.subr.bf16.mxu1 %v9303_v31 }
0x2d02   :  { %6389 = vmatpush1.bf16.msra.mxu1 %v9301_v29 }
0x2d03   :  { %6223 = vadd.xlane.f32.xlu0 %v6217_v3 }
0x2d80   :  { %v6204_v41 = vpop.xlane.xlu0 %6203 }
0x2d81   :  { %v6211_v38 = vmul.f32 0.0078125, %v6204_v41 }
0x2d82   :  { %v6206_v46 = vpop.xlane.xlu1 %6205 }
0x2d83   :  { %v6231_v16 = vmul.f32 %v6211_v38, %v6211_v38  ;;  %v6212_v45 = vmul.f32 0.0078125, %v6206_v46  ;;  %v6239_v11 = vsub.f32 %v10773_v19, %v6211_v38 }
0x2d84   :  { %v6220_v35 = vpop.xlane.xlu0 %6219 }
0x2d85   :  { %v6227_v36 = vmul.f32 0.0078125, %v6220_v35  ;;  %v6232_v60 = vmul.f32 %v6212_v45, %v6212_v45  ;;  %v6240_v33 = vsub.f32 %v10776_v39, %v6212_v45 }
0x2d86   :  { %v6210_v18 = vpop.xlane.xlu1 %6209 }
0x2d87   :  { %v6235_v4 = vsub.f32 %v6227_v36, %v6231_v16  ;;  %v6214_v5 = vmul.f32 0.0078125, %v6210_v18 }
0x2d88   :  { %v6222_v43 = vpop.xlane.xlu0 %6221 }
0x2d89   :  { %v6243_v61 = vadd.f32 1e-05, %v6235_v4  ;;  %v6228_v24 = vmul.f32 0.0078125, %v6222_v43  ;;  %v6234_v62 = vmul.f32 %v6214_v5, %v6214_v5  ;;  %v6242_v59 = vsub.f32 %v10783_v23, %v6214_v5 }
0x2d8a   :  { %v6226_v6 = vpop.xlane.xlu1 %6225 }
0x2d8b   :  { %9546 = vrsqrt.f32 %v6243_v61  ;;  %v6236_v13 = vsub.f32 %v6228_v24, %v6232_v60  ;;  %v6230_v10 = vmul.f32 0.0078125, %v6226_v6 }
0x2d8c   :  { %v6208_v54 = vpop.xlane.xlu0 %6207 }
0x2d8d   :  { %v6244_v48 = vadd.f32 1e-05, %v6236_v13  ;;  %v6238_v8 = vsub.f32 %v6230_v10, %v6234_v62  ;;  %v6213_v63 = vmul.f32 0.0078125, %v6208_v54 }
0x2d8f   :  { %9548 = vrsqrt.f32 %v6244_v48  ;;  %v6246_v44 = vadd.f32 1e-05, %v6238_v8  ;;  %v6233_v27 = vmul.f32 %v6213_v63, %v6213_v63  ;;  %v6241_v12 = vsub.f32 %v10791_v9, %v6213_v63  ;;  %v9316_v9 = vld [vmem:[#allocation8 + $0x760] ss:$8 sps:$4 sm:$0xff]  }
0x2d90   :  { %v6224_v49 = vpop.xlane.xlu0 %6223  ;;  %7747 = vmatprep.subr.bf16.mxu0 %v9316_v9 }
0x2d91   :  { %9550 = vrsqrt.f32 %v6246_v44  ;;  %v6229_v3 = vmul.f32 0.0078125, %v6224_v49  ;;  %7748 = vmatpush3.bf16.msra.mxu0 %v9317_v15 }
0x2d92   :  { %7749 = vmatprep.subr.bf16.mxu0 %v9318_v20 }
0x2d93   :  { %v6237_v50 = vsub.f32 %v6229_v3, %v6233_v27 }
0x2d95   :  { %v9547_v51 = vpop.eup %9546  ;;  %v6245_v42 = vadd.f32 1e-05, %v6237_v50  ;;  %7750 = vmatpush3.bf16.msra.mxu0 %v9319_v32 }
0x2d96   :  { %v6251_v53 = vmul.f32 %v9547_v51, %v6239_v11  ;;  %v6683_v51 = vld [vmem:[#allocation7 + $0x310] sm:$0xff] }
0x2d97   :  { %9552 = vrsqrt.f32 %v6245_v42  ;;  %v6684_v42 = vld [vmem:[#allocation7 + $0x318] sm:$0xff] }
0x2d98   :  { %v6255_v56 = vmul.f32 %v6251_v53, %v6201_v55  ;;  %v8871_v53 = vpack.c.bf16 %v6684_v42, %v6683_v51  ;;  %v6813_v42 = vld [vmem:[#allocation7 + $0x450] sm:$0xff] }
0x2d99   :  { %v9549_v40 = vpop.eup %9548 }
0x2d9a   :  { %v6252_v34 = vmul.f32 %v9549_v40, %v6240_v33  ;;  %v10799_v31 = vadd.f32 %v6255_v56, %v6202_v58  ;;  %8872 = vmatprep.subr.bf16.mxu1 %v8871_v53  ;;  %v6471_v33 = vld [vmem:[#allocation5 + $0x45] ss:$0 sm:$0xff] }
0x2d9b   :  { %v9551_v57 = vpop.eup %9550 }
0x2d9c   :  { %v6256_v14 = vmul.f32 %v6252_v34, %v6201_v55  ;;  %v6254_v19 = vmul.f32 %v9551_v57, %v6242_v59 }
0x2d9e   :  { %v10801_v29 = vadd.f32 %v6256_v14, %v6202_v58  ;;  %v6258_v47 = vmul.f32 %v6254_v19, %v6201_v55 }
0x2da0   :  { %v6263_v17 = vpack.c.bf16 %v10801_v29, %v10799_v31  ;;  %v10809_v23 = vadd.f32 %v6258_v47, %v6202_v58 }
0x2da1   :  { %v9553_v7 = vpop.eup %9552 }
0x2da2   :  { %6407 = vmatmul.mubr.bf16.vlgmr.msra.gmra.mrb[156].mxu1 %v6263_v17  ;;  %v6253_v39 = vmul.f32 %v9553_v7, %v6241_v12 }
0x2da3   :  { %6416 = vmatprep.mubr.bf16.mxu1 %v9720_v2  ;;  %v6282_v2 = vld [vmem:[#allocation5 + $0x44] ss:$8 sm:$0x3]  ;;  %8874 = vmatpush3.bf16.msra.mxu1 %v8871_v53 }
0x2da4   :  { %v6257_v25 = vmul.f32 %v6253_v39, %v6201_v55  ;;  %v6287_v41 = vrot.slane %v6282_v2, %v9884_v30  ;;  %v6291_v38 = vrot.slane %v6282_v2, %v10173_v21  ;;  %v6814_v53 = vld [vmem:[#allocation7 + $0x458] sm:$0xff] }
0x2da6   :  { %v10807_v52 = vadd.f32 %v6257_v25, %v6202_v58 }
0x2da8   :  { %v6264_v22 = vpack.c.bf16 %v10809_v23, %v10807_v52 }
0x2daa   :  { %6417 = vmatmul.mubr.bf16.gmra.mrb[160].mxu1 %v6264_v22 }
0x2e75   :  { %v6408_v46 = vpop.f32.mrb[156].mxu1 }
0x2e76   :  { %v6409_v35 = vadd.f32 %v6408_v46, %v6287_v41  ;;  %v6410_v16 = vpop.f32.mrb[157].mxu1 }
0x2e77   :  { %v6411_v45 = vadd.f32 %v6410_v16, %v6291_v38  ;;  %v6412_v36 = vpop.f32.mrb[158].mxu1 }
0x2e78   :  { %v6413_v18 = vadd.f32 %v6412_v36, %v6287_v41  ;;  %v6414_v4 = vpop.f32.mrb[159].mxu1  ;;  %v6427_v43 = vmax.f32 %v6409_v35, 0.0  ;;  %v6688_v35 = vld [vmem:[#allocation7 + $0x338] sm:$0xff] }
0x2e79   :  { %v6415_v5 = vadd.f32 %v6414_v4, %v6291_v38  ;;  %v6428_v61 = vmax.f32 %v6411_v45, 0.0  ;;  %v6690_v45 = vld [vmem:[#allocation7 + $0x348] sm:$0xff]  ;;  %v6692_v4 = vld [vmem:[#allocation7 + $0x358] sm:$0xff] }
0x2e7a   :  { %v6429_v60 = vmax.f32 %v6413_v18, 0.0  ;;  %v6691_v18 = vld [vmem:[#allocation7 + $0x350] sm:$0xff] }
0x2e7b   :  { %v6430_v24 = vmax.f32 %v6415_v5, 0.0  ;;  %v8887_v5 = vpack.c.bf16 %v6692_v4, %v6691_v18 }
0x2e7c   :  { %v6435_v6 = vpack.c.bf16 %v6429_v60, %v6427_v43  ;;  %v6693_v43 = vld [vmem:[#allocation7 + $0x360] sm:$0xff]  ;;  %v6694_v60 = vld [vmem:[#allocation7 + $0x368] sm:$0xff] }
0x2e7d   :  { %v6436_v62 = vpack.c.bf16 %v6430_v24, %v6428_v61  ;;  %v6418_v13 = vpop.f32.mrb[160].mxu1  ;;  %v8891_v61 = vpack.c.bf16 %v6694_v60, %v6693_v43  ;;  %v6695_v24 = vld [vmem:[#allocation7 + $0x370] sm:$0xff] }
0x2e7e   :  { %v6419_v10 = vadd.f32 %v6418_v13, %v6287_v41  ;;  %v6420_v54 = vpop.f32.mrb[161].mxu1  ;;  %v6697_v13 = vld [vmem:[#allocation7 + $0x380] sm:$0xff] }
0x2e7f   :  { %v6421_v30 = vadd.f32 %v6420_v54, %v6291_v38  ;;  %v6422_v48 = vpop.f32.mrb[162].mxu1  ;;  %6600 = vmatprep.mubr.bf16.mxu0 %v6436_v62 }
0x2e80   :  { %v6423_v21 = vadd.f32 %v6422_v48, %v6287_v41  ;;  %v6424_v8 = vpop.f32.mrb[163].mxu1  ;;  %6601 = vmatmul.mubr.bf16.vlgmr.msra.gmra.mrb[132].mxu0 %v6435_v6  ;;  %v6431_v44 = vmax.f32 %v6419_v10, 0.0  ;;  %v6685_v41 = vld [vmem:[#allocation7 + $0x320] sm:$0xff]  ;;  %v6696_v6 = vld [vmem:[#allocation7 + $0x378] sm:$0xff]  ;;  %v6698_v10 = vld [vmem:[#allocation7 + $0x388] sm:$0xff] }
0x2e81   :  { %v6425_v63 = vadd.f32 %v6424_v8, %v6291_v38  ;;  %v6432_v27 = vmax.f32 %v6421_v30, 0.0  ;;  %v6686_v38 = vld [vmem:[#allocation7 + $0x328] sm:$0xff]  ;;  %v8895_v62 = vpack.c.bf16 %v6696_v6, %v6695_v24  ;;  %v8899_v54 = vpack.c.bf16 %v6698_v10, %v6697_v13  ;;  %v6805_v30 = vld [vmem:[#allocation7 + $0x410] sm:$0xff]  ;;  %v6806_v48 = vld [vmem:[#allocation7 + $0x418] sm:$0xff] }
0x2e82   :  { %v6433_v49 = vmax.f32 %v6423_v21, 0.0  ;;  %v8875_v46 = vpack.c.bf16 %v6686_v38, %v6685_v41  ;;  %v6807_v21 = vld [vmem:[#allocation7 + $0x420] sm:$0xff]  ;;  %v8903_v8 = vpack.c.bf16 %v6806_v48, %v6805_v30  ;;  %v6621_v6 = vld [vmem:[#allocation5 + $0x46] ss:$0 sm:$0xff] }
0x2e83   :  { %v6434_v3 = vmax.f32 %v6425_v63, 0.0  ;;  %v6808_v63 = vld [vmem:[#allocation7 + $0x428] sm:$0xff] }
0x2e84   :  { %v6437_v50 = vpack.c.bf16 %v6433_v49, %v6431_v44  ;;  %8876 = vmatprep.subr.bf16.mxu1 %v8875_v46  ;;  %v8907_v44 = vpack.c.bf16 %v6808_v63, %v6807_v21  ;;  %v6809_v49 = vld [vmem:[#allocation7 + $0x430] sm:$0xff]  ;;  %8904 = vmatprep.subr.bf16.mxu0 %v8903_v8 }
0x2e85   :  { %v6438_v11 = vpack.c.bf16 %v6434_v3, %v6432_v27  ;;  %8878 = vmatpush3.bf16.msra.mxu1 %v8875_v46  ;;  %v6810_v27 = vld [vmem:[#allocation7 + $0x438] sm:$0xff]  ;;  %8906 = vmatpush3.bf16.msra.mxu0 %v8903_v8  ;;  %v7000_v21 = vld [vmem:[#allocation7 + $0x490] sm:$0xff] }
0x2e86   :  { %8908 = vmatprep.subr.bf16.mxu0 %v8907_v44  ;;  %v8911_v3 = vpack.c.bf16 %v6810_v27, %v6809_v49  ;;  %v7001_v8 = vld [vmem:[#allocation7 + $0x498] sm:$0xff] }
0x2e87   :  { %6608 = vmatprep.mubr.bf16.mxu0 %v6438_v11  ;;  %v6812_v11 = vld [vmem:[#allocation7 + $0x448] sm:$0xff]  ;;  %v8968_v49 = vpack.c.bf16 %v7001_v8, %v7000_v21  ;;  %v6797_v8 = vld [vmem:[#allocation7 + $0x3d0] sm:$0xff] }
0x2e88   :  { %6609 = vmatmul.mubr.bf16.gmra.mrb[136].mxu0 %v6437_v50  ;;  %v6811_v50 = vld [vmem:[#allocation7 + $0x440] sm:$0xff] }
0x2e89   :  { %8910 = vmatpush3.bf16.msra.mxu0 %v8907_v44  ;;  %v8915_v51 = vpack.c.bf16 %v6812_v11, %v6811_v50  ;;  %v7003_v50 = vld [vmem:[#allocation7 + $0x4a8] sm:$0xff] }
0x2e8a   :  { %8912 = vmatprep.subr.bf16.mxu0 %v8911_v3 }
0x2e8d   :  { %8914 = vmatpush3.bf16.msra.mxu0 %v8911_v3  ;;  %v7002_v3 = vld [vmem:[#allocation7 + $0x4a0] sm:$0xff] }
0x2e8e   :  { %8916 = vmatprep.subr.bf16.mxu0 %v8915_v51 }
0x2e91   :  { %8918 = vmatpush3.bf16.msra.mxu0 %v8915_v51 }
0x2f53   :  { %v7751_v55 = vpop.f32.mrb[132].mxu0 }
0x2f54   :  { %v7752_v40 = vpop.f32.mrb[133].mxu0 }
0x2f55   :  { %v7753_v34 = vadd.f32 %v7752_v40, %v7751_v55  ;;  %v7754_v56 = vpop.f32.mrb[134].mxu0  ;;  %v8919_v55 = vpack.c.bf16 %v6814_v53, %v6813_v42  ;;  %v6816_v40 = vld [vmem:[#allocation7 + $0x468] sm:$0xff]  ;;  %v8971_v53 = vpack.c.bf16 %v7003_v50, %v7002_v3 }
0x2f56   :  { %v7755_v57 = vpop.f32.mrb[135].mxu0  ;;  %v6800_v3 = vld [vmem:[#allocation7 + $0x3e8] sm:$0xff] }
0x2f57   :  { %v6603_v58 = vadd.f32 %v7753_v34, %v6471_v33  ;;  %v7756_v59 = vadd.f32 %v7755_v57, %v7754_v56  ;;  %8920 = vmatprep.subr.bf16.mxu0 %v8919_v55  ;;  %v6817_v56 = vld [vmem:[#allocation7 + $0x470] sm:$0xff]  ;;  %v6818_v57 = vld [vmem:[#allocation7 + $0x478] sm:$0xff] }
0x2f58   :  { %8922 = vmatpush3.bf16.msra.mxu0 %v8919_v55 }
0x2f59   :  { %v6606_v14 = vadd.f32 %v7756_v59, %v6471_v33  ;;  %v10816_v19 = vadd.f32 %v6603_v58, %v10799_v31  ;;  %v8927_v58 = vpack.c.bf16 %v6818_v57, %v6817_v56 }
0x2f5b   :  { %6623 = vadd.xlane.f32.xlu0 %v10816_v19  ;;  %v7757_v12 = vpop.f32.mrb[136].mxu0  ;;  %v10820_v17 = vadd.f32 %v6606_v14, %v10801_v29  ;;  %v6635_v25 = vmul.f32 %v10816_v19, %v10816_v19 }
0x2f5c   :  { %v7758_v7 = vpop.f32.mrb[137].mxu0 }
0x2f5d   :  { %v7759_v39 = vadd.f32 %v7758_v7, %v7757_v12  ;;  %6625 = vadd.xlane.f32.xlu1 %v10820_v17  ;;  %v7760_v47 = vpop.f32.mrb[138].mxu0  ;;  %v6636_v31 = vmul.f32 %v10820_v17, %v10820_v17 }
0x2f5e   :  { %v7761_v22 = vpop.f32.mrb[139].mxu0 }
0x2f5f   :  { %v6611_v37 = vadd.f32 %v7759_v39, %v6471_v33  ;;  %v7762_v9 = vadd.f32 %v7761_v22, %v7760_v47  ;;  %6639 = vadd.xlane.f32.xlu0 %v6635_v25 }
0x2f61   :  { %v6614_v15 = vadd.f32 %v7762_v9, %v6471_v33  ;;  %6641 = vadd.xlane.f32.xlu1 %v6636_v31  ;;  %v10828_v29 = vadd.f32 %v6611_v37, %v10807_v52  ;;  %v6687_v52 = vld [vmem:[#allocation7 + $0x330] sm:$0xff]  ;;  %v6815_v33 = vld [vmem:[#allocation7 + $0x460] sm:$0xff] }
0x2f62   :  { %v8879_v16 = vpack.c.bf16 %v6688_v35, %v6687_v52  ;;  %v8923_v34 = vpack.c.bf16 %v6816_v40, %v6815_v33  ;;  %v7005_v40 = vld [vmem:[#allocation7 + $0x4b8] sm:$0xff] }
0x2f63   :  { %6627 = vadd.xlane.f32.xlu0 %v10828_v29  ;;  %v10832_v20 = vadd.f32 %v6614_v15, %v10809_v23  ;;  %v6637_v32 = vmul.f32 %v10828_v29, %v10828_v29  ;;  %v6689_v23 = vld [vmem:[#allocation7 + $0x340] sm:$0xff] }
0x2f64   :  { %8880 = vmatprep.subr.bf16.mxu1 %v8879_v16  ;;  %v8883_v36 = vpack.c.bf16 %v6690_v45, %v6689_v23  ;;  %8924 = vmatprep.subr.bf16.mxu0 %v8923_v34 }
0x2f65   :  { %6629 = vadd.xlane.f32.xlu1 %v10832_v20  ;;  %v6638_v2 = vmul.f32 %v10832_v20, %v10832_v20  ;;  %8882 = vmatpush3.bf16.msra.mxu1 %v8879_v16 }
0x2f66   :  { %8884 = vmatprep.subr.bf16.mxu1 %v8883_v36  ;;  %8926 = vmatpush3.bf16.msra.mxu0 %v8923_v34 }
0x2f67   :  { %6643 = vadd.xlane.f32.xlu0 %v6637_v32  ;;  %8928 = vmatprep.subr.bf16.mxu0 %v8927_v58 }
0x2f69   :  { %6645 = vadd.xlane.f32.xlu1 %v6638_v2  ;;  %8886 = vmatpush3.bf16.msra.mxu1 %v8883_v36 }
0x2f6a   :  { %8888 = vmatprep.subr.bf16.mxu1 %v8887_v5  ;;  %8930 = vmatpush3.bf16.msra.mxu0 %v8927_v58  ;;  %v7006_v58 = vld [vmem:[#allocation7 + $0x4c0] sm:$0xff] }
0x2f6d   :  { %8890 = vmatpush3.bf16.msra.mxu1 %v8887_v5 }
0x2f6e   :  { %8892 = vmatprep.subr.bf16.mxu1 %v8891_v61 }
0x2f71   :  { %8894 = vmatpush3.bf16.msra.mxu1 %v8891_v61 }
0x2f72   :  { %8896 = vmatprep.subr.bf16.mxu1 %v8895_v62 }
0x2f75   :  { %8898 = vmatpush3.bf16.msra.mxu1 %v8895_v62 }
0x2f76   :  { %8900 = vmatprep.subr.bf16.mxu1 %v8899_v54 }
0x2f79   :  { %8902 = vmatpush3.bf16.msra.mxu1 %v8899_v54  ;;  %v6622_v54 = vld [vmem:[#allocation5 + $0x47] ss:$0 sm:$0xff] }
0x2f7a   :  { %8967 = vmatprep.subr.bf16.mxu1 %v9712_v0 }
0x2fe8   :  { %v6624_v59 = vpop.xlane.xlu0 %6623 }
0x2fe9   :  { %v6631_v14 = vmul.f32 0.0078125, %v6624_v59  ;;  %v7007_v59 = vld [vmem:[#allocation7 + $0x4c8] sm:$0xff] }
0x2fea   :  { %v6626_v12 = vpop.xlane.xlu1 %6625 }
0x2feb   :  { %v6632_v7 = vmul.f32 0.0078125, %v6626_v12  ;;  %v6651_v47 = vmul.f32 %v6631_v14, %v6631_v14  ;;  %v6659_v61 = vsub.f32 %v10816_v19, %v6631_v14  ;;  %v8977_v14 = vpack.c.bf16 %v7007_v59, %v7006_v58  ;;  %v7008_v12 = vld [vmem:[#allocation7 + $0x4d0] sm:$0xff] }
0x2fec   :  { %v6640_v39 = vpop.xlane.xlu0 %6639 }
0x2fed   :  { %v6647_v25 = vmul.f32 0.0078125, %v6640_v39  ;;  %v6652_v37 = vmul.f32 %v6632_v7, %v6632_v7  ;;  %v6660_v62 = vsub.f32 %v10820_v17, %v6632_v7  ;;  %v7009_v7 = vld [vmem:[#allocation7 + $0x4d8] sm:$0xff] }
0x2fee   :  { %v6642_v22 = vpop.xlane.xlu1 %6641  ;;  %v8980_v39 = vpack.c.bf16 %v7009_v7, %v7008_v12 }
0x2fef   :  { %v6655_v9 = vsub.f32 %v6647_v25, %v6651_v47  ;;  %v6648_v31 = vmul.f32 0.0078125, %v6642_v22  ;;  %v7010_v47 = vld [vmem:[#allocation7 + $0x4e0] sm:$0xff]  ;;  %v7011_v25 = vld [vmem:[#allocation7 + $0x4e8] sm:$0xff] }
0x2ff0   :  { %v6628_v15 = vpop.xlane.xlu0 %6627  ;;  %v8983_v22 = vpack.c.bf16 %v7011_v25, %v7010_v47 }
0x2ff1   :  { %v6663_v32 = vadd.f32 1e-05, %v6655_v9  ;;  %v6656_v2 = vsub.f32 %v6648_v31, %v6652_v37  ;;  %v6633_v41 = vmul.f32 0.0078125, %v6628_v15  ;;  %v7012_v37 = vld [vmem:[#allocation7 + $0x4f0] sm:$0xff]  ;;  %v7013_v9 = vld [vmem:[#allocation7 + $0x4f8] sm:$0xff]  ;;  %v7015_v15 = vld [vmem:[#allocation7 + $0x508] sm:$0xff] }
0x2ff2   :  { %v6630_v38 = vpop.xlane.xlu1 %6629  ;;  %v8986_v31 = vpack.c.bf16 %v7013_v9, %v7012_v37 }
0x2ff3   :  { %9554 = vrsqrt.f32 %v6663_v32  ;;  %v6664_v46 = vadd.f32 1e-05, %v6656_v2  ;;  %v6634_v52 = vmul.f32 0.0078125, %v6630_v38  ;;  %v6653_v16 = vmul.f32 %v6633_v41, %v6633_v41  ;;  %v6819_v2 = vld [vmem:[#allocation7 + $0x480] sm:$0xff] }
0x2ff4   :  { %v6644_v35 = vpop.xlane.xlu0 %6643  ;;  %v6661_v27 = vsub.f32 %v10828_v29, %v6633_v41  ;;  %v7004_v29 = vld [vmem:[#allocation7 + $0x4b0] sm:$0xff]  ;;  %v6820_v41 = vld [vmem:[#allocation7 + $0x488] sm:$0xff] }
0x2ff5   :  { %9556 = vrsqrt.f32 %v6664_v46  ;;  %v6649_v23 = vmul.f32 0.0078125, %v6644_v35  ;;  %v6654_v36 = vmul.f32 %v6634_v52, %v6634_v52  ;;  %v6662_v11 = vsub.f32 %v10832_v20, %v6634_v52  ;;  %v6789_v46 = vld [vmem:[#allocation7 + $0x390] sm:$0xff]  ;;  %v6790_v52 = vld [vmem:[#allocation7 + $0x398] sm:$0xff] }
0x2ff6   :  { %v6646_v45 = vpop.xlane.xlu1 %6645  ;;  %v8974_v57 = vpack.c.bf16 %v7005_v40, %v7004_v29  ;;  %v8931_v38 = vpack.c.bf16 %v6820_v41, %v6819_v2  ;;  %v8935_v35 = vpack.c.bf16 %v6790_v52, %v6789_v46 }
0x2ff7   :  { %v6657_v18 = vsub.f32 %v6649_v23, %v6653_v16  ;;  %v6650_v4 = vmul.f32 0.0078125, %v6646_v45  ;;  %v6699_v16 = vld [vmem:[#allocation5 + $0x7] ss:$0 sm:$0xff] }
0x2ff8   :  { %8932 = vmatprep.subr.bf16.mxu0 %v8931_v38 }
0x2ff9   :  { %v6665_v5 = vadd.f32 1e-05, %v6657_v18  ;;  %v6658_v43 = vsub.f32 %v6650_v4, %v6654_v36  ;;  %8934 = vmatpush3.bf16.msra.mxu0 %v8931_v38  ;;  %v6791_v4 = vld [vmem:[#allocation7 + $0x3a0] sm:$0xff] }
0x2ffa   :  { %8936 = vmatprep.subr.bf16.mxu0 %v8935_v35 }
0x2ffb   :  { %9558 = vrsqrt.f32 %v6665_v5  ;;  %v6666_v60 = vadd.f32 1e-05, %v6658_v43 }
0x2ffd   :  { %v9555_v24 = vpop.eup %9554  ;;  %9560 = vrsqrt.f32 %v6666_v60  ;;  %v6794_v60 = vld [vmem:[#allocation7 + $0x3b8] sm:$0xff] }
0x2ffe   :  { %v6671_v13 = vmul.f32 %v9555_v24, %v6659_v61 }
0x2fff   :  { %v9557_v10 = vpop.eup %9556 }
0x3000   :  { %v6672_v30 = vmul.f32 %v9557_v10, %v6660_v62  ;;  %v6675_v48 = vmul.f32 %v6671_v13, %v6621_v6  ;;  %v6795_v10 = vld [vmem:[#allocation7 + $0x3c0] sm:$0xff] }
0x3002   :  { %v10842_v63 = vadd.f32 %v6675_v48, %v6622_v54  ;;  %v6676_v44 = vmul.f32 %v6672_v30, %v6621_v6 }
0x3004   :  { %8610 = vmatprep.mubr.f32.mxu1 %v10842_v63  ;;  %v10846_v19 = vadd.f32 %v6676_v44, %v6622_v54  ;;  %v6798_v44 = vld [vmem:[#allocation7 + $0x3d8] sm:$0xff] }
0x3005   :  { %v9559_v17 = vpop.eup %9558 }
0x3006   :  { %8611 = vmatmul.mubr.f32.vlgmr.msra.gmra.mrb[6].mxu1 %v10846_v19  ;;  %v6673_v51 = vmul.f32 %v9559_v17, %v6661_v27  ;;  %v6799_v27 = vld [vmem:[#allocation7 + $0x3e0] sm:$0xff]  ;;  %v6801_v17 = vld [vmem:[#allocation7 + $0x3f0] sm:$0xff] }
0x3007   :  { %v9561_v42 = vpop.eup %9560  ;;  %8969 = vmatpush3.bf16.msra.mxu1 %v8968_v49  ;;  %v8951_v49 = vpack.c.bf16 %v6798_v44, %v6797_v8  ;;  %v8955_v50 = vpack.c.bf16 %v6800_v3, %v6799_v27 }
0x3008   :  { %8970 = vmatprep.subr.bf16.mxu1 %v9712_v0  ;;  %v6677_v55 = vmul.f32 %v6673_v51, %v6621_v6  ;;  %v6674_v33 = vmul.f32 %v9561_v42, %v6662_v11  ;;  %v6802_v11 = vld [vmem:[#allocation7 + $0x3f8] sm:$0xff]  ;;  %v6803_v42 = vld [vmem:[#allocation7 + $0x400] sm:$0xff] }
0x3009   :  { %v8959_v51 = vpack.c.bf16 %v6802_v11, %v6801_v17 }
0x300a   :  { %v10851_v34 = vadd.f32 %v6677_v55, %v6622_v54  ;;  %v6678_v56 = vmul.f32 %v6674_v33, %v6621_v6  ;;  %v7016_v33 = vld [vmem:[#allocation5 + $0x11] ss:$0 sm:$0xff] }
0x300b   :  { %8972 = vmatpush3.bf16.msra.mxu1 %v8971_v53  ;;  %v6804_v53 = vld [vmem:[#allocation7 + $0x408] sm:$0xff] }
0x300c   :  { %8613 = vmatprep.mubr.f32.mxu1 %v10851_v34  ;;  %8973 = vmatprep.subr.bf16.mxu1 %v9712_v0  ;;  %v10855_v20 = vadd.f32 %v6678_v56, %v6622_v54  ;;  %v6796_v54 = vld [vmem:[#allocation7 + $0x3c8] sm:$0xff]  ;;  %v8963_v55 = vpack.c.bf16 %v6804_v53, %v6803_v42 }
0x300d   :  { %v8947_v21 = vpack.c.bf16 %v6796_v54, %v6795_v10 }
0x300e   :  { %8614 = vmatmul.mubr.f32.gmra.mrb[164].mxu1 %v10855_v20 }
0x300f   :  { %8975 = vmatpush3.bf16.msra.mxu1 %v8974_v57  ;;  %8724 = vmatprep.mubr.msk.f32.mxu1 %vm9713_vm0, %v9714_v1  ;;  %v7014_v1 = vld [vmem:[#allocation7 + $0x500] sm:$0xff] }
0x3010   :  { %8976 = vmatprep.subr.bf16.mxu1 %v9712_v0  ;;  %v8989_v32 = vpack.c.bf16 %v7015_v15, %v7014_v1 }
0x3013   :  { %8978 = vmatpush3.bf16.msra.mxu1 %v8977_v14 }
0x3014   :  { %8979 = vmatprep.subr.bf16.mxu1 %v9712_v0 }
0x3017   :  { %8981 = vmatpush3.bf16.msra.mxu1 %v8980_v39 }
0x3018   :  { %8982 = vmatprep.subr.bf16.mxu1 %v9712_v0 }
0x301b   :  { %8984 = vmatpush3.bf16.msra.mxu1 %v8983_v22 }
0x301c   :  { %8985 = vmatprep.subr.bf16.mxu1 %v9712_v0 }
0x301f   :  { %8987 = vmatpush3.bf16.msra.mxu1 %v8986_v31 }
0x3020   :  { %8988 = vmatprep.subr.bf16.mxu1 %v9712_v0  ;;  %v6792_v0 = vld [vmem:[#allocation7 + $0x3a8] sm:$0xff] }
0x3021   :  { %v8939_v26 = vpack.c.bf16 %v6792_v0, %v6791_v4 }
0x3023   :  { %8990 = vmatpush3.bf16.msra.mxu1 %v8989_v32 }
0x3026   :  { %8725 = vmatmul.mubr.f32.vlgmr.msra.gmra.mrb[166].mxu1 %v623_v28  ;;  %v6793_v28 = vld [vmem:[#allocation7 + $0x3b0] sm:$0xff] }
0x3027   :  { %v8943_v62 = vpack.c.bf16 %v6794_v60, %v6793_v28 }
0x30d9   :  { %v8612_v23 = vpop.f32.mrb[6].mxu1 }
0x30da   :  { %v6772_v45 = vadd.f32 %v8612_v23, %v6699_v16  ;;  %v6766_v36 = vpop.f32.mrb[7].mxu1 }
0x30db   :  { %v6767_v18 = vadd.f32 %v6766_v36, %v6699_v16 }
0x30dc   :  { %v6786_v43 = vmax.f32 %v6772_v45, 0.0 }
0x30dd   :  { %v6785_v5 = vmax.f32 %v6767_v18, 0.0 }
0x30df   :  { %8648 = vmatprep.mubr.f32.mxu0 %v6785_v5 }
0x30e0   :  { %8649 = vmatmul.mubr.f32.vlgmr.msra.gmra.mrb[6].mxu0 %v6786_v43 }
0x30e1   :  { %8938 = vmatpush3.bf16.msra.mxu0 %v8935_v35  ;;  %v8615_v61 = vpop.f32.mrb[164].mxu1 }
0x30e2   :  { %v6782_v24 = vadd.f32 %v8615_v61, %v6699_v16  ;;  %v6776_v6 = vpop.f32.mrb[165].mxu1  ;;  %8940 = vmatprep.subr.bf16.mxu0 %v8939_v26 }
0x30e3   :  { %v6777_v13 = vadd.f32 %v6776_v6, %v6699_v16 }
0x30e4   :  { %v6788_v48 = vmax.f32 %v6782_v24, 0.0 }
0x30e5   :  { %v6787_v30 = vmax.f32 %v6777_v13, 0.0  ;;  %8942 = vmatpush3.bf16.msra.mxu0 %v8939_v26 }
0x30e6   :  { %8944 = vmatprep.subr.bf16.mxu0 %v8943_v62 }
0x30e7   :  { %8651 = vmatprep.mubr.f32.mxu0 %v6787_v30 }
0x30e8   :  { %8652 = vmatmul.mubr.f32.gmra.mrb[140].mxu0 %v6788_v48 }
0x30e9   :  { %8946 = vmatpush3.bf16.msra.mxu0 %v8943_v62  ;;  %8686 = vmatprep.mubr.f32.mxu0 %v10842_v63 }
0x30ea   :  { %8948 = vmatprep.subr.bf16.mxu0 %v8947_v21 }
0x30ed   :  { %8950 = vmatpush3.bf16.msra.mxu0 %v8947_v21 }
0x30ee   :  { %8952 = vmatprep.subr.bf16.mxu0 %v8951_v49 }
0x30f1   :  { %8954 = vmatpush3.bf16.msra.mxu0 %v8951_v49 }
0x30f2   :  { %8956 = vmatprep.subr.bf16.mxu0 %v8955_v50 }
0x30f5   :  { %8958 = vmatpush3.bf16.msra.mxu0 %v8955_v50 }
0x30f6   :  { %8960 = vmatprep.subr.bf16.mxu0 %v8959_v51 }
0x30f9   :  { %8962 = vmatpush3.bf16.msra.mxu0 %v8959_v51  ;;  %v7083_v63 = vpop.f32.mrb[166].mxu1 }
0x30fa   :  { %v7084_v29 = vadd.f32 %v7083_v63, %v7016_v33  ;;  %v8726_v40 = vpop.f32.mrb[167].mxu1  ;;  %8964 = vmatprep.subr.bf16.mxu0 %v8963_v55 }
0x30fc   :  { %7087 = vst [vmem:[#allocation11] sm:$0x3] %v7084_v29 }
0x30fd   :  { %8966 = vmatpush3.bf16.msra.mxu0 %v8963_v55 }
0x3100   :  { %8687 = vmatmul.mubr.f32.vlgmr.msra.gmra.mrb[6].mxu0 %v10846_v19 }
0x3101   :  { %8689 = vmatprep.mubr.f32.mxu0 %v10851_v34 }
0x3104   :  { %8690 = vmatmul.mubr.f32.gmra.mrb[140].mxu0 %v10855_v20 }
0x3105   :  { %9661 = shalt.err (!%p9658_p8)
}
0x3106   :  { %s9662_s23 = scalar_lea.hbm %s10903_s5, 32 }
0x3107   :  { %p9663_p9 = scmp.ne.s32.totalorder %s10903_s5, %s9662_s23  ;;  %p9666_p10 = scmp.lt.u32.totalorder %s9662_s23, %s10903_s5 }
0x3109   :  { %p9668_p11 = pnand %p9666_p10, %p9663_p9 }
0x310b   :  { %9671 = shalt.err (!%p9668_p11)
}
0x310c   :  { %7109 = dma.vmem_to_hbm [thread:$0]  %s7107_s19, 32, %s10903_s5, [#allocation12]   ;;  %v6991_v19 = vld [vmem:[#allocation5 + $0x10] ss:$0 sm:$0xff] }
0x310d   :  { %s9722_s6 = smov [#allocation10]  }
0x310e   :  { %s7093_s7 = sshll.u32 %s9722_s6, 4  ;;  %s7094_s7 = int_to_ptr.vmem [resolvable:$true] %s7093_s7 }
0x310f   :  { %s9672_s8 = scalar_lea.vmem %s7094_s7, 512  ;;  %p9677_p13 = scmp.lt.s32.totalorder %s7094_s7, %s7094_s7 }
0x3110   :  { %p9673_p12 = scmp.ne.s32.totalorder %s7094_s7, %s9672_s8  ;;  %p9678_p0 = scmp.lt.s32.totalorder %s9672_s8, %s9672_s8 }
0x3112   :  { %p9679_p1 = por %p9678_p0, %p9677_p13 }
0x3114   :  { %p9680_p2 = pnand %p9679_p1, %p9673_p12 }
0x31d3   :  { %v8688_v34 = vpop.f32.mrb[6].mxu0 }
0x31d4   :  { %v6993_v56 = vadd.f32 %v8688_v34, %v6991_v19  ;;  %v6972_v57 = vpop.f32.mrb[7].mxu0 }
0x31d5   :  { %v6992_v20 = vadd.f32 %v6991_v19, %v6972_v57 }
0x31d6   :  { %6997 = vst [vmem:[#allocation10 + $0x8] sm:$0xff] %v6993_v56 }
0x31d7   :  { %6996 = vst [vmem:[#allocation10] sm:$0xff] %v6992_v20  ;;  %v8691_v58 = vpop.f32.mrb[140].mxu0 }
0x31d8   :  { %v6995_v59 = vadd.f32 %v8691_v58, %v6991_v19  ;;  %v6982_v14 = vpop.f32.mrb[141].mxu0 }
0x31d9   :  { %v6994_v12 = vadd.f32 %v6991_v19, %v6982_v14 }
0x31da   :  { %6999 = vst [vmem:[#allocation10 + $0x18] sm:$0xff] %v6995_v59 }
0x31db   :  { %6998 = vst [vmem:[#allocation10 + $0x10] sm:$0xff] %v6994_v12 }
0x31dc   :  { %9683 = shalt.err (!%p9680_p2)
}
0x31dd   :  { %s9684_s11 = scalar_lea.hbm %s10902_s4, 512 }
0x31de   :  { %p9685_p3 = scmp.ne.s32.totalorder %s10902_s4, %s9684_s11  ;;  %p9688_p4 = scmp.lt.u32.totalorder %s9684_s11, %s10902_s4 }
0x31e0   :  { %p9690_p5 = pnand %p9688_p4, %p9685_p3 }
0x31e2   :  { %9693 = shalt.err (!%p9690_p5)
}
0x31e3   :  { %7099 = dma.vmem_to_hbm [thread:$0]  %s7094_s7, 512, %s10902_s4, [#allocation4], %s9709_s0, %s9709_s0, %s9710_s28  }
0x31e4   :  { %9700 = dma.done.wait [#allocation4], 512  }
0x31e5   :  { %9701 = vsyncadd [#allocation4], 4294966784 }
0x31e6   :  { %9702 = dma.done.wait [#allocation12], 32  }
0x31e7   :  { %9703 = vsyncadd [#allocation12], 4294967264 }
0x31e8   :  { %7116 = vsyncpa [#allocation3], 1 }
0x31e9   :  { %7117 = vsyncpa [#allocation6], 1 }
0x31ea   :  { %7118 = vsyncpa [#allocation9], 1 }
0x31eb   :  { %7119 = vsyncpa [#allocation4], 1 }
0x31ec   :  { %7120 = vsyncpa [#allocation12], 1 }

</bundles_post_ra>
